<compile_context>
chip_gen: v7x
topology: tpu7x:2x2x1
jax: 0.10.0
libtpu: 0.0.40
codegen_flags: <defaults>
</compile_context>

<pallas_src>
import math

import jax
import jax.numpy as jnp
from jax import lax
from jax.experimental import pallas as pl
from jax.experimental.pallas import tpu as pltpu

# ----------------------- model config (small but consistent) -----------------
IMAGE_SIZE = (64, 64)
PATCH = 16
LATENT_DIM = 128
DIM = 128
DEPTH = 2
HEADS = 4
DIM_HEAD = 32
INNER = HEADS * DIM_HEAD            # 128
HP = IMAGE_SIZE[0] // PATCH         # 4
WP = IMAGE_SIZE[1] // PATCH         # 4
NUM_PATCHES = HP * WP               # 16
PATCH_DIM = 1 * PATCH * PATCH       # 256
EPS = 1e-5                          # nn.LayerNorm default
SCALE = 1.0 / math.sqrt(DIM_HEAD)

F32 = jnp.float32
BF16 = jnp.bfloat16


# --------------------------- in-kernel building blocks ------------------------
def _layernorm(x, g, b):
    """Row-wise LayerNorm (biased variance, matching torch) with affine, in f32."""
    mean = jnp.mean(x, axis=-1, keepdims=True)
    var = jnp.mean(jnp.square(x - mean), axis=-1, keepdims=True)
    return (x - mean) * lax.rsqrt(var + EPS) * g + b


def _softmax_last(dots):
    m = jnp.max(dots, axis=-1, keepdims=True)
    p = jnp.exp(dots - m)
    return p * pl.reciprocal(jnp.sum(p, axis=-1, keepdims=True), approx=False)


def _attention(x_ln, w_qkv_ref, w_out_ref, b_tile):
    """Multi-head self-attention on x_ln of shape (b_tile*NUM_PATCHES, DIM)."""
    m_rows = b_tile * NUM_PATCHES
    qkv = jnp.dot(x_ln.astype(BF16), w_qkv_ref[...],
                  preferred_element_type=F32)                       # (M, 3*INNER)
    out = jnp.zeros((m_rows, DIM), F32)
    if b_tile == 1:
        # single image per grid step: plain 2-D per-head attention
        for h in range(HEADS):
            c = h * DIM_HEAD
            q = qkv[:, c:c + DIM_HEAD].astype(BF16)
            k = qkv[:, INNER + c:INNER + c + DIM_HEAD].astype(BF16)
            v = qkv[:, 2 * INNER + c:2 * INNER + c + DIM_HEAD].astype(BF16)
            dots = lax.dot_general(q, k, (((1,), (1,)), ((), ())),
                                   preferred_element_type=F32) * SCALE
            attn = _softmax_last(dots)
            ctx = jnp.dot(attn.astype(BF16), v, preferred_element_type=F32)
            out = out + jnp.dot(ctx.astype(BF16), w_out_ref[c:c + DIM_HEAD, :],
                                preferred_element_type=F32)
    else:
        # several images per grid step: per-image attention via batched dot_general
        qkv3 = qkv.reshape(b_tile, NUM_PATCHES, 3 * INNER)          # leading split only
        for h in range(HEADS):
            c = h * DIM_HEAD
            q = qkv3[:, :, c:c + DIM_HEAD].astype(BF16)
            k = qkv3[:, :, INNER + c:INNER + c + DIM_HEAD].astype(BF16)
            v = qkv3[:, :, 2 * INNER + c:2 * INNER + c + DIM_HEAD].astype(BF16)
            dots = jnp.einsum('bnd,bmd->bnm', q, k,
                              preferred_element_type=F32) * SCALE
            attn = _softmax_last(dots)
            ctx = jnp.einsum('bnm,bmd->bnd', attn.astype(BF16), v,
                             preferred_element_type=F32)            # (b, N, DIM_HEAD)
            ctx2 = ctx.reshape(m_rows, DIM_HEAD)                    # leading merge only
            out = out + jnp.dot(ctx2.astype(BF16), w_out_ref[c:c + DIM_HEAD, :],
                                preferred_element_type=F32)
    return out


def _transformer_block(x, refs, b_tile):
    """Pre-LN transformer block on a (b_tile*NUM_PATCHES, DIM) f32 activation."""
    ln1_g, ln1_b, w_qkv, w_out, ln2_g, ln2_b, w_ff1, w_ff2 = refs
    h = _layernorm(x, ln1_g[...], ln1_b[...])
    x = x + _attention(h, w_qkv, w_out, b_tile)
    h = _layernorm(x, ln2_g[...], ln2_b[...])
    f = jnp.dot(h.astype(BF16), w_ff1[...], preferred_element_type=F32)
    # TODO(synk): nn.GELU() default is exact-erf; tanh-approx GELU used here for
    # guaranteed Mosaic lowering (deviation ~1e-3, below bf16 matmul noise).
    f = jax.nn.gelu(f, approximate=True)
    return x + jnp.dot(f.astype(BF16), w_ff2[...], preferred_element_type=F32)


# ------------------------------- fused kernel ---------------------------------
def _make_fused_kernel(b_tile):
    m_rows = b_tile * NUM_PATCHES

    def kernel(*refs):
        i = 0
        patches_ref = refs[i]; i += 1
        pe0_g, pe0_b, pe_w, pe1_g, pe1_b, pos_ref = refs[i:i + 6]; i += 6
        enc_refs = refs[i:i + 8 * DEPTH]; i += 8 * DEPTH
        wl_ref, wf_ref = refs[i:i + 2]; i += 2
        dec_refs = refs[i:i + 8 * DEPTH]; i += 8 * DEPTH
        tp_g, tp_b, tp_w = refs[i:i + 3]; i += 3
        o_ref = refs[i]; i += 1
        xflat_scr = refs[i]; i += 1          # VMEM (b_tile, NUM_PATCHES*DIM) f32
        dec_scr = refs[i]                    # VMEM (m_rows, DIM) f32

        # --------------------------- encode ---------------------------------
        p = patches_ref[...]                                        # (M, PATCH_DIM) f32
        t = _layernorm(p, pe0_g[...], pe0_b[...])
        t = jnp.dot(t.astype(BF16), pe_w[...], preferred_element_type=F32)
        t = _layernorm(t, pe1_g[...], pe1_b[...])
        if b_tile == 1:
            x = t + pos_ref[...]
        else:
            x = (t.reshape(b_tile, NUM_PATCHES, DIM)
                 + pos_ref[...][None, :, :]).reshape(m_rows, DIM)

        for d in range(DEPTH):
            x = _transformer_block(x, enc_refs[8 * d:8 * (d + 1)], b_tile)

        # to_latent: flatten each image's tokens into lanes, then ONE deep matmul
        #   latent[b] = concat_n(x[b,n]) @ W_lat     (K = NUM_PATCHES*DIM = 2048)
        for b in range(b_tile):
            for n in range(NUM_PATCHES):
                r = b * NUM_PATCHES + n
                xflat_scr[b:b + 1, n * DIM:(n + 1) * DIM] = x[r:r + 1, :]
        z = jnp.dot(xflat_scr[...].astype(BF16), wl_ref[...],
                    preferred_element_type=F32)                      # (b_tile, LATENT)

        # --------------------------- decode ---------------------------------
        # from_latent: ONE matmul (N = NUM_PATCHES*DIM = 2048), then unflatten rows
        hv = jnp.dot(z.astype(BF16), wf_ref[...],
                     preferred_element_type=F32)                     # (b_tile, N*DIM)
        for b in range(b_tile):
            for n in range(NUM_PATCHES):
                r = b * NUM_PATCHES + n
                dec_scr[r:r + 1, :] = hv[b:b + 1, n * DIM:(n + 1) * DIM]
        x = dec_scr[...]                                             # (M, DIM) f32

        for d in range(DEPTH):
            x = _transformer_block(x, dec_refs[8 * d:8 * (d + 1)], b_tile)

        # to_pixels = LayerNorm(dim) -> Linear(dim, patch_dim, bias=False)
        x = _layernorm(x, tp_g[...], tp_b[...])
        o_ref[...] = jnp.dot(x.astype(BF16), tp_w[...],
                             preferred_element_type=F32)             # (M, PATCH_DIM)

    return kernel


# ------------------------------ pallas_call glue -------------------------------
def _const_spec(shape):
    """Full-array block whose index never changes -> stays VMEM-resident."""
    nd = len(shape)
    return pl.BlockSpec(shape, lambda i, _nd=nd: (0,) * _nd)


def _block_weight_list(blocks):
    arrs = []
    for blk in blocks:
        arrs += [blk["ln1_g"], blk["ln1_b"], blk["w_qkv"], blk["w_out"],
                 blk["ln2_g"], blk["ln2_b"], blk["w_ff1"], blk["w_ff2"]]
    return arrs


def _pick_b_tile(batch):
    # Fill up to 256 MXU rows (16 images * 16 tokens) per step, but keep the
    # grid length >= 2 so v7x's two TensorCores both get work.
    cap = max(1, min(16, batch // 2))
    for t in range(cap, 0, -1):
        if batch % t == 0:
            return t
    return 1


def _fused_forward(params, patches, batch):
    b_tile = _pick_b_tile(batch)
    grid = (batch // b_tile,)
    m_blk = b_tile * NUM_PATCHES

    inputs = ([patches,
               params["pe_ln0_g"], params["pe_ln0_b"], params["pe_w"],
               params["pe_ln1_g"], params["pe_ln1_b"], params["pos_embedding"]]
              + _block_weight_list(params["encoder"])
              + [params["to_latent_w"], params["from_latent_w"]]
              + _block_weight_list(params["decoder"])
              + [params["tp_ln_g"], params["tp_ln_b"], params["tp_w"]])

    in_specs = ([pl.BlockSpec((m_blk, PATCH_DIM), lambda i: (i, 0))]
                + [_const_spec(a.shape) for a in inputs[1:]])

    return pl.pallas_call(
        _make_fused_kernel(b_tile),
        out_shape=jax.ShapeDtypeStruct((batch * NUM_PATCHES, PATCH_DIM), F32),
        grid=grid,
        in_specs=in_specs,
        out_specs=pl.BlockSpec((m_blk, PATCH_DIM), lambda i: (i, 0)),
        scratch_shapes=[pltpu.VMEM((b_tile, NUM_PATCHES * DIM), F32),
                        pltpu.VMEM((m_blk, DIM), F32)],
        compiler_params=pltpu.CompilerParams(
            dimension_semantics=("parallel",),      # batch tiles -> 2 TCs on v7x
            vmem_limit_bytes=32 * 1024 * 1024),     # ~6 MB actually used
    )(*inputs)


# ------------------------------ parameter init --------------------------------
def _orthogonal(key, fan_in, fan_out):
    # matches nn.init.orthogonal_ applied to every (bias-free) nn.Linear weight
    return jax.nn.initializers.orthogonal()(key, (fan_in, fan_out), F32)


def _init_block(key):
    ks = jax.random.split(key, 4)
    return dict(
        ln1_g=jnp.ones((1, DIM), F32), ln1_b=jnp.zeros((1, DIM), F32),
        w_qkv=_orthogonal(ks[0], DIM, 3 * INNER).astype(BF16),
        w_out=_orthogonal(ks[1], INNER, DIM).astype(BF16),
        ln2_g=jnp.ones((1, DIM), F32), ln2_b=jnp.zeros((1, DIM), F32),
        w_ff1=_orthogonal(ks[2], DIM, 4 * DIM).astype(BF16),
        w_ff2=_orthogonal(ks[3], 4 * DIM, DIM).astype(BF16),
    )


def init_params(key):
    ks = list(jax.random.split(key, 4 + 2 * DEPTH))
    to_latent_w = _orthogonal(ks[0], DIM * NUM_PATCHES, LATENT_DIM)   # f32 master
    return dict(
        pe_ln0_g=jnp.ones((1, PATCH_DIM), F32),
        pe_ln0_b=jnp.zeros((1, PATCH_DIM), F32),
        pe_w=_orthogonal(ks[1], PATCH_DIM, DIM).astype(BF16),
        pe_ln1_g=jnp.ones((1, DIM), F32),
        pe_ln1_b=jnp.zeros((1, DIM), F32),
        pos_embedding=jax.random.normal(ks[2], (NUM_PATCHES, DIM), F32),
        to_latent_w=to_latent_w.astype(BF16),            # [N*DIM, LATENT]
        from_latent_w=to_latent_w.T.astype(BF16),        # tie: to_latent.weight.t()
        tp_ln_g=jnp.ones((1, DIM), F32),
        tp_ln_b=jnp.zeros((1, DIM), F32),
        tp_w=_orthogonal(ks[3], DIM, PATCH_DIM).astype(BF16),
        encoder=[_init_block(ks[4 + i]) for i in range(DEPTH)],
        decoder=[_init_block(ks[4 + DEPTH + i]) for i in range(DEPTH)],
    )


# --------------------------------- forward ------------------------------------
@jax.jit
def vit_autoencoder_forward(params, x):
    B = x.shape[0]
    # rearrange 'b c (h p1) (w p2) -> b (h w) (p1 p2 c)', c = 1   (layout only)
    patches = (x.reshape(B, 1, HP, PATCH, WP, PATCH)
               .transpose(0, 2, 4, 3, 5, 1)
               .reshape(B * NUM_PATCHES, PATCH_DIM))
    patches_out = _fused_forward(params, patches, B)      # [B*N, PATCH_DIM]
    # rearrange 'b (h w) (p1 p2 c) -> b c (h p1) (w p2)', c = 1
    imgs = (patches_out.reshape(B, HP, WP, PATCH, PATCH, 1)
            .transpose(0, 5, 1, 3, 2, 4)
            .reshape(B, 1, HP * PATCH, WP * PATCH))
    return imgs


# ----------------------------------- main --------------------------------------
if __name__ == "__main__":
    key = jax.random.PRNGKey(0)
    k_param, k_data = jax.random.split(key)
    params = init_params(k_param)
    x = jax.random.normal(k_data, (2, 1, IMAGE_SIZE[0], IMAGE_SIZE[1]), F32)

    out = vit_autoencoder_forward(params, x)
    out = jax.block_until_ready(out)

    assert out.shape == (2, 1, IMAGE_SIZE[0], IMAGE_SIZE[1]), out.shape
    assert bool(jnp.all(jnp.isfinite(out)))
    print("KERNEL_OK")
</pallas_src>

<mosaic_0001>
module attributes {stable_mosaic.version = 11 : i64} {
  func.func @kernel(%arg0: i32, %arg1: memref<16x256xf32, #tpu.memory_space<vmem>>, %arg2: memref<1x256xf32, #tpu.memory_space<vmem>>, %arg3: memref<1x256xf32, #tpu.memory_space<vmem>>, %arg4: memref<256x128xbf16, #tpu.memory_space<vmem>>, %arg5: memref<1x128xf32, #tpu.memory_space<vmem>>, %arg6: memref<1x128xf32, #tpu.memory_space<vmem>>, %arg7: memref<16x128xf32, #tpu.memory_space<vmem>>, %arg8: memref<1x128xf32, #tpu.memory_space<vmem>>, %arg9: memref<1x128xf32, #tpu.memory_space<vmem>>, %arg10: memref<128x384xbf16, #tpu.memory_space<vmem>>, %arg11: memref<128x128xbf16, #tpu.memory_space<vmem>>, %arg12: memref<1x128xf32, #tpu.memory_space<vmem>>, %arg13: memref<1x128xf32, #tpu.memory_space<vmem>>, %arg14: memref<128x512xbf16, #tpu.memory_space<vmem>>, %arg15: memref<512x128xbf16, #tpu.memory_space<vmem>>, %arg16: memref<1x128xf32, #tpu.memory_space<vmem>>, %arg17: memref<1x128xf32, #tpu.memory_space<vmem>>, %arg18: memref<128x384xbf16, #tpu.memory_space<vmem>>, %arg19: memref<128x128xbf16, #tpu.memory_space<vmem>>, %arg20: memref<1x128xf32, #tpu.memory_space<vmem>>, %arg21: memref<1x128xf32, #tpu.memory_space<vmem>>, %arg22: memref<128x512xbf16, #tpu.memory_space<vmem>>, %arg23: memref<512x128xbf16, #tpu.memory_space<vmem>>, %arg24: memref<2048x128xbf16, #tpu.memory_space<vmem>>, %arg25: memref<128x2048xbf16, #tpu.memory_space<vmem>>, %arg26: memref<1x128xf32, #tpu.memory_space<vmem>>, %arg27: memref<1x128xf32, #tpu.memory_space<vmem>>, %arg28: memref<128x384xbf16, #tpu.memory_space<vmem>>, %arg29: memref<128x128xbf16, #tpu.memory_space<vmem>>, %arg30: memref<1x128xf32, #tpu.memory_space<vmem>>, %arg31: memref<1x128xf32, #tpu.memory_space<vmem>>, %arg32: memref<128x512xbf16, #tpu.memory_space<vmem>>, %arg33: memref<512x128xbf16, #tpu.memory_space<vmem>>, %arg34: memref<1x128xf32, #tpu.memory_space<vmem>>, %arg35: memref<1x128xf32, #tpu.memory_space<vmem>>, %arg36: memref<128x384xbf16, #tpu.memory_space<vmem>>, %arg37: memref<128x128xbf16, #tpu.memory_space<vmem>>, %arg38: memref<1x128xf32, #tpu.memory_space<vmem>>, %arg39: memref<1x128xf32, #tpu.memory_space<vmem>>, %arg40: memref<128x512xbf16, #tpu.memory_space<vmem>>, %arg41: memref<512x128xbf16, #tpu.memory_space<vmem>>, %arg42: memref<1x128xf32, #tpu.memory_space<vmem>>, %arg43: memref<1x128xf32, #tpu.memory_space<vmem>>, %arg44: memref<128x256xbf16, #tpu.memory_space<vmem>>, %arg45: memref<16x256xf32, #tpu.memory_space<vmem>>, %arg46: memref<1x2048xf32, #tpu.memory_space<vmem>>, %arg47: memref<16x128xf32, #tpu.memory_space<vmem>>) attributes {dimension_semantics = [#tpu.dimension_semantics<parallel>], iteration_bounds = array<i64: 2>, scalar_prefetch = 0 : i64, scratch_operands = 2 : i64, tpu.core_type = #tpu.core_type<tc>, window_params = [{transform_indices = @transform_0, window_bounds = array<i64: 16, 256>}, {pipeline_mode = #tpu.pipeline_mode<synchronous>, transform_indices = @transform_1, window_bounds = array<i64: 1, 256>}, {pipeline_mode = #tpu.pipeline_mode<synchronous>, transform_indices = @transform_2, window_bounds = array<i64: 1, 256>}, {pipeline_mode = #tpu.pipeline_mode<synchronous>, transform_indices = @transform_3, window_bounds = array<i64: 256, 128>}, {pipeline_mode = #tpu.pipeline_mode<synchronous>, transform_indices = @transform_4, window_bounds = array<i64: 1, 128>}, {pipeline_mode = #tpu.pipeline_mode<synchronous>, transform_indices = @transform_5, window_bounds = array<i64: 1, 128>}, {pipeline_mode = #tpu.pipeline_mode<synchronous>, transform_indices = @transform_6, window_bounds = array<i64: 16, 128>}, {pipeline_mode = #tpu.pipeline_mode<synchronous>, transform_indices = @transform_7, window_bounds = array<i64: 1, 128>}, {pipeline_mode = #tpu.pipeline_mode<synchronous>, transform_indices = @transform_8, window_bounds = array<i64: 1, 128>}, {pipeline_mode = #tpu.pipeline_mode<synchronous>, transform_indices = @transform_9, window_bounds = array<i64: 128, 384>}, {pipeline_mode = #tpu.pipeline_mode<synchronous>, transform_indices = @transform_10, window_bounds = array<i64: 128, 128>}, {pipeline_mode = #tpu.pipeline_mode<synchronous>, transform_indices = @transform_11, window_bounds = array<i64: 1, 128>}, {pipeline_mode = #tpu.pipeline_mode<synchronous>, transform_indices = @transform_12, window_bounds = array<i64: 1, 128>}, {pipeline_mode = #tpu.pipeline_mode<synchronous>, transform_indices = @transform_13, window_bounds = array<i64: 128, 512>}, {pipeline_mode = #tpu.pipeline_mode<synchronous>, transform_indices = @transform_14, window_bounds = array<i64: 512, 128>}, {pipeline_mode = #tpu.pipeline_mode<synchronous>, transform_indices = @transform_15, window_bounds = array<i64: 1, 128>}, {pipeline_mode = #tpu.pipeline_mode<synchronous>, transform_indices = @transform_16, window_bounds = array<i64: 1, 128>}, {pipeline_mode = #tpu.pipeline_mode<synchronous>, transform_indices = @transform_17, window_bounds = array<i64: 128, 384>}, {pipeline_mode = #tpu.pipeline_mode<synchronous>, transform_indices = @transform_18, window_bounds = array<i64: 128, 128>}, {pipeline_mode = #tpu.pipeline_mode<synchronous>, transform_indices = @transform_19, window_bounds = array<i64: 1, 128>}, {pipeline_mode = #tpu.pipeline_mode<synchronous>, transform_indices = @transform_20, window_bounds = array<i64: 1, 128>}, {pipeline_mode = #tpu.pipeline_mode<synchronous>, transform_indices = @transform_21, window_bounds = array<i64: 128, 512>}, {pipeline_mode = #tpu.pipeline_mode<synchronous>, transform_indices = @transform_22, window_bounds = array<i64: 512, 128>}, {pipeline_mode = #tpu.pipeline_mode<synchronous>, transform_indices = @transform_23, window_bounds = array<i64: 2048, 128>}, {pipeline_mode = #tpu.pipeline_mode<synchronous>, transform_indices = @transform_24, window_bounds = array<i64: 128, 2048>}, {pipeline_mode = #tpu.pipeline_mode<synchronous>, transform_indices = @transform_25, window_bounds = array<i64: 1, 128>}, {pipeline_mode = #tpu.pipeline_mode<synchronous>, transform_indices = @transform_26, window_bounds = array<i64: 1, 128>}, {pipeline_mode = #tpu.pipeline_mode<synchronous>, transform_indices = @transform_27, window_bounds = array<i64: 128, 384>}, {pipeline_mode = #tpu.pipeline_mode<synchronous>, transform_indices = @transform_28, window_bounds = array<i64: 128, 128>}, {pipeline_mode = #tpu.pipeline_mode<synchronous>, transform_indices = @transform_29, window_bounds = array<i64: 1, 128>}, {pipeline_mode = #tpu.pipeline_mode<synchronous>, transform_indices = @transform_30, window_bounds = array<i64: 1, 128>}, {pipeline_mode = #tpu.pipeline_mode<synchronous>, transform_indices = @transform_31, window_bounds = array<i64: 128, 512>}, {pipeline_mode = #tpu.pipeline_mode<synchronous>, transform_indices = @transform_32, window_bounds = array<i64: 512, 128>}, {pipeline_mode = #tpu.pipeline_mode<synchronous>, transform_indices = @transform_33, window_bounds = array<i64: 1, 128>}, {pipeline_mode = #tpu.pipeline_mode<synchronous>, transform_indices = @transform_34, window_bounds = array<i64: 1, 128>}, {pipeline_mode = #tpu.pipeline_mode<synchronous>, transform_indices = @transform_35, window_bounds = array<i64: 128, 384>}, {pipeline_mode = #tpu.pipeline_mode<synchronous>, transform_indices = @transform_36, window_bounds = array<i64: 128, 128>}, {pipeline_mode = #tpu.pipeline_mode<synchronous>, transform_indices = @transform_37, window_bounds = array<i64: 1, 128>}, {pipeline_mode = #tpu.pipeline_mode<synchronous>, transform_indices = @transform_38, window_bounds = array<i64: 1, 128>}, {pipeline_mode = #tpu.pipeline_mode<synchronous>, transform_indices = @transform_39, window_bounds = array<i64: 128, 512>}, {pipeline_mode = #tpu.pipeline_mode<synchronous>, transform_indices = @transform_40, window_bounds = array<i64: 512, 128>}, {pipeline_mode = #tpu.pipeline_mode<synchronous>, transform_indices = @transform_41, window_bounds = array<i64: 1, 128>}, {pipeline_mode = #tpu.pipeline_mode<synchronous>, transform_indices = @transform_42, window_bounds = array<i64: 1, 128>}, {pipeline_mode = #tpu.pipeline_mode<synchronous>, transform_indices = @transform_43, window_bounds = array<i64: 128, 256>}, {transform_indices = @transform_44, window_bounds = array<i64: 16, 256>}]} {
    %c0 = arith.constant 0 : index
    %c0_0 = arith.constant 0 : index
    %0 = vector.load %arg1[%c0, %c0_0] : memref<16x256xf32, #tpu.memory_space<vmem>>, vector<16x256xf32>
    %c0_1 = arith.constant 0 : index
    %c0_2 = arith.constant 0 : index
    %1 = vector.load %arg2[%c0_1, %c0_2] : memref<1x256xf32, #tpu.memory_space<vmem>>, vector<1x256xf32>
    %c0_3 = arith.constant 0 : index
    %c0_4 = arith.constant 0 : index
    %2 = vector.load %arg3[%c0_3, %c0_4] : memref<1x256xf32, #tpu.memory_space<vmem>>, vector<1x256xf32>
    %cst = arith.constant dense<0.000000e+00> : vector<16xf32>
    %3 = vector.multi_reduction <add>, %0, %cst [1] : vector<16x256xf32> to vector<16xf32>
    %4 = vector.shape_cast %3 : vector<16xf32> to vector<16x1xf32>
    %cst_5 = arith.constant 2.560000e+02 : f32
    %5 = vector.broadcast %cst_5 : f32 to vector<16x1xf32>
    %6 = arith.divf %4, %5 : vector<16x1xf32>
    %7 = vector.broadcast %6 : vector<16x1xf32> to vector<16x256xf32>
    %8 = arith.subf %0, %7 : vector<16x256xf32>
    %9 = arith.mulf %8, %8 : vector<16x256xf32>
    %cst_6 = arith.constant dense<0.000000e+00> : vector<16xf32>
    %10 = vector.multi_reduction <add>, %9, %cst_6 [1] : vector<16x256xf32> to vector<16xf32>
    %11 = vector.shape_cast %10 : vector<16xf32> to vector<16x1xf32>
    %cst_7 = arith.constant 2.560000e+02 : f32
    %12 = vector.broadcast %cst_7 : f32 to vector<16x1xf32>
    %13 = arith.divf %11, %12 : vector<16x1xf32>
    %14 = vector.broadcast %6 : vector<16x1xf32> to vector<16x256xf32>
    %15 = arith.subf %0, %14 : vector<16x256xf32>
    %cst_8 = arith.constant 9.99999974E-6 : f32
    %16 = vector.broadcast %cst_8 : f32 to vector<16x1xf32>
    %17 = arith.addf %13, %16 : vector<16x1xf32>
    %18 = math.rsqrt %17 : vector<16x1xf32>
    %19 = vector.broadcast %18 : vector<16x1xf32> to vector<16x256xf32>
    %20 = arith.mulf %15, %19 : vector<16x256xf32>
    %21 = vector.broadcast %1 : vector<1x256xf32> to vector<16x256xf32>
    %22 = arith.mulf %20, %21 : vector<16x256xf32>
    %23 = vector.broadcast %2 : vector<1x256xf32> to vector<16x256xf32>
    %24 = arith.addf %22, %23 : vector<16x256xf32>
    %25 = arith.truncf %24 : vector<16x256xf32> to vector<16x256xbf16>
    %c0_9 = arith.constant 0 : index
    %c0_10 = arith.constant 0 : index
    %26 = vector.load %arg4[%c0_9, %c0_10] : memref<256x128xbf16, #tpu.memory_space<vmem>>, vector<256x128xbf16>
    %cst_11 = arith.constant dense<0.000000e+00> : vector<16x128xf32>
    %27 = tpu.matmul %25, %26, %cst_11 {dimension_numbers = #tpu.dot_dimension_numbers<[1], [0], [0], [1], [0, 0, 1, 1], [], []>} : vector<16x256xbf16>, vector<256x128xbf16>, vector<16x128xf32> -> vector<16x128xf32>
    %c0_12 = arith.constant 0 : index
    %c0_13 = arith.constant 0 : index
    %28 = vector.load %arg5[%c0_12, %c0_13] : memref<1x128xf32, #tpu.memory_space<vmem>>, vector<1x128xf32>
    %c0_14 = arith.constant 0 : index
    %c0_15 = arith.constant 0 : index
    %29 = vector.load %arg6[%c0_14, %c0_15] : memref<1x128xf32, #tpu.memory_space<vmem>>, vector<1x128xf32>
    %cst_16 = arith.constant dense<0.000000e+00> : vector<16xf32>
    %30 = vector.multi_reduction <add>, %27, %cst_16 [1] : vector<16x128xf32> to vector<16xf32>
    %31 = vector.shape_cast %30 : vector<16xf32> to vector<16x1xf32>
    %cst_17 = arith.constant 1.280000e+02 : f32
    %32 = vector.broadcast %cst_17 : f32 to vector<16x1xf32>
    %33 = arith.divf %31, %32 : vector<16x1xf32>
    %34 = vector.broadcast %33 : vector<16x1xf32> to vector<16x128xf32>
    %35 = arith.subf %27, %34 : vector<16x128xf32>
    %36 = arith.mulf %35, %35 : vector<16x128xf32>
    %cst_18 = arith.constant dense<0.000000e+00> : vector<16xf32>
    %37 = vector.multi_reduction <add>, %36, %cst_18 [1] : vector<16x128xf32> to vector<16xf32>
    %38 = vector.shape_cast %37 : vector<16xf32> to vector<16x1xf32>
    %cst_19 = arith.constant 1.280000e+02 : f32
    %39 = vector.broadcast %cst_19 : f32 to vector<16x1xf32>
    %40 = arith.divf %38, %39 : vector<16x1xf32>
    %41 = vector.broadcast %33 : vector<16x1xf32> to vector<16x128xf32>
    %42 = arith.subf %27, %41 : vector<16x128xf32>
    %cst_20 = arith.constant 9.99999974E-6 : f32
    %43 = vector.broadcast %cst_20 : f32 to vector<16x1xf32>
    %44 = arith.addf %40, %43 : vector<16x1xf32>
    %45 = math.rsqrt %44 : vector<16x1xf32>
    %46 = vector.broadcast %45 : vector<16x1xf32> to vector<16x128xf32>
    %47 = arith.mulf %42, %46 : vector<16x128xf32>
    %48 = vector.broadcast %28 : vector<1x128xf32> to vector<16x128xf32>
    %49 = arith.mulf %47, %48 : vector<16x128xf32>
    %50 = vector.broadcast %29 : vector<1x128xf32> to vector<16x128xf32>
    %51 = arith.addf %49, %50 : vector<16x128xf32>
    %c0_21 = arith.constant 0 : index
    %c0_22 = arith.constant 0 : index
    %52 = vector.load %arg7[%c0_21, %c0_22] : memref<16x128xf32, #tpu.memory_space<vmem>>, vector<16x128xf32>
    %53 = arith.addf %51, %52 : vector<16x128xf32>
    %c0_23 = arith.constant 0 : index
    %c0_24 = arith.constant 0 : index
    %54 = vector.load %arg8[%c0_23, %c0_24] : memref<1x128xf32, #tpu.memory_space<vmem>>, vector<1x128xf32>
    %c0_25 = arith.constant 0 : index
    %c0_26 = arith.constant 0 : index
    %55 = vector.load %arg9[%c0_25, %c0_26] : memref<1x128xf32, #tpu.memory_space<vmem>>, vector<1x128xf32>
    %cst_27 = arith.constant dense<0.000000e+00> : vector<16xf32>
    %56 = vector.multi_reduction <add>, %53, %cst_27 [1] : vector<16x128xf32> to vector<16xf32>
    %57 = vector.shape_cast %56 : vector<16xf32> to vector<16x1xf32>
    %cst_28 = arith.constant 1.280000e+02 : f32
    %58 = vector.broadcast %cst_28 : f32 to vector<16x1xf32>
    %59 = arith.divf %57, %58 : vector<16x1xf32>
    %60 = vector.broadcast %59 : vector<16x1xf32> to vector<16x128xf32>
    %61 = arith.subf %53, %60 : vector<16x128xf32>
    %62 = arith.mulf %61, %61 : vector<16x128xf32>
    %cst_29 = arith.constant dense<0.000000e+00> : vector<16xf32>
    %63 = vector.multi_reduction <add>, %62, %cst_29 [1] : vector<16x128xf32> to vector<16xf32>
    %64 = vector.shape_cast %63 : vector<16xf32> to vector<16x1xf32>
    %cst_30 = arith.constant 1.280000e+02 : f32
    %65 = vector.broadcast %cst_30 : f32 to vector<16x1xf32>
    %66 = arith.divf %64, %65 : vector<16x1xf32>
    %67 = vector.broadcast %59 : vector<16x1xf32> to vector<16x128xf32>
    %68 = arith.subf %53, %67 : vector<16x128xf32>
    %cst_31 = arith.constant 9.99999974E-6 : f32
    %69 = vector.broadcast %cst_31 : f32 to vector<16x1xf32>
    %70 = arith.addf %66, %69 : vector<16x1xf32>
    %71 = math.rsqrt %70 : vector<16x1xf32>
    %72 = vector.broadcast %71 : vector<16x1xf32> to vector<16x128xf32>
    %73 = arith.mulf %68, %72 : vector<16x128xf32>
    %74 = vector.broadcast %54 : vector<1x128xf32> to vector<16x128xf32>
    %75 = arith.mulf %73, %74 : vector<16x128xf32>
    %76 = vector.broadcast %55 : vector<1x128xf32> to vector<16x128xf32>
    %77 = arith.addf %75, %76 : vector<16x128xf32>
    %78 = arith.truncf %77 : vector<16x128xf32> to vector<16x128xbf16>
    %c0_32 = arith.constant 0 : index
    %c0_33 = arith.constant 0 : index
    %79 = vector.load %arg10[%c0_32, %c0_33] : memref<128x384xbf16, #tpu.memory_space<vmem>>, vector<128x384xbf16>
    %cst_34 = arith.constant dense<0.000000e+00> : vector<16x384xf32>
    %80 = tpu.matmul %78, %79, %cst_34 {dimension_numbers = #tpu.dot_dimension_numbers<[1], [0], [0], [1], [0, 0, 1, 1], [], []>} : vector<16x128xbf16>, vector<128x384xbf16>, vector<16x384xf32> -> vector<16x384xf32>
    %cst_35 = arith.constant 0.000000e+00 : f32
    %81 = vector.broadcast %cst_35 : f32 to vector<16x128xf32>
    %82 = vector.extract_strided_slice %80 {offsets = [0, 0], sizes = [16, 32], strides = [1, 1]} : vector<16x384xf32> to vector<16x32xf32>
    %83 = arith.truncf %82 : vector<16x32xf32> to vector<16x32xbf16>
    %84 = vector.extract_strided_slice %80 {offsets = [0, 128], sizes = [16, 32], strides = [1, 1]} : vector<16x384xf32> to vector<16x32xf32>
    %85 = arith.truncf %84 : vector<16x32xf32> to vector<16x32xbf16>
    %86 = vector.extract_strided_slice %80 {offsets = [0, 256], sizes = [16, 32], strides = [1, 1]} : vector<16x384xf32> to vector<16x32xf32>
    %87 = arith.truncf %86 : vector<16x32xf32> to vector<16x32xbf16>
    %cst_36 = arith.constant dense<0.000000e+00> : vector<16x16xf32>
    %88 = tpu.matmul %83, %85, %cst_36 {dimension_numbers = #tpu.dot_dimension_numbers<[1], [1], [0], [0], [0, 0, 1, 0], [], []>} : vector<16x32xbf16>, vector<16x32xbf16>, vector<16x16xf32> -> vector<16x16xf32>
    %cst_37 = arith.constant 0.176776692 : f32
    %89 = vector.broadcast %cst_37 : f32 to vector<16x16xf32>
    %90 = arith.mulf %88, %89 : vector<16x16xf32>
    %cst_38 = arith.constant dense<0xFF800000> : vector<16xf32>
    %91 = vector.multi_reduction <maximumf>, %90, %cst_38 [1] : vector<16x16xf32> to vector<16xf32>
    %92 = vector.shape_cast %91 : vector<16xf32> to vector<16x1xf32>
    %93 = vector.broadcast %92 : vector<16x1xf32> to vector<16x16xf32>
    %94 = arith.subf %90, %93 : vector<16x16xf32>
    %95 = math.exp %94 : vector<16x16xf32>
    %cst_39 = arith.constant dense<0.000000e+00> : vector<16xf32>
    %96 = vector.multi_reduction <add>, %95, %cst_39 [1] : vector<16x16xf32> to vector<16xf32>
    %97 = vector.shape_cast %96 : vector<16xf32> to vector<16x1xf32>
    %98 = tpu.reciprocal %97 : vector<16x1xf32> -> vector<16x1xf32>
    %99 = vector.broadcast %98 : vector<16x1xf32> to vector<16x16xf32>
    %100 = arith.mulf %95, %99 : vector<16x16xf32>
    %101 = arith.truncf %100 : vector<16x16xf32> to vector<16x16xbf16>
    %cst_40 = arith.constant dense<0.000000e+00> : vector<16x32xf32>
    %102 = tpu.matmul %101, %87, %cst_40 {dimension_numbers = #tpu.dot_dimension_numbers<[1], [0], [0], [1], [0, 0, 1, 1], [], []>} : vector<16x16xbf16>, vector<16x32xbf16>, vector<16x32xf32> -> vector<16x32xf32>
    %103 = arith.truncf %102 : vector<16x32xf32> to vector<16x32xbf16>
    %c0_41 = arith.constant 0 : index
    %c0_42 = arith.constant 0 : index
    %104 = vector.load %arg11[%c0_41, %c0_42] : memref<128x128xbf16, #tpu.memory_space<vmem>>, vector<32x128xbf16>
    %cst_43 = arith.constant dense<0.000000e+00> : vector<16x128xf32>
    %105 = tpu.matmul %103, %104, %cst_43 {dimension_numbers = #tpu.dot_dimension_numbers<[1], [0], [0], [1], [0, 0, 1, 1], [], []>} : vector<16x32xbf16>, vector<32x128xbf16>, vector<16x128xf32> -> vector<16x128xf32>
    %106 = arith.addf %81, %105 : vector<16x128xf32>
    %107 = vector.extract_strided_slice %80 {offsets = [0, 32], sizes = [16, 32], strides = [1, 1]} : vector<16x384xf32> to vector<16x32xf32>
    %108 = arith.truncf %107 : vector<16x32xf32> to vector<16x32xbf16>
    %109 = vector.extract_strided_slice %80 {offsets = [0, 160], sizes = [16, 32], strides = [1, 1]} : vector<16x384xf32> to vector<16x32xf32>
    %110 = arith.truncf %109 : vector<16x32xf32> to vector<16x32xbf16>
    %111 = vector.extract_strided_slice %80 {offsets = [0, 288], sizes = [16, 32], strides = [1, 1]} : vector<16x384xf32> to vector<16x32xf32>
    %112 = arith.truncf %111 : vector<16x32xf32> to vector<16x32xbf16>
    %cst_44 = arith.constant dense<0.000000e+00> : vector<16x16xf32>
    %113 = tpu.matmul %108, %110, %cst_44 {dimension_numbers = #tpu.dot_dimension_numbers<[1], [1], [0], [0], [0, 0, 1, 0], [], []>} : vector<16x32xbf16>, vector<16x32xbf16>, vector<16x16xf32> -> vector<16x16xf32>
    %cst_45 = arith.constant 0.176776692 : f32
    %114 = vector.broadcast %cst_45 : f32 to vector<16x16xf32>
    %115 = arith.mulf %113, %114 : vector<16x16xf32>
    %cst_46 = arith.constant dense<0xFF800000> : vector<16xf32>
    %116 = vector.multi_reduction <maximumf>, %115, %cst_46 [1] : vector<16x16xf32> to vector<16xf32>
    %117 = vector.shape_cast %116 : vector<16xf32> to vector<16x1xf32>
    %118 = vector.broadcast %117 : vector<16x1xf32> to vector<16x16xf32>
    %119 = arith.subf %115, %118 : vector<16x16xf32>
    %120 = math.exp %119 : vector<16x16xf32>
    %cst_47 = arith.constant dense<0.000000e+00> : vector<16xf32>
    %121 = vector.multi_reduction <add>, %120, %cst_47 [1] : vector<16x16xf32> to vector<16xf32>
    %122 = vector.shape_cast %121 : vector<16xf32> to vector<16x1xf32>
    %123 = tpu.reciprocal %122 : vector<16x1xf32> -> vector<16x1xf32>
    %124 = vector.broadcast %123 : vector<16x1xf32> to vector<16x16xf32>
    %125 = arith.mulf %120, %124 : vector<16x16xf32>
    %126 = arith.truncf %125 : vector<16x16xf32> to vector<16x16xbf16>
    %cst_48 = arith.constant dense<0.000000e+00> : vector<16x32xf32>
    %127 = tpu.matmul %126, %112, %cst_48 {dimension_numbers = #tpu.dot_dimension_numbers<[1], [0], [0], [1], [0, 0, 1, 1], [], []>} : vector<16x16xbf16>, vector<16x32xbf16>, vector<16x32xf32> -> vector<16x32xf32>
    %128 = arith.truncf %127 : vector<16x32xf32> to vector<16x32xbf16>
    %c32 = arith.constant 32 : index
    %c0_49 = arith.constant 0 : index
    %129 = vector.load %arg11[%c32, %c0_49] : memref<128x128xbf16, #tpu.memory_space<vmem>>, vector<32x128xbf16>
    %cst_50 = arith.constant dense<0.000000e+00> : vector<16x128xf32>
    %130 = tpu.matmul %128, %129, %cst_50 {dimension_numbers = #tpu.dot_dimension_numbers<[1], [0], [0], [1], [0, 0, 1, 1], [], []>} : vector<16x32xbf16>, vector<32x128xbf16>, vector<16x128xf32> -> vector<16x128xf32>
    %131 = arith.addf %106, %130 : vector<16x128xf32>
    %132 = vector.extract_strided_slice %80 {offsets = [0, 64], sizes = [16, 32], strides = [1, 1]} : vector<16x384xf32> to vector<16x32xf32>
    %133 = arith.truncf %132 : vector<16x32xf32> to vector<16x32xbf16>
    %134 = vector.extract_strided_slice %80 {offsets = [0, 192], sizes = [16, 32], strides = [1, 1]} : vector<16x384xf32> to vector<16x32xf32>
    %135 = arith.truncf %134 : vector<16x32xf32> to vector<16x32xbf16>
    %136 = vector.extract_strided_slice %80 {offsets = [0, 320], sizes = [16, 32], strides = [1, 1]} : vector<16x384xf32> to vector<16x32xf32>
    %137 = arith.truncf %136 : vector<16x32xf32> to vector<16x32xbf16>
    %cst_51 = arith.constant dense<0.000000e+00> : vector<16x16xf32>
    %138 = tpu.matmul %133, %135, %cst_51 {dimension_numbers = #tpu.dot_dimension_numbers<[1], [1], [0], [0], [0, 0, 1, 0], [], []>} : vector<16x32xbf16>, vector<16x32xbf16>, vector<16x16xf32> -> vector<16x16xf32>
    %cst_52 = arith.constant 0.176776692 : f32
    %139 = vector.broadcast %cst_52 : f32 to vector<16x16xf32>
    %140 = arith.mulf %138, %139 : vector<16x16xf32>
    %cst_53 = arith.constant dense<0xFF800000> : vector<16xf32>
    %141 = vector.multi_reduction <maximumf>, %140, %cst_53 [1] : vector<16x16xf32> to vector<16xf32>
    %142 = vector.shape_cast %141 : vector<16xf32> to vector<16x1xf32>
    %143 = vector.broadcast %142 : vector<16x1xf32> to vector<16x16xf32>
    %144 = arith.subf %140, %143 : vector<16x16xf32>
    %145 = math.exp %144 : vector<16x16xf32>
    %cst_54 = arith.constant dense<0.000000e+00> : vector<16xf32>
    %146 = vector.multi_reduction <add>, %145, %cst_54 [1] : vector<16x16xf32> to vector<16xf32>
    %147 = vector.shape_cast %146 : vector<16xf32> to vector<16x1xf32>
    %148 = tpu.reciprocal %147 : vector<16x1xf32> -> vector<16x1xf32>
    %149 = vector.broadcast %148 : vector<16x1xf32> to vector<16x16xf32>
    %150 = arith.mulf %145, %149 : vector<16x16xf32>
    %151 = arith.truncf %150 : vector<16x16xf32> to vector<16x16xbf16>
    %cst_55 = arith.constant dense<0.000000e+00> : vector<16x32xf32>
    %152 = tpu.matmul %151, %137, %cst_55 {dimension_numbers = #tpu.dot_dimension_numbers<[1], [0], [0], [1], [0, 0, 1, 1], [], []>} : vector<16x16xbf16>, vector<16x32xbf16>, vector<16x32xf32> -> vector<16x32xf32>
    %153 = arith.truncf %152 : vector<16x32xf32> to vector<16x32xbf16>
    %c64 = arith.constant 64 : index
    %c0_56 = arith.constant 0 : index
    %154 = vector.load %arg11[%c64, %c0_56] : memref<128x128xbf16, #tpu.memory_space<vmem>>, vector<32x128xbf16>
    %cst_57 = arith.constant dense<0.000000e+00> : vector<16x128xf32>
    %155 = tpu.matmul %153, %154, %cst_57 {dimension_numbers = #tpu.dot_dimension_numbers<[1], [0], [0], [1], [0, 0, 1, 1], [], []>} : vector<16x32xbf16>, vector<32x128xbf16>, vector<16x128xf32> -> vector<16x128xf32>
    %156 = arith.addf %131, %155 : vector<16x128xf32>
    %157 = vector.extract_strided_slice %80 {offsets = [0, 96], sizes = [16, 32], strides = [1, 1]} : vector<16x384xf32> to vector<16x32xf32>
    %158 = arith.truncf %157 : vector<16x32xf32> to vector<16x32xbf16>
    %159 = vector.extract_strided_slice %80 {offsets = [0, 224], sizes = [16, 32], strides = [1, 1]} : vector<16x384xf32> to vector<16x32xf32>
    %160 = arith.truncf %159 : vector<16x32xf32> to vector<16x32xbf16>
    %161 = vector.extract_strided_slice %80 {offsets = [0, 352], sizes = [16, 32], strides = [1, 1]} : vector<16x384xf32> to vector<16x32xf32>
    %162 = arith.truncf %161 : vector<16x32xf32> to vector<16x32xbf16>
    %cst_58 = arith.constant dense<0.000000e+00> : vector<16x16xf32>
    %163 = tpu.matmul %158, %160, %cst_58 {dimension_numbers = #tpu.dot_dimension_numbers<[1], [1], [0], [0], [0, 0, 1, 0], [], []>} : vector<16x32xbf16>, vector<16x32xbf16>, vector<16x16xf32> -> vector<16x16xf32>
    %cst_59 = arith.constant 0.176776692 : f32
    %164 = vector.broadcast %cst_59 : f32 to vector<16x16xf32>
    %165 = arith.mulf %163, %164 : vector<16x16xf32>
    %cst_60 = arith.constant dense<0xFF800000> : vector<16xf32>
    %166 = vector.multi_reduction <maximumf>, %165, %cst_60 [1] : vector<16x16xf32> to vector<16xf32>
    %167 = vector.shape_cast %166 : vector<16xf32> to vector<16x1xf32>
    %168 = vector.broadcast %167 : vector<16x1xf32> to vector<16x16xf32>
    %169 = arith.subf %165, %168 : vector<16x16xf32>
    %170 = math.exp %169 : vector<16x16xf32>
    %cst_61 = arith.constant dense<0.000000e+00> : vector<16xf32>
    %171 = vector.multi_reduction <add>, %170, %cst_61 [1] : vector<16x16xf32> to vector<16xf32>
    %172 = vector.shape_cast %171 : vector<16xf32> to vector<16x1xf32>
    %173 = tpu.reciprocal %172 : vector<16x1xf32> -> vector<16x1xf32>
    %174 = vector.broadcast %173 : vector<16x1xf32> to vector<16x16xf32>
    %175 = arith.mulf %170, %174 : vector<16x16xf32>
    %176 = arith.truncf %175 : vector<16x16xf32> to vector<16x16xbf16>
    %cst_62 = arith.constant dense<0.000000e+00> : vector<16x32xf32>
    %177 = tpu.matmul %176, %162, %cst_62 {dimension_numbers = #tpu.dot_dimension_numbers<[1], [0], [0], [1], [0, 0, 1, 1], [], []>} : vector<16x16xbf16>, vector<16x32xbf16>, vector<16x32xf32> -> vector<16x32xf32>
    %178 = arith.truncf %177 : vector<16x32xf32> to vector<16x32xbf16>
    %c96 = arith.constant 96 : index
    %c0_63 = arith.constant 0 : index
    %179 = vector.load %arg11[%c96, %c0_63] : memref<128x128xbf16, #tpu.memory_space<vmem>>, vector<32x128xbf16>
    %cst_64 = arith.constant dense<0.000000e+00> : vector<16x128xf32>
    %180 = tpu.matmul %178, %179, %cst_64 {dimension_numbers = #tpu.dot_dimension_numbers<[1], [0], [0], [1], [0, 0, 1, 1], [], []>} : vector<16x32xbf16>, vector<32x128xbf16>, vector<16x128xf32> -> vector<16x128xf32>
    %181 = arith.addf %156, %180 : vector<16x128xf32>
    %182 = arith.addf %53, %181 : vector<16x128xf32>
    %c0_65 = arith.constant 0 : index
    %c0_66 = arith.constant 0 : index
    %183 = vector.load %arg12[%c0_65, %c0_66] : memref<1x128xf32, #tpu.memory_space<vmem>>, vector<1x128xf32>
    %c0_67 = arith.constant 0 : index
    %c0_68 = arith.constant 0 : index
    %184 = vector.load %arg13[%c0_67, %c0_68] : memref<1x128xf32, #tpu.memory_space<vmem>>, vector<1x128xf32>
    %cst_69 = arith.constant dense<0.000000e+00> : vector<16xf32>
    %185 = vector.multi_reduction <add>, %182, %cst_69 [1] : vector<16x128xf32> to vector<16xf32>
    %186 = vector.shape_cast %185 : vector<16xf32> to vector<16x1xf32>
    %cst_70 = arith.constant 1.280000e+02 : f32
    %187 = vector.broadcast %cst_70 : f32 to vector<16x1xf32>
    %188 = arith.divf %186, %187 : vector<16x1xf32>
    %189 = vector.broadcast %188 : vector<16x1xf32> to vector<16x128xf32>
    %190 = arith.subf %182, %189 : vector<16x128xf32>
    %191 = arith.mulf %190, %190 : vector<16x128xf32>
    %cst_71 = arith.constant dense<0.000000e+00> : vector<16xf32>
    %192 = vector.multi_reduction <add>, %191, %cst_71 [1] : vector<16x128xf32> to vector<16xf32>
    %193 = vector.shape_cast %192 : vector<16xf32> to vector<16x1xf32>
    %cst_72 = arith.constant 1.280000e+02 : f32
    %194 = vector.broadcast %cst_72 : f32 to vector<16x1xf32>
    %195 = arith.divf %193, %194 : vector<16x1xf32>
    %196 = vector.broadcast %188 : vector<16x1xf32> to vector<16x128xf32>
    %197 = arith.subf %182, %196 : vector<16x128xf32>
    %cst_73 = arith.constant 9.99999974E-6 : f32
    %198 = vector.broadcast %cst_73 : f32 to vector<16x1xf32>
    %199 = arith.addf %195, %198 : vector<16x1xf32>
    %200 = math.rsqrt %199 : vector<16x1xf32>
    %201 = vector.broadcast %200 : vector<16x1xf32> to vector<16x128xf32>
    %202 = arith.mulf %197, %201 : vector<16x128xf32>
    %203 = vector.broadcast %183 : vector<1x128xf32> to vector<16x128xf32>
    %204 = arith.mulf %202, %203 : vector<16x128xf32>
    %205 = vector.broadcast %184 : vector<1x128xf32> to vector<16x128xf32>
    %206 = arith.addf %204, %205 : vector<16x128xf32>
    %207 = arith.truncf %206 : vector<16x128xf32> to vector<16x128xbf16>
    %c0_74 = arith.constant 0 : index
    %c0_75 = arith.constant 0 : index
    %208 = vector.load %arg14[%c0_74, %c0_75] : memref<128x512xbf16, #tpu.memory_space<vmem>>, vector<128x512xbf16>
    %cst_76 = arith.constant dense<0.000000e+00> : vector<16x512xf32>
    %209 = tpu.matmul %207, %208, %cst_76 {dimension_numbers = #tpu.dot_dimension_numbers<[1], [0], [0], [1], [0, 0, 1, 1], [], []>} : vector<16x128xbf16>, vector<128x512xbf16>, vector<16x512xf32> -> vector<16x512xf32>
    %210 = arith.mulf %209, %209 : vector<16x512xf32>
    %211 = arith.mulf %209, %210 : vector<16x512xf32>
    %cst_77 = arith.constant 4.471500e-02 : f32
    %212 = vector.broadcast %cst_77 : f32 to vector<16x512xf32>
    %213 = arith.mulf %212, %211 : vector<16x512xf32>
    %214 = arith.addf %209, %213 : vector<16x512xf32>
    %cst_78 = arith.constant 0.797884583 : f32
    %215 = vector.broadcast %cst_78 : f32 to vector<16x512xf32>
    %216 = arith.mulf %215, %214 : vector<16x512xf32>
    %217 = math.tanh %216 : vector<16x512xf32>
    %cst_79 = arith.constant 1.000000e+00 : f32
    %218 = vector.broadcast %cst_79 : f32 to vector<16x512xf32>
    %219 = arith.addf %218, %217 : vector<16x512xf32>
    %cst_80 = arith.constant 5.000000e-01 : f32
    %220 = vector.broadcast %cst_80 : f32 to vector<16x512xf32>
    %221 = arith.mulf %220, %219 : vector<16x512xf32>
    %222 = arith.mulf %209, %221 : vector<16x512xf32>
    %223 = arith.truncf %222 : vector<16x512xf32> to vector<16x512xbf16>
    %c0_81 = arith.constant 0 : index
    %c0_82 = arith.constant 0 : index
    %224 = vector.load %arg15[%c0_81, %c0_82] : memref<512x128xbf16, #tpu.memory_space<vmem>>, vector<512x128xbf16>
    %cst_83 = arith.constant dense<0.000000e+00> : vector<16x128xf32>
    %225 = tpu.matmul %223, %224, %cst_83 {dimension_numbers = #tpu.dot_dimension_numbers<[1], [0], [0], [1], [0, 0, 1, 1], [], []>} : vector<16x512xbf16>, vector<512x128xbf16>, vector<16x128xf32> -> vector<16x128xf32>
    %226 = arith.addf %182, %225 : vector<16x128xf32>
    %c0_84 = arith.constant 0 : index
    %c0_85 = arith.constant 0 : index
    %227 = vector.load %arg16[%c0_84, %c0_85] : memref<1x128xf32, #tpu.memory_space<vmem>>, vector<1x128xf32>
    %c0_86 = arith.constant 0 : index
    %c0_87 = arith.constant 0 : index
    %228 = vector.load %arg17[%c0_86, %c0_87] : memref<1x128xf32, #tpu.memory_space<vmem>>, vector<1x128xf32>
    %cst_88 = arith.constant dense<0.000000e+00> : vector<16xf32>
    %229 = vector.multi_reduction <add>, %226, %cst_88 [1] : vector<16x128xf32> to vector<16xf32>
    %230 = vector.shape_cast %229 : vector<16xf32> to vector<16x1xf32>
    %cst_89 = arith.constant 1.280000e+02 : f32
    %231 = vector.broadcast %cst_89 : f32 to vector<16x1xf32>
    %232 = arith.divf %230, %231 : vector<16x1xf32>
    %233 = vector.broadcast %232 : vector<16x1xf32> to vector<16x128xf32>
    %234 = arith.subf %226, %233 : vector<16x128xf32>
    %235 = arith.mulf %234, %234 : vector<16x128xf32>
    %cst_90 = arith.constant dense<0.000000e+00> : vector<16xf32>
    %236 = vector.multi_reduction <add>, %235, %cst_90 [1] : vector<16x128xf32> to vector<16xf32>
    %237 = vector.shape_cast %236 : vector<16xf32> to vector<16x1xf32>
    %cst_91 = arith.constant 1.280000e+02 : f32
    %238 = vector.broadcast %cst_91 : f32 to vector<16x1xf32>
    %239 = arith.divf %237, %238 : vector<16x1xf32>
    %240 = vector.broadcast %232 : vector<16x1xf32> to vector<16x128xf32>
    %241 = arith.subf %226, %240 : vector<16x128xf32>
    %cst_92 = arith.constant 9.99999974E-6 : f32
    %242 = vector.broadcast %cst_92 : f32 to vector<16x1xf32>
    %243 = arith.addf %239, %242 : vector<16x1xf32>
    %244 = math.rsqrt %243 : vector<16x1xf32>
    %245 = vector.broadcast %244 : vector<16x1xf32> to vector<16x128xf32>
    %246 = arith.mulf %241, %245 : vector<16x128xf32>
    %247 = vector.broadcast %227 : vector<1x128xf32> to vector<16x128xf32>
    %248 = arith.mulf %246, %247 : vector<16x128xf32>
    %249 = vector.broadcast %228 : vector<1x128xf32> to vector<16x128xf32>
    %250 = arith.addf %248, %249 : vector<16x128xf32>
    %251 = arith.truncf %250 : vector<16x128xf32> to vector<16x128xbf16>
    %c0_93 = arith.constant 0 : index
    %c0_94 = arith.constant 0 : index
    %252 = vector.load %arg18[%c0_93, %c0_94] : memref<128x384xbf16, #tpu.memory_space<vmem>>, vector<128x384xbf16>
    %cst_95 = arith.constant dense<0.000000e+00> : vector<16x384xf32>
    %253 = tpu.matmul %251, %252, %cst_95 {dimension_numbers = #tpu.dot_dimension_numbers<[1], [0], [0], [1], [0, 0, 1, 1], [], []>} : vector<16x128xbf16>, vector<128x384xbf16>, vector<16x384xf32> -> vector<16x384xf32>
    %cst_96 = arith.constant 0.000000e+00 : f32
    %254 = vector.broadcast %cst_96 : f32 to vector<16x128xf32>
    %255 = vector.extract_strided_slice %253 {offsets = [0, 0], sizes = [16, 32], strides = [1, 1]} : vector<16x384xf32> to vector<16x32xf32>
    %256 = arith.truncf %255 : vector<16x32xf32> to vector<16x32xbf16>
    %257 = vector.extract_strided_slice %253 {offsets = [0, 128], sizes = [16, 32], strides = [1, 1]} : vector<16x384xf32> to vector<16x32xf32>
    %258 = arith.truncf %257 : vector<16x32xf32> to vector<16x32xbf16>
    %259 = vector.extract_strided_slice %253 {offsets = [0, 256], sizes = [16, 32], strides = [1, 1]} : vector<16x384xf32> to vector<16x32xf32>
    %260 = arith.truncf %259 : vector<16x32xf32> to vector<16x32xbf16>
    %cst_97 = arith.constant dense<0.000000e+00> : vector<16x16xf32>
    %261 = tpu.matmul %256, %258, %cst_97 {dimension_numbers = #tpu.dot_dimension_numbers<[1], [1], [0], [0], [0, 0, 1, 0], [], []>} : vector<16x32xbf16>, vector<16x32xbf16>, vector<16x16xf32> -> vector<16x16xf32>
    %cst_98 = arith.constant 0.176776692 : f32
    %262 = vector.broadcast %cst_98 : f32 to vector<16x16xf32>
    %263 = arith.mulf %261, %262 : vector<16x16xf32>
    %cst_99 = arith.constant dense<0xFF800000> : vector<16xf32>
    %264 = vector.multi_reduction <maximumf>, %263, %cst_99 [1] : vector<16x16xf32> to vector<16xf32>
    %265 = vector.shape_cast %264 : vector<16xf32> to vector<16x1xf32>
    %266 = vector.broadcast %265 : vector<16x1xf32> to vector<16x16xf32>
    %267 = arith.subf %263, %266 : vector<16x16xf32>
    %268 = math.exp %267 : vector<16x16xf32>
    %cst_100 = arith.constant dense<0.000000e+00> : vector<16xf32>
    %269 = vector.multi_reduction <add>, %268, %cst_100 [1] : vector<16x16xf32> to vector<16xf32>
    %270 = vector.shape_cast %269 : vector<16xf32> to vector<16x1xf32>
    %271 = tpu.reciprocal %270 : vector<16x1xf32> -> vector<16x1xf32>
    %272 = vector.broadcast %271 : vector<16x1xf32> to vector<16x16xf32>
    %273 = arith.mulf %268, %272 : vector<16x16xf32>
    %274 = arith.truncf %273 : vector<16x16xf32> to vector<16x16xbf16>
    %cst_101 = arith.constant dense<0.000000e+00> : vector<16x32xf32>
    %275 = tpu.matmul %274, %260, %cst_101 {dimension_numbers = #tpu.dot_dimension_numbers<[1], [0], [0], [1], [0, 0, 1, 1], [], []>} : vector<16x16xbf16>, vector<16x32xbf16>, vector<16x32xf32> -> vector<16x32xf32>
    %276 = arith.truncf %275 : vector<16x32xf32> to vector<16x32xbf16>
    %c0_102 = arith.constant 0 : index
    %c0_103 = arith.constant 0 : index
    %277 = vector.load %arg19[%c0_102, %c0_103] : memref<128x128xbf16, #tpu.memory_space<vmem>>, vector<32x128xbf16>
    %cst_104 = arith.constant dense<0.000000e+00> : vector<16x128xf32>
    %278 = tpu.matmul %276, %277, %cst_104 {dimension_numbers = #tpu.dot_dimension_numbers<[1], [0], [0], [1], [0, 0, 1, 1], [], []>} : vector<16x32xbf16>, vector<32x128xbf16>, vector<16x128xf32> -> vector<16x128xf32>
    %279 = arith.addf %254, %278 : vector<16x128xf32>
    %280 = vector.extract_strided_slice %253 {offsets = [0, 32], sizes = [16, 32], strides = [1, 1]} : vector<16x384xf32> to vector<16x32xf32>
    %281 = arith.truncf %280 : vector<16x32xf32> to vector<16x32xbf16>
    %282 = vector.extract_strided_slice %253 {offsets = [0, 160], sizes = [16, 32], strides = [1, 1]} : vector<16x384xf32> to vector<16x32xf32>
    %283 = arith.truncf %282 : vector<16x32xf32> to vector<16x32xbf16>
    %284 = vector.extract_strided_slice %253 {offsets = [0, 288], sizes = [16, 32], strides = [1, 1]} : vector<16x384xf32> to vector<16x32xf32>
    %285 = arith.truncf %284 : vector<16x32xf32> to vector<16x32xbf16>
    %cst_105 = arith.constant dense<0.000000e+00> : vector<16x16xf32>
    %286 = tpu.matmul %281, %283, %cst_105 {dimension_numbers = #tpu.dot_dimension_numbers<[1], [1], [0], [0], [0, 0, 1, 0], [], []>} : vector<16x32xbf16>, vector<16x32xbf16>, vector<16x16xf32> -> vector<16x16xf32>
    %cst_106 = arith.constant 0.176776692 : f32
    %287 = vector.broadcast %cst_106 : f32 to vector<16x16xf32>
    %288 = arith.mulf %286, %287 : vector<16x16xf32>
    %cst_107 = arith.constant dense<0xFF800000> : vector<16xf32>
    %289 = vector.multi_reduction <maximumf>, %288, %cst_107 [1] : vector<16x16xf32> to vector<16xf32>
    %290 = vector.shape_cast %289 : vector<16xf32> to vector<16x1xf32>
    %291 = vector.broadcast %290 : vector<16x1xf32> to vector<16x16xf32>
    %292 = arith.subf %288, %291 : vector<16x16xf32>
    %293 = math.exp %292 : vector<16x16xf32>
    %cst_108 = arith.constant dense<0.000000e+00> : vector<16xf32>
    %294 = vector.multi_reduction <add>, %293, %cst_108 [1] : vector<16x16xf32> to vector<16xf32>
    %295 = vector.shape_cast %294 : vector<16xf32> to vector<16x1xf32>
    %296 = tpu.reciprocal %295 : vector<16x1xf32> -> vector<16x1xf32>
    %297 = vector.broadcast %296 : vector<16x1xf32> to vector<16x16xf32>
    %298 = arith.mulf %293, %297 : vector<16x16xf32>
    %299 = arith.truncf %298 : vector<16x16xf32> to vector<16x16xbf16>
    %cst_109 = arith.constant dense<0.000000e+00> : vector<16x32xf32>
    %300 = tpu.matmul %299, %285, %cst_109 {dimension_numbers = #tpu.dot_dimension_numbers<[1], [0], [0], [1], [0, 0, 1, 1], [], []>} : vector<16x16xbf16>, vector<16x32xbf16>, vector<16x32xf32> -> vector<16x32xf32>
    %301 = arith.truncf %300 : vector<16x32xf32> to vector<16x32xbf16>
    %c32_110 = arith.constant 32 : index
    %c0_111 = arith.constant 0 : index
    %302 = vector.load %arg19[%c32_110, %c0_111] : memref<128x128xbf16, #tpu.memory_space<vmem>>, vector<32x128xbf16>
    %cst_112 = arith.constant dense<0.000000e+00> : vector<16x128xf32>
    %303 = tpu.matmul %301, %302, %cst_112 {dimension_numbers = #tpu.dot_dimension_numbers<[1], [0], [0], [1], [0, 0, 1, 1], [], []>} : vector<16x32xbf16>, vector<32x128xbf16>, vector<16x128xf32> -> vector<16x128xf32>
    %304 = arith.addf %279, %303 : vector<16x128xf32>
    %305 = vector.extract_strided_slice %253 {offsets = [0, 64], sizes = [16, 32], strides = [1, 1]} : vector<16x384xf32> to vector<16x32xf32>
    %306 = arith.truncf %305 : vector<16x32xf32> to vector<16x32xbf16>
    %307 = vector.extract_strided_slice %253 {offsets = [0, 192], sizes = [16, 32], strides = [1, 1]} : vector<16x384xf32> to vector<16x32xf32>
    %308 = arith.truncf %307 : vector<16x32xf32> to vector<16x32xbf16>
    %309 = vector.extract_strided_slice %253 {offsets = [0, 320], sizes = [16, 32], strides = [1, 1]} : vector<16x384xf32> to vector<16x32xf32>
    %310 = arith.truncf %309 : vector<16x32xf32> to vector<16x32xbf16>
    %cst_113 = arith.constant dense<0.000000e+00> : vector<16x16xf32>
    %311 = tpu.matmul %306, %308, %cst_113 {dimension_numbers = #tpu.dot_dimension_numbers<[1], [1], [0], [0], [0, 0, 1, 0], [], []>} : vector<16x32xbf16>, vector<16x32xbf16>, vector<16x16xf32> -> vector<16x16xf32>
    %cst_114 = arith.constant 0.176776692 : f32
    %312 = vector.broadcast %cst_114 : f32 to vector<16x16xf32>
    %313 = arith.mulf %311, %312 : vector<16x16xf32>
    %cst_115 = arith.constant dense<0xFF800000> : vector<16xf32>
    %314 = vector.multi_reduction <maximumf>, %313, %cst_115 [1] : vector<16x16xf32> to vector<16xf32>
    %315 = vector.shape_cast %314 : vector<16xf32> to vector<16x1xf32>
    %316 = vector.broadcast %315 : vector<16x1xf32> to vector<16x16xf32>
    %317 = arith.subf %313, %316 : vector<16x16xf32>
    %318 = math.exp %317 : vector<16x16xf32>
    %cst_116 = arith.constant dense<0.000000e+00> : vector<16xf32>
    %319 = vector.multi_reduction <add>, %318, %cst_116 [1] : vector<16x16xf32> to vector<16xf32>
    %320 = vector.shape_cast %319 : vector<16xf32> to vector<16x1xf32>
    %321 = tpu.reciprocal %320 : vector<16x1xf32> -> vector<16x1xf32>
    %322 = vector.broadcast %321 : vector<16x1xf32> to vector<16x16xf32>
    %323 = arith.mulf %318, %322 : vector<16x16xf32>
    %324 = arith.truncf %323 : vector<16x16xf32> to vector<16x16xbf16>
    %cst_117 = arith.constant dense<0.000000e+00> : vector<16x32xf32>
    %325 = tpu.matmul %324, %310, %cst_117 {dimension_numbers = #tpu.dot_dimension_numbers<[1], [0], [0], [1], [0, 0, 1, 1], [], []>} : vector<16x16xbf16>, vector<16x32xbf16>, vector<16x32xf32> -> vector<16x32xf32>
    %326 = arith.truncf %325 : vector<16x32xf32> to vector<16x32xbf16>
    %c64_118 = arith.constant 64 : index
    %c0_119 = arith.constant 0 : index
    %327 = vector.load %arg19[%c64_118, %c0_119] : memref<128x128xbf16, #tpu.memory_space<vmem>>, vector<32x128xbf16>
    %cst_120 = arith.constant dense<0.000000e+00> : vector<16x128xf32>
    %328 = tpu.matmul %326, %327, %cst_120 {dimension_numbers = #tpu.dot_dimension_numbers<[1], [0], [0], [1], [0, 0, 1, 1], [], []>} : vector<16x32xbf16>, vector<32x128xbf16>, vector<16x128xf32> -> vector<16x128xf32>
    %329 = arith.addf %304, %328 : vector<16x128xf32>
    %330 = vector.extract_strided_slice %253 {offsets = [0, 96], sizes = [16, 32], strides = [1, 1]} : vector<16x384xf32> to vector<16x32xf32>
    %331 = arith.truncf %330 : vector<16x32xf32> to vector<16x32xbf16>
    %332 = vector.extract_strided_slice %253 {offsets = [0, 224], sizes = [16, 32], strides = [1, 1]} : vector<16x384xf32> to vector<16x32xf32>
    %333 = arith.truncf %332 : vector<16x32xf32> to vector<16x32xbf16>
    %334 = vector.extract_strided_slice %253 {offsets = [0, 352], sizes = [16, 32], strides = [1, 1]} : vector<16x384xf32> to vector<16x32xf32>
    %335 = arith.truncf %334 : vector<16x32xf32> to vector<16x32xbf16>
    %cst_121 = arith.constant dense<0.000000e+00> : vector<16x16xf32>
    %336 = tpu.matmul %331, %333, %cst_121 {dimension_numbers = #tpu.dot_dimension_numbers<[1], [1], [0], [0], [0, 0, 1, 0], [], []>} : vector<16x32xbf16>, vector<16x32xbf16>, vector<16x16xf32> -> vector<16x16xf32>
    %cst_122 = arith.constant 0.176776692 : f32
    %337 = vector.broadcast %cst_122 : f32 to vector<16x16xf32>
    %338 = arith.mulf %336, %337 : vector<16x16xf32>
    %cst_123 = arith.constant dense<0xFF800000> : vector<16xf32>
    %339 = vector.multi_reduction <maximumf>, %338, %cst_123 [1] : vector<16x16xf32> to vector<16xf32>
    %340 = vector.shape_cast %339 : vector<16xf32> to vector<16x1xf32>
    %341 = vector.broadcast %340 : vector<16x1xf32> to vector<16x16xf32>
    %342 = arith.subf %338, %341 : vector<16x16xf32>
    %343 = math.exp %342 : vector<16x16xf32>
    %cst_124 = arith.constant dense<0.000000e+00> : vector<16xf32>
    %344 = vector.multi_reduction <add>, %343, %cst_124 [1] : vector<16x16xf32> to vector<16xf32>
    %345 = vector.shape_cast %344 : vector<16xf32> to vector<16x1xf32>
    %346 = tpu.reciprocal %345 : vector<16x1xf32> -> vector<16x1xf32>
    %347 = vector.broadcast %346 : vector<16x1xf32> to vector<16x16xf32>
    %348 = arith.mulf %343, %347 : vector<16x16xf32>
    %349 = arith.truncf %348 : vector<16x16xf32> to vector<16x16xbf16>
    %cst_125 = arith.constant dense<0.000000e+00> : vector<16x32xf32>
    %350 = tpu.matmul %349, %335, %cst_125 {dimension_numbers = #tpu.dot_dimension_numbers<[1], [0], [0], [1], [0, 0, 1, 1], [], []>} : vector<16x16xbf16>, vector<16x32xbf16>, vector<16x32xf32> -> vector<16x32xf32>
    %351 = arith.truncf %350 : vector<16x32xf32> to vector<16x32xbf16>
    %c96_126 = arith.constant 96 : index
    %c0_127 = arith.constant 0 : index
    %352 = vector.load %arg19[%c96_126, %c0_127] : memref<128x128xbf16, #tpu.memory_space<vmem>>, vector<32x128xbf16>
    %cst_128 = arith.constant dense<0.000000e+00> : vector<16x128xf32>
    %353 = tpu.matmul %351, %352, %cst_128 {dimension_numbers = #tpu.dot_dimension_numbers<[1], [0], [0], [1], [0, 0, 1, 1], [], []>} : vector<16x32xbf16>, vector<32x128xbf16>, vector<16x128xf32> -> vector<16x128xf32>
    %354 = arith.addf %329, %353 : vector<16x128xf32>
    %355 = arith.addf %226, %354 : vector<16x128xf32>
    %c0_129 = arith.constant 0 : index
    %c0_130 = arith.constant 0 : index
    %356 = vector.load %arg20[%c0_129, %c0_130] : memref<1x128xf32, #tpu.memory_space<vmem>>, vector<1x128xf32>
    %c0_131 = arith.constant 0 : index
    %c0_132 = arith.constant 0 : index
    %357 = vector.load %arg21[%c0_131, %c0_132] : memref<1x128xf32, #tpu.memory_space<vmem>>, vector<1x128xf32>
    %cst_133 = arith.constant dense<0.000000e+00> : vector<16xf32>
    %358 = vector.multi_reduction <add>, %355, %cst_133 [1] : vector<16x128xf32> to vector<16xf32>
    %359 = vector.shape_cast %358 : vector<16xf32> to vector<16x1xf32>
    %cst_134 = arith.constant 1.280000e+02 : f32
    %360 = vector.broadcast %cst_134 : f32 to vector<16x1xf32>
    %361 = arith.divf %359, %360 : vector<16x1xf32>
    %362 = vector.broadcast %361 : vector<16x1xf32> to vector<16x128xf32>
    %363 = arith.subf %355, %362 : vector<16x128xf32>
    %364 = arith.mulf %363, %363 : vector<16x128xf32>
    %cst_135 = arith.constant dense<0.000000e+00> : vector<16xf32>
    %365 = vector.multi_reduction <add>, %364, %cst_135 [1] : vector<16x128xf32> to vector<16xf32>
    %366 = vector.shape_cast %365 : vector<16xf32> to vector<16x1xf32>
    %cst_136 = arith.constant 1.280000e+02 : f32
    %367 = vector.broadcast %cst_136 : f32 to vector<16x1xf32>
    %368 = arith.divf %366, %367 : vector<16x1xf32>
    %369 = vector.broadcast %361 : vector<16x1xf32> to vector<16x128xf32>
    %370 = arith.subf %355, %369 : vector<16x128xf32>
    %cst_137 = arith.constant 9.99999974E-6 : f32
    %371 = vector.broadcast %cst_137 : f32 to vector<16x1xf32>
    %372 = arith.addf %368, %371 : vector<16x1xf32>
    %373 = math.rsqrt %372 : vector<16x1xf32>
    %374 = vector.broadcast %373 : vector<16x1xf32> to vector<16x128xf32>
    %375 = arith.mulf %370, %374 : vector<16x128xf32>
    %376 = vector.broadcast %356 : vector<1x128xf32> to vector<16x128xf32>
    %377 = arith.mulf %375, %376 : vector<16x128xf32>
    %378 = vector.broadcast %357 : vector<1x128xf32> to vector<16x128xf32>
    %379 = arith.addf %377, %378 : vector<16x128xf32>
    %380 = arith.truncf %379 : vector<16x128xf32> to vector<16x128xbf16>
    %c0_138 = arith.constant 0 : index
    %c0_139 = arith.constant 0 : index
    %381 = vector.load %arg22[%c0_138, %c0_139] : memref<128x512xbf16, #tpu.memory_space<vmem>>, vector<128x512xbf16>
    %cst_140 = arith.constant dense<0.000000e+00> : vector<16x512xf32>
    %382 = tpu.matmul %380, %381, %cst_140 {dimension_numbers = #tpu.dot_dimension_numbers<[1], [0], [0], [1], [0, 0, 1, 1], [], []>} : vector<16x128xbf16>, vector<128x512xbf16>, vector<16x512xf32> -> vector<16x512xf32>
    %383 = arith.mulf %382, %382 : vector<16x512xf32>
    %384 = arith.mulf %382, %383 : vector<16x512xf32>
    %cst_141 = arith.constant 4.471500e-02 : f32
    %385 = vector.broadcast %cst_141 : f32 to vector<16x512xf32>
    %386 = arith.mulf %385, %384 : vector<16x512xf32>
    %387 = arith.addf %382, %386 : vector<16x512xf32>
    %cst_142 = arith.constant 0.797884583 : f32
    %388 = vector.broadcast %cst_142 : f32 to vector<16x512xf32>
    %389 = arith.mulf %388, %387 : vector<16x512xf32>
    %390 = math.tanh %389 : vector<16x512xf32>
    %cst_143 = arith.constant 1.000000e+00 : f32
    %391 = vector.broadcast %cst_143 : f32 to vector<16x512xf32>
    %392 = arith.addf %391, %390 : vector<16x512xf32>
    %cst_144 = arith.constant 5.000000e-01 : f32
    %393 = vector.broadcast %cst_144 : f32 to vector<16x512xf32>
    %394 = arith.mulf %393, %392 : vector<16x512xf32>
    %395 = arith.mulf %382, %394 : vector<16x512xf32>
    %396 = arith.truncf %395 : vector<16x512xf32> to vector<16x512xbf16>
    %c0_145 = arith.constant 0 : index
    %c0_146 = arith.constant 0 : index
    %397 = vector.load %arg23[%c0_145, %c0_146] : memref<512x128xbf16, #tpu.memory_space<vmem>>, vector<512x128xbf16>
    %cst_147 = arith.constant dense<0.000000e+00> : vector<16x128xf32>
    %398 = tpu.matmul %396, %397, %cst_147 {dimension_numbers = #tpu.dot_dimension_numbers<[1], [0], [0], [1], [0, 0, 1, 1], [], []>} : vector<16x512xbf16>, vector<512x128xbf16>, vector<16x128xf32> -> vector<16x128xf32>
    %399 = arith.addf %355, %398 : vector<16x128xf32>
    %400 = vector.extract_strided_slice %399 {offsets = [0, 0], sizes = [1, 128], strides = [1, 1]} : vector<16x128xf32> to vector<1x128xf32>
    %c0_148 = arith.constant 0 : index
    %c0_149 = arith.constant 0 : index
    %401 = vector.load %arg46[%c0_148, %c0_149] : memref<1x2048xf32, #tpu.memory_space<vmem>>, vector<1x128xf32>
    tpu.vector_store %arg46[%c0_148, %c0_149], %400 {strides = array<i32>} : memref<1x2048xf32, #tpu.memory_space<vmem>>, vector<1x128xf32>,
    %402 = vector.extract_strided_slice %399 {offsets = [1, 0], sizes = [1, 128], strides = [1, 1]} : vector<16x128xf32> to vector<1x128xf32>
    %c0_150 = arith.constant 0 : index
    %c128 = arith.constant 128 : index
    %403 = vector.load %arg46[%c0_150, %c128] : memref<1x2048xf32, #tpu.memory_space<vmem>>, vector<1x128xf32>
    tpu.vector_store %arg46[%c0_150, %c128], %402 {strides = array<i32>} : memref<1x2048xf32, #tpu.memory_space<vmem>>, vector<1x128xf32>,
    %404 = vector.extract_strided_slice %399 {offsets = [2, 0], sizes = [1, 128], strides = [1, 1]} : vector<16x128xf32> to vector<1x128xf32>
    %c0_151 = arith.constant 0 : index
    %c256 = arith.constant 256 : index
    %405 = vector.load %arg46[%c0_151, %c256] : memref<1x2048xf32, #tpu.memory_space<vmem>>, vector<1x128xf32>
    tpu.vector_store %arg46[%c0_151, %c256], %404 {strides = array<i32>} : memref<1x2048xf32, #tpu.memory_space<vmem>>, vector<1x128xf32>,
    %406 = vector.extract_strided_slice %399 {offsets = [3, 0], sizes = [1, 128], strides = [1, 1]} : vector<16x128xf32> to vector<1x128xf32>
    %c0_152 = arith.constant 0 : index
    %c384 = arith.constant 384 : index
    %407 = vector.load %arg46[%c0_152, %c384] : memref<1x2048xf32, #tpu.memory_space<vmem>>, vector<1x128xf32>
    tpu.vector_store %arg46[%c0_152, %c384], %406 {strides = array<i32>} : memref<1x2048xf32, #tpu.memory_space<vmem>>, vector<1x128xf32>,
    %408 = vector.extract_strided_slice %399 {offsets = [4, 0], sizes = [1, 128], strides = [1, 1]} : vector<16x128xf32> to vector<1x128xf32>
    %c0_153 = arith.constant 0 : index
    %c512 = arith.constant 512 : index
    %409 = vector.load %arg46[%c0_153, %c512] : memref<1x2048xf32, #tpu.memory_space<vmem>>, vector<1x128xf32>
    tpu.vector_store %arg46[%c0_153, %c512], %408 {strides = array<i32>} : memref<1x2048xf32, #tpu.memory_space<vmem>>, vector<1x128xf32>,
    %410 = vector.extract_strided_slice %399 {offsets = [5, 0], sizes = [1, 128], strides = [1, 1]} : vector<16x128xf32> to vector<1x128xf32>
    %c0_154 = arith.constant 0 : index
    %c640 = arith.constant 640 : index
    %411 = vector.load %arg46[%c0_154, %c640] : memref<1x2048xf32, #tpu.memory_space<vmem>>, vector<1x128xf32>
    tpu.vector_store %arg46[%c0_154, %c640], %410 {strides = array<i32>} : memref<1x2048xf32, #tpu.memory_space<vmem>>, vector<1x128xf32>,
    %412 = vector.extract_strided_slice %399 {offsets = [6, 0], sizes = [1, 128], strides = [1, 1]} : vector<16x128xf32> to vector<1x128xf32>
    %c0_155 = arith.constant 0 : index
    %c768 = arith.constant 768 : index
    %413 = vector.load %arg46[%c0_155, %c768] : memref<1x2048xf32, #tpu.memory_space<vmem>>, vector<1x128xf32>
    tpu.vector_store %arg46[%c0_155, %c768], %412 {strides = array<i32>} : memref<1x2048xf32, #tpu.memory_space<vmem>>, vector<1x128xf32>,
    %414 = vector.extract_strided_slice %399 {offsets = [7, 0], sizes = [1, 128], strides = [1, 1]} : vector<16x128xf32> to vector<1x128xf32>
    %c0_156 = arith.constant 0 : index
    %c896 = arith.constant 896 : index
    %415 = vector.load %arg46[%c0_156, %c896] : memref<1x2048xf32, #tpu.memory_space<vmem>>, vector<1x128xf32>
    tpu.vector_store %arg46[%c0_156, %c896], %414 {strides = array<i32>} : memref<1x2048xf32, #tpu.memory_space<vmem>>, vector<1x128xf32>,
    %416 = vector.extract_strided_slice %399 {offsets = [8, 0], sizes = [1, 128], strides = [1, 1]} : vector<16x128xf32> to vector<1x128xf32>
    %c0_157 = arith.constant 0 : index
    %c1024 = arith.constant 1024 : index
    %417 = vector.load %arg46[%c0_157, %c1024] : memref<1x2048xf32, #tpu.memory_space<vmem>>, vector<1x128xf32>
    tpu.vector_store %arg46[%c0_157, %c1024], %416 {strides = array<i32>} : memref<1x2048xf32, #tpu.memory_space<vmem>>, vector<1x128xf32>,
    %418 = vector.extract_strided_slice %399 {offsets = [9, 0], sizes = [1, 128], strides = [1, 1]} : vector<16x128xf32> to vector<1x128xf32>
    %c0_158 = arith.constant 0 : index
    %c1152 = arith.constant 1152 : index
    %419 = vector.load %arg46[%c0_158, %c1152] : memref<1x2048xf32, #tpu.memory_space<vmem>>, vector<1x128xf32>
    tpu.vector_store %arg46[%c0_158, %c1152], %418 {strides = array<i32>} : memref<1x2048xf32, #tpu.memory_space<vmem>>, vector<1x128xf32>,
    %420 = vector.extract_strided_slice %399 {offsets = [10, 0], sizes = [1, 128], strides = [1, 1]} : vector<16x128xf32> to vector<1x128xf32>
    %c0_159 = arith.constant 0 : index
    %c1280 = arith.constant 1280 : index
    %421 = vector.load %arg46[%c0_159, %c1280] : memref<1x2048xf32, #tpu.memory_space<vmem>>, vector<1x128xf32>
    tpu.vector_store %arg46[%c0_159, %c1280], %420 {strides = array<i32>} : memref<1x2048xf32, #tpu.memory_space<vmem>>, vector<1x128xf32>,
    %422 = vector.extract_strided_slice %399 {offsets = [11, 0], sizes = [1, 128], strides = [1, 1]} : vector<16x128xf32> to vector<1x128xf32>
    %c0_160 = arith.constant 0 : index
    %c1408 = arith.constant 1408 : index
    %423 = vector.load %arg46[%c0_160, %c1408] : memref<1x2048xf32, #tpu.memory_space<vmem>>, vector<1x128xf32>
    tpu.vector_store %arg46[%c0_160, %c1408], %422 {strides = array<i32>} : memref<1x2048xf32, #tpu.memory_space<vmem>>, vector<1x128xf32>,
    %424 = vector.extract_strided_slice %399 {offsets = [12, 0], sizes = [1, 128], strides = [1, 1]} : vector<16x128xf32> to vector<1x128xf32>
    %c0_161 = arith.constant 0 : index
    %c1536 = arith.constant 1536 : index
    %425 = vector.load %arg46[%c0_161, %c1536] : memref<1x2048xf32, #tpu.memory_space<vmem>>, vector<1x128xf32>
    tpu.vector_store %arg46[%c0_161, %c1536], %424 {strides = array<i32>} : memref<1x2048xf32, #tpu.memory_space<vmem>>, vector<1x128xf32>,
    %426 = vector.extract_strided_slice %399 {offsets = [13, 0], sizes = [1, 128], strides = [1, 1]} : vector<16x128xf32> to vector<1x128xf32>
    %c0_162 = arith.constant 0 : index
    %c1664 = arith.constant 1664 : index
    %427 = vector.load %arg46[%c0_162, %c1664] : memref<1x2048xf32, #tpu.memory_space<vmem>>, vector<1x128xf32>
    tpu.vector_store %arg46[%c0_162, %c1664], %426 {strides = array<i32>} : memref<1x2048xf32, #tpu.memory_space<vmem>>, vector<1x128xf32>,
    %428 = vector.extract_strided_slice %399 {offsets = [14, 0], sizes = [1, 128], strides = [1, 1]} : vector<16x128xf32> to vector<1x128xf32>
    %c0_163 = arith.constant 0 : index
    %c1792 = arith.constant 1792 : index
    %429 = vector.load %arg46[%c0_163, %c1792] : memref<1x2048xf32, #tpu.memory_space<vmem>>, vector<1x128xf32>
    tpu.vector_store %arg46[%c0_163, %c1792], %428 {strides = array<i32>} : memref<1x2048xf32, #tpu.memory_space<vmem>>, vector<1x128xf32>,
    %430 = vector.extract_strided_slice %399 {offsets = [15, 0], sizes = [1, 128], strides = [1, 1]} : vector<16x128xf32> to vector<1x128xf32>
    %c0_164 = arith.constant 0 : index
    %c1920 = arith.constant 1920 : index
    %431 = vector.load %arg46[%c0_164, %c1920] : memref<1x2048xf32, #tpu.memory_space<vmem>>, vector<1x128xf32>
    tpu.vector_store %arg46[%c0_164, %c1920], %430 {strides = array<i32>} : memref<1x2048xf32, #tpu.memory_space<vmem>>, vector<1x128xf32>,
    %c0_165 = arith.constant 0 : index
    %c0_166 = arith.constant 0 : index
    %432 = vector.load %arg46[%c0_165, %c0_166] : memref<1x2048xf32, #tpu.memory_space<vmem>>, vector<1x2048xf32>
    %433 = arith.truncf %432 : vector<1x2048xf32> to vector<1x2048xbf16>
    %c0_167 = arith.constant 0 : index
    %c0_168 = arith.constant 0 : index
    %434 = vector.load %arg24[%c0_167, %c0_168] : memref<2048x128xbf16, #tpu.memory_space<vmem>>, vector<2048x128xbf16>
    %cst_169 = arith.constant dense<0.000000e+00> : vector<1x128xf32>
    %435 = tpu.matmul %433, %434, %cst_169 {dimension_numbers = #tpu.dot_dimension_numbers<[1], [0], [0], [1], [0, 0, 1, 1], [], []>} : vector<1x2048xbf16>, vector<2048x128xbf16>, vector<1x128xf32> -> vector<1x128xf32>
    %436 = arith.truncf %435 : vector<1x128xf32> to vector<1x128xbf16>
    %c0_170 = arith.constant 0 : index
    %c0_171 = arith.constant 0 : index
    %437 = vector.load %arg25[%c0_170, %c0_171] : memref<128x2048xbf16, #tpu.memory_space<vmem>>, vector<128x2048xbf16>
    %cst_172 = arith.constant dense<0.000000e+00> : vector<1x2048xf32>
    %438 = tpu.matmul %436, %437, %cst_172 {dimension_numbers = #tpu.dot_dimension_numbers<[1], [0], [0], [1], [0, 0, 1, 1], [], []>} : vector<1x128xbf16>, vector<128x2048xbf16>, vector<1x2048xf32> -> vector<1x2048xf32>
    %439 = vector.extract_strided_slice %438 {offsets = [0, 0], sizes = [1, 128], strides = [1, 1]} : vector<1x2048xf32> to vector<1x128xf32>
    %c0_173 = arith.constant 0 : index
    %c0_174 = arith.constant 0 : index
    %440 = vector.load %arg47[%c0_173, %c0_174] : memref<16x128xf32, #tpu.memory_space<vmem>>, vector<1x128xf32>
    tpu.vector_store %arg47[%c0_173, %c0_174], %439 {strides = array<i32>} : memref<16x128xf32, #tpu.memory_space<vmem>>, vector<1x128xf32>,
    %441 = vector.extract_strided_slice %438 {offsets = [0, 128], sizes = [1, 128], strides = [1, 1]} : vector<1x2048xf32> to vector<1x128xf32>
    %c1 = arith.constant 1 : index
    %c0_175 = arith.constant 0 : index
    %442 = vector.load %arg47[%c1, %c0_175] : memref<16x128xf32, #tpu.memory_space<vmem>>, vector<1x128xf32>
    tpu.vector_store %arg47[%c1, %c0_175], %441 {strides = array<i32>} : memref<16x128xf32, #tpu.memory_space<vmem>>, vector<1x128xf32>,
    %443 = vector.extract_strided_slice %438 {offsets = [0, 256], sizes = [1, 128], strides = [1, 1]} : vector<1x2048xf32> to vector<1x128xf32>
    %c2 = arith.constant 2 : index
    %c0_176 = arith.constant 0 : index
    %444 = vector.load %arg47[%c2, %c0_176] : memref<16x128xf32, #tpu.memory_space<vmem>>, vector<1x128xf32>
    tpu.vector_store %arg47[%c2, %c0_176], %443 {strides = array<i32>} : memref<16x128xf32, #tpu.memory_space<vmem>>, vector<1x128xf32>,
    %445 = vector.extract_strided_slice %438 {offsets = [0, 384], sizes = [1, 128], strides = [1, 1]} : vector<1x2048xf32> to vector<1x128xf32>
    %c3 = arith.constant 3 : index
    %c0_177 = arith.constant 0 : index
    %446 = vector.load %arg47[%c3, %c0_177] : memref<16x128xf32, #tpu.memory_space<vmem>>, vector<1x128xf32>
    tpu.vector_store %arg47[%c3, %c0_177], %445 {strides = array<i32>} : memref<16x128xf32, #tpu.memory_space<vmem>>, vector<1x128xf32>,
    %447 = vector.extract_strided_slice %438 {offsets = [0, 512], sizes = [1, 128], strides = [1, 1]} : vector<1x2048xf32> to vector<1x128xf32>
    %c4 = arith.constant 4 : index
    %c0_178 = arith.constant 0 : index
    %448 = vector.load %arg47[%c4, %c0_178] : memref<16x128xf32, #tpu.memory_space<vmem>>, vector<1x128xf32>
    tpu.vector_store %arg47[%c4, %c0_178], %447 {strides = array<i32>} : memref<16x128xf32, #tpu.memory_space<vmem>>, vector<1x128xf32>,
    %449 = vector.extract_strided_slice %438 {offsets = [0, 640], sizes = [1, 128], strides = [1, 1]} : vector<1x2048xf32> to vector<1x128xf32>
    %c5 = arith.constant 5 : index
    %c0_179 = arith.constant 0 : index
    %450 = vector.load %arg47[%c5, %c0_179] : memref<16x128xf32, #tpu.memory_space<vmem>>, vector<1x128xf32>
    tpu.vector_store %arg47[%c5, %c0_179], %449 {strides = array<i32>} : memref<16x128xf32, #tpu.memory_space<vmem>>, vector<1x128xf32>,
    %451 = vector.extract_strided_slice %438 {offsets = [0, 768], sizes = [1, 128], strides = [1, 1]} : vector<1x2048xf32> to vector<1x128xf32>
    %c6 = arith.constant 6 : index
    %c0_180 = arith.constant 0 : index
    %452 = vector.load %arg47[%c6, %c0_180] : memref<16x128xf32, #tpu.memory_space<vmem>>, vector<1x128xf32>
    tpu.vector_store %arg47[%c6, %c0_180], %451 {strides = array<i32>} : memref<16x128xf32, #tpu.memory_space<vmem>>, vector<1x128xf32>,
    %453 = vector.extract_strided_slice %438 {offsets = [0, 896], sizes = [1, 128], strides = [1, 1]} : vector<1x2048xf32> to vector<1x128xf32>
    %c7 = arith.constant 7 : index
    %c0_181 = arith.constant 0 : index
    %454 = vector.load %arg47[%c7, %c0_181] : memref<16x128xf32, #tpu.memory_space<vmem>>, vector<1x128xf32>
    tpu.vector_store %arg47[%c7, %c0_181], %453 {strides = array<i32>} : memref<16x128xf32, #tpu.memory_space<vmem>>, vector<1x128xf32>,
    %455 = vector.extract_strided_slice %438 {offsets = [0, 1024], sizes = [1, 128], strides = [1, 1]} : vector<1x2048xf32> to vector<1x128xf32>
    %c8 = arith.constant 8 : index
    %c0_182 = arith.constant 0 : index
    %456 = vector.load %arg47[%c8, %c0_182] : memref<16x128xf32, #tpu.memory_space<vmem>>, vector<1x128xf32>
    tpu.vector_store %arg47[%c8, %c0_182], %455 {strides = array<i32>} : memref<16x128xf32, #tpu.memory_space<vmem>>, vector<1x128xf32>,
    %457 = vector.extract_strided_slice %438 {offsets = [0, 1152], sizes = [1, 128], strides = [1, 1]} : vector<1x2048xf32> to vector<1x128xf32>
    %c9 = arith.constant 9 : index
    %c0_183 = arith.constant 0 : index
    %458 = vector.load %arg47[%c9, %c0_183] : memref<16x128xf32, #tpu.memory_space<vmem>>, vector<1x128xf32>
    tpu.vector_store %arg47[%c9, %c0_183], %457 {strides = array<i32>} : memref<16x128xf32, #tpu.memory_space<vmem>>, vector<1x128xf32>,
    %459 = vector.extract_strided_slice %438 {offsets = [0, 1280], sizes = [1, 128], strides = [1, 1]} : vector<1x2048xf32> to vector<1x128xf32>
    %c10 = arith.constant 10 : index
    %c0_184 = arith.constant 0 : index
    %460 = vector.load %arg47[%c10, %c0_184] : memref<16x128xf32, #tpu.memory_space<vmem>>, vector<1x128xf32>
    tpu.vector_store %arg47[%c10, %c0_184], %459 {strides = array<i32>} : memref<16x128xf32, #tpu.memory_space<vmem>>, vector<1x128xf32>,
    %461 = vector.extract_strided_slice %438 {offsets = [0, 1408], sizes = [1, 128], strides = [1, 1]} : vector<1x2048xf32> to vector<1x128xf32>
    %c11 = arith.constant 11 : index
    %c0_185 = arith.constant 0 : index
    %462 = vector.load %arg47[%c11, %c0_185] : memref<16x128xf32, #tpu.memory_space<vmem>>, vector<1x128xf32>
    tpu.vector_store %arg47[%c11, %c0_185], %461 {strides = array<i32>} : memref<16x128xf32, #tpu.memory_space<vmem>>, vector<1x128xf32>,
    %463 = vector.extract_strided_slice %438 {offsets = [0, 1536], sizes = [1, 128], strides = [1, 1]} : vector<1x2048xf32> to vector<1x128xf32>
    %c12 = arith.constant 12 : index
    %c0_186 = arith.constant 0 : index
    %464 = vector.load %arg47[%c12, %c0_186] : memref<16x128xf32, #tpu.memory_space<vmem>>, vector<1x128xf32>
    tpu.vector_store %arg47[%c12, %c0_186], %463 {strides = array<i32>} : memref<16x128xf32, #tpu.memory_space<vmem>>, vector<1x128xf32>,
    %465 = vector.extract_strided_slice %438 {offsets = [0, 1664], sizes = [1, 128], strides = [1, 1]} : vector<1x2048xf32> to vector<1x128xf32>
    %c13 = arith.constant 13 : index
    %c0_187 = arith.constant 0 : index
    %466 = vector.load %arg47[%c13, %c0_187] : memref<16x128xf32, #tpu.memory_space<vmem>>, vector<1x128xf32>
    tpu.vector_store %arg47[%c13, %c0_187], %465 {strides = array<i32>} : memref<16x128xf32, #tpu.memory_space<vmem>>, vector<1x128xf32>,
    %467 = vector.extract_strided_slice %438 {offsets = [0, 1792], sizes = [1, 128], strides = [1, 1]} : vector<1x2048xf32> to vector<1x128xf32>
    %c14 = arith.constant 14 : index
    %c0_188 = arith.constant 0 : index
    %468 = vector.load %arg47[%c14, %c0_188] : memref<16x128xf32, #tpu.memory_space<vmem>>, vector<1x128xf32>
    tpu.vector_store %arg47[%c14, %c0_188], %467 {strides = array<i32>} : memref<16x128xf32, #tpu.memory_space<vmem>>, vector<1x128xf32>,
    %469 = vector.extract_strided_slice %438 {offsets = [0, 1920], sizes = [1, 128], strides = [1, 1]} : vector<1x2048xf32> to vector<1x128xf32>
    %c15 = arith.constant 15 : index
    %c0_189 = arith.constant 0 : index
    %470 = vector.load %arg47[%c15, %c0_189] : memref<16x128xf32, #tpu.memory_space<vmem>>, vector<1x128xf32>
    tpu.vector_store %arg47[%c15, %c0_189], %469 {strides = array<i32>} : memref<16x128xf32, #tpu.memory_space<vmem>>, vector<1x128xf32>,
    %c0_190 = arith.constant 0 : index
    %c0_191 = arith.constant 0 : index
    %471 = vector.load %arg47[%c0_190, %c0_191] : memref<16x128xf32, #tpu.memory_space<vmem>>, vector<16x128xf32>
    %c0_192 = arith.constant 0 : index
    %c0_193 = arith.constant 0 : index
    %472 = vector.load %arg26[%c0_192, %c0_193] : memref<1x128xf32, #tpu.memory_space<vmem>>, vector<1x128xf32>
    %c0_194 = arith.constant 0 : index
    %c0_195 = arith.constant 0 : index
    %473 = vector.load %arg27[%c0_194, %c0_195] : memref<1x128xf32, #tpu.memory_space<vmem>>, vector<1x128xf32>
    %cst_196 = arith.constant dense<0.000000e+00> : vector<16xf32>
    %474 = vector.multi_reduction <add>, %471, %cst_196 [1] : vector<16x128xf32> to vector<16xf32>
    %475 = vector.shape_cast %474 : vector<16xf32> to vector<16x1xf32>
    %cst_197 = arith.constant 1.280000e+02 : f32
    %476 = vector.broadcast %cst_197 : f32 to vector<16x1xf32>
    %477 = arith.divf %475, %476 : vector<16x1xf32>
    %478 = vector.broadcast %477 : vector<16x1xf32> to vector<16x128xf32>
    %479 = arith.subf %471, %478 : vector<16x128xf32>
    %480 = arith.mulf %479, %479 : vector<16x128xf32>
    %cst_198 = arith.constant dense<0.000000e+00> : vector<16xf32>
    %481 = vector.multi_reduction <add>, %480, %cst_198 [1] : vector<16x128xf32> to vector<16xf32>
    %482 = vector.shape_cast %481 : vector<16xf32> to vector<16x1xf32>
    %cst_199 = arith.constant 1.280000e+02 : f32
    %483 = vector.broadcast %cst_199 : f32 to vector<16x1xf32>
    %484 = arith.divf %482, %483 : vector<16x1xf32>
    %485 = vector.broadcast %477 : vector<16x1xf32> to vector<16x128xf32>
    %486 = arith.subf %471, %485 : vector<16x128xf32>
    %cst_200 = arith.constant 9.99999974E-6 : f32
    %487 = vector.broadcast %cst_200 : f32 to vector<16x1xf32>
    %488 = arith.addf %484, %487 : vector<16x1xf32>
    %489 = math.rsqrt %488 : vector<16x1xf32>
    %490 = vector.broadcast %489 : vector<16x1xf32> to vector<16x128xf32>
    %491 = arith.mulf %486, %490 : vector<16x128xf32>
    %492 = vector.broadcast %472 : vector<1x128xf32> to vector<16x128xf32>
    %493 = arith.mulf %491, %492 : vector<16x128xf32>
    %494 = vector.broadcast %473 : vector<1x128xf32> to vector<16x128xf32>
    %495 = arith.addf %493, %494 : vector<16x128xf32>
    %496 = arith.truncf %495 : vector<16x128xf32> to vector<16x128xbf16>
    %c0_201 = arith.constant 0 : index
    %c0_202 = arith.constant 0 : index
    %497 = vector.load %arg28[%c0_201, %c0_202] : memref<128x384xbf16, #tpu.memory_space<vmem>>, vector<128x384xbf16>
    %cst_203 = arith.constant dense<0.000000e+00> : vector<16x384xf32>
    %498 = tpu.matmul %496, %497, %cst_203 {dimension_numbers = #tpu.dot_dimension_numbers<[1], [0], [0], [1], [0, 0, 1, 1], [], []>} : vector<16x128xbf16>, vector<128x384xbf16>, vector<16x384xf32> -> vector<16x384xf32>
    %cst_204 = arith.constant 0.000000e+00 : f32
    %499 = vector.broadcast %cst_204 : f32 to vector<16x128xf32>
    %500 = vector.extract_strided_slice %498 {offsets = [0, 0], sizes = [16, 32], strides = [1, 1]} : vector<16x384xf32> to vector<16x32xf32>
    %501 = arith.truncf %500 : vector<16x32xf32> to vector<16x32xbf16>
    %502 = vector.extract_strided_slice %498 {offsets = [0, 128], sizes = [16, 32], strides = [1, 1]} : vector<16x384xf32> to vector<16x32xf32>
    %503 = arith.truncf %502 : vector<16x32xf32> to vector<16x32xbf16>
    %504 = vector.extract_strided_slice %498 {offsets = [0, 256], sizes = [16, 32], strides = [1, 1]} : vector<16x384xf32> to vector<16x32xf32>
    %505 = arith.truncf %504 : vector<16x32xf32> to vector<16x32xbf16>
    %cst_205 = arith.constant dense<0.000000e+00> : vector<16x16xf32>
    %506 = tpu.matmul %501, %503, %cst_205 {dimension_numbers = #tpu.dot_dimension_numbers<[1], [1], [0], [0], [0, 0, 1, 0], [], []>} : vector<16x32xbf16>, vector<16x32xbf16>, vector<16x16xf32> -> vector<16x16xf32>
    %cst_206 = arith.constant 0.176776692 : f32
    %507 = vector.broadcast %cst_206 : f32 to vector<16x16xf32>
    %508 = arith.mulf %506, %507 : vector<16x16xf32>
    %cst_207 = arith.constant dense<0xFF800000> : vector<16xf32>
    %509 = vector.multi_reduction <maximumf>, %508, %cst_207 [1] : vector<16x16xf32> to vector<16xf32>
    %510 = vector.shape_cast %509 : vector<16xf32> to vector<16x1xf32>
    %511 = vector.broadcast %510 : vector<16x1xf32> to vector<16x16xf32>
    %512 = arith.subf %508, %511 : vector<16x16xf32>
    %513 = math.exp %512 : vector<16x16xf32>
    %cst_208 = arith.constant dense<0.000000e+00> : vector<16xf32>
    %514 = vector.multi_reduction <add>, %513, %cst_208 [1] : vector<16x16xf32> to vector<16xf32>
    %515 = vector.shape_cast %514 : vector<16xf32> to vector<16x1xf32>
    %516 = tpu.reciprocal %515 : vector<16x1xf32> -> vector<16x1xf32>
    %517 = vector.broadcast %516 : vector<16x1xf32> to vector<16x16xf32>
    %518 = arith.mulf %513, %517 : vector<16x16xf32>
    %519 = arith.truncf %518 : vector<16x16xf32> to vector<16x16xbf16>
    %cst_209 = arith.constant dense<0.000000e+00> : vector<16x32xf32>
    %520 = tpu.matmul %519, %505, %cst_209 {dimension_numbers = #tpu.dot_dimension_numbers<[1], [0], [0], [1], [0, 0, 1, 1], [], []>} : vector<16x16xbf16>, vector<16x32xbf16>, vector<16x32xf32> -> vector<16x32xf32>
    %521 = arith.truncf %520 : vector<16x32xf32> to vector<16x32xbf16>
    %c0_210 = arith.constant 0 : index
    %c0_211 = arith.constant 0 : index
    %522 = vector.load %arg29[%c0_210, %c0_211] : memref<128x128xbf16, #tpu.memory_space<vmem>>, vector<32x128xbf16>
    %cst_212 = arith.constant dense<0.000000e+00> : vector<16x128xf32>
    %523 = tpu.matmul %521, %522, %cst_212 {dimension_numbers = #tpu.dot_dimension_numbers<[1], [0], [0], [1], [0, 0, 1, 1], [], []>} : vector<16x32xbf16>, vector<32x128xbf16>, vector<16x128xf32> -> vector<16x128xf32>
    %524 = arith.addf %499, %523 : vector<16x128xf32>
    %525 = vector.extract_strided_slice %498 {offsets = [0, 32], sizes = [16, 32], strides = [1, 1]} : vector<16x384xf32> to vector<16x32xf32>
    %526 = arith.truncf %525 : vector<16x32xf32> to vector<16x32xbf16>
    %527 = vector.extract_strided_slice %498 {offsets = [0, 160], sizes = [16, 32], strides = [1, 1]} : vector<16x384xf32> to vector<16x32xf32>
    %528 = arith.truncf %527 : vector<16x32xf32> to vector<16x32xbf16>
    %529 = vector.extract_strided_slice %498 {offsets = [0, 288], sizes = [16, 32], strides = [1, 1]} : vector<16x384xf32> to vector<16x32xf32>
    %530 = arith.truncf %529 : vector<16x32xf32> to vector<16x32xbf16>
    %cst_213 = arith.constant dense<0.000000e+00> : vector<16x16xf32>
    %531 = tpu.matmul %526, %528, %cst_213 {dimension_numbers = #tpu.dot_dimension_numbers<[1], [1], [0], [0], [0, 0, 1, 0], [], []>} : vector<16x32xbf16>, vector<16x32xbf16>, vector<16x16xf32> -> vector<16x16xf32>
    %cst_214 = arith.constant 0.176776692 : f32
    %532 = vector.broadcast %cst_214 : f32 to vector<16x16xf32>
    %533 = arith.mulf %531, %532 : vector<16x16xf32>
    %cst_215 = arith.constant dense<0xFF800000> : vector<16xf32>
    %534 = vector.multi_reduction <maximumf>, %533, %cst_215 [1] : vector<16x16xf32> to vector<16xf32>
    %535 = vector.shape_cast %534 : vector<16xf32> to vector<16x1xf32>
    %536 = vector.broadcast %535 : vector<16x1xf32> to vector<16x16xf32>
    %537 = arith.subf %533, %536 : vector<16x16xf32>
    %538 = math.exp %537 : vector<16x16xf32>
    %cst_216 = arith.constant dense<0.000000e+00> : vector<16xf32>
    %539 = vector.multi_reduction <add>, %538, %cst_216 [1] : vector<16x16xf32> to vector<16xf32>
    %540 = vector.shape_cast %539 : vector<16xf32> to vector<16x1xf32>
    %541 = tpu.reciprocal %540 : vector<16x1xf32> -> vector<16x1xf32>
    %542 = vector.broadcast %541 : vector<16x1xf32> to vector<16x16xf32>
    %543 = arith.mulf %538, %542 : vector<16x16xf32>
    %544 = arith.truncf %543 : vector<16x16xf32> to vector<16x16xbf16>
    %cst_217 = arith.constant dense<0.000000e+00> : vector<16x32xf32>
    %545 = tpu.matmul %544, %530, %cst_217 {dimension_numbers = #tpu.dot_dimension_numbers<[1], [0], [0], [1], [0, 0, 1, 1], [], []>} : vector<16x16xbf16>, vector<16x32xbf16>, vector<16x32xf32> -> vector<16x32xf32>
    %546 = arith.truncf %545 : vector<16x32xf32> to vector<16x32xbf16>
    %c32_218 = arith.constant 32 : index
    %c0_219 = arith.constant 0 : index
    %547 = vector.load %arg29[%c32_218, %c0_219] : memref<128x128xbf16, #tpu.memory_space<vmem>>, vector<32x128xbf16>
    %cst_220 = arith.constant dense<0.000000e+00> : vector<16x128xf32>
    %548 = tpu.matmul %546, %547, %cst_220 {dimension_numbers = #tpu.dot_dimension_numbers<[1], [0], [0], [1], [0, 0, 1, 1], [], []>} : vector<16x32xbf16>, vector<32x128xbf16>, vector<16x128xf32> -> vector<16x128xf32>
    %549 = arith.addf %524, %548 : vector<16x128xf32>
    %550 = vector.extract_strided_slice %498 {offsets = [0, 64], sizes = [16, 32], strides = [1, 1]} : vector<16x384xf32> to vector<16x32xf32>
    %551 = arith.truncf %550 : vector<16x32xf32> to vector<16x32xbf16>
    %552 = vector.extract_strided_slice %498 {offsets = [0, 192], sizes = [16, 32], strides = [1, 1]} : vector<16x384xf32> to vector<16x32xf32>
    %553 = arith.truncf %552 : vector<16x32xf32> to vector<16x32xbf16>
    %554 = vector.extract_strided_slice %498 {offsets = [0, 320], sizes = [16, 32], strides = [1, 1]} : vector<16x384xf32> to vector<16x32xf32>
    %555 = arith.truncf %554 : vector<16x32xf32> to vector<16x32xbf16>
    %cst_221 = arith.constant dense<0.000000e+00> : vector<16x16xf32>
    %556 = tpu.matmul %551, %553, %cst_221 {dimension_numbers = #tpu.dot_dimension_numbers<[1], [1], [0], [0], [0, 0, 1, 0], [], []>} : vector<16x32xbf16>, vector<16x32xbf16>, vector<16x16xf32> -> vector<16x16xf32>
    %cst_222 = arith.constant 0.176776692 : f32
    %557 = vector.broadcast %cst_222 : f32 to vector<16x16xf32>
    %558 = arith.mulf %556, %557 : vector<16x16xf32>
    %cst_223 = arith.constant dense<0xFF800000> : vector<16xf32>
    %559 = vector.multi_reduction <maximumf>, %558, %cst_223 [1] : vector<16x16xf32> to vector<16xf32>
    %560 = vector.shape_cast %559 : vector<16xf32> to vector<16x1xf32>
    %561 = vector.broadcast %560 : vector<16x1xf32> to vector<16x16xf32>
    %562 = arith.subf %558, %561 : vector<16x16xf32>
    %563 = math.exp %562 : vector<16x16xf32>
    %cst_224 = arith.constant dense<0.000000e+00> : vector<16xf32>
    %564 = vector.multi_reduction <add>, %563, %cst_224 [1] : vector<16x16xf32> to vector<16xf32>
    %565 = vector.shape_cast %564 : vector<16xf32> to vector<16x1xf32>
    %566 = tpu.reciprocal %565 : vector<16x1xf32> -> vector<16x1xf32>
    %567 = vector.broadcast %566 : vector<16x1xf32> to vector<16x16xf32>
    %568 = arith.mulf %563, %567 : vector<16x16xf32>
    %569 = arith.truncf %568 : vector<16x16xf32> to vector<16x16xbf16>
    %cst_225 = arith.constant dense<0.000000e+00> : vector<16x32xf32>
    %570 = tpu.matmul %569, %555, %cst_225 {dimension_numbers = #tpu.dot_dimension_numbers<[1], [0], [0], [1], [0, 0, 1, 1], [], []>} : vector<16x16xbf16>, vector<16x32xbf16>, vector<16x32xf32> -> vector<16x32xf32>
    %571 = arith.truncf %570 : vector<16x32xf32> to vector<16x32xbf16>
    %c64_226 = arith.constant 64 : index
    %c0_227 = arith.constant 0 : index
    %572 = vector.load %arg29[%c64_226, %c0_227] : memref<128x128xbf16, #tpu.memory_space<vmem>>, vector<32x128xbf16>
    %cst_228 = arith.constant dense<0.000000e+00> : vector<16x128xf32>
    %573 = tpu.matmul %571, %572, %cst_228 {dimension_numbers = #tpu.dot_dimension_numbers<[1], [0], [0], [1], [0, 0, 1, 1], [], []>} : vector<16x32xbf16>, vector<32x128xbf16>, vector<16x128xf32> -> vector<16x128xf32>
    %574 = arith.addf %549, %573 : vector<16x128xf32>
    %575 = vector.extract_strided_slice %498 {offsets = [0, 96], sizes = [16, 32], strides = [1, 1]} : vector<16x384xf32> to vector<16x32xf32>
    %576 = arith.truncf %575 : vector<16x32xf32> to vector<16x32xbf16>
    %577 = vector.extract_strided_slice %498 {offsets = [0, 224], sizes = [16, 32], strides = [1, 1]} : vector<16x384xf32> to vector<16x32xf32>
    %578 = arith.truncf %577 : vector<16x32xf32> to vector<16x32xbf16>
    %579 = vector.extract_strided_slice %498 {offsets = [0, 352], sizes = [16, 32], strides = [1, 1]} : vector<16x384xf32> to vector<16x32xf32>
    %580 = arith.truncf %579 : vector<16x32xf32> to vector<16x32xbf16>
    %cst_229 = arith.constant dense<0.000000e+00> : vector<16x16xf32>
    %581 = tpu.matmul %576, %578, %cst_229 {dimension_numbers = #tpu.dot_dimension_numbers<[1], [1], [0], [0], [0, 0, 1, 0], [], []>} : vector<16x32xbf16>, vector<16x32xbf16>, vector<16x16xf32> -> vector<16x16xf32>
    %cst_230 = arith.constant 0.176776692 : f32
    %582 = vector.broadcast %cst_230 : f32 to vector<16x16xf32>
    %583 = arith.mulf %581, %582 : vector<16x16xf32>
    %cst_231 = arith.constant dense<0xFF800000> : vector<16xf32>
    %584 = vector.multi_reduction <maximumf>, %583, %cst_231 [1] : vector<16x16xf32> to vector<16xf32>
    %585 = vector.shape_cast %584 : vector<16xf32> to vector<16x1xf32>
    %586 = vector.broadcast %585 : vector<16x1xf32> to vector<16x16xf32>
    %587 = arith.subf %583, %586 : vector<16x16xf32>
    %588 = math.exp %587 : vector<16x16xf32>
    %cst_232 = arith.constant dense<0.000000e+00> : vector<16xf32>
    %589 = vector.multi_reduction <add>, %588, %cst_232 [1] : vector<16x16xf32> to vector<16xf32>
    %590 = vector.shape_cast %589 : vector<16xf32> to vector<16x1xf32>
    %591 = tpu.reciprocal %590 : vector<16x1xf32> -> vector<16x1xf32>
    %592 = vector.broadcast %591 : vector<16x1xf32> to vector<16x16xf32>
    %593 = arith.mulf %588, %592 : vector<16x16xf32>
    %594 = arith.truncf %593 : vector<16x16xf32> to vector<16x16xbf16>
    %cst_233 = arith.constant dense<0.000000e+00> : vector<16x32xf32>
    %595 = tpu.matmul %594, %580, %cst_233 {dimension_numbers = #tpu.dot_dimension_numbers<[1], [0], [0], [1], [0, 0, 1, 1], [], []>} : vector<16x16xbf16>, vector<16x32xbf16>, vector<16x32xf32> -> vector<16x32xf32>
    %596 = arith.truncf %595 : vector<16x32xf32> to vector<16x32xbf16>
    %c96_234 = arith.constant 96 : index
    %c0_235 = arith.constant 0 : index
    %597 = vector.load %arg29[%c96_234, %c0_235] : memref<128x128xbf16, #tpu.memory_space<vmem>>, vector<32x128xbf16>
    %cst_236 = arith.constant dense<0.000000e+00> : vector<16x128xf32>
    %598 = tpu.matmul %596, %597, %cst_236 {dimension_numbers = #tpu.dot_dimension_numbers<[1], [0], [0], [1], [0, 0, 1, 1], [], []>} : vector<16x32xbf16>, vector<32x128xbf16>, vector<16x128xf32> -> vector<16x128xf32>
    %599 = arith.addf %574, %598 : vector<16x128xf32>
    %600 = arith.addf %471, %599 : vector<16x128xf32>
    %c0_237 = arith.constant 0 : index
    %c0_238 = arith.constant 0 : index
    %601 = vector.load %arg30[%c0_237, %c0_238] : memref<1x128xf32, #tpu.memory_space<vmem>>, vector<1x128xf32>
    %c0_239 = arith.constant 0 : index
    %c0_240 = arith.constant 0 : index
    %602 = vector.load %arg31[%c0_239, %c0_240] : memref<1x128xf32, #tpu.memory_space<vmem>>, vector<1x128xf32>
    %cst_241 = arith.constant dense<0.000000e+00> : vector<16xf32>
    %603 = vector.multi_reduction <add>, %600, %cst_241 [1] : vector<16x128xf32> to vector<16xf32>
    %604 = vector.shape_cast %603 : vector<16xf32> to vector<16x1xf32>
    %cst_242 = arith.constant 1.280000e+02 : f32
    %605 = vector.broadcast %cst_242 : f32 to vector<16x1xf32>
    %606 = arith.divf %604, %605 : vector<16x1xf32>
    %607 = vector.broadcast %606 : vector<16x1xf32> to vector<16x128xf32>
    %608 = arith.subf %600, %607 : vector<16x128xf32>
    %609 = arith.mulf %608, %608 : vector<16x128xf32>
    %cst_243 = arith.constant dense<0.000000e+00> : vector<16xf32>
    %610 = vector.multi_reduction <add>, %609, %cst_243 [1] : vector<16x128xf32> to vector<16xf32>
    %611 = vector.shape_cast %610 : vector<16xf32> to vector<16x1xf32>
    %cst_244 = arith.constant 1.280000e+02 : f32
    %612 = vector.broadcast %cst_244 : f32 to vector<16x1xf32>
    %613 = arith.divf %611, %612 : vector<16x1xf32>
    %614 = vector.broadcast %606 : vector<16x1xf32> to vector<16x128xf32>
    %615 = arith.subf %600, %614 : vector<16x128xf32>
    %cst_245 = arith.constant 9.99999974E-6 : f32
    %616 = vector.broadcast %cst_245 : f32 to vector<16x1xf32>
    %617 = arith.addf %613, %616 : vector<16x1xf32>
    %618 = math.rsqrt %617 : vector<16x1xf32>
    %619 = vector.broadcast %618 : vector<16x1xf32> to vector<16x128xf32>
    %620 = arith.mulf %615, %619 : vector<16x128xf32>
    %621 = vector.broadcast %601 : vector<1x128xf32> to vector<16x128xf32>
    %622 = arith.mulf %620, %621 : vector<16x128xf32>
    %623 = vector.broadcast %602 : vector<1x128xf32> to vector<16x128xf32>
    %624 = arith.addf %622, %623 : vector<16x128xf32>
    %625 = arith.truncf %624 : vector<16x128xf32> to vector<16x128xbf16>
    %c0_246 = arith.constant 0 : index
    %c0_247 = arith.constant 0 : index
    %626 = vector.load %arg32[%c0_246, %c0_247] : memref<128x512xbf16, #tpu.memory_space<vmem>>, vector<128x512xbf16>
    %cst_248 = arith.constant dense<0.000000e+00> : vector<16x512xf32>
    %627 = tpu.matmul %625, %626, %cst_248 {dimension_numbers = #tpu.dot_dimension_numbers<[1], [0], [0], [1], [0, 0, 1, 1], [], []>} : vector<16x128xbf16>, vector<128x512xbf16>, vector<16x512xf32> -> vector<16x512xf32>
    %628 = arith.mulf %627, %627 : vector<16x512xf32>
    %629 = arith.mulf %627, %628 : vector<16x512xf32>
    %cst_249 = arith.constant 4.471500e-02 : f32
    %630 = vector.broadcast %cst_249 : f32 to vector<16x512xf32>
    %631 = arith.mulf %630, %629 : vector<16x512xf32>
    %632 = arith.addf %627, %631 : vector<16x512xf32>
    %cst_250 = arith.constant 0.797884583 : f32
    %633 = vector.broadcast %cst_250 : f32 to vector<16x512xf32>
    %634 = arith.mulf %633, %632 : vector<16x512xf32>
    %635 = math.tanh %634 : vector<16x512xf32>
    %cst_251 = arith.constant 1.000000e+00 : f32
    %636 = vector.broadcast %cst_251 : f32 to vector<16x512xf32>
    %637 = arith.addf %636, %635 : vector<16x512xf32>
    %cst_252 = arith.constant 5.000000e-01 : f32
    %638 = vector.broadcast %cst_252 : f32 to vector<16x512xf32>
    %639 = arith.mulf %638, %637 : vector<16x512xf32>
    %640 = arith.mulf %627, %639 : vector<16x512xf32>
    %641 = arith.truncf %640 : vector<16x512xf32> to vector<16x512xbf16>
    %c0_253 = arith.constant 0 : index
    %c0_254 = arith.constant 0 : index
    %642 = vector.load %arg33[%c0_253, %c0_254] : memref<512x128xbf16, #tpu.memory_space<vmem>>, vector<512x128xbf16>
    %cst_255 = arith.constant dense<0.000000e+00> : vector<16x128xf32>
    %643 = tpu.matmul %641, %642, %cst_255 {dimension_numbers = #tpu.dot_dimension_numbers<[1], [0], [0], [1], [0, 0, 1, 1], [], []>} : vector<16x512xbf16>, vector<512x128xbf16>, vector<16x128xf32> -> vector<16x128xf32>
    %644 = arith.addf %600, %643 : vector<16x128xf32>
    %c0_256 = arith.constant 0 : index
    %c0_257 = arith.constant 0 : index
    %645 = vector.load %arg34[%c0_256, %c0_257] : memref<1x128xf32, #tpu.memory_space<vmem>>, vector<1x128xf32>
    %c0_258 = arith.constant 0 : index
    %c0_259 = arith.constant 0 : index
    %646 = vector.load %arg35[%c0_258, %c0_259] : memref<1x128xf32, #tpu.memory_space<vmem>>, vector<1x128xf32>
    %cst_260 = arith.constant dense<0.000000e+00> : vector<16xf32>
    %647 = vector.multi_reduction <add>, %644, %cst_260 [1] : vector<16x128xf32> to vector<16xf32>
    %648 = vector.shape_cast %647 : vector<16xf32> to vector<16x1xf32>
    %cst_261 = arith.constant 1.280000e+02 : f32
    %649 = vector.broadcast %cst_261 : f32 to vector<16x1xf32>
    %650 = arith.divf %648, %649 : vector<16x1xf32>
    %651 = vector.broadcast %650 : vector<16x1xf32> to vector<16x128xf32>
    %652 = arith.subf %644, %651 : vector<16x128xf32>
    %653 = arith.mulf %652, %652 : vector<16x128xf32>
    %cst_262 = arith.constant dense<0.000000e+00> : vector<16xf32>
    %654 = vector.multi_reduction <add>, %653, %cst_262 [1] : vector<16x128xf32> to vector<16xf32>
    %655 = vector.shape_cast %654 : vector<16xf32> to vector<16x1xf32>
    %cst_263 = arith.constant 1.280000e+02 : f32
    %656 = vector.broadcast %cst_263 : f32 to vector<16x1xf32>
    %657 = arith.divf %655, %656 : vector<16x1xf32>
    %658 = vector.broadcast %650 : vector<16x1xf32> to vector<16x128xf32>
    %659 = arith.subf %644, %658 : vector<16x128xf32>
    %cst_264 = arith.constant 9.99999974E-6 : f32
    %660 = vector.broadcast %cst_264 : f32 to vector<16x1xf32>
    %661 = arith.addf %657, %660 : vector<16x1xf32>
    %662 = math.rsqrt %661 : vector<16x1xf32>
    %663 = vector.broadcast %662 : vector<16x1xf32> to vector<16x128xf32>
    %664 = arith.mulf %659, %663 : vector<16x128xf32>
    %665 = vector.broadcast %645 : vector<1x128xf32> to vector<16x128xf32>
    %666 = arith.mulf %664, %665 : vector<16x128xf32>
    %667 = vector.broadcast %646 : vector<1x128xf32> to vector<16x128xf32>
    %668 = arith.addf %666, %667 : vector<16x128xf32>
    %669 = arith.truncf %668 : vector<16x128xf32> to vector<16x128xbf16>
    %c0_265 = arith.constant 0 : index
    %c0_266 = arith.constant 0 : index
    %670 = vector.load %arg36[%c0_265, %c0_266] : memref<128x384xbf16, #tpu.memory_space<vmem>>, vector<128x384xbf16>
    %cst_267 = arith.constant dense<0.000000e+00> : vector<16x384xf32>
    %671 = tpu.matmul %669, %670, %cst_267 {dimension_numbers = #tpu.dot_dimension_numbers<[1], [0], [0], [1], [0, 0, 1, 1], [], []>} : vector<16x128xbf16>, vector<128x384xbf16>, vector<16x384xf32> -> vector<16x384xf32>
    %cst_268 = arith.constant 0.000000e+00 : f32
    %672 = vector.broadcast %cst_268 : f32 to vector<16x128xf32>
    %673 = vector.extract_strided_slice %671 {offsets = [0, 0], sizes = [16, 32], strides = [1, 1]} : vector<16x384xf32> to vector<16x32xf32>
    %674 = arith.truncf %673 : vector<16x32xf32> to vector<16x32xbf16>
    %675 = vector.extract_strided_slice %671 {offsets = [0, 128], sizes = [16, 32], strides = [1, 1]} : vector<16x384xf32> to vector<16x32xf32>
    %676 = arith.truncf %675 : vector<16x32xf32> to vector<16x32xbf16>
    %677 = vector.extract_strided_slice %671 {offsets = [0, 256], sizes = [16, 32], strides = [1, 1]} : vector<16x384xf32> to vector<16x32xf32>
    %678 = arith.truncf %677 : vector<16x32xf32> to vector<16x32xbf16>
    %cst_269 = arith.constant dense<0.000000e+00> : vector<16x16xf32>
    %679 = tpu.matmul %674, %676, %cst_269 {dimension_numbers = #tpu.dot_dimension_numbers<[1], [1], [0], [0], [0, 0, 1, 0], [], []>} : vector<16x32xbf16>, vector<16x32xbf16>, vector<16x16xf32> -> vector<16x16xf32>
    %cst_270 = arith.constant 0.176776692 : f32
    %680 = vector.broadcast %cst_270 : f32 to vector<16x16xf32>
    %681 = arith.mulf %679, %680 : vector<16x16xf32>
    %cst_271 = arith.constant dense<0xFF800000> : vector<16xf32>
    %682 = vector.multi_reduction <maximumf>, %681, %cst_271 [1] : vector<16x16xf32> to vector<16xf32>
    %683 = vector.shape_cast %682 : vector<16xf32> to vector<16x1xf32>
    %684 = vector.broadcast %683 : vector<16x1xf32> to vector<16x16xf32>
    %685 = arith.subf %681, %684 : vector<16x16xf32>
    %686 = math.exp %685 : vector<16x16xf32>
    %cst_272 = arith.constant dense<0.000000e+00> : vector<16xf32>
    %687 = vector.multi_reduction <add>, %686, %cst_272 [1] : vector<16x16xf32> to vector<16xf32>
    %688 = vector.shape_cast %687 : vector<16xf32> to vector<16x1xf32>
    %689 = tpu.reciprocal %688 : vector<16x1xf32> -> vector<16x1xf32>
    %690 = vector.broadcast %689 : vector<16x1xf32> to vector<16x16xf32>
    %691 = arith.mulf %686, %690 : vector<16x16xf32>
    %692 = arith.truncf %691 : vector<16x16xf32> to vector<16x16xbf16>
    %cst_273 = arith.constant dense<0.000000e+00> : vector<16x32xf32>
    %693 = tpu.matmul %692, %678, %cst_273 {dimension_numbers = #tpu.dot_dimension_numbers<[1], [0], [0], [1], [0, 0, 1, 1], [], []>} : vector<16x16xbf16>, vector<16x32xbf16>, vector<16x32xf32> -> vector<16x32xf32>
    %694 = arith.truncf %693 : vector<16x32xf32> to vector<16x32xbf16>
    %c0_274 = arith.constant 0 : index
    %c0_275 = arith.constant 0 : index
    %695 = vector.load %arg37[%c0_274, %c0_275] : memref<128x128xbf16, #tpu.memory_space<vmem>>, vector<32x128xbf16>
    %cst_276 = arith.constant dense<0.000000e+00> : vector<16x128xf32>
    %696 = tpu.matmul %694, %695, %cst_276 {dimension_numbers = #tpu.dot_dimension_numbers<[1], [0], [0], [1], [0, 0, 1, 1], [], []>} : vector<16x32xbf16>, vector<32x128xbf16>, vector<16x128xf32> -> vector<16x128xf32>
    %697 = arith.addf %672, %696 : vector<16x128xf32>
    %698 = vector.extract_strided_slice %671 {offsets = [0, 32], sizes = [16, 32], strides = [1, 1]} : vector<16x384xf32> to vector<16x32xf32>
    %699 = arith.truncf %698 : vector<16x32xf32> to vector<16x32xbf16>
    %700 = vector.extract_strided_slice %671 {offsets = [0, 160], sizes = [16, 32], strides = [1, 1]} : vector<16x384xf32> to vector<16x32xf32>
    %701 = arith.truncf %700 : vector<16x32xf32> to vector<16x32xbf16>
    %702 = vector.extract_strided_slice %671 {offsets = [0, 288], sizes = [16, 32], strides = [1, 1]} : vector<16x384xf32> to vector<16x32xf32>
    %703 = arith.truncf %702 : vector<16x32xf32> to vector<16x32xbf16>
    %cst_277 = arith.constant dense<0.000000e+00> : vector<16x16xf32>
    %704 = tpu.matmul %699, %701, %cst_277 {dimension_numbers = #tpu.dot_dimension_numbers<[1], [1], [0], [0], [0, 0, 1, 0], [], []>} : vector<16x32xbf16>, vector<16x32xbf16>, vector<16x16xf32> -> vector<16x16xf32>
    %cst_278 = arith.constant 0.176776692 : f32
    %705 = vector.broadcast %cst_278 : f32 to vector<16x16xf32>
    %706 = arith.mulf %704, %705 : vector<16x16xf32>
    %cst_279 = arith.constant dense<0xFF800000> : vector<16xf32>
    %707 = vector.multi_reduction <maximumf>, %706, %cst_279 [1] : vector<16x16xf32> to vector<16xf32>
    %708 = vector.shape_cast %707 : vector<16xf32> to vector<16x1xf32>
    %709 = vector.broadcast %708 : vector<16x1xf32> to vector<16x16xf32>
    %710 = arith.subf %706, %709 : vector<16x16xf32>
    %711 = math.exp %710 : vector<16x16xf32>
    %cst_280 = arith.constant dense<0.000000e+00> : vector<16xf32>
    %712 = vector.multi_reduction <add>, %711, %cst_280 [1] : vector<16x16xf32> to vector<16xf32>
    %713 = vector.shape_cast %712 : vector<16xf32> to vector<16x1xf32>
    %714 = tpu.reciprocal %713 : vector<16x1xf32> -> vector<16x1xf32>
    %715 = vector.broadcast %714 : vector<16x1xf32> to vector<16x16xf32>
    %716 = arith.mulf %711, %715 : vector<16x16xf32>
    %717 = arith.truncf %716 : vector<16x16xf32> to vector<16x16xbf16>
    %cst_281 = arith.constant dense<0.000000e+00> : vector<16x32xf32>
    %718 = tpu.matmul %717, %703, %cst_281 {dimension_numbers = #tpu.dot_dimension_numbers<[1], [0], [0], [1], [0, 0, 1, 1], [], []>} : vector<16x16xbf16>, vector<16x32xbf16>, vector<16x32xf32> -> vector<16x32xf32>
    %719 = arith.truncf %718 : vector<16x32xf32> to vector<16x32xbf16>
    %c32_282 = arith.constant 32 : index
    %c0_283 = arith.constant 0 : index
    %720 = vector.load %arg37[%c32_282, %c0_283] : memref<128x128xbf16, #tpu.memory_space<vmem>>, vector<32x128xbf16>
    %cst_284 = arith.constant dense<0.000000e+00> : vector<16x128xf32>
    %721 = tpu.matmul %719, %720, %cst_284 {dimension_numbers = #tpu.dot_dimension_numbers<[1], [0], [0], [1], [0, 0, 1, 1], [], []>} : vector<16x32xbf16>, vector<32x128xbf16>, vector<16x128xf32> -> vector<16x128xf32>
    %722 = arith.addf %697, %721 : vector<16x128xf32>
    %723 = vector.extract_strided_slice %671 {offsets = [0, 64], sizes = [16, 32], strides = [1, 1]} : vector<16x384xf32> to vector<16x32xf32>
    %724 = arith.truncf %723 : vector<16x32xf32> to vector<16x32xbf16>
    %725 = vector.extract_strided_slice %671 {offsets = [0, 192], sizes = [16, 32], strides = [1, 1]} : vector<16x384xf32> to vector<16x32xf32>
    %726 = arith.truncf %725 : vector<16x32xf32> to vector<16x32xbf16>
    %727 = vector.extract_strided_slice %671 {offsets = [0, 320], sizes = [16, 32], strides = [1, 1]} : vector<16x384xf32> to vector<16x32xf32>
    %728 = arith.truncf %727 : vector<16x32xf32> to vector<16x32xbf16>
    %cst_285 = arith.constant dense<0.000000e+00> : vector<16x16xf32>
    %729 = tpu.matmul %724, %726, %cst_285 {dimension_numbers = #tpu.dot_dimension_numbers<[1], [1], [0], [0], [0, 0, 1, 0], [], []>} : vector<16x32xbf16>, vector<16x32xbf16>, vector<16x16xf32> -> vector<16x16xf32>
    %cst_286 = arith.constant 0.176776692 : f32
    %730 = vector.broadcast %cst_286 : f32 to vector<16x16xf32>
    %731 = arith.mulf %729, %730 : vector<16x16xf32>
    %cst_287 = arith.constant dense<0xFF800000> : vector<16xf32>
    %732 = vector.multi_reduction <maximumf>, %731, %cst_287 [1] : vector<16x16xf32> to vector<16xf32>
    %733 = vector.shape_cast %732 : vector<16xf32> to vector<16x1xf32>
    %734 = vector.broadcast %733 : vector<16x1xf32> to vector<16x16xf32>
    %735 = arith.subf %731, %734 : vector<16x16xf32>
    %736 = math.exp %735 : vector<16x16xf32>
    %cst_288 = arith.constant dense<0.000000e+00> : vector<16xf32>
    %737 = vector.multi_reduction <add>, %736, %cst_288 [1] : vector<16x16xf32> to vector<16xf32>
    %738 = vector.shape_cast %737 : vector<16xf32> to vector<16x1xf32>
    %739 = tpu.reciprocal %738 : vector<16x1xf32> -> vector<16x1xf32>
    %740 = vector.broadcast %739 : vector<16x1xf32> to vector<16x16xf32>
    %741 = arith.mulf %736, %740 : vector<16x16xf32>
    %742 = arith.truncf %741 : vector<16x16xf32> to vector<16x16xbf16>
    %cst_289 = arith.constant dense<0.000000e+00> : vector<16x32xf32>
    %743 = tpu.matmul %742, %728, %cst_289 {dimension_numbers = #tpu.dot_dimension_numbers<[1], [0], [0], [1], [0, 0, 1, 1], [], []>} : vector<16x16xbf16>, vector<16x32xbf16>, vector<16x32xf32> -> vector<16x32xf32>
    %744 = arith.truncf %743 : vector<16x32xf32> to vector<16x32xbf16>
    %c64_290 = arith.constant 64 : index
    %c0_291 = arith.constant 0 : index
    %745 = vector.load %arg37[%c64_290, %c0_291] : memref<128x128xbf16, #tpu.memory_space<vmem>>, vector<32x128xbf16>
    %cst_292 = arith.constant dense<0.000000e+00> : vector<16x128xf32>
    %746 = tpu.matmul %744, %745, %cst_292 {dimension_numbers = #tpu.dot_dimension_numbers<[1], [0], [0], [1], [0, 0, 1, 1], [], []>} : vector<16x32xbf16>, vector<32x128xbf16>, vector<16x128xf32> -> vector<16x128xf32>
    %747 = arith.addf %722, %746 : vector<16x128xf32>
    %748 = vector.extract_strided_slice %671 {offsets = [0, 96], sizes = [16, 32], strides = [1, 1]} : vector<16x384xf32> to vector<16x32xf32>
    %749 = arith.truncf %748 : vector<16x32xf32> to vector<16x32xbf16>
    %750 = vector.extract_strided_slice %671 {offsets = [0, 224], sizes = [16, 32], strides = [1, 1]} : vector<16x384xf32> to vector<16x32xf32>
    %751 = arith.truncf %750 : vector<16x32xf32> to vector<16x32xbf16>
    %752 = vector.extract_strided_slice %671 {offsets = [0, 352], sizes = [16, 32], strides = [1, 1]} : vector<16x384xf32> to vector<16x32xf32>
    %753 = arith.truncf %752 : vector<16x32xf32> to vector<16x32xbf16>
    %cst_293 = arith.constant dense<0.000000e+00> : vector<16x16xf32>
    %754 = tpu.matmul %749, %751, %cst_293 {dimension_numbers = #tpu.dot_dimension_numbers<[1], [1], [0], [0], [0, 0, 1, 0], [], []>} : vector<16x32xbf16>, vector<16x32xbf16>, vector<16x16xf32> -> vector<16x16xf32>
    %cst_294 = arith.constant 0.176776692 : f32
    %755 = vector.broadcast %cst_294 : f32 to vector<16x16xf32>
    %756 = arith.mulf %754, %755 : vector<16x16xf32>
    %cst_295 = arith.constant dense<0xFF800000> : vector<16xf32>
    %757 = vector.multi_reduction <maximumf>, %756, %cst_295 [1] : vector<16x16xf32> to vector<16xf32>
    %758 = vector.shape_cast %757 : vector<16xf32> to vector<16x1xf32>
    %759 = vector.broadcast %758 : vector<16x1xf32> to vector<16x16xf32>
    %760 = arith.subf %756, %759 : vector<16x16xf32>
    %761 = math.exp %760 : vector<16x16xf32>
    %cst_296 = arith.constant dense<0.000000e+00> : vector<16xf32>
    %762 = vector.multi_reduction <add>, %761, %cst_296 [1] : vector<16x16xf32> to vector<16xf32>
    %763 = vector.shape_cast %762 : vector<16xf32> to vector<16x1xf32>
    %764 = tpu.reciprocal %763 : vector<16x1xf32> -> vector<16x1xf32>
    %765 = vector.broadcast %764 : vector<16x1xf32> to vector<16x16xf32>
    %766 = arith.mulf %761, %765 : vector<16x16xf32>
    %767 = arith.truncf %766 : vector<16x16xf32> to vector<16x16xbf16>
    %cst_297 = arith.constant dense<0.000000e+00> : vector<16x32xf32>
    %768 = tpu.matmul %767, %753, %cst_297 {dimension_numbers = #tpu.dot_dimension_numbers<[1], [0], [0], [1], [0, 0, 1, 1], [], []>} : vector<16x16xbf16>, vector<16x32xbf16>, vector<16x32xf32> -> vector<16x32xf32>
    %769 = arith.truncf %768 : vector<16x32xf32> to vector<16x32xbf16>
    %c96_298 = arith.constant 96 : index
    %c0_299 = arith.constant 0 : index
    %770 = vector.load %arg37[%c96_298, %c0_299] : memref<128x128xbf16, #tpu.memory_space<vmem>>, vector<32x128xbf16>
    %cst_300 = arith.constant dense<0.000000e+00> : vector<16x128xf32>
    %771 = tpu.matmul %769, %770, %cst_300 {dimension_numbers = #tpu.dot_dimension_numbers<[1], [0], [0], [1], [0, 0, 1, 1], [], []>} : vector<16x32xbf16>, vector<32x128xbf16>, vector<16x128xf32> -> vector<16x128xf32>
    %772 = arith.addf %747, %771 : vector<16x128xf32>
    %773 = arith.addf %644, %772 : vector<16x128xf32>
    %c0_301 = arith.constant 0 : index
    %c0_302 = arith.constant 0 : index
    %774 = vector.load %arg38[%c0_301, %c0_302] : memref<1x128xf32, #tpu.memory_space<vmem>>, vector<1x128xf32>
    %c0_303 = arith.constant 0 : index
    %c0_304 = arith.constant 0 : index
    %775 = vector.load %arg39[%c0_303, %c0_304] : memref<1x128xf32, #tpu.memory_space<vmem>>, vector<1x128xf32>
    %cst_305 = arith.constant dense<0.000000e+00> : vector<16xf32>
    %776 = vector.multi_reduction <add>, %773, %cst_305 [1] : vector<16x128xf32> to vector<16xf32>
    %777 = vector.shape_cast %776 : vector<16xf32> to vector<16x1xf32>
    %cst_306 = arith.constant 1.280000e+02 : f32
    %778 = vector.broadcast %cst_306 : f32 to vector<16x1xf32>
    %779 = arith.divf %777, %778 : vector<16x1xf32>
    %780 = vector.broadcast %779 : vector<16x1xf32> to vector<16x128xf32>
    %781 = arith.subf %773, %780 : vector<16x128xf32>
    %782 = arith.mulf %781, %781 : vector<16x128xf32>
    %cst_307 = arith.constant dense<0.000000e+00> : vector<16xf32>
    %783 = vector.multi_reduction <add>, %782, %cst_307 [1] : vector<16x128xf32> to vector<16xf32>
    %784 = vector.shape_cast %783 : vector<16xf32> to vector<16x1xf32>
    %cst_308 = arith.constant 1.280000e+02 : f32
    %785 = vector.broadcast %cst_308 : f32 to vector<16x1xf32>
    %786 = arith.divf %784, %785 : vector<16x1xf32>
    %787 = vector.broadcast %779 : vector<16x1xf32> to vector<16x128xf32>
    %788 = arith.subf %773, %787 : vector<16x128xf32>
    %cst_309 = arith.constant 9.99999974E-6 : f32
    %789 = vector.broadcast %cst_309 : f32 to vector<16x1xf32>
    %790 = arith.addf %786, %789 : vector<16x1xf32>
    %791 = math.rsqrt %790 : vector<16x1xf32>
    %792 = vector.broadcast %791 : vector<16x1xf32> to vector<16x128xf32>
    %793 = arith.mulf %788, %792 : vector<16x128xf32>
    %794 = vector.broadcast %774 : vector<1x128xf32> to vector<16x128xf32>
    %795 = arith.mulf %793, %794 : vector<16x128xf32>
    %796 = vector.broadcast %775 : vector<1x128xf32> to vector<16x128xf32>
    %797 = arith.addf %795, %796 : vector<16x128xf32>
    %798 = arith.truncf %797 : vector<16x128xf32> to vector<16x128xbf16>
    %c0_310 = arith.constant 0 : index
    %c0_311 = arith.constant 0 : index
    %799 = vector.load %arg40[%c0_310, %c0_311] : memref<128x512xbf16, #tpu.memory_space<vmem>>, vector<128x512xbf16>
    %cst_312 = arith.constant dense<0.000000e+00> : vector<16x512xf32>
    %800 = tpu.matmul %798, %799, %cst_312 {dimension_numbers = #tpu.dot_dimension_numbers<[1], [0], [0], [1], [0, 0, 1, 1], [], []>} : vector<16x128xbf16>, vector<128x512xbf16>, vector<16x512xf32> -> vector<16x512xf32>
    %801 = arith.mulf %800, %800 : vector<16x512xf32>
    %802 = arith.mulf %800, %801 : vector<16x512xf32>
    %cst_313 = arith.constant 4.471500e-02 : f32
    %803 = vector.broadcast %cst_313 : f32 to vector<16x512xf32>
    %804 = arith.mulf %803, %802 : vector<16x512xf32>
    %805 = arith.addf %800, %804 : vector<16x512xf32>
    %cst_314 = arith.constant 0.797884583 : f32
    %806 = vector.broadcast %cst_314 : f32 to vector<16x512xf32>
    %807 = arith.mulf %806, %805 : vector<16x512xf32>
    %808 = math.tanh %807 : vector<16x512xf32>
    %cst_315 = arith.constant 1.000000e+00 : f32
    %809 = vector.broadcast %cst_315 : f32 to vector<16x512xf32>
    %810 = arith.addf %809, %808 : vector<16x512xf32>
    %cst_316 = arith.constant 5.000000e-01 : f32
    %811 = vector.broadcast %cst_316 : f32 to vector<16x512xf32>
    %812 = arith.mulf %811, %810 : vector<16x512xf32>
    %813 = arith.mulf %800, %812 : vector<16x512xf32>
    %814 = arith.truncf %813 : vector<16x512xf32> to vector<16x512xbf16>
    %c0_317 = arith.constant 0 : index
    %c0_318 = arith.constant 0 : index
    %815 = vector.load %arg41[%c0_317, %c0_318] : memref<512x128xbf16, #tpu.memory_space<vmem>>, vector<512x128xbf16>
    %cst_319 = arith.constant dense<0.000000e+00> : vector<16x128xf32>
    %816 = tpu.matmul %814, %815, %cst_319 {dimension_numbers = #tpu.dot_dimension_numbers<[1], [0], [0], [1], [0, 0, 1, 1], [], []>} : vector<16x512xbf16>, vector<512x128xbf16>, vector<16x128xf32> -> vector<16x128xf32>
    %817 = arith.addf %773, %816 : vector<16x128xf32>
    %c0_320 = arith.constant 0 : index
    %c0_321 = arith.constant 0 : index
    %818 = vector.load %arg42[%c0_320, %c0_321] : memref<1x128xf32, #tpu.memory_space<vmem>>, vector<1x128xf32>
    %c0_322 = arith.constant 0 : index
    %c0_323 = arith.constant 0 : index
    %819 = vector.load %arg43[%c0_322, %c0_323] : memref<1x128xf32, #tpu.memory_space<vmem>>, vector<1x128xf32>
    %cst_324 = arith.constant dense<0.000000e+00> : vector<16xf32>
    %820 = vector.multi_reduction <add>, %817, %cst_324 [1] : vector<16x128xf32> to vector<16xf32>
    %821 = vector.shape_cast %820 : vector<16xf32> to vector<16x1xf32>
    %cst_325 = arith.constant 1.280000e+02 : f32
    %822 = vector.broadcast %cst_325 : f32 to vector<16x1xf32>
    %823 = arith.divf %821, %822 : vector<16x1xf32>
    %824 = vector.broadcast %823 : vector<16x1xf32> to vector<16x128xf32>
    %825 = arith.subf %817, %824 : vector<16x128xf32>
    %826 = arith.mulf %825, %825 : vector<16x128xf32>
    %cst_326 = arith.constant dense<0.000000e+00> : vector<16xf32>
    %827 = vector.multi_reduction <add>, %826, %cst_326 [1] : vector<16x128xf32> to vector<16xf32>
    %828 = vector.shape_cast %827 : vector<16xf32> to vector<16x1xf32>
    %cst_327 = arith.constant 1.280000e+02 : f32
    %829 = vector.broadcast %cst_327 : f32 to vector<16x1xf32>
    %830 = arith.divf %828, %829 : vector<16x1xf32>
    %831 = vector.broadcast %823 : vector<16x1xf32> to vector<16x128xf32>
    %832 = arith.subf %817, %831 : vector<16x128xf32>
    %cst_328 = arith.constant 9.99999974E-6 : f32
    %833 = vector.broadcast %cst_328 : f32 to vector<16x1xf32>
    %834 = arith.addf %830, %833 : vector<16x1xf32>
    %835 = math.rsqrt %834 : vector<16x1xf32>
    %836 = vector.broadcast %835 : vector<16x1xf32> to vector<16x128xf32>
    %837 = arith.mulf %832, %836 : vector<16x128xf32>
    %838 = vector.broadcast %818 : vector<1x128xf32> to vector<16x128xf32>
    %839 = arith.mulf %837, %838 : vector<16x128xf32>
    %840 = vector.broadcast %819 : vector<1x128xf32> to vector<16x128xf32>
    %841 = arith.addf %839, %840 : vector<16x128xf32>
    %842 = arith.truncf %841 : vector<16x128xf32> to vector<16x128xbf16>
    %c0_329 = arith.constant 0 : index
    %c0_330 = arith.constant 0 : index
    %843 = vector.load %arg44[%c0_329, %c0_330] : memref<128x256xbf16, #tpu.memory_space<vmem>>, vector<128x256xbf16>
    %cst_331 = arith.constant dense<0.000000e+00> : vector<16x256xf32>
    %844 = tpu.matmul %842, %843, %cst_331 {dimension_numbers = #tpu.dot_dimension_numbers<[1], [0], [0], [1], [0, 0, 1, 1], [], []>} : vector<16x128xbf16>, vector<128x256xbf16>, vector<16x256xf32> -> vector<16x256xf32>
    %c0_332 = arith.constant 0 : index
    %c0_333 = arith.constant 0 : index
    %845 = vector.load %arg45[%c0_332, %c0_333] : memref<16x256xf32, #tpu.memory_space<vmem>>, vector<16x256xf32>
    tpu.vector_store %arg45[%c0_332, %c0_333], %844 {strides = array<i32>} : memref<16x256xf32, #tpu.memory_space<vmem>>, vector<16x256xf32>,
    return
  }
  func.func @transform_0(%arg0: i32) -> (i32, i32) {
    %c0_i32 = arith.constant 0 : i32
    %c0_i32_0 = arith.constant 0 : i32
    return %arg0, %c0_i32 : i32, i32
  }
  func.func @transform_1(%arg0: i32) -> (i32, i32) {
    %c0_i32 = arith.constant 0 : i32
    %c0_i32_0 = arith.constant 0 : i32
    %c0_i32_1 = arith.constant 0 : i32
    return %c0_i32, %c0_i32_0 : i32, i32
  }
  func.func @transform_2(%arg0: i32) -> (i32, i32) {
    %c0_i32 = arith.constant 0 : i32
    %c0_i32_0 = arith.constant 0 : i32
    %c0_i32_1 = arith.constant 0 : i32
    return %c0_i32, %c0_i32_0 : i32, i32
  }
  func.func @transform_3(%arg0: i32) -> (i32, i32) {
    %c0_i32 = arith.constant 0 : i32
    %c0_i32_0 = arith.constant 0 : i32
    %c0_i32_1 = arith.constant 0 : i32
    return %c0_i32, %c0_i32_0 : i32, i32
  }
  func.func @transform_4(%arg0: i32) -> (i32, i32) {
    %c0_i32 = arith.constant 0 : i32
    %c0_i32_0 = arith.constant 0 : i32
    %c0_i32_1 = arith.constant 0 : i32
    return %c0_i32, %c0_i32_0 : i32, i32
  }
  func.func @transform_5(%arg0: i32) -> (i32, i32) {
    %c0_i32 = arith.constant 0 : i32
    %c0_i32_0 = arith.constant 0 : i32
    %c0_i32_1 = arith.constant 0 : i32
    return %c0_i32, %c0_i32_0 : i32, i32
  }
  func.func @transform_6(%arg0: i32) -> (i32, i32) {
    %c0_i32 = arith.constant 0 : i32
    %c0_i32_0 = arith.constant 0 : i32
    %c0_i32_1 = arith.constant 0 : i32
    return %c0_i32, %c0_i32_0 : i32, i32
  }
  func.func @transform_7(%arg0: i32) -> (i32, i32) {
    %c0_i32 = arith.constant 0 : i32
    %c0_i32_0 = arith.constant 0 : i32
    %c0_i32_1 = arith.constant 0 : i32
    return %c0_i32, %c0_i32_0 : i32, i32
  }
  func.func @transform_8(%arg0: i32) -> (i32, i32) {
    %c0_i32 = arith.constant 0 : i32
    %c0_i32_0 = arith.constant 0 : i32
    %c0_i32_1 = arith.constant 0 : i32
    return %c0_i32, %c0_i32_0 : i32, i32
  }
  func.func @transform_9(%arg0: i32) -> (i32, i32) {
    %c0_i32 = arith.constant 0 : i32
    %c0_i32_0 = arith.constant 0 : i32
    %c0_i32_1 = arith.constant 0 : i32
    return %c0_i32, %c0_i32_0 : i32, i32
  }
  func.func @transform_10(%arg0: i32) -> (i32, i32) {
    %c0_i32 = arith.constant 0 : i32
    %c0_i32_0 = arith.constant 0 : i32
    %c0_i32_1 = arith.constant 0 : i32
    return %c0_i32, %c0_i32_0 : i32, i32
  }
  func.func @transform_11(%arg0: i32) -> (i32, i32) {
    %c0_i32 = arith.constant 0 : i32
    %c0_i32_0 = arith.constant 0 : i32
    %c0_i32_1 = arith.constant 0 : i32
    return %c0_i32, %c0_i32_0 : i32, i32
  }
  func.func @transform_12(%arg0: i32) -> (i32, i32) {
    %c0_i32 = arith.constant 0 : i32
    %c0_i32_0 = arith.constant 0 : i32
    %c0_i32_1 = arith.constant 0 : i32
    return %c0_i32, %c0_i32_0 : i32, i32
  }
  func.func @transform_13(%arg0: i32) -> (i32, i32) {
    %c0_i32 = arith.constant 0 : i32
    %c0_i32_0 = arith.constant 0 : i32
    %c0_i32_1 = arith.constant 0 : i32
    return %c0_i32, %c0_i32_0 : i32, i32
  }
  func.func @transform_14(%arg0: i32) -> (i32, i32) {
    %c0_i32 = arith.constant 0 : i32
    %c0_i32_0 = arith.constant 0 : i32
    %c0_i32_1 = arith.constant 0 : i32
    return %c0_i32, %c0_i32_0 : i32, i32
  }
  func.func @transform_15(%arg0: i32) -> (i32, i32) {
    %c0_i32 = arith.constant 0 : i32
    %c0_i32_0 = arith.constant 0 : i32
    %c0_i32_1 = arith.constant 0 : i32
    return %c0_i32, %c0_i32_0 : i32, i32
  }
  func.func @transform_16(%arg0: i32) -> (i32, i32) {
    %c0_i32 = arith.constant 0 : i32
    %c0_i32_0 = arith.constant 0 : i32
    %c0_i32_1 = arith.constant 0 : i32
    return %c0_i32, %c0_i32_0 : i32, i32
  }
  func.func @transform_17(%arg0: i32) -> (i32, i32) {
    %c0_i32 = arith.constant 0 : i32
    %c0_i32_0 = arith.constant 0 : i32
    %c0_i32_1 = arith.constant 0 : i32
    return %c0_i32, %c0_i32_0 : i32, i32
  }
  func.func @transform_18(%arg0: i32) -> (i32, i32) {
    %c0_i32 = arith.constant 0 : i32
    %c0_i32_0 = arith.constant 0 : i32
    %c0_i32_1 = arith.constant 0 : i32
    return %c0_i32, %c0_i32_0 : i32, i32
  }
  func.func @transform_19(%arg0: i32) -> (i32, i32) {
    %c0_i32 = arith.constant 0 : i32
    %c0_i32_0 = arith.constant 0 : i32
    %c0_i32_1 = arith.constant 0 : i32
    return %c0_i32, %c0_i32_0 : i32, i32
  }
  func.func @transform_20(%arg0: i32) -> (i32, i32) {
    %c0_i32 = arith.constant 0 : i32
    %c0_i32_0 = arith.constant 0 : i32
    %c0_i32_1 = arith.constant 0 : i32
    return %c0_i32, %c0_i32_0 : i32, i32
  }
  func.func @transform_21(%arg0: i32) -> (i32, i32) {
    %c0_i32 = arith.constant 0 : i32
    %c0_i32_0 = arith.constant 0 : i32
    %c0_i32_1 = arith.constant 0 : i32
    return %c0_i32, %c0_i32_0 : i32, i32
  }
  func.func @transform_22(%arg0: i32) -> (i32, i32) {
    %c0_i32 = arith.constant 0 : i32
    %c0_i32_0 = arith.constant 0 : i32
    %c0_i32_1 = arith.constant 0 : i32
    return %c0_i32, %c0_i32_0 : i32, i32
  }
  func.func @transform_23(%arg0: i32) -> (i32, i32) {
    %c0_i32 = arith.constant 0 : i32
    %c0_i32_0 = arith.constant 0 : i32
    %c0_i32_1 = arith.constant 0 : i32
    return %c0_i32, %c0_i32_0 : i32, i32
  }
  func.func @transform_24(%arg0: i32) -> (i32, i32) {
    %c0_i32 = arith.constant 0 : i32
    %c0_i32_0 = arith.constant 0 : i32
    %c0_i32_1 = arith.constant 0 : i32
    return %c0_i32, %c0_i32_0 : i32, i32
  }
  func.func @transform_25(%arg0: i32) -> (i32, i32) {
    %c0_i32 = arith.constant 0 : i32
    %c0_i32_0 = arith.constant 0 : i32
    %c0_i32_1 = arith.constant 0 : i32
    return %c0_i32, %c0_i32_0 : i32, i32
  }
  func.func @transform_26(%arg0: i32) -> (i32, i32) {
    %c0_i32 = arith.constant 0 : i32
    %c0_i32_0 = arith.constant 0 : i32
    %c0_i32_1 = arith.constant 0 : i32
    return %c0_i32, %c0_i32_0 : i32, i32
  }
  func.func @transform_27(%arg0: i32) -> (i32, i32) {
    %c0_i32 = arith.constant 0 : i32
    %c0_i32_0 = arith.constant 0 : i32
    %c0_i32_1 = arith.constant 0 : i32
    return %c0_i32, %c0_i32_0 : i32, i32
  }
  func.func @transform_28(%arg0: i32) -> (i32, i32) {
    %c0_i32 = arith.constant 0 : i32
    %c0_i32_0 = arith.constant 0 : i32
    %c0_i32_1 = arith.constant 0 : i32
    return %c0_i32, %c0_i32_0 : i32, i32
  }
  func.func @transform_29(%arg0: i32) -> (i32, i32) {
    %c0_i32 = arith.constant 0 : i32
    %c0_i32_0 = arith.constant 0 : i32
    %c0_i32_1 = arith.constant 0 : i32
    return %c0_i32, %c0_i32_0 : i32, i32
  }
  func.func @transform_30(%arg0: i32) -> (i32, i32) {
    %c0_i32 = arith.constant 0 : i32
    %c0_i32_0 = arith.constant 0 : i32
    %c0_i32_1 = arith.constant 0 : i32
    return %c0_i32, %c0_i32_0 : i32, i32
  }
  func.func @transform_31(%arg0: i32) -> (i32, i32) {
    %c0_i32 = arith.constant 0 : i32
    %c0_i32_0 = arith.constant 0 : i32
    %c0_i32_1 = arith.constant 0 : i32
    return %c0_i32, %c0_i32_0 : i32, i32
  }
  func.func @transform_32(%arg0: i32) -> (i32, i32) {
    %c0_i32 = arith.constant 0 : i32
    %c0_i32_0 = arith.constant 0 : i32
    %c0_i32_1 = arith.constant 0 : i32
    return %c0_i32, %c0_i32_0 : i32, i32
  }
  func.func @transform_33(%arg0: i32) -> (i32, i32) {
    %c0_i32 = arith.constant 0 : i32
    %c0_i32_0 = arith.constant 0 : i32
    %c0_i32_1 = arith.constant 0 : i32
    return %c0_i32, %c0_i32_0 : i32, i32
  }
  func.func @transform_34(%arg0: i32) -> (i32, i32) {
    %c0_i32 = arith.constant 0 : i32
    %c0_i32_0 = arith.constant 0 : i32
    %c0_i32_1 = arith.constant 0 : i32
    return %c0_i32, %c0_i32_0 : i32, i32
  }
  func.func @transform_35(%arg0: i32) -> (i32, i32) {
    %c0_i32 = arith.constant 0 : i32
    %c0_i32_0 = arith.constant 0 : i32
    %c0_i32_1 = arith.constant 0 : i32
    return %c0_i32, %c0_i32_0 : i32, i32
  }
  func.func @transform_36(%arg0: i32) -> (i32, i32) {
    %c0_i32 = arith.constant 0 : i32
    %c0_i32_0 = arith.constant 0 : i32
    %c0_i32_1 = arith.constant 0 : i32
    return %c0_i32, %c0_i32_0 : i32, i32
  }
  func.func @transform_37(%arg0: i32) -> (i32, i32) {
    %c0_i32 = arith.constant 0 : i32
    %c0_i32_0 = arith.constant 0 : i32
    %c0_i32_1 = arith.constant 0 : i32
    return %c0_i32, %c0_i32_0 : i32, i32
  }
  func.func @transform_38(%arg0: i32) -> (i32, i32) {
    %c0_i32 = arith.constant 0 : i32
    %c0_i32_0 = arith.constant 0 : i32
    %c0_i32_1 = arith.constant 0 : i32
    return %c0_i32, %c0_i32_0 : i32, i32
  }
  func.func @transform_39(%arg0: i32) -> (i32, i32) {
    %c0_i32 = arith.constant 0 : i32
    %c0_i32_0 = arith.constant 0 : i32
    %c0_i32_1 = arith.constant 0 : i32
    return %c0_i32, %c0_i32_0 : i32, i32
  }
  func.func @transform_40(%arg0: i32) -> (i32, i32) {
    %c0_i32 = arith.constant 0 : i32
    %c0_i32_0 = arith.constant 0 : i32
    %c0_i32_1 = arith.constant 0 : i32
    return %c0_i32, %c0_i32_0 : i32, i32
  }
  func.func @transform_41(%arg0: i32) -> (i32, i32) {
    %c0_i32 = arith.constant 0 : i32
    %c0_i32_0 = arith.constant 0 : i32
    %c0_i32_1 = arith.constant 0 : i32
    return %c0_i32, %c0_i32_0 : i32, i32
  }
  func.func @transform_42(%arg0: i32) -> (i32, i32) {
    %c0_i32 = arith.constant 0 : i32
    %c0_i32_0 = arith.constant 0 : i32
    %c0_i32_1 = arith.constant 0 : i32
    return %c0_i32, %c0_i32_0 : i32, i32
  }
  func.func @transform_43(%arg0: i32) -> (i32, i32) {
    %c0_i32 = arith.constant 0 : i32
    %c0_i32_0 = arith.constant 0 : i32
    %c0_i32_1 = arith.constant 0 : i32
    return %c0_i32, %c0_i32_0 : i32, i32
  }
  func.func @transform_44(%arg0: i32) -> (i32, i32) {
    %c0_i32 = arith.constant 0 : i32
    %c0_i32_0 = arith.constant 0 : i32
    return %arg0, %c0_i32 : i32, i32
  }
}

</mosaic_0001>

<bundles_post_ra>
// kernel: vit_autoencoder_forward.1
= control target key start
LH: loop header
LB: loop body
LE: loop exit
PB: predicated region body
PF: predicated region fallthrough
CT: control target
= control target key end

     0   :  { %s15857_s6 = smov 1   ;;  %s15858_s10 = smov 2   ;;  %s17873_s0 = inlined_call_operand.smem [shape: u32[45], index: -1, kind: input, shape index: {}] }
   0x1   :  { %s15948_s5 = sld [smem:[%s17873_s0]]   ;;  %s15859_s14 = smov 3  }
   0x2   :  { %s15953_s9 = sld [smem:[%s17873_s0 + %s15857_s6]]   ;;  %s15860_s18 = smov 4  }
   0x3   :  { %s15958_s13 = sld [smem:[%s17873_s0 + %s15858_s10]]   ;;  %s15861_s22 = smov 5  }
   0x4   :  { %s15963_s17 = sld [smem:[%s17873_s0 + %s15859_s14]]   ;;  %s15862_s26 = smov 6  }
   0x5   :  { %s15968_s21 = sld [smem:[%s17873_s0 + %s15860_s18]]   ;;  %s15863_s30 = smov 7  }
   0x6   :  { %s15973_s25 = sld [smem:[%s17873_s0 + %s15861_s22]]   ;;  %s15864_s4 = smov 8  }
   0x7   :  { %17914 = sst [smem:[#allocation54_spill]] %s15948_s5  ;;  %s15865_s10 = smov 9  }
   0x8   :  { %17915 = sst [smem:[#allocation55_spill]] %s15953_s9  ;;  %s15866_s15 = smov 10  }
   0x9   :  { %17916 = sst [smem:[#allocation56_spill]] %s15958_s13  ;;  %s15867_s20 = smov 11  }
   0xa   :  { %s15978_s29 = sld [smem:[%s17873_s0 + %s15862_s26]]   ;;  %s15868_s26 = smov 12  }
   0xb   :  { %17917 = sst [smem:[#allocation57_spill]] %s15968_s21  ;;  %s15869_s1 = smov 13  }
   0xc   :  { %17918 = sst [smem:[#allocation58_spill]] %s15973_s25  ;;  %s15870_s7 = smov 14  }
   0xd   :  { %s15983_s3 = sld [smem:[%s17873_s0 + %s15863_s30]]   ;;  %s15872_s22 = smov 16  }
   0xe   :  { %s15988_s8 = sld [smem:[%s17873_s0 + %s15864_s4]]   ;;  %s15873_s28 = smov 17  }
   0xf   :  { %s15993_s14 = sld [smem:[%s17873_s0 + %s15865_s10]]  }
  0x10   :  { %17919 = sst [smem:[#allocation59_spill]] %s15978_s29 }
  0x11   :  { %s15998_s19 = sld [smem:[%s17873_s0 + %s15866_s15]]   ;;  %s15871_s15 = smov 15  }
  0x12   :  { %s16003_s24 = sld [smem:[%s17873_s0 + %s15867_s20]]  }
  0x13   :  { %17920 = sst [smem:[#allocation60_spill]] %s15983_s3 }
  0x14   :  { %17921 = sst [smem:[#allocation61_spill]] %s15988_s8 }
  0x15   :  { %17922 = sst [smem:[#allocation62_spill]] %s15993_s14 }
  0x16   :  { %s16008_s30 = sld [smem:[%s17873_s0 + %s15868_s26]]  }
  0x17   :  { %s16013_s6 = sld [smem:[%s17873_s0 + %s15869_s1]]  }
  0x18   :  { %17923 = sst [smem:[#allocation63_spill]] %s16003_s24 }
  0x19   :  { %s16018_s12 = sld [smem:[%s17873_s0 + %s15870_s7]]   ;;  %s15874_s7 = smov 18  }
  0x1a   :  { %s16023_s20 = sld [smem:[%s17873_s0 + %s15871_s15]]   ;;  %s15875_s15 = smov 19  }
  0x1b   :  { %s16028_s27 = sld [smem:[%s17873_s0 + %s15872_s22]]   ;;  %s15876_s22 = smov 20  }
  0x1c   :  { %17924 = sst [smem:[#allocation64_spill]] %s16008_s30 }
  0x1d   :  { %17925 = sst [smem:[#allocation65_spill]] %s16013_s6 }
  0x1e   :  { %s16033_s4 = sld [smem:[%s17873_s0 + %s15873_s28]]   ;;  %s15877_s28 = smov 21  }
  0x1f   :  { %17926 = sst [smem:[#allocation66_spill]] %s16018_s12 }
  0x20   :  { %17927 = sst [smem:[#allocation67_spill]] %s16023_s20 }
  0x21   :  { %17928 = sst [smem:[#allocation68_spill]] %s16028_s27 }
  0x22   :  { %s16038_s12 = sld [smem:[%s17873_s0 + %s15874_s7]]   ;;  %s15878_s7 = smov 22  }
  0x23   :  { %s16043_s20 = sld [smem:[%s17873_s0 + %s15875_s15]]   ;;  %s15879_s15 = smov 23  }
  0x24   :  { %17929 = sst [smem:[#allocation69_spill]] %s16033_s4 }
  0x25   :  { %s16048_s27 = sld [smem:[%s17873_s0 + %s15876_s22]]   ;;  %s15880_s22 = smov 24  }
  0x26   :  { %s16053_s30 = sld [smem:[%s17873_s0 + %s15877_s28]]   ;;  %s15881_s28 = smov 25  }
  0x27   :  { %s16058_s24 = sld [smem:[%s17873_s0 + %s15878_s7]]   ;;  %s15882_s7 = smov 26  }
  0x28   :  { %17930 = sst [smem:[#allocation70_spill]] %s16038_s12 }
  0x29   :  { %17931 = sst [smem:[#allocation71_spill]] %s16043_s20 }
  0x2a   :  { %s16063_s20 = sld [smem:[%s17873_s0 + %s15879_s15]]   ;;  %s15883_s15 = smov 27  }
  0x2b   :  { %17932 = sst [smem:[#allocation72_spill]] %s16048_s27 }
  0x2c   :  { %17933 = sst [smem:[#allocation73_spill]] %s16053_s30 }
  0x2d   :  { %s16068_s27 = sld [smem:[%s17873_s0 + %s15880_s22]]   ;;  %s15884_s22 = smov 28  }
  0x2e   :  { %s16073_s8 = sld [smem:[%s17873_s0 + %s15881_s28]]   ;;  %s15885_s28 = smov 29  }
  0x2f   :  { %s16078_s3 = sld [smem:[%s17873_s0 + %s15882_s7]]   ;;  %s15886_s7 = smov 30  }
  0x30   :  { %17934 = sst [smem:[#allocation74_spill]] %s16063_s20 }
  0x31   :  { %s16083_s20 = sld [smem:[%s17873_s0 + %s15883_s15]]   ;;  %s15887_s15 = smov 31  }
  0x32   :  { %s16098_s29 = sld [smem:[%s17873_s0 + %s15886_s7]]   ;;  %s15890_s7 = smov 34  }
  0x33   :  { %17935 = sst [smem:[#allocation75_spill]] %s16068_s27 }
  0x34   :  { %17936 = sst [smem:[#allocation76_spill]] %s16073_s8 }
  0x35   :  { %17937 = sst [smem:[#allocation77_spill]] %s16078_s3 }
  0x36   :  { %s16088_s27 = sld [smem:[%s17873_s0 + %s15884_s22]]   ;;  %s15888_s22 = smov 32  }
  0x37   :  { %s16093_s8 = sld [smem:[%s17873_s0 + %s15885_s28]]   ;;  %s15889_s28 = smov 33  }
  0x38   :  { %17940 = sst [smem:[#allocation80_spill]] %s16098_s29 }
  0x39   :  { %s16103_s25 = sld [smem:[%s17873_s0 + %s15887_s15]]   ;;  %s15891_s15 = smov 35  }
  0x3a   :  { %s16108_s21 = sld [smem:[%s17873_s0 + %s15888_s22]]   ;;  %s15892_s22 = smov 36  }
  0x3b   :  { %s16113_s13 = sld [smem:[%s17873_s0 + %s15889_s28]]   ;;  %s15893_s28 = smov 37  }
  0x3c   :  { %17938 = sst [smem:[#allocation78_spill]] %s16088_s27 }
  0x3d   :  { %17939 = sst [smem:[#allocation79_spill]] %s16093_s8 }
  0x3e   :  { %s16118_s9 = sld [smem:[%s17873_s0 + %s15890_s7]]   ;;  %s15894_s7 = smov 38  }
  0x3f   :  { %s16123_s5 = sld [smem:[%s17873_s0 + %s15891_s15]]   ;;  %s15895_s15 = smov 39  }
  0x40   :  { %17941 = sst [smem:[#allocation81_spill]] %s16108_s21 }
  0x41   :  { %17942 = sst [smem:[#allocation82_spill]] %s16113_s13 }
  0x42   :  { %s16128_s21 = sld [smem:[%s17873_s0 + %s15892_s22]]   ;;  %s15896_s22 = smov 40  }
  0x43   :  { %s16133_s29 = sld [smem:[%s17873_s0 + %s15893_s28]]   ;;  %s15897_s28 = smov 41  }
  0x44   :  { %17943 = sst [smem:[#allocation83_spill]] %s16118_s9 }
  0x45   :  { %17944 = sst [smem:[#allocation84_spill]] %s16123_s5 }
  0x46   :  { %s16138_s9 = sld [smem:[%s17873_s0 + %s15894_s7]]   ;;  %s15898_s7 = smov 42  }
  0x47   :  { %s16143_s27 = sld [smem:[%s17873_s0 + %s15895_s15]]   ;;  %s15899_s15 = smov 43  }
  0x48   :  { %17945 = sst [smem:[#allocation85_spill]] %s16128_s21 }
  0x49   :  { %s16148_s21 = sld [smem:[%s17873_s0 + %s15896_s22]]   ;;  %s15900_s22 = smov 44  }
  0x4a   :  { %s16153_s3 = sld [smem:[%s17873_s0 + %s15897_s28]]  }
  0x4b   :  { %s16163_s30 = sld [smem:[%s17873_s0 + %s15899_s15]]  }
  0x4c   :  { %17946 = sst [smem:[#allocation86_spill]] %s16138_s9 }
  0x4d   :  { %s16158_s9 = sld [smem:[%s17873_s0 + %s15898_s7]]  }
  0x4f   :  { %17947 = sst [smem:[#allocation87_spill]] %s16148_s21 }
  0x50   :  { %s16168_s21 = sld [smem:[%s17873_s0 + %s15900_s22]]  }
  0x51   :  { %94 = vsyncpa [#allocation5], 0 }
  0x52   :  { %95 = vsyncpa [#allocation7], 0 }
  0x53   :  { %96 = vsyncpa [#allocation10], 0 }
  0x54   :  { %97 = vsyncpa [#allocation13], 0 }
  0x55   :  { %98 = vsyncpa [#allocation16], 0 }
  0x56   :  { %99 = vsyncpa [#allocation19], 0 }
  0x57   :  { %100 = vsyncpa [#allocation22], 0 }
  0x58   :  { %101 = vsyncpa [#allocation25], 0 }
  0x59   :  { %102 = vsyncpa [#allocation28], 0 }
  0x5a   :  { %103 = vsyncpa [#allocation31], 0 }
  0x5b   :  { %104 = vsyncpa [#allocation34], 0 }
  0x5c   :  { %105 = vsyncpa [#allocation37], 0 }
  0x5d   :  { %106 = vsyncpa [#allocation40], 0  ;;  %s16170_s28 = smov 0  }
  0x5e LB: > { %s17948_s4 = sld [smem:[#allocation69_spill]]  ;;  %s17949_s13 = sld [smem:[#allocation82_spill]]  ;;  %s15855_s28 = sphi %s16170_s28, %s112_s28  }
  0x5f   : > { %s17950_s5 = sld [smem:[#allocation84_spill]]  ;;  %s17951_s12 = sld [smem:[#allocation70_spill]] }
  0x60   : > { %s17952_s8 = sld [smem:[#allocation79_spill]]  ;;  %s17953_s6 = sld [smem:[#allocation65_spill]] }
  0x61   : > { %s17954_s14 = sld [smem:[#allocation62_spill]]  ;;  %s15901_s0 = smov [#allocation6]  }
  0x62   : > { %s1118_s1 = sshll.u32 %s15901_s0, 4  ;;  %s17890_s2 = sadd.s32 4294967295, %s15855_s28   ;;  %s16184_s1 = int_to_ptr.vmem [resolvable:$true] %s1118_s1 }
  0x63   : > { %p12210_p0 = scmp.ge.s32.totalorder %s15855_s28, 1  ;;  %p1072_p1 = scmp.lt.s32.totalorder %s15855_s28, 3 }
  0x64   : > { %p16180_p2 = scmp.eq.s32.totalorder %s17890_s2, 0  ;;  %s15902_s11 = smov [#allocation9]  }
  0x65   : > { %p16186_p3 = pnand %p12210_p0, %p1072_p1  ;;  %s1150_s15 = sshll.u32 %s15902_s11, 4  ;;  %s16192_s15 = int_to_ptr.vmem [resolvable:$true] %s1150_s15 }
  0x66   : > { %s17955_s7 = scalar_select %p16180_p2, 1, 0 }
  0x67   : > { %s17956_s10 = scalar_select %p16186_p3, 1, 0 }
  0x68   : > { %p14029_p4 = pneg %p16186_p3  ;;  %s15125_s18 = scalar_lea.hbm %s17954_s14, 3072 }
  0x69   : > { %p15126_p6 = scmp.ne.s32.totalorder %s17954_s14, %s15125_s18  ;;  %p15132_p10 = scmp.lt.u32.totalorder %s15125_s18, %s17954_s14 }
  0x6a   : > { %p16196_p5 = pnand %p16180_p2, %p14029_p4 }
  0x6c   : > { %p16204_p7 = pneg %p16196_p5 }
  0x6e   : > { %p15128_p8 = pnand %p16204_p7, %p15126_p6 }
  0x70   : > { %p15129_p9 = pneg %p15128_p8 }
  0x72   : > { %p15134_p11 = pnand %p15132_p10, %p15129_p9 }
  0x74   : > { %15137 = shalt.err (!%p15134_p11)
}
  0x75   : > { %s15138_s23 = scalar_lea.vmem %s16184_s1, 3072  ;;  %p15146_p1 = scmp.lt.s32.totalorder %s16184_s1, %s16184_s1 }
  0x76   : > { %p15139_p12 = scmp.ne.s32.totalorder %s16184_s1, %s15138_s23  ;;  %p15147_p4 = scmp.lt.s32.totalorder %s15138_s23, %s15138_s23 }
  0x78   : > { %p15141_p13 = pnand %p15139_p12, %p16204_p7  ;;  %p15148_p2 = por %p15147_p4, %p15146_p1 }
  0x7a   : > { %p15142_p0 = pneg %p15141_p13 }
  0x7c   : > { %p15149_p3 = pnand %p15148_p2, %p15142_p0 }
  0x7e   : > { %15152 = shalt.err (!%p15149_p3)
}
  0x7f   : > { %s17891_s26 = smov 192   ;;  %s17893_s0 = smov 12  }
  0x80   : > { %14035 = dma.hbm_to_vmem [thread:$0]  (!%p16196_p5), %s17954_s14, 3072, %s16184_s1, [#allocation7], %s17891_s26, %s17891_s26, %s17893_s0  }
  0x81   : > { %s15153_s11 = scalar_lea.hbm %s17953_s6, 4096 }
  0x82   : > { %p15154_p6 = scmp.ne.s32.totalorder %s17953_s6, %s15153_s11  ;;  %p15160_p3 = scmp.lt.u32.totalorder %s15153_s11, %s17953_s6 }
  0x84   : > { %p15156_p8 = pnand %p15154_p6, %p16204_p7 }
  0x86   : > { %p15157_p2 = pneg %p15156_p8 }
  0x88   : > { %p15162_p9 = pnand %p15160_p3, %p15157_p2 }
  0x8a   : > { %15165 = shalt.err (!%p15162_p9)
}
  0x8b   : > { %s15166_s18 = scalar_lea.vmem %s16192_s15, 4096  ;;  %p15174_p13 = scmp.lt.s32.totalorder %s16192_s15, %s16192_s15 }
  0x8c   : > { %p15167_p10 = scmp.ne.s32.totalorder %s16192_s15, %s15166_s18  ;;  %p15175_p0 = scmp.lt.s32.totalorder %s15166_s18, %s15166_s18 }
  0x8e   : > { %p15169_p11 = pnand %p15167_p10, %p16204_p7  ;;  %p15176_p1 = por %p15175_p0, %p15174_p13 }
  0x90   : > { %p15170_p12 = pneg %p15169_p11 }
  0x92   : > { %p15177_p4 = pnand %p15176_p1, %p15170_p12 }
  0x94   : > { %15180 = shalt.err (!%p15177_p4)
}
  0x95   : > { %s17896_s1 = smov 256   ;;  %s17898_s23 = smov 16  }
  0x96   : > { %14041 = dma.hbm_to_vmem [thread:$0]  (!%p16196_p5), %s17953_s6, 4096, %s16192_s15, [#allocation10], %s17896_s1, %s17896_s1, %s17898_s23  }
  0x97   : > { %s15907_s11 = smov [#allocation12]   ;;  %s15908_s18 = smov [#allocation15]  }
  0x98   : > { %s1185_s2 = sshll.u32 %s15907_s11, 4  ;;  %s1217_s26 = sshll.u32 %s15908_s18, 4  ;;  %s1186_s2 = int_to_ptr.vmem [resolvable:$true] %s1185_s2  ;;  %s1218_s26 = int_to_ptr.vmem [resolvable:$true] %s1217_s26 }
  0x99   : > { %s15181_s0 = scalar_lea.hbm %s17951_s12, 1024 }
  0x9a   : > { %p15182_p6 = scmp.ne.s32.totalorder %s17951_s12, %s15181_s0  ;;  %p15188_p3 = scmp.lt.u32.totalorder %s15181_s0, %s17951_s12 }
  0x9c   : > { %p15184_p8 = pnand %p15182_p6, %p16204_p7 }
  0x9e   : > { %p15185_p2 = pneg %p15184_p8 }
  0xa0   : > { %p15190_p9 = pnand %p15188_p3, %p15185_p2 }
  0xa2   : > { %15193 = shalt.err (!%p15190_p9)
}
  0xa3   : > { %s15194_s14 = scalar_lea.vmem %s1186_s2, 1024  ;;  %p15202_p13 = scmp.lt.s32.totalorder %s1186_s2, %s1186_s2 }
  0xa4   : > { %p15195_p10 = scmp.ne.s32.totalorder %s1186_s2, %s15194_s14  ;;  %p15203_p0 = scmp.lt.s32.totalorder %s15194_s14, %s15194_s14 }
  0xa6   : > { %p15197_p11 = pnand %p15195_p10, %p16204_p7  ;;  %p15204_p1 = por %p15203_p0, %p15202_p13 }
  0xa8   : > { %p15198_p12 = pneg %p15197_p11 }
  0xaa   : > { %p15205_p4 = pnand %p15204_p1, %p15198_p12 }
  0xac   : > { %15208 = shalt.err (!%p15205_p4)
}
  0xad   : > { %s17900_s15 = smov 64   ;;  %s17902_s0 = smov 4  }
  0xae   : > { %14047 = dma.hbm_to_vmem [thread:$0]  (!%p16196_p5), %s17951_s12, 1024, %s1186_s2, [#allocation13], %s17900_s15, %s17900_s15, %s17902_s0  }
  0xaf   : > { %s15209_s11 = scalar_lea.hbm %s16058_s24, 4096 }
  0xb0   : > { %p15210_p6 = scmp.ne.s32.totalorder %s16058_s24, %s15209_s11  ;;  %p15216_p3 = scmp.lt.u32.totalorder %s15209_s11, %s16058_s24 }
  0xb2   : > { %p15212_p8 = pnand %p15210_p6, %p16204_p7 }
  0xb4   : > { %p15213_p2 = pneg %p15212_p8 }
  0xb6   : > { %p15218_p9 = pnand %p15216_p3, %p15213_p2 }
  0xb8   : > { %15221 = shalt.err (!%p15218_p9)
}
  0xb9   : > { %s15222_s14 = scalar_lea.vmem %s1218_s26, 4096  ;;  %p15230_p13 = scmp.lt.s32.totalorder %s1218_s26, %s1218_s26 }
  0xba   : > { %p15223_p10 = scmp.ne.s32.totalorder %s1218_s26, %s15222_s14  ;;  %p15231_p0 = scmp.lt.s32.totalorder %s15222_s14, %s15222_s14 }
  0xbc   : > { %p15225_p11 = pnand %p15223_p10, %p16204_p7  ;;  %p15232_p1 = por %p15231_p0, %p15230_p13 }
  0xbe   : > { %p15226_p12 = pneg %p15225_p11 }
  0xc0   : > { %p15233_p4 = pnand %p15232_p1, %p15226_p12 }
  0xc2   : > { %15236 = shalt.err (!%p15233_p4)
}
  0xc3   : > { %14053 = dma.hbm_to_vmem [thread:$0]  (!%p16196_p5), %s16058_s24, 4096, %s1218_s26, [#allocation16], %s17900_s15, %s17900_s15, %s17902_s0  }
  0xc4   : > { %s15911_s2 = smov [#allocation18]   ;;  %s15912_s11 = smov [#allocation21]  }
  0xc5   : > { %s1250_s18 = sshll.u32 %s15911_s2, 4  ;;  %s1277_s1 = sshll.u32 %s15912_s11, 4  ;;  %s1251_s18 = int_to_ptr.vmem [resolvable:$true] %s1250_s18  ;;  %s1278_s1 = int_to_ptr.vmem [resolvable:$true] %s1277_s1 }
  0xc6   : > { %s15237_s14 = scalar_lea.hbm %s16083_s20, 3072 }
  0xc7   : > { %p15238_p6 = scmp.ne.s32.totalorder %s16083_s20, %s15237_s14  ;;  %p15244_p3 = scmp.lt.u32.totalorder %s15237_s14, %s16083_s20 }
  0xc9   : > { %p15240_p8 = pnand %p15238_p6, %p16204_p7 }
  0xcb   : > { %p15241_p2 = pneg %p15240_p8 }
  0xcd   : > { %p15246_p9 = pnand %p15244_p3, %p15241_p2 }
  0xcf   : > { %15249 = shalt.err (!%p15246_p9)
}
  0xd0   : > { %s15250_s23 = scalar_lea.vmem %s1251_s18, 3072  ;;  %p15258_p13 = scmp.lt.s32.totalorder %s1251_s18, %s1251_s18 }
  0xd1   : > { %p15251_p10 = scmp.ne.s32.totalorder %s1251_s18, %s15250_s23  ;;  %p15259_p0 = scmp.lt.s32.totalorder %s15250_s23, %s15250_s23 }
  0xd3   : > { %p15253_p11 = pnand %p15251_p10, %p16204_p7  ;;  %p15260_p1 = por %p15259_p0, %p15258_p13 }
  0xd5   : > { %p15254_p12 = pneg %p15253_p11 }
  0xd7   : > { %p15261_p4 = pnand %p15260_p1, %p15254_p12 }
  0xd9   : > { %15264 = shalt.err (!%p15261_p4)
}
  0xda   : > { %s17959_s26 = smov 12   ;;  %s17960_s2 = smov 192  }
  0xdb   : > { %14059 = dma.hbm_to_vmem [thread:$0]  (!%p16196_p5), %s16083_s20, 3072, %s1251_s18, [#allocation19], %s17960_s2, %s17960_s2, %s17959_s26  }
  0xdc   : > { %s15265_s11 = scalar_lea.hbm %s17952_s8, 16 }
  0xdd   : > { %p15266_p6 = scmp.ne.s32.totalorder %s17952_s8, %s15265_s11  ;;  %p15272_p3 = scmp.lt.u32.totalorder %s15265_s11, %s17952_s8 }
  0xdf   : > { %p15268_p8 = pnand %p15266_p6, %p16204_p7 }
  0xe1   : > { %p15269_p2 = pneg %p15268_p8 }
  0xe3   : > { %p15274_p9 = pnand %p15272_p3, %p15269_p2 }
  0xe5   : > { %15277 = shalt.err (!%p15274_p9)
}
  0xe6   : > { %s15278_s23 = scalar_lea.vmem %s1278_s1, 16  ;;  %s15285_s14 = scalar_lea.vmem %s1278_s1, 32 }
  0xe7   : > { %p15279_p10 = scmp.ne.s32.totalorder %s1278_s1, %s15278_s23  ;;  %p15286_p13 = scmp.lt.s32.totalorder %s1278_s1, %s1278_s1 }
  0xe8   : > { %p15287_p0 = scmp.lt.s32.totalorder %s15285_s14, %s15278_s23 }
  0xe9   : > { %p15281_p11 = pnand %p15279_p10, %p16204_p7 }
  0xea   : > { %p15288_p1 = por %p15287_p0, %p15286_p13 }
  0xeb   : > { %p15282_p12 = pneg %p15281_p11 }
  0xed   : > { %p15289_p4 = pnand %p15288_p1, %p15282_p12 }
  0xef   : > { %15292 = shalt.err (!%p15289_p4)
}
  0xf0   : > { %14065 = dma.hbm_to_vmem [thread:$0]  (!%p16196_p5), %s17952_s8, 16, %s1278_s1, [#allocation22]  }
  0xf1   : > { %s15913_s18 = smov [#allocation24]   ;;  %s15914_s15 = smov [#allocation27]  }
  0xf2   : > { %s1298_s11 = sshll.u32 %s15913_s18, 4  ;;  %s1325_s0 = sshll.u32 %s15914_s15, 4  ;;  %s1299_s11 = int_to_ptr.vmem [resolvable:$true] %s1298_s11  ;;  %s1326_s0 = int_to_ptr.vmem [resolvable:$true] %s1325_s0 }
  0xf3   : > { %s15293_s6 = scalar_lea.hbm %s16103_s25, 4096 }
  0xf4   : > { %p15294_p6 = scmp.ne.s32.totalorder %s16103_s25, %s15293_s6  ;;  %p15300_p3 = scmp.lt.u32.totalorder %s15293_s6, %s16103_s25 }
  0xf6   : > { %p15296_p8 = pnand %p15294_p6, %p16204_p7 }
  0xf8   : > { %p15297_p2 = pneg %p15296_p8 }
  0xfa   : > { %p15302_p9 = pnand %p15300_p3, %p15297_p2 }
  0xfc   : > { %15305 = shalt.err (!%p15302_p9)
}
  0xfd   : > { %s15306_s23 = scalar_lea.vmem %s1299_s11, 4096  ;;  %p15314_p13 = scmp.lt.s32.totalorder %s1299_s11, %s1299_s11 }
  0xfe   : > { %p15307_p10 = scmp.ne.s32.totalorder %s1299_s11, %s15306_s23  ;;  %p15315_p0 = scmp.lt.s32.totalorder %s15306_s23, %s15306_s23 }
 0x100   : > { %p15309_p11 = pnand %p15307_p10, %p16204_p7  ;;  %p15316_p1 = por %p15315_p0, %p15314_p13 }
 0x102   : > { %p15310_p12 = pneg %p15309_p11 }
 0x104   : > { %p15317_p4 = pnand %p15316_p1, %p15310_p12 }
 0x106   : > { %15320 = shalt.err (!%p15317_p4)
}
 0x107   : > { %s17961_s1 = smov 16   ;;  %s17962_s15 = smov 256  }
 0x108   : > { %14071 = dma.hbm_to_vmem [thread:$0]  (!%p16196_p5), %s16103_s25, 4096, %s1299_s11, [#allocation25], %s17962_s15, %s17962_s15, %s17961_s1  }
 0x109   : > { %s15321_s6 = scalar_lea.hbm %s17949_s13, 16 }
 0x10a   : > { %p15322_p6 = scmp.ne.s32.totalorder %s17949_s13, %s15321_s6  ;;  %p15328_p3 = scmp.lt.u32.totalorder %s15321_s6, %s17949_s13 }
 0x10c   : > { %p15324_p8 = pnand %p15322_p6, %p16204_p7 }
 0x10e   : > { %p15325_p2 = pneg %p15324_p8 }
 0x110   : > { %p15330_p9 = pnand %p15328_p3, %p15325_p2 }
 0x112   : > { %15333 = shalt.err (!%p15330_p9)
}
 0x113   : > { %s15334_s14 = scalar_lea.vmem %s1326_s0, 16  ;;  %s15341_s18 = scalar_lea.vmem %s1326_s0, 32 }
 0x114   : > { %p15335_p10 = scmp.ne.s32.totalorder %s1326_s0, %s15334_s14  ;;  %p15342_p13 = scmp.lt.s32.totalorder %s1326_s0, %s1326_s0 }
 0x115   : > { %p15343_p0 = scmp.lt.s32.totalorder %s15341_s18, %s15334_s14 }
 0x116   : > { %p15337_p11 = pnand %p15335_p10, %p16204_p7 }
 0x117   : > { %p15344_p1 = por %p15343_p0, %p15342_p13 }
 0x118   : > { %p15338_p12 = pneg %p15337_p11 }
 0x11a   : > { %p15345_p4 = pnand %p15344_p1, %p15338_p12 }
 0x11c   : > { %15348 = shalt.err (!%p15345_p4)
}
 0x11d   : > { %14077 = dma.hbm_to_vmem [thread:$0]  (!%p16196_p5), %s17949_s13, 16, %s1326_s0, [#allocation28]  }
 0x11e   : > { %s15915_s11 = smov [#allocation30]   ;;  %s15916_s6 = smov [#allocation33]  }
 0x11f   : > { %s1346_s23 = sshll.u32 %s15915_s11, 4  ;;  %s1373_s8 = sshll.u32 %s15916_s6, 4  ;;  %s1347_s23 = int_to_ptr.vmem [resolvable:$true] %s1346_s23  ;;  %s1374_s8 = int_to_ptr.vmem [resolvable:$true] %s1373_s8 }
 0x120   : > { %s15349_s12 = scalar_lea.hbm %s17950_s5, 3072 }
 0x121   : > { %p15350_p6 = scmp.ne.s32.totalorder %s17950_s5, %s15349_s12  ;;  %p15356_p3 = scmp.lt.u32.totalorder %s15349_s12, %s17950_s5 }
 0x123   : > { %p15352_p8 = pnand %p15350_p6, %p16204_p7 }
 0x125   : > { %p15353_p2 = pneg %p15352_p8 }
 0x127   : > { %p15358_p9 = pnand %p15356_p3, %p15353_p2 }
 0x129   : > { %15361 = shalt.err (!%p15358_p9)
}
 0x12a   : > { %s15362_s14 = scalar_lea.vmem %s1347_s23, 3072  ;;  %p15370_p13 = scmp.lt.s32.totalorder %s1347_s23, %s1347_s23 }
 0x12b   : > { %p15363_p10 = scmp.ne.s32.totalorder %s1347_s23, %s15362_s14  ;;  %p15371_p0 = scmp.lt.s32.totalorder %s15362_s14, %s15362_s14 }
 0x12d   : > { %p15365_p11 = pnand %p15363_p10, %p16204_p7  ;;  %p15372_p1 = por %p15371_p0, %p15370_p13 }
 0x12f   : > { %p15366_p12 = pneg %p15365_p11 }
 0x131   : > { %p15373_p4 = pnand %p15372_p1, %p15366_p12 }
 0x133   : > { %15376 = shalt.err (!%p15373_p4)
}
 0x134   : > { %14083 = dma.hbm_to_vmem [thread:$0]  (!%p16196_p5), %s17950_s5, 3072, %s1347_s23, [#allocation31], %s17960_s2, %s17960_s2, %s17959_s26  }
 0x135   : > { %s15377_s12 = scalar_lea.hbm %s16133_s29, 16 }
 0x136   : > { %p15378_p6 = scmp.ne.s32.totalorder %s16133_s29, %s15377_s12  ;;  %p15384_p3 = scmp.lt.u32.totalorder %s15377_s12, %s16133_s29 }
 0x138   : > { %p15380_p8 = pnand %p15378_p6, %p16204_p7 }
 0x13a   : > { %p15381_p2 = pneg %p15380_p8 }
 0x13c   : > { %p15386_p9 = pnand %p15384_p3, %p15381_p2 }
 0x13e   : > { %15389 = shalt.err (!%p15386_p9)
}
 0x13f   : > { %s15390_s0 = scalar_lea.vmem %s1374_s8, 16  ;;  %s15397_s18 = scalar_lea.vmem %s1374_s8, 32 }
 0x140   : > { %p15391_p10 = scmp.ne.s32.totalorder %s1374_s8, %s15390_s0  ;;  %p15398_p13 = scmp.lt.s32.totalorder %s1374_s8, %s1374_s8 }
 0x141   : > { %p15399_p0 = scmp.lt.s32.totalorder %s15397_s18, %s15390_s0 }
 0x142   : > { %p15393_p11 = pnand %p15391_p10, %p16204_p7 }
 0x143   : > { %p15400_p1 = por %p15399_p0, %p15398_p13 }
 0x144   : > { %p15394_p12 = pneg %p15393_p11 }
 0x146   : > { %p15401_p4 = pnand %p15400_p1, %p15394_p12 }
 0x148   : > { %15404 = shalt.err (!%p15401_p4)
}
 0x149   : > { %14089 = dma.hbm_to_vmem [thread:$0]  (!%p16196_p5), %s16133_s29, 16, %s1374_s8, [#allocation34]  }
 0x14a   : > { %s15917_s11 = smov [#allocation36]   ;;  %s15918_s6 = smov [#allocation4]  }
 0x14b   : > { %s1394_s23 = sshll.u32 %s15917_s11, 4  ;;  %s1090_s14 = sshll.u32 %s15918_s6, 4  ;;  %s1395_s23 = int_to_ptr.vmem [resolvable:$true] %s1394_s23  ;;  %s1091_s14 = int_to_ptr.vmem [resolvable:$true] %s1090_s14 }
 0x14c   : > { %s15405_s12 = scalar_lea.hbm %s16143_s27, 4096 }
 0x14d   : > { %p15406_p6 = scmp.ne.s32.totalorder %s16143_s27, %s15405_s12  ;;  %p15412_p3 = scmp.lt.u32.totalorder %s15405_s12, %s16143_s27 }
 0x14f   : > { %p15408_p8 = pnand %p15406_p6, %p16204_p7 }
 0x151   : > { %p15409_p2 = pneg %p15408_p8 }
 0x153   : > { %p15414_p9 = pnand %p15412_p3, %p15409_p2 }
 0x155   : > { %15417 = shalt.err (!%p15414_p9)
}
 0x156   : > { %s15418_s0 = scalar_lea.vmem %s1395_s23, 4096  ;;  %p15426_p13 = scmp.lt.s32.totalorder %s1395_s23, %s1395_s23 }
 0x157   : > { %p15419_p10 = scmp.ne.s32.totalorder %s1395_s23, %s15418_s0  ;;  %p15427_p0 = scmp.lt.s32.totalorder %s15418_s0, %s15418_s0 }
 0x159   : > { %p15421_p11 = pnand %p15419_p10, %p16204_p7  ;;  %p15428_p1 = por %p15427_p0, %p15426_p13 }
 0x15b   : > { %p15422_p12 = pneg %p15421_p11 }
 0x15d   : > { %p15429_p4 = pnand %p15428_p1, %p15422_p12 }
 0x15f   : > { %15432 = shalt.err (!%p15429_p4)
}
 0x160   : > { %14095 = dma.hbm_to_vmem [thread:$0]  (!%p16196_p5), %s16143_s27, 4096, %s1395_s23, [#allocation37], %s17962_s15, %s17962_s15, %s17961_s1  }
 0x161   : > { %s15433_s8 = scalar_lea.hbm %s15963_s17, 2048 }
 0x162   : > { %p15434_p6 = scmp.ne.s32.totalorder %s15963_s17, %s15433_s8  ;;  %p15440_p3 = scmp.lt.u32.totalorder %s15433_s8, %s15963_s17 }
 0x164   : > { %p15436_p8 = pnand %p15434_p6, %p16204_p7 }
 0x166   : > { %p15437_p2 = pneg %p15436_p8 }
 0x168   : > { %p15442_p9 = pnand %p15440_p3, %p15437_p2 }
 0x16a   : > { %15445 = shalt.err (!%p15442_p9)
}
 0x16b   : > { %s15446_s18 = scalar_lea.vmem %s1091_s14, 2048  ;;  %p15454_p13 = scmp.lt.s32.totalorder %s1091_s14, %s1091_s14 }
 0x16c   : > { %p15447_p10 = scmp.ne.s32.totalorder %s1091_s14, %s15446_s18  ;;  %p15455_p0 = scmp.lt.s32.totalorder %s15446_s18, %s15446_s18 }
 0x16e   : > { %p15449_p11 = pnand %p15447_p10, %p16204_p7  ;;  %p15456_p1 = por %p15455_p0, %p15454_p13 }
 0x170   : > { %p15450_p12 = pneg %p15449_p11 }
 0x172   : > { %p15457_p4 = pnand %p15456_p1, %p15450_p12 }
 0x174   : > { %15460 = shalt.err (!%p15457_p4)
}
 0x175   : > { %s17963_s11 = smov 4   ;;  %s17964_s23 = smov 64  }
 0x176   : > { %14032 = dma.hbm_to_vmem [thread:$0]  (!%p16196_p5), %s15963_s17, 2048, %s1091_s14, [#allocation5], %s17964_s23, %s17964_s23, %s17963_s11  }
 0x177   : > { %s15919_s6 = smov [#allocation8]   ;;  %s15920_s0 = smov [#allocation11]  }
 0x178   : > { %s1131_s12 = sshll.u32 %s15919_s6, 4  ;;  %s1172_s8 = sshll.u32 %s15920_s0, 4  ;;  %s1132_s12 = int_to_ptr.vmem [resolvable:$true] %s1131_s12  ;;  %s1173_s8 = int_to_ptr.vmem [resolvable:$true] %s1172_s8 }
 0x179   : > { %s15461_s18 = scalar_lea.hbm %s15998_s19, 1024 }
 0x17a   : > { %p15462_p6 = scmp.ne.s32.totalorder %s15998_s19, %s15461_s18  ;;  %p15468_p3 = scmp.lt.u32.totalorder %s15461_s18, %s15998_s19 }
 0x17c   : > { %p15464_p8 = pnand %p15462_p6, %p16204_p7 }
 0x17e   : > { %p15465_p2 = pneg %p15464_p8 }
 0x180   : > { %p15470_p9 = pnand %p15468_p3, %p15465_p2 }
 0x182   : > { %15473 = shalt.err (!%p15470_p9)
}
 0x183   : > { %s15474_s5 = scalar_lea.vmem %s1132_s12, 1024  ;;  %p15482_p13 = scmp.lt.s32.totalorder %s1132_s12, %s1132_s12 }
 0x184   : > { %p15475_p10 = scmp.ne.s32.totalorder %s1132_s12, %s15474_s5  ;;  %p15483_p0 = scmp.lt.s32.totalorder %s15474_s5, %s15474_s5 }
 0x186   : > { %p15477_p11 = pnand %p15475_p10, %p16204_p7  ;;  %p15484_p1 = por %p15483_p0, %p15482_p13 }
 0x188   : > { %p15478_p12 = pneg %p15477_p11 }
 0x18a   : > { %p15485_p4 = pnand %p15484_p1, %p15478_p12 }
 0x18c   : > { %15488 = shalt.err (!%p15485_p4)
}
 0x18d   : > { %14038 = dma.hbm_to_vmem [thread:$0]  (!%p16196_p5), %s15998_s19, 1024, %s1132_s12, [#allocation7], %s17964_s23, %s17964_s23, %s17963_s11  }
 0x18e   : > { %s15489_s14 = scalar_lea.hbm %s17948_s4, 3072 }
 0x18f   : > { %p15490_p6 = scmp.ne.s32.totalorder %s17948_s4, %s15489_s14  ;;  %p15496_p3 = scmp.lt.u32.totalorder %s15489_s14, %s17948_s4 }
 0x191   : > { %p15492_p8 = pnand %p15490_p6, %p16204_p7 }
 0x193   : > { %p15493_p2 = pneg %p15492_p8 }
 0x195   : > { %p15498_p9 = pnand %p15496_p3, %p15493_p2 }
 0x197   : > { %15501 = shalt.err (!%p15498_p9)
}
 0x198   : > { %s15502_s5 = scalar_lea.vmem %s1173_s8, 3072  ;;  %p15510_p13 = scmp.lt.s32.totalorder %s1173_s8, %s1173_s8 }
 0x199   : > { %p15503_p10 = scmp.ne.s32.totalorder %s1173_s8, %s15502_s5  ;;  %p15511_p0 = scmp.lt.s32.totalorder %s15502_s5, %s15502_s5 }
 0x19b   : > { %p15505_p11 = pnand %p15503_p10, %p16204_p7  ;;  %p15512_p1 = por %p15511_p0, %p15510_p13 }
 0x19d   : > { %p15506_p12 = pneg %p15505_p11 }
 0x19f   : > { %p15513_p4 = pnand %p15512_p1, %p15506_p12 }
 0x1a1   : > { %15516 = shalt.err (!%p15513_p4)
}
 0x1a2   : > { %s17965_s6 = sld [smem:[#allocation73_spill]]  ;;  %s15921_s12 = smov [#allocation14]  }
 0x1a3   : > { %14044 = dma.hbm_to_vmem [thread:$0]  (!%p16196_p5), %s17948_s4, 3072, %s1173_s8, [#allocation10], %s17960_s2, %s17960_s2, %s17959_s26  }
 0x1a4   : > { %s1204_s0 = sshll.u32 %s15921_s12, 4  ;;  %s15922_s18 = smov [#allocation17]   ;;  %s1205_s0 = int_to_ptr.vmem [resolvable:$true] %s1204_s0 }
 0x1a5   : > { %s1240_s14 = sshll.u32 %s15922_s18, 4  ;;  %s1241_s14 = int_to_ptr.vmem [resolvable:$true] %s1240_s14 }
 0x1a8   : > { %s15517_s5 = scalar_lea.hbm %s17965_s6, 4096 }
 0x1a9   : > { %p15518_p6 = scmp.ne.s32.totalorder %s17965_s6, %s15517_s5  ;;  %p15524_p3 = scmp.lt.u32.totalorder %s15517_s5, %s17965_s6 }
 0x1ab   : > { %p15520_p8 = pnand %p15518_p6, %p16204_p7 }
 0x1ad   : > { %p15521_p2 = pneg %p15520_p8 }
 0x1af   : > { %p15526_p9 = pnand %p15524_p3, %p15521_p2 }
 0x1b1   : > { %15529 = shalt.err (!%p15526_p9)
}
 0x1b2   : > { %s15530_s13 = scalar_lea.vmem %s1205_s0, 4096  ;;  %p15538_p13 = scmp.lt.s32.totalorder %s1205_s0, %s1205_s0 }
 0x1b3   : > { %p15531_p10 = scmp.ne.s32.totalorder %s1205_s0, %s15530_s13  ;;  %p15539_p0 = scmp.lt.s32.totalorder %s15530_s13, %s15530_s13 }
 0x1b5   : > { %p15533_p11 = pnand %p15531_p10, %p16204_p7  ;;  %p15540_p1 = por %p15539_p0, %p15538_p13 }
 0x1b7   : > { %p15534_p12 = pneg %p15533_p11 }
 0x1b9   : > { %p15541_p4 = pnand %p15540_p1, %p15534_p12 }
 0x1bb   : > { %15544 = shalt.err (!%p15541_p4)
}
 0x1bc   : > { %s17966_s26 = sld [smem:[#allocation77_spill]] }
 0x1bd   : > { %14050 = dma.hbm_to_vmem [thread:$0]  (!%p16196_p5), %s17965_s6, 4096, %s1205_s0, [#allocation13], %s17962_s15, %s17962_s15, %s17961_s1  }
 0x1c2   : > { %s15545_s2 = scalar_lea.hbm %s17966_s26, 16 }
 0x1c3   : > { %p15546_p6 = scmp.ne.s32.totalorder %s17966_s26, %s15545_s2  ;;  %p15552_p3 = scmp.lt.u32.totalorder %s15545_s2, %s17966_s26 }
 0x1c5   : > { %p15548_p8 = pnand %p15546_p6, %p16204_p7 }
 0x1c7   : > { %p15549_p2 = pneg %p15548_p8 }
 0x1c9   : > { %p15554_p9 = pnand %p15552_p3, %p15549_p2 }
 0x1cb   : > { %15557 = shalt.err (!%p15554_p9)
}
 0x1cc   : > { %s15558_s13 = scalar_lea.vmem %s1241_s14, 16  ;;  %s15565_s8 = scalar_lea.vmem %s1241_s14, 32 }
 0x1cd   : > { %p15559_p10 = scmp.ne.s32.totalorder %s1241_s14, %s15558_s13  ;;  %p15566_p13 = scmp.lt.s32.totalorder %s1241_s14, %s1241_s14 }
 0x1ce   : > { %p15567_p0 = scmp.lt.s32.totalorder %s15565_s8, %s15558_s13 }
 0x1cf   : > { %p15561_p11 = pnand %p15559_p10, %p16204_p7 }
 0x1d0   : > { %p15568_p1 = por %p15567_p0, %p15566_p13 }
 0x1d1   : > { %p15562_p12 = pneg %p15561_p11 }
 0x1d3   : > { %p15569_p4 = pnand %p15568_p1, %p15562_p12 }
 0x1d5   : > { %15572 = shalt.err (!%p15569_p4)
}
 0x1d6   : > { %s17967_s1 = sld [smem:[#allocation78_spill]]  ;;  %s15923_s15 = smov [#allocation20]  }
 0x1d7   : > { %14056 = dma.hbm_to_vmem [thread:$0]  (!%p16196_p5), %s17966_s26, 16, %s1241_s14, [#allocation16]  }
 0x1d8   : > { %s1263_s12 = sshll.u32 %s15923_s15, 4  ;;  %s15924_s0 = smov [#allocation23]   ;;  %s1264_s12 = int_to_ptr.vmem [resolvable:$true] %s1263_s12 }
 0x1d9   : > { %s1288_s18 = sshll.u32 %s15924_s0, 4  ;;  %s1289_s18 = int_to_ptr.vmem [resolvable:$true] %s1288_s18 }
 0x1dc   : > { %s15573_s5 = scalar_lea.hbm %s17967_s1, 1024 }
 0x1dd   : > { %p15574_p6 = scmp.ne.s32.totalorder %s17967_s1, %s15573_s5  ;;  %p15580_p3 = scmp.lt.u32.totalorder %s15573_s5, %s17967_s1 }
 0x1df   : > { %p15576_p8 = pnand %p15574_p6, %p16204_p7 }
 0x1e1   : > { %p15577_p2 = pneg %p15576_p8 }
 0x1e3   : > { %p15582_p9 = pnand %p15580_p3, %p15577_p2 }
 0x1e5   : > { %15585 = shalt.err (!%p15582_p9)
}
 0x1e6   : > { %s15586_s2 = scalar_lea.vmem %s1264_s12, 1024  ;;  %p15594_p13 = scmp.lt.s32.totalorder %s1264_s12, %s1264_s12 }
 0x1e7   : > { %p15587_p10 = scmp.ne.s32.totalorder %s1264_s12, %s15586_s2  ;;  %p15595_p0 = scmp.lt.s32.totalorder %s15586_s2, %s15586_s2 }
 0x1e9   : > { %p15589_p11 = pnand %p15587_p10, %p16204_p7  ;;  %p15596_p1 = por %p15595_p0, %p15594_p13 }
 0x1eb   : > { %p15590_p12 = pneg %p15589_p11 }
 0x1ed   : > { %p15597_p4 = pnand %p15596_p1, %p15590_p12 }
 0x1ef   : > { %15600 = shalt.err (!%p15597_p4)
}
 0x1f0   : > { %s17968_s14 = sld [smem:[#allocation80_spill]] }
 0x1f1   : > { %14062 = dma.hbm_to_vmem [thread:$0]  (!%p16196_p5), %s17967_s1, 1024, %s1264_s12, [#allocation19], %s17964_s23, %s17964_s23, %s17963_s11  }
 0x1f6   : > { %s15601_s13 = scalar_lea.hbm %s17968_s14, 16 }
 0x1f7   : > { %p15602_p6 = scmp.ne.s32.totalorder %s17968_s14, %s15601_s13  ;;  %p15608_p3 = scmp.lt.u32.totalorder %s15601_s13, %s17968_s14 }
 0x1f9   : > { %p15604_p8 = pnand %p15602_p6, %p16204_p7 }
 0x1fb   : > { %p15605_p2 = pneg %p15604_p8 }
 0x1fd   : > { %p15610_p9 = pnand %p15608_p3, %p15605_p2 }
 0x1ff   : > { %15613 = shalt.err (!%p15610_p9)
}
 0x200   : > { %s15614_s8 = scalar_lea.vmem %s1289_s18, 16  ;;  %s15621_s15 = scalar_lea.vmem %s1289_s18, 32 }
 0x201   : > { %p15615_p10 = scmp.ne.s32.totalorder %s1289_s18, %s15614_s8  ;;  %p15622_p13 = scmp.lt.s32.totalorder %s1289_s18, %s1289_s18 }
 0x202   : > { %p15623_p0 = scmp.lt.s32.totalorder %s15621_s15, %s15614_s8 }
 0x203   : > { %p15617_p11 = pnand %p15615_p10, %p16204_p7 }
 0x204   : > { %p15624_p1 = por %p15623_p0, %p15622_p13 }
 0x205   : > { %p15618_p12 = pneg %p15617_p11 }
 0x207   : > { %p15625_p4 = pnand %p15624_p1, %p15618_p12 }
 0x209   : > { %15628 = shalt.err (!%p15625_p4)
}
 0x20a   : > { %s17969_s12 = sld [smem:[#allocation81_spill]]  ;;  %s15925_s0 = smov [#allocation26]  }
 0x20b   : > { %14068 = dma.hbm_to_vmem [thread:$0]  (!%p16196_p5), %s17968_s14, 16, %s1289_s18, [#allocation22]  }
 0x20c   : > { %s1311_s5 = sshll.u32 %s15925_s0, 4  ;;  %s15926_s2 = smov [#allocation29]   ;;  %s1312_s5 = int_to_ptr.vmem [resolvable:$true] %s1311_s5 }
 0x20d   : > { %s1336_s13 = sshll.u32 %s15926_s2, 4  ;;  %s1337_s13 = int_to_ptr.vmem [resolvable:$true] %s1336_s13 }
 0x210   : > { %s15629_s1 = scalar_lea.hbm %s17969_s12, 4096 }
 0x211   : > { %p15630_p6 = scmp.ne.s32.totalorder %s17969_s12, %s15629_s1  ;;  %p15636_p3 = scmp.lt.u32.totalorder %s15629_s1, %s17969_s12 }
 0x213   : > { %p15632_p8 = pnand %p15630_p6, %p16204_p7 }
 0x215   : > { %p15633_p2 = pneg %p15632_p8 }
 0x217   : > { %p15638_p9 = pnand %p15636_p3, %p15633_p2 }
 0x219   : > { %15641 = shalt.err (!%p15638_p9)
}
 0x21a   : > { %s15642_s8 = scalar_lea.vmem %s1312_s5, 4096  ;;  %p15650_p13 = scmp.lt.s32.totalorder %s1312_s5, %s1312_s5 }
 0x21b   : > { %p15643_p10 = scmp.ne.s32.totalorder %s1312_s5, %s15642_s8  ;;  %p15651_p0 = scmp.lt.s32.totalorder %s15642_s8, %s15642_s8 }
 0x21d   : > { %p15645_p11 = pnand %p15643_p10, %p16204_p7  ;;  %p15652_p1 = por %p15651_p0, %p15650_p13 }
 0x21f   : > { %p15646_p12 = pneg %p15645_p11 }
 0x221   : > { %p15653_p4 = pnand %p15652_p1, %p15646_p12 }
 0x223   : > { %15656 = shalt.err (!%p15653_p4)
}
 0x224   : > { %s17970_s1 = sld [smem:[#allocation83_spill]] }
 0x225   : > { %14074 = dma.hbm_to_vmem [thread:$0]  (!%p16196_p5), %s17969_s12, 4096, %s1312_s5, [#allocation25], %s17964_s23, %s17964_s23, %s17963_s11  }
 0x22a   : > { %s15657_s18 = scalar_lea.hbm %s17970_s1, 16 }
 0x22b   : > { %p15658_p6 = scmp.ne.s32.totalorder %s17970_s1, %s15657_s18  ;;  %p15664_p3 = scmp.lt.u32.totalorder %s15657_s18, %s17970_s1 }
 0x22d   : > { %p15660_p8 = pnand %p15658_p6, %p16204_p7 }
 0x22f   : > { %p15661_p2 = pneg %p15660_p8 }
 0x231   : > { %p15666_p9 = pnand %p15664_p3, %p15661_p2 }
 0x233   : > { %15669 = shalt.err (!%p15666_p9)
}
 0x234   : > { %s15670_s15 = scalar_lea.vmem %s1337_s13, 16  ;;  %s15677_s0 = scalar_lea.vmem %s1337_s13, 32 }
 0x235   : > { %p15671_p10 = scmp.ne.s32.totalorder %s1337_s13, %s15670_s15  ;;  %p15678_p13 = scmp.lt.s32.totalorder %s1337_s13, %s1337_s13 }
 0x236   : > { %p15679_p0 = scmp.lt.s32.totalorder %s15677_s0, %s15670_s15 }
 0x237   : > { %p15673_p11 = pnand %p15671_p10, %p16204_p7 }
 0x238   : > { %p15680_p1 = por %p15679_p0, %p15678_p13 }
 0x239   : > { %p15674_p12 = pneg %p15673_p11 }
 0x23b   : > { %p15681_p4 = pnand %p15680_p1, %p15674_p12 }
 0x23d   : > { %15684 = shalt.err (!%p15681_p4)
}
 0x23e   : > { %s17971_s5 = sld [smem:[#allocation85_spill]]  ;;  %s15927_s2 = smov [#allocation32]  }
 0x23f   : > { %14080 = dma.hbm_to_vmem [thread:$0]  (!%p16196_p5), %s17970_s1, 16, %s1337_s13, [#allocation28]  }
 0x240   : > { %s1359_s8 = sshll.u32 %s15927_s2, 4  ;;  %s15928_s18 = smov [#allocation35]   ;;  %s1360_s8 = int_to_ptr.vmem [resolvable:$true] %s1359_s8 }
 0x241   : > { %s1384_s4 = sshll.u32 %s15928_s18, 4  ;;  %s1385_s4 = int_to_ptr.vmem [resolvable:$true] %s1384_s4 }
 0x244   : > { %s15685_s6 = scalar_lea.hbm %s17971_s5, 1024 }
 0x245   : > { %p15686_p6 = scmp.ne.s32.totalorder %s17971_s5, %s15685_s6  ;;  %p15692_p3 = scmp.lt.u32.totalorder %s15685_s6, %s17971_s5 }
 0x247   : > { %p15688_p8 = pnand %p15686_p6, %p16204_p7 }
 0x249   : > { %p15689_p2 = pneg %p15688_p8 }
 0x24b   : > { %p15694_p9 = pnand %p15692_p3, %p15689_p2 }
 0x24d   : > { %15697 = shalt.err (!%p15694_p9)
}
 0x24e   : > { %s15698_s15 = scalar_lea.vmem %s1360_s8, 1024  ;;  %p15706_p13 = scmp.lt.s32.totalorder %s1360_s8, %s1360_s8 }
 0x24f   : > { %p15699_p10 = scmp.ne.s32.totalorder %s1360_s8, %s15698_s15  ;;  %p15707_p0 = scmp.lt.s32.totalorder %s15698_s15, %s15698_s15 }
 0x251   : > { %p15701_p11 = pnand %p15699_p10, %p16204_p7  ;;  %p15708_p1 = por %p15707_p0, %p15706_p13 }
 0x253   : > { %p15702_p12 = pneg %p15701_p11 }
 0x255   : > { %p15709_p4 = pnand %p15708_p1, %p15702_p12 }
 0x257   : > { %15712 = shalt.err (!%p15709_p4)
}
 0x258   : > { %s17972_s6 = sld [smem:[#allocation86_spill]] }
 0x259   : > { %14086 = dma.hbm_to_vmem [thread:$0]  (!%p16196_p5), %s17971_s5, 1024, %s1360_s8, [#allocation31], %s17964_s23, %s17964_s23, %s17963_s11  }
 0x25e   : > { %s15713_s13 = scalar_lea.hbm %s17972_s6, 16 }
 0x25f   : > { %p15714_p6 = scmp.ne.s32.totalorder %s17972_s6, %s15713_s13  ;;  %p15720_p3 = scmp.lt.u32.totalorder %s15713_s13, %s17972_s6 }
 0x261   : > { %p15716_p8 = pnand %p15714_p6, %p16204_p7 }
 0x263   : > { %p15717_p2 = pneg %p15716_p8 }
 0x265   : > { %p15722_p9 = pnand %p15720_p3, %p15717_p2 }
 0x267   : > { %15725 = shalt.err (!%p15722_p9)
}
 0x268   : > { %s15726_s0 = scalar_lea.vmem %s1385_s4, 16  ;;  %s15733_s2 = scalar_lea.vmem %s1385_s4, 32 }
 0x269   : > { %p15727_p10 = scmp.ne.s32.totalorder %s1385_s4, %s15726_s0  ;;  %p15734_p13 = scmp.lt.s32.totalorder %s1385_s4, %s1385_s4 }
 0x26a   : > { %p15735_p0 = scmp.lt.s32.totalorder %s15733_s2, %s15726_s0 }
 0x26b   : > { %p15729_p11 = pnand %p15727_p10, %p16204_p7 }
 0x26c   : > { %p15736_p1 = por %p15735_p0, %p15734_p13 }
 0x26d   : > { %p15730_p12 = pneg %p15729_p11 }
 0x26f   : > { %p15737_p4 = pnand %p15736_p1, %p15730_p12 }
 0x271   : > { %15740 = shalt.err (!%p15737_p4)
}
 0x272   : > { %s17973_s8 = sld [smem:[#allocation87_spill]]  ;;  %s15929_s18 = smov [#allocation38]  }
 0x273   : > { %14092 = dma.hbm_to_vmem [thread:$0]  (!%p16196_p5), %s17972_s6, 16, %s1385_s4, [#allocation34]  }
 0x274   : > { %s1407_s15 = sshll.u32 %s15929_s18, 4  ;;  %s15930_s13 = smov [#allocation39]   ;;  %s1408_s15 = int_to_ptr.vmem [resolvable:$true] %s1407_s15 }
 0x275   : > { %s1426_s1 = sshll.u32 %s15930_s13, 4  ;;  %s1427_s1 = int_to_ptr.vmem [resolvable:$true] %s1426_s1 }
 0x278   : > { %s15741_s5 = scalar_lea.hbm %s17973_s8, 4096 }
 0x279   : > { %p15742_p6 = scmp.ne.s32.totalorder %s17973_s8, %s15741_s5  ;;  %p15748_p3 = scmp.lt.u32.totalorder %s15741_s5, %s17973_s8 }
 0x27b   : > { %p15744_p8 = pnand %p15742_p6, %p16204_p7 }
 0x27d   : > { %p15745_p2 = pneg %p15744_p8 }
 0x27f   : > { %p15750_p9 = pnand %p15748_p3, %p15745_p2 }
 0x281   : > { %15753 = shalt.err (!%p15750_p9)
}
 0x282   : > { %s15754_s0 = scalar_lea.vmem %s1408_s15, 4096  ;;  %p15762_p13 = scmp.lt.s32.totalorder %s1408_s15, %s1408_s15 }
 0x283   : > { %p15755_p10 = scmp.ne.s32.totalorder %s1408_s15, %s15754_s0  ;;  %p15763_p0 = scmp.lt.s32.totalorder %s15754_s0, %s15754_s0 }
 0x285   : > { %p15757_p11 = pnand %p15755_p10, %p16204_p7  ;;  %p15764_p1 = por %p15763_p0, %p15762_p13 }
 0x287   : > { %p15758_p12 = pneg %p15757_p11 }
 0x289   : > { %p15765_p4 = pnand %p15764_p1, %p15758_p12 }
 0x28b   : > { %15768 = shalt.err (!%p15765_p4)
}
 0x28c   : > { %14098 = dma.hbm_to_vmem [thread:$0]  (!%p16196_p5), %s17973_s8, 4096, %s1408_s15, [#allocation37], %s17964_s23, %s17964_s23, %s17963_s11  }
 0x28d   : > { %s15769_s4 = scalar_lea.hbm %s16163_s30, 2048 }
 0x28e   : > { %p15770_p6 = scmp.ne.s32.totalorder %s16163_s30, %s15769_s4  ;;  %p15776_p3 = scmp.lt.u32.totalorder %s15769_s4, %s16163_s30 }
 0x290   : > { %p15772_p8 = pnand %p15770_p6, %p16204_p7 }
 0x292   : > { %p15773_p2 = pneg %p15772_p8 }
 0x294   : > { %p15778_p9 = pnand %p15776_p3, %p15773_p2 }
 0x296   : > { %15781 = shalt.err (!%p15778_p9)
}
 0x297   : > { %s15782_s5 = scalar_lea.vmem %s1427_s1, 2048  ;;  %p15790_p13 = scmp.lt.s32.totalorder %s1427_s1, %s1427_s1 }
 0x298   : > { %p15783_p10 = scmp.ne.s32.totalorder %s1427_s1, %s15782_s5  ;;  %p15791_p0 = scmp.lt.s32.totalorder %s15782_s5, %s15782_s5 }
 0x29a   : > { %p15785_p11 = pnand %p15783_p10, %p16204_p7  ;;  %p15792_p1 = por %p15791_p0, %p15790_p13 }
 0x29c   : > { %p15786_p12 = pneg %p15785_p11 }
 0x29e   : > { %p15793_p4 = pnand %p15792_p1, %p15786_p12 }
 0x2a0   : > { %15796 = shalt.err (!%p15793_p4)
}
 0x2a1   : > { %s15931_s11 = smov 128   ;;  %s15932_s23 = smov 8  }
 0x2a2   : > { %14101 = dma.hbm_to_vmem [thread:$0]  (!%p16196_p5), %s16163_s30, 2048, %s1427_s1, [#allocation40], %s15931_s11, %s15931_s11, %s15932_s23  }
 0x2a3   : > { %p17974_p6 = scmp.ne.s32.totalorder %s17956_s10, 0 }
 0x2a4   : > { %p17975_p8 = scmp.ne.s32.totalorder (!%p17974_p6), %s17955_s7, 0 }
 0x2a5   : > { %1452 = sbr.rel (%p17974_p6) target bundleno = 18012 (0x465c), region = 196 }
 0x2ac   : > { %15802 = dma.done.wait (%p17975_p8), [#allocation5], 2048  }
 0x2ad   : > { %15804 = vsyncadd (%p17975_p8), [#allocation5], 4294965248 }
 0x2ae   : > { %15806 = dma.done.wait (%p17975_p8), [#allocation7], 4096  }
 0x2af   : > { %15808 = vsyncadd (%p17975_p8), [#allocation7], 4294963200 }
 0x2b0   : > { %15810 = dma.done.wait (%p17975_p8), [#allocation10], 7168  }
 0x2b1   : > { %15812 = vsyncadd (%p17975_p8), [#allocation10], 4294960128 }
 0x2b2   : > { %15814 = dma.done.wait (%p17975_p8), [#allocation13], 5120  }
 0x2b3   : > { %15816 = vsyncadd (%p17975_p8), [#allocation13], 4294962176 }
 0x2b4   : > { %15818 = dma.done.wait (%p17975_p8), [#allocation16], 4112  }
 0x2b5   : > { %15820 = vsyncadd (%p17975_p8), [#allocation16], 4294963184 }
 0x2b6   : > { %15822 = dma.done.wait (%p17975_p8), [#allocation19], 4096  }
 0x2b7   : > { %15824 = vsyncadd (%p17975_p8), [#allocation19], 4294963200 }
 0x2b8   : > { %15826 = dma.done.wait (%p17975_p8), [#allocation22], 32  }
 0x2b9   : > { %15828 = vsyncadd (%p17975_p8), [#allocation22], 4294967264 }
 0x2ba   : > { %15830 = dma.done.wait (%p17975_p8), [#allocation25], 8192  }
 0x2bb   : > { %15832 = vsyncadd (%p17975_p8), [#allocation25], 4294959104 }
 0x2bc   : > { %15834 = dma.done.wait (%p17975_p8), [#allocation28], 32  }
 0x2bd   : > { %15836 = vsyncadd (%p17975_p8), [#allocation28], 4294967264 }
 0x2be   : > { %15838 = dma.done.wait (%p17975_p8), [#allocation31], 4096  }
 0x2bf   : > { %15840 = vsyncadd (%p17975_p8), [#allocation31], 4294963200 }
 0x2c0   : > { %15842 = dma.done.wait (%p17975_p8), [#allocation34], 32  }
 0x2c1   : > { %15844 = vsyncadd (%p17975_p8), [#allocation34], 4294967264 }
 0x2c2   : > { %15846 = dma.done.wait (%p17975_p8), [#allocation37], 8192  }
 0x2c3   : > { %15848 = vsyncadd (%p17975_p8), [#allocation37], 4294959104 }
 0x2c4   : > { %15850 = dma.done.wait (%p17975_p8), [#allocation40], 2048  }
 0x2c5   : > { %15852 = vsyncadd (%p17975_p8), [#allocation40], 4294965248  ;;  %s17976_s10 = sadd.s32 4294967295, %s15855_s28   ;;  %s17977_s16 = sld [smem:[#allocation54_spill]]  ;;  %v14241_v6 = vld [vmem:[#allocation4 + $0x40] sm:$0xff]   ;;  %v14243_v22 = vld [vmem:[#allocation4 + $0x48] sm:$0xff]   ;;  %v1707_v40 = vlaneseq }
 0x2c6   : > { %s12261_s22 = sshll.u32 %s17976_s10, 1  ;;  %v14242_v7 = vld [vmem:[#allocation4] sm:$0xff]   ;;  %13011 = vmatprep.subr.bf16.mxu0 %v14241_v6  ;;  %v14244_v23 = vld [vmem:[#allocation4 + $0x8] sm:$0xff]   ;;  %v14245_v24 = vld [vmem:[#allocation4 + $0x50] sm:$0xff]   ;;  %s17978_s7 = sld [smem:[#allocation55_spill]]  ;;  %vm15935_vm0 = vmmov 0  }
 0x2c7   : > { %p1653_p5 = scmp.lt.s32.totalorder %s12261_s22, 3  ;;  %13012 = vmatpush3.bf16.msra.mxu0 %v14242_v7  ;;  %v14246_v25 = vld [vmem:[#allocation4 + $0x10] sm:$0xff]   ;;  %v14247_v26 = vld [vmem:[#allocation4 + $0x58] sm:$0xff]   ;;  %v14249_v28 = vld [vmem:[#allocation4 + $0x60] sm:$0xff]   ;;  %s17979_s18 = sld [smem:[#allocation56_spill]]  ;;  %v16567_v43 = vshrl.u32 %v1707_v40, 7 }
 0x2c8   : > { %13013 = vmatprep.subr.bf16.mxu0 %v14243_v22  ;;  %v14248_v27 = vld [vmem:[#allocation4 + $0x18] sm:$0xff]   ;;  %v14250_v29 = vld [vmem:[#allocation4 + $0x20] sm:$0xff]   ;;  %v14251_v30 = vld [vmem:[#allocation4 + $0x68] sm:$0xff]   ;;  %s17980_s15 = sld [smem:[#allocation57_spill]]  ;;  %s17981_s13 = sld [smem:[#allocation58_spill]]  ;;  %vm2240_vm1 = vcmask 261120  }
 0x2c9   : > { %s17998_s22 = smov (!%p1653_p5, %s12261_s22), 3  ;;  %v14252_v31 = vld [vmem:[#allocation4 + $0x28] sm:$0xff]   ;;  %v14253_v32 = vld [vmem:[#allocation4 + $0x70] sm:$0xff]   ;;  %v14255_v34 = vld [vmem:[#allocation4 + $0x78] sm:$0xff]   ;;  %v16570_v44 = vsub.s32 0, %v16567_v43  ;;  %v16573_v45 = vsub.s32 1, %v16567_v43 }
 0x2ca   : > { %s13009_s1 = sshll.u32 %s17998_s22, 4  ;;  %v14254_v33 = vld [vmem:[#allocation4 + $0x30] sm:$0xff]   ;;  %v14256_v35 = vld [vmem:[#allocation4 + $0x38] sm:$0xff]   ;;  %s17982_s0 = sld [smem:[#allocation59_spill]]  ;;  %vm2290_vm2 = vcmask 130048   ;;  %vm17091_vm3 = vcmp.lt.s32.totalorder %v1707_v40, 128 }
 0x2cb   : > { %s1657_s2 = scalar_lea.vmem %s17977_s16, %s13009_s1  ;;  %13014 = vmatpush3.bf16.msra.mxu0 %v14244_v23  ;;  %s17983_s4 = sld [smem:[#allocation60_spill]] }
 0x2cc   : > { %v1667_v0 = vld [vmem:[%s1657_s2] sm:$0xff]  ;;  %v1668_v1 = vld [vmem:[%s1657_s2 + $0x8] sm:$0xff]  ;;  %v1669_v2 = vld [vmem:[%s1657_s2 + $0x10] sm:$0xff]  ;;  %13015 = vmatprep.subr.bf16.mxu0 %v14245_v24  ;;  %s17984_s5 = sld [smem:[#allocation61_spill]]  ;;  %s15936_s11 = smov 96  }
 0x2cd   : > { %v1673_v3 = vadd.f32 %v1668_v1, %v1667_v0  ;;  %v1670_v4 = vld [vmem:[%s1657_s2 + $0x18] sm:$0xff]  ;;  %v1671_v46 = vld [vmem:[%s17978_s7] sm:$0x3]  ;;  %s15937_s23 = smov 64   ;;  %s15938_s10 = smov 32  }
 0x2ce   : > { %v1676_v5 = vadd.f32 %v1670_v4, %v1669_v2  ;;  %v1672_v48 = vld [vmem:[%s17979_s18] sm:$0x3]  ;;  %v1710_v50 = vrot.slane %v1671_v46, %v16570_v44  ;;  %v1714_v51 = vrot.slane %v1671_v46, %v16573_v45  ;;  %v14261_v46 = vld [vmem:[#allocation6 + $0x1c] ss:$12 sps:$4 sm:$0xff]   ;;  %s17985_s16 = sld [smem:[#allocation63_spill]]  ;;  %s17986_s2 = sld [smem:[#allocation64_spill]] }
 0x2cf   : > { %1674 = vadd.xlane.f32.xlu0 %v1673_v3  ;;  %13016 = vmatpush3.bf16.msra.mxu0 %v14246_v25  ;;  %v1725_v54 = vrot.slane %v1672_v48, %v16570_v44  ;;  %v1729_v55 = vrot.slane %v1672_v48, %v16573_v45  ;;  %v12283_v25 = vld [vmem:[%s17980_s15] ss:$0 sm:$0xff]  ;;  %s17987_s7 = sld [smem:[#allocation66_spill]]  ;;  %s17988_s18 = sld [smem:[#allocation67_spill]] }
 0x2d0   : > { %13017 = vmatprep.subr.bf16.mxu0 %v14247_v26  ;;  %v14264_v48 = vld [vmem:[#allocation6 + $0x20] ss:$12 sps:$4 sm:$0xff]   ;;  %s17989_s15 = sld [smem:[#allocation68_spill]] }
 0x2d3   : > { %1677 = vadd.xlane.f32.xlu0 %v1676_v5  ;;  %13018 = vmatpush3.bf16.msra.mxu0 %v14248_v27 }
 0x2d4   : > { %13019 = vmatprep.subr.bf16.mxu0 %v14249_v28  ;;  %v12284_v28 = vld [vmem:[%s17981_s13] ss:$0 sm:$0xff]  ;;  %s17990_s13 = sld [smem:[#allocation71_spill]] }
 0x2d7   : > { %13020 = vmatpush3.bf16.msra.mxu0 %v14250_v29 }
 0x2d8   : > { %13021 = vmatprep.subr.bf16.mxu0 %v14251_v30 }
 0x2db   : > { %13022 = vmatpush3.bf16.msra.mxu0 %v14252_v31  ;;  %v1948_v31 = vld [vmem:[%s17982_s0] sm:$0xff] }
 0x2dc   : > { %13023 = vmatprep.subr.bf16.mxu0 %v14253_v32 }
 0x2df   : > { %13024 = vmatpush3.bf16.msra.mxu0 %v14254_v33 }
 0x2e0   : > { %13025 = vmatprep.subr.bf16.mxu0 %v14255_v34  ;;  %v1949_v34 = vld [vmem:[%s17982_s0 + $0x8] sm:$0xff] }
 0x2e3   : > { %13026 = vmatpush3.bf16.msra.mxu0 %v14256_v35 }
 0x35c   : > { %v1675_v8 = vpop.xlane.xlu0 %1674 }
 0x35d   : > { %v1680_v9 = vmul.f32 0.00390625, %v1675_v8 }
 0x35f   : > { %v1682_v10 = vsub.f32 %v1667_v0, %v1680_v9  ;;  %v1683_v11 = vsub.f32 %v1668_v1, %v1680_v9 }
 0x360   : > { %v1678_v12 = vpop.xlane.xlu0 %1677 }
 0x361   : > { %v1681_v13 = vmul.f32 0.00390625, %v1678_v12  ;;  %v1686_v14 = vmul.f32 %v1682_v10, %v1682_v10  ;;  %v1687_v15 = vmul.f32 %v1683_v11, %v1683_v11 }
 0x363   : > { %v1684_v16 = vsub.f32 %v1669_v2, %v1681_v13  ;;  %v1685_v17 = vsub.f32 %v1670_v4, %v1681_v13  ;;  %v1690_v18 = vadd.f32 %v1687_v15, %v1686_v14 }
 0x365   : > { %1691 = vadd.xlane.f32.xlu1 %v1690_v18  ;;  %v1688_v19 = vmul.f32 %v1684_v16, %v1684_v16  ;;  %v1689_v20 = vmul.f32 %v1685_v17, %v1685_v17 }
 0x367   : > { %v1693_v21 = vadd.f32 %v1689_v20, %v1688_v19 }
 0x369   : > { %1694 = vadd.xlane.f32.xlu1 %v1693_v21 }
 0x3f2   : > { %v1692_v36 = vpop.xlane.xlu1 %1691 }
 0x3f3   : > { %v1696_v37 = vmul.f32 0.00390625, %v1692_v36 }
 0x3f5   : > { %v1698_v38 = vadd.f32 1e-05, %v1696_v37 }
 0x3f6   : > { %v1695_v39 = vpop.xlane.xlu1 %1694 }
 0x3f7   : > { %14889 = vrsqrt.f32 %v1698_v38  ;;  %v1697_v41 = vmul.f32 0.00390625, %v1695_v39  ;;  %v14257_v38 = vld [vmem:[#allocation6 + $0x4] ss:$12 sps:$4 sm:$0xff]   ;;  %v14259_v39 = vld [vmem:[#allocation6] ss:$12 sps:$4 sm:$0xff]  }
 0x3f8   : > { %2153 = vmatprep.subr.bf16.mxu1 %v14257_v38 }
 0x3f9   : > { %v1699_v42 = vadd.f32 1e-05, %v1697_v41  ;;  %v15933_v41 = vmov 0.0   ;;  %2154 = vmatpush1.bf16.msra.mxu1 %v14259_v39 }
 0x3fa   : > { %13533 = vmatprep.subr.bf16.mxu0 %v15933_v41  ;;  %2155 = vmatprep.subr.bf16.mxu1 %v14261_v46 }
 0x3fb   : > { %14891 = vrsqrt.f32 %v1699_v42  ;;  %v14260_v42 = vld [vmem:[#allocation6 + $0x8] ss:$12 sps:$4 sm:$0xff]  }
 0x401   : > { %v14890_v47 = vpop.eup %14889 }
 0x402   : > { %v1703_v49 = vmul.f32 %v14890_v47, %v1683_v11  ;;  %v1702_v52 = vmul.f32 %v14890_v47, %v1682_v10  ;;  %v14263_v47 = vld [vmem:[#allocation6 + $0x18] ss:$12 sps:$4 sm:$0xff]  }
 0x403   : > { %2156 = vmatpush1.bf16.msra.mxu1 %v14263_v47 }
 0x404   : > { %v1718_v57 = vmul.f32 %v1714_v51, %v1703_v49  ;;  %v1717_v59 = vmul.f32 %v1710_v50, %v1702_v52 }
 0x405   : > { %v14892_v53 = vpop.eup %14891 }
 0x406   : > { %v1705_v56 = vmul.f32 %v14892_v53, %v1685_v17  ;;  %v1704_v58 = vmul.f32 %v14892_v53, %v1684_v16  ;;  %v1733_v62 = vadd.f32 %v1729_v55, %v1718_v57  ;;  %v1732_v0 = vadd.f32 %v1725_v54, %v1717_v59  ;;  %v14265_v57 = vld [vmem:[#allocation6 + $0x34] ss:$12 sps:$4 sm:$0xff]   ;;  %v14268_v59 = vld [vmem:[#allocation6 + $0x38] ss:$12 sps:$4 sm:$0xff]  }
 0x407   : > { %2157 = vmatprep.subr.bf16.mxu1 %v14265_v57 }
 0x408   : > { %v1720_v60 = vmul.f32 %v1714_v51, %v1705_v56  ;;  %v1719_v61 = vmul.f32 %v1710_v50, %v1704_v58  ;;  %v14267_v58 = vld [vmem:[#allocation6 + $0x30] ss:$12 sps:$4 sm:$0xff]  }
 0x409   : > { %2158 = vmatpush1.bf16.msra.mxu1 %v14267_v58 }
 0x40a   : > { %v1735_v63 = vadd.f32 %v1729_v55, %v1720_v60  ;;  %v1734_v1 = vadd.f32 %v1725_v54, %v1719_v61  ;;  %v14269_v60 = vld [vmem:[#allocation6 + $0x4c] ss:$12 sps:$4 sm:$0xff]   ;;  %v14271_v61 = vld [vmem:[#allocation6 + $0x48] ss:$12 sps:$4 sm:$0xff]  }
 0x40b   : > { %2159 = vmatprep.subr.bf16.mxu1 %v14269_v60 }
 0x40c   : > { %v1737_v2 = vpack.c.bf16 %v1735_v63, %v1733_v62  ;;  %v1736_v3 = vpack.c.bf16 %v1734_v1, %v1732_v0  ;;  %v14272_v62 = vld [vmem:[#allocation6 + $0x50] ss:$12 sps:$4 sm:$0xff]   ;;  %v14275_v0 = vld [vmem:[#allocation6 + $0x60] ss:$12 sps:$4 sm:$0xff]   ;;  %v14276_v1 = vld [vmem:[#allocation6 + $0x68] ss:$12 sps:$4 sm:$0xff]  }
 0x40d   : > { %2160 = vmatpush1.bf16.msra.mxu1 %v14271_v61  ;;  %v14273_v63 = vld [vmem:[#allocation6 + $0x64] ss:$12 sps:$4 sm:$0xff]  }
 0x40e   : > { %1898 = vmatprep.mubr.bf16.mxu0 %v1737_v2  ;;  %v14277_v2 = vld [vmem:[#allocation6 + $0x7c] ss:$12 sps:$4 sm:$0xff]   ;;  %2161 = vmatprep.subr.bf16.mxu1 %v14273_v63 }
 0x40f   : > { %1899 = vmatmul.mubr.bf16.vlgmr.msra.gmra.mrb[0].mxu0 %v1736_v3  ;;  %v14279_v3 = vld [vmem:[#allocation6 + $0x78] ss:$12 sps:$4 sm:$0xff]  }
 0x410   : > { %13534 = vmatpush3.bf16.msra.mxu0 %v14260_v42  ;;  %13549 = vmatprep.mubr.msk.bf16.mxu0 %vm15935_vm0, %v15933_v41 }
 0x411   : > { %13535 = vmatprep.subr.bf16.mxu0 %v15933_v41  ;;  %2162 = vmatpush1.bf16.msra.mxu1 %v14275_v0 }
 0x412   : > { %2163 = vmatprep.subr.bf16.mxu1 %v14277_v2 }
 0x414   : > { %13536 = vmatpush3.bf16.msra.mxu0 %v14264_v48 }
 0x415   : > { %13537 = vmatprep.subr.bf16.mxu0 %v15933_v41  ;;  %2164 = vmatpush1.bf16.msra.mxu1 %v14279_v3 }
 0x418   : > { %13538 = vmatpush3.bf16.msra.mxu0 %v14268_v59 }
 0x419   : > { %13539 = vmatprep.subr.bf16.mxu0 %v15933_v41 }
 0x41c   : > { %13540 = vmatpush3.bf16.msra.mxu0 %v14272_v62 }
 0x41d   : > { %13541 = vmatprep.subr.bf16.mxu0 %v15933_v41 }
 0x420   : > { %13542 = vmatpush3.bf16.msra.mxu0 %v14276_v1 }
 0x421   : > { %13543 = vmatprep.subr.bf16.mxu0 %v15933_v41 }
 0x4e2   : > { %v13027_v4 = vpop.f32.mrb[0].mxu0 }
 0x4e3   : > { %v13028_v5 = vpop.f32.mrb[1].mxu0 }
 0x4e4   : > { %v13029_v6 = vadd.f32 %v13028_v5, %v13027_v4  ;;  %v13030_v7 = vpop.f32.mrb[2].mxu0  ;;  %v14280_v4 = vld [vmem:[#allocation6 + $0x80] ss:$12 sps:$4 sm:$0xff]  }
 0x4e5   : > { %v13031_v8 = vpop.f32.mrb[3].mxu0  ;;  %v14281_v5 = vld [vmem:[#allocation6 + $0x94] ss:$12 sps:$4 sm:$0xff]   ;;  %13544 = vmatpush3.bf16.msra.mxu0 %v14280_v4 }
 0x4e6   : > { %v13032_v9 = vadd.f32 %v13031_v8, %v13030_v7  ;;  %1909 = vadd.xlane.f32.xlu0 %v13029_v6  ;;  %v14283_v7 = vld [vmem:[#allocation6 + $0x90] ss:$12 sps:$4 sm:$0xff]   ;;  %v14284_v8 = vld [vmem:[#allocation6 + $0x98] ss:$12 sps:$4 sm:$0xff]   ;;  %2165 = vmatprep.subr.bf16.mxu1 %v14281_v5 }
 0x4e7   : > { %13545 = vmatprep.subr.bf16.mxu0 %v15933_v41  ;;  %2166 = vmatpush1.bf16.msra.mxu1 %v14283_v7 }
 0x4e8   : > { %1911 = vadd.xlane.f32.xlu1 %v13032_v9 }
 0x4e9   : > { %13546 = vmatpush3.bf16.msra.mxu0 %v14284_v8 }
 0x4ea   : > { %13547 = vmatprep.subr.bf16.mxu0 %v15933_v41 }
 0x573   : > { %v1910_v10 = vpop.xlane.xlu0 %1909 }
 0x574   : > { %v1914_v11 = vmul.f32 0.0078125, %v1910_v10  ;;  %v14287_v10 = vld [vmem:[#allocation6 + $0xa8] ss:$12 sps:$4 sm:$0xff]  }
 0x575   : > { %v1912_v12 = vpop.xlane.xlu1 %1911 }
 0x576   : > { %v1915_v13 = vmul.f32 0.0078125, %v1912_v12  ;;  %v1916_v14 = vsub.f32 %v13029_v6, %v1914_v11  ;;  %v15934_v6 = vmov 0   ;;  %v14288_v11 = vld [vmem:[#allocation6 + $0xb0] ss:$12 sps:$4 sm:$0xff]  }
 0x577   : > { %2185 = vmatprep.mubr.bf16.mxu1 %v15934_v6  ;;  %13548 = vmatpush3.bf16.msra.mxu0 %v14288_v11 }
 0x578   : > { %v1918_v15 = vmul.f32 %v1916_v14, %v1916_v14  ;;  %v1917_v16 = vsub.f32 %v13032_v9, %v1915_v13  ;;  %v14285_v9 = vld [vmem:[#allocation6 + $0xac] ss:$12 sps:$4 sm:$0xff]   ;;  %13605 = vmatprep.subr.bf16.mxu0 %v15933_v41 }
 0x579   : > { %2167 = vmatprep.subr.bf16.mxu1 %v14285_v9 }
 0x57a   : > { %1920 = vadd.xlane.f32.xlu0 %v1918_v15  ;;  %v1919_v17 = vmul.f32 %v1917_v16, %v1917_v16  ;;  %2168 = vmatpush1.bf16.msra.mxu1 %v14287_v10 }
 0x57b   : > { %13553 = vmatprep.subr.bf16.mxu1 %v15933_v41 }
 0x57c   : > { %1922 = vadd.xlane.f32.xlu1 %v1919_v17 }
 0x607   : > { %v1921_v18 = vpop.xlane.xlu0 %1920 }
 0x608   : > { %v1924_v19 = vmul.f32 0.0078125, %v1921_v18 }
 0x609   : > { %v1923_v20 = vpop.xlane.xlu1 %1922 }
 0x60a   : > { %v1926_v21 = vadd.f32 1e-05, %v1924_v19  ;;  %v1925_v22 = vmul.f32 0.0078125, %v1923_v20  ;;  %v12285_v19 = vld [vmem:[%s17983_s4] ss:$0 sm:$0xff]  ;;  %s17991_s4 = sld [smem:[#allocation72_spill]] }
 0x60c   : > { %14893 = vrsqrt.f32 %v1926_v21  ;;  %v1927_v23 = vadd.f32 1e-05, %v1925_v22 }
 0x60e   : > { %14895 = vrsqrt.f32 %v1927_v23 }
 0x616   : > { %v14894_v24 = vpop.eup %14893 }
 0x617   : > { %v1930_v26 = vmul.f32 %v14894_v24, %v1916_v14  ;;  %v12286_v24 = vld [vmem:[%s17984_s5] ss:$0 sm:$0xff]  ;;  %s17992_s5 = sld [smem:[#allocation74_spill]] }
 0x618   : > { %v14896_v27 = vpop.eup %14895 }
 0x619   : > { %v1938_v29 = vmul.f32 %v12283_v25, %v1930_v26  ;;  %v1931_v30 = vmul.f32 %v14896_v27, %v1917_v16 }
 0x61b   : > { %v1946_v32 = vadd.f32 %v12284_v28, %v1938_v29  ;;  %v1939_v33 = vmul.f32 %v12283_v25, %v1931_v30 }
 0x61d   : > { %v16585_v35 = vadd.f32 %v1948_v31, %v1946_v32  ;;  %v1947_v36 = vadd.f32 %v12284_v28, %v1939_v33 }
 0x61f   : > { %1954 = vadd.xlane.f32.xlu0 %v16585_v35  ;;  %v16588_v37 = vadd.f32 %v1949_v34, %v1947_v36 }
 0x621   : > { %1956 = vadd.xlane.f32.xlu1 %v16588_v37 }
 0x6ac   : > { %v1955_v49 = vpop.xlane.xlu0 %1954 }
 0x6ad   : > { %v1958_v50 = vmul.f32 0.0078125, %v1955_v49 }
 0x6ae   : > { %v1957_v51 = vpop.xlane.xlu1 %1956 }
 0x6af   : > { %v1959_v52 = vmul.f32 0.0078125, %v1957_v51  ;;  %v16595_v53 = vsub.f32 %v16585_v35, %v1958_v50 }
 0x6b1   : > { %v1962_v54 = vmul.f32 %v16595_v53, %v16595_v53  ;;  %v16600_v55 = vsub.f32 %v16588_v37, %v1959_v52 }
 0x6b3   : > { %1964 = vadd.xlane.f32.xlu0 %v1962_v54  ;;  %v1963_v56 = vmul.f32 %v16600_v55, %v16600_v55 }
 0x6b5   : > { %1966 = vadd.xlane.f32.xlu1 %v1963_v56 }
 0x740   : > { %v1965_v12 = vpop.xlane.xlu0 %1964 }
 0x741   : > { %v1968_v13 = vmul.f32 0.0078125, %v1965_v12 }
 0x742   : > { %v1967_v14 = vpop.xlane.xlu1 %1966 }
 0x743   : > { %v1970_v15 = vadd.f32 1e-05, %v1968_v13  ;;  %v1969_v16 = vmul.f32 0.0078125, %v1967_v14 }
 0x745   : > { %14897 = vrsqrt.f32 %v1970_v15  ;;  %v1971_v17 = vadd.f32 1e-05, %v1969_v16 }
 0x747   : > { %14899 = vrsqrt.f32 %v1971_v17 }
 0x74f   : > { %v14898_v18 = vpop.eup %14897 }
 0x750   : > { %v1974_v20 = vmul.f32 %v14898_v18, %v16595_v53 }
 0x751   : > { %v14900_v21 = vpop.eup %14899 }
 0x752   : > { %v1975_v22 = vmul.f32 %v14900_v21, %v16600_v55  ;;  %v1982_v23 = vmul.f32 %v12285_v19, %v1974_v20 }
 0x754   : > { %v1983_v25 = vmul.f32 %v12285_v19, %v1975_v22  ;;  %v1990_v26 = vadd.f32 %v12286_v24, %v1982_v23 }
 0x756   : > { %v1991_v27 = vadd.f32 %v12286_v24, %v1983_v25 }
 0x758   : > { %v1992_v28 = vpack.c.bf16 %v1991_v27, %v1990_v26 }
 0x75a   : > { %2186 = vmatmul.mubr.bf16.vlgmr.msra.gmra.mrb[0].mxu1 %v1992_v28  ;;  %13550 = vmatmul.mubr.bf16.vlgmr.msra.gmra.mrb[4].mxu0 %v1992_v28 }
 0x75b   : > { %13555 = vmatprep.mubr.msk.bf16.mxu1 %vm15935_vm0, %v15933_v41  ;;  %13609 = vmatprep.mubr.msk.bf16.mxu0 %vm15935_vm0, %v15933_v41 }
 0x82d   : > { %v2187_v29 = vpop.f32.mrb[0].mxu1  ;;  %v2230_v30 = vpop.f32.mrb[4].mxu0 }
 0x82e   : > { %v2189_v31 = vpop.f32.mrb[1].mxu1  ;;  %v13551_v32 = vpop.f32.mrb[5].mxu0 }
 0x82f   : > { %v2191_v33 = vpop.f32.mrb[2].mxu1  ;;  %v2233_v34 = vpop.f32.mrb[6].mxu0 }
 0x830   : > { %v16622_v36 = vpack.c.bf16 %v2191_v33, %v2187_v29  ;;  %v16624_v38 = vpack.c.bf16 %v2233_v34, %v2230_v30  ;;  %v2193_v39 = vpop.f32.mrb[3].mxu1  ;;  %v13552_v42 = vpop.f32.mrb[7].mxu0 }
 0x831   : > { %v16626_v46 = vpack.c.bf16 %v2193_v39, %v2189_v31 }
 0x833   : > { %v2245_v47 = vsel %vm2240_vm1, %v16626_v46, 0 }
 0x834   : > { %13554 = vmatpush3.bf16.xpose.msra.mxu1 %v2245_v47 }
 0x835   : > { %13559 = vmatprep.subr.bf16.mxu1 %v15933_v41 }
 0x83b   : > { %13556 = vmatmul.mubr.msk.bf16.vlgmr.msra.gmra.mrb[4].mxu1 %vm2240_vm1, %v16622_v36 }
 0x83c   : > { %13560 = vmatpush3.bf16.msra.mxu1 %v16624_v38  ;;  %13561 = vmatprep.mubr.msk.bf16.mxu1 %vm15935_vm0, %v15933_v41 }
 0x83d   : > { %13565 = vmatprep.subr.bf16.mxu1 %v15933_v41 }
 0x90e   : > { %v2281_v48 = vpop.f32.mrb[4].mxu1 }
 0x90f   : > { %v2288_v49 = vmul.f32 0.17677669, %v2281_v48  ;;  %v13557_v50 = vpop.f32.mrb[5].mxu1 }
 0x910   : > { %v2284_v51 = vpop.f32.mrb[6].mxu1 }
 0x911   : > { %v2289_v52 = vmul.f32 0.17677669, %v2284_v51  ;;  %v13558_v53 = vpop.f32.mrb[7].mxu1  ;;  %v2291_v54 = vsel %vm2290_vm2, %v2288_v49, -inf }
 0x912   : > { %2292 = vmax.xlane.f32.xlu0 %v2291_v54  ;;  %v14289_v53 = vld [vmem:[#allocation8 + $0x10] sm:$0xff]  }
 0x913   : > { %v2294_v55 = vsel %vm2290_vm2, %v2289_v52, -inf }
 0x914   : > { %2295 = vmax.xlane.f32.xlu1 %v2294_v55  ;;  %v14290_v55 = vld [vmem:[#allocation8 + $0x18] sm:$0xff]  }
 0x99f   : > { %v2293_v56 = vpop.xlane.xlu0 %2292 }
 0x9a0   : > { %v2297_v57 = vsub.f32 %v2288_v49, %v2293_v56 }
 0x9a1   : > { %v2296_v58 = vpop.xlane.xlu1 %2295 }
 0x9a2   : > { %v2299_v59 = vmul.f32 1.442695, %v2297_v57  ;;  %v2298_v60 = vsub.f32 %v2289_v52, %v2296_v58 }
 0x9a4   : > { %14901 = vpow2.f32 %v2299_v59  ;;  %v2301_v61 = vmul.f32 1.442695, %v2298_v60  ;;  %v14291_v59 = vld [vmem:[#allocation8] sm:$0xff]  }
 0x9a6   : > { %14903 = vpow2.f32 %v2301_v61 }
 0x9ae   : > { %v14902_v62 = vpop.eup %14901 }
 0x9af   : > { %v2303_v63 = vsel %vm2290_vm2, %v14902_v62, 0.0 }
 0x9b0   : > { %v14904_v0 = vpop.eup %14903  ;;  %2304 = vadd.xlane.f32.xlu0 %v2303_v63 }
 0x9b1   : > { %v2306_v1 = vsel %vm2290_vm2, %v14904_v0, 0.0 }
 0x9b2   : > { %2307 = vadd.xlane.f32.xlu1 %v2306_v1 }
 0x9c3   : > { %2364 = vrot.lane.b32.xlu1 %v16622_v36, %s15936_s11 }
 0x9c6   : > { %2367 = vrot.lane.b32.xlu0 %v16626_v46, %s15936_s11 }
 0xa3d   : > { %v2305_v2 = vpop.xlane.xlu0 %2304 }
 0xa3e   : > { %14905 = vrcp.f32 %v2305_v2 }
 0xa3f   : > { %v2308_v3 = vpop.xlane.xlu1 %2307 }
 0xa40   : > { %14907 = vrcp.f32 %v2308_v3 }
 0xa41   : > { %v2368_v9 = vpop.permute.xlu0 %2367 }
 0xa42   : > { %v2373_v11 = vsel %vm2240_vm1, %v2368_v9, 0 }
 0xa43   : > { %v2365_v12 = vpop.permute.xlu1 %2364 }
 0xa48   : > { %v14906_v4 = vpop.eup %14905 }
 0xa49   : > { %v2311_v7 = vmul.f32 %v14906_v4, %v14902_v62  ;;  %v14292_v62 = vld [vmem:[#allocation8 + $0x8] sm:$0xff]  }
 0xa4a   : > { %v14908_v5 = vpop.eup %14907 }
 0xa4b   : > { %v2312_v8 = vmul.f32 %v14908_v5, %v14904_v0 }
 0xa4d   : > { %v2313_v10 = vpack.c.bf16 %v2312_v8, %v2311_v7 }
 0xa4f   : > { %13562 = vmatmul.mubr.msk.bf16.vlgmr.msra.gmra.mrb[8].mxu1 %vm2290_vm2, %v2313_v10 }
 0xa50   : > { %13566 = vmatpush3.bf16.xpose.msra.mxu1 %v2373_v11  ;;  %13567 = vmatprep.mubr.msk.bf16.mxu1 %vm15935_vm0, %v15933_v41 }
 0xa51   : > { %13571 = vmatprep.subr.bf16.mxu1 %v15933_v41 }
 0xa57   : > { %13568 = vmatmul.mubr.msk.bf16.vlgmr.msra.gmra.mrb[12].mxu1 %vm2240_vm1, %v2365_v12 }
 0xa58   : > { %13573 = vmatprep.mubr.msk.bf16.mxu1 %vm15935_vm0, %v15933_v41 }
 0xb22   : > { %v16653_v13 = vpop.f32.mrb[8].mxu1 }
 0xb23   : > { %v13563_v14 = vpop.f32.mrb[9].mxu1 }
 0xb24   : > { %v16655_v15 = vpop.f32.mrb[10].mxu1 }
 0xb25   : > { %v2358_v16 = vpack.c.bf16 %v16655_v15, %v16653_v13  ;;  %v13564_v17 = vpop.f32.mrb[11].mxu1 }
 0xb2a   : > { %v2409_v18 = vpop.f32.mrb[12].mxu1 }
 0xb2b   : > { %v2416_v19 = vmul.f32 0.17677669, %v2409_v18  ;;  %v13569_v20 = vpop.f32.mrb[13].mxu1 }
 0xb2c   : > { %v2412_v21 = vpop.f32.mrb[14].mxu1 }
 0xb2d   : > { %v2417_v22 = vmul.f32 0.17677669, %v2412_v21  ;;  %v13570_v23 = vpop.f32.mrb[15].mxu1  ;;  %v2418_v24 = vsel %vm2290_vm2, %v2416_v19, -inf }
 0xb2e   : > { %2419 = vmax.xlane.f32.xlu1 %v2418_v24 }
 0xb2f   : > { %v2421_v25 = vsel %vm2290_vm2, %v2417_v22, -inf }
 0xb30   : > { %2422 = vmax.xlane.f32.xlu0 %v2421_v25 }
 0xbbb   : > { %v2420_v26 = vpop.xlane.xlu1 %2419 }
 0xbbc   : > { %v2424_v27 = vsub.f32 %v2416_v19, %v2420_v26 }
 0xbbd   : > { %v2423_v28 = vpop.xlane.xlu0 %2422 }
 0xbbe   : > { %v2426_v29 = vmul.f32 1.442695, %v2424_v27  ;;  %v2425_v30 = vsub.f32 %v2417_v22, %v2423_v28 }
 0xbc0   : > { %14909 = vpow2.f32 %v2426_v29  ;;  %v2428_v31 = vmul.f32 1.442695, %v2425_v30 }
 0xbc2   : > { %14911 = vpow2.f32 %v2428_v31 }
 0xbca   : > { %v14910_v32 = vpop.eup %14909 }
 0xbcb   : > { %v2430_v33 = vsel %vm2290_vm2, %v14910_v32, 0.0 }
 0xbcc   : > { %v14912_v34 = vpop.eup %14911  ;;  %2431 = vadd.xlane.f32.xlu0 %v2430_v33 }
 0xbcd   : > { %v2433_v39 = vsel %vm2290_vm2, %v14912_v34, 0.0 }
 0xbce   : > { %2434 = vadd.xlane.f32.xlu1 %v2433_v39 }
 0xbdf   : > { %2608 = vrot.lane.b32.xlu1 %v16626_v46, %s15937_s23 }
 0xbe2   : > { %2442 = vrot.lane.b32.xlu0 %v16624_v38, %s15936_s11 }
 0xbe3   : > { %2606 = vrot.lane.b32.xlu1 %v16622_v36, %s15937_s23 }
 0xc59   : > { %v2432_v42 = vpop.xlane.xlu0 %2431 }
 0xc5a   : > { %14913 = vrcp.f32 %v2432_v42 }
 0xc5b   : > { %v2435_v47 = vpop.xlane.xlu1 %2434 }
 0xc5c   : > { %14915 = vrcp.f32 %v2435_v47 }
 0xc5d   : > { %v2443_v48 = vpop.permute.xlu0 %2442 }
 0xc5e   : > { %13572 = vmatpush3.bf16.msra.mxu1 %v2443_v48 }
 0xc5f   : > { %13577 = vmatprep.subr.bf16.mxu1 %v15933_v41  ;;  %v2609_v63 = vpop.permute.xlu1 %2608 }
 0xc60   : > { %v2614_v0 = vsel %vm2240_vm1, %v2609_v63, 0 }
 0xc63   : > { %v2607_v1 = vpop.permute.xlu1 %2606 }
 0xc64   : > { %v14914_v49 = vpop.eup %14913 }
 0xc65   : > { %v2438_v51 = vmul.f32 %v14914_v49, %v14910_v32 }
 0xc66   : > { %v14916_v50 = vpop.eup %14915 }
 0xc67   : > { %v2439_v52 = vmul.f32 %v14916_v50, %v14912_v34 }
 0xc69   : > { %v2440_v54 = vpack.c.bf16 %v2439_v52, %v2438_v51  ;;  %v14294_v51 = vld [vmem:[#allocation8 + $0x28] sm:$0xff]  }
 0xc6b   : > { %13574 = vmatmul.mubr.msk.bf16.vlgmr.msra.gmra.mrb[16].mxu1 %vm2290_vm2, %v2440_v54 }
 0xc6c   : > { %13578 = vmatpush3.bf16.msra.mxu1 %v14289_v53  ;;  %13581 = vmatprep.mubr.msk.bf16.mxu1 %vm15935_vm0, %v15933_v41 }
 0xc6d   : > { %13579 = vmatprep.subr.bf16.mxu1 %v15933_v41 }
 0xc70   : > { %13580 = vmatpush3.bf16.msra.mxu1 %v14290_v55 }
 0xc71   : > { %13585 = vmatprep.subr.bf16.mxu1 %v15933_v41 }
 0xd3e   : > { %v2482_v56 = vpop.f32.mrb[16].mxu1 }
 0xd3f   : > { %v13575_v57 = vpop.f32.mrb[17].mxu1 }
 0xd40   : > { %v2485_v58 = vpop.f32.mrb[18].mxu1 }
 0xd41   : > { %v2489_v60 = vpack.c.bf16 %v2485_v58, %v2482_v56  ;;  %v13576_v61 = vpop.f32.mrb[19].mxu1 }
 0xd43   : > { %13582 = vmatmul.mubr.msk.bf16.vlgmr.msra.gmra.mrb[20].mxu1 %vm2240_vm1, %v2489_v60 }
 0xd44   : > { %13586 = vmatpush3.bf16.msra.mxu1 %v14291_v59  ;;  %13589 = vmatprep.mubr.msk.bf16.mxu1 %vm15935_vm0, %v15933_v41 }
 0xd45   : > { %13587 = vmatprep.subr.bf16.mxu1 %v15933_v41 }
 0xd48   : > { %13588 = vmatpush3.bf16.msra.mxu1 %v14292_v62 }
 0xd49   : > { %13593 = vmatprep.subr.bf16.mxu1 %v15933_v41 }
 0xd4b   : > { %13590 = vmatmul.mubr.msk.bf16.vlgmr.msra.gmra.mrb[24].mxu1 %vm2240_vm1, %v2358_v16 }
 0xd4c   : > { %13595 = vmatprep.mubr.msk.bf16.mxu1 %vm15935_vm0, %v15933_v41 }
 0xd51   : > { %13594 = vmatpush3.bf16.xpose.msra.mxu1 %v2614_v0 }
 0xd52   : > { %13599 = vmatprep.subr.bf16.mxu1 %v15933_v41 }
 0xd58   : > { %13596 = vmatmul.mubr.msk.bf16.vlgmr.msra.gmra.mrb[28].mxu1 %vm2240_vm1, %v2607_v1 }
 0xd59   : > { %13601 = vmatprep.mubr.msk.bf16.mxu1 %vm15935_vm0, %v15933_v41 }
 0xe16   : > { %v2543_v2 = vpop.f32.mrb[20].mxu1 }
 0xe17   : > { %v13583_v3 = vpop.f32.mrb[21].mxu1 }
 0xe18   : > { %v2546_v4 = vpop.f32.mrb[22].mxu1 }
 0xe19   : > { %v13584_v5 = vpop.f32.mrb[23].mxu1 }
 0xe1e   : > { %v2599_v7 = vpop.f32.mrb[24].mxu1 }
 0xe1f   : > { %v16691_v8 = vadd.f32 %v2599_v7, %v2543_v2  ;;  %v13591_v9 = vpop.f32.mrb[25].mxu1 }
 0xe20   : > { %v2602_v10 = vpop.f32.mrb[26].mxu1 }
 0xe21   : > { %v16693_v11 = vadd.f32 %v2602_v10, %v2546_v4  ;;  %v13592_v12 = vpop.f32.mrb[27].mxu1 }
 0xe2b   : > { %v2650_v13 = vpop.f32.mrb[28].mxu1 }
 0xe2c   : > { %v2657_v14 = vmul.f32 0.17677669, %v2650_v13  ;;  %v13597_v15 = vpop.f32.mrb[29].mxu1 }
 0xe2d   : > { %v2653_v16 = vpop.f32.mrb[30].mxu1 }
 0xe2e   : > { %v2658_v17 = vmul.f32 0.17677669, %v2653_v16  ;;  %v13598_v18 = vpop.f32.mrb[31].mxu1  ;;  %v2659_v19 = vsel %vm2290_vm2, %v2657_v14, -inf }
 0xe2f   : > { %2660 = vmax.xlane.f32.xlu1 %v2659_v19 }
 0xe30   : > { %v2662_v20 = vsel %vm2290_vm2, %v2658_v17, -inf }
 0xe31   : > { %2663 = vmax.xlane.f32.xlu0 %v2662_v20 }
 0xe40   : > { %2682 = vrot.lane.b32.xlu1 %v16624_v38, %s15937_s23 }
 0xe44   : > { %2792 = vrot.lane.b32.xlu1 %v16622_v36, %s15938_s10  ;;  %v14293_v36 = vld [vmem:[#allocation8 + $0x20] sm:$0xff]  }
 0xe45   : > { %13606 = vmatpush3.bf16.msra.mxu0 %v14293_v36 }
 0xe46   : > { %13607 = vmatprep.subr.bf16.mxu0 %v15933_v41 }
 0xe49   : > { %13608 = vmatpush3.bf16.msra.mxu0 %v14294_v51  ;;  %v14302_v51 = vld [vmem:[#allocation9 + $0xc] ss:$16 sps:$4 sm:$0xff]  }
 0xe4a   : > { %13619 = vmatprep.subr.bf16.mxu0 %v15933_v41 }
 0xebc   : > { %v2661_v21 = vpop.xlane.xlu1 %2660 }
 0xebd   : > { %v2665_v22 = vsub.f32 %v2657_v14, %v2661_v21  ;;  %v14295_v14 = vld [vmem:[#allocation8 + $0x30] sm:$0xff]  }
 0xebe   : > { %v2664_v23 = vpop.xlane.xlu0 %2663 }
 0xebf   : > { %v2667_v24 = vmul.f32 1.442695, %v2665_v22  ;;  %v2666_v25 = vsub.f32 %v2658_v17, %v2664_v23 }
 0xec0   : > { %v2683_v26 = vpop.permute.xlu1 %2682 }
 0xec1   : > { %14917 = vpow2.f32 %v2667_v24  ;;  %v2669_v27 = vmul.f32 1.442695, %v2666_v25  ;;  %13600 = vmatpush3.bf16.msra.mxu1 %v2683_v26 }
 0xec2   : > { %13613 = vmatprep.subr.bf16.mxu1 %v15933_v41 }
 0xec3   : > { %14919 = vpow2.f32 %v2669_v27 }
 0xecb   : > { %v14918_v28 = vpop.eup %14917 }
 0xecc   : > { %v2671_v29 = vsel %vm2290_vm2, %v14918_v28, 0.0 }
 0xecd   : > { %v14920_v30 = vpop.eup %14919  ;;  %2672 = vadd.xlane.f32.xlu0 %v2671_v29 }
 0xece   : > { %v2674_v31 = vsel %vm2290_vm2, %v14920_v30, 0.0 }
 0xed1   : > { %2675 = vadd.xlane.f32.xlu0 %v2674_v31 }
 0xee7   : > { %2794 = vrot.lane.b32.xlu0 %v16626_v46, %s15938_s10  ;;  %v2793_v46 = vpop.permute.xlu1 %2792 }
 0xf5a   : > { %v2673_v32 = vpop.xlane.xlu0 %2672 }
 0xf5b   : > { %14921 = vrcp.f32 %v2673_v32 }
 0xf5e   : > { %v2676_v33 = vpop.xlane.xlu0 %2675 }
 0xf5f   : > { %14923 = vrcp.f32 %v2676_v33 }
 0xf62   : > { %v2795_v48 = vpop.permute.xlu0 %2794 }
 0xf63   : > { %v2800_v50 = vsel %vm2240_vm1, %v2795_v48, 0 }
 0xf65   : > { %v14922_v34 = vpop.eup %14921 }
 0xf66   : > { %v2679_v42 = vmul.f32 %v14922_v34, %v14918_v28 }
 0xf69   : > { %v14924_v39 = vpop.eup %14923 }
 0xf6a   : > { %v2680_v47 = vmul.f32 %v14924_v39, %v14920_v30 }
 0xf6c   : > { %v2681_v49 = vpack.c.bf16 %v2680_v47, %v2679_v42 }
 0xf6e   : > { %13602 = vmatmul.mubr.msk.bf16.vlgmr.msra.gmra.mrb[32].mxu1 %vm2290_vm2, %v2681_v49  ;;  %v14297_v49 = vld [vmem:[#allocation9] ss:$16 sps:$4 sm:$0xff]  }
 0xf6f   : > { %13614 = vmatpush3.bf16.xpose.msra.mxu1 %v2800_v50  ;;  %13615 = vmatprep.mubr.msk.bf16.mxu1 %vm15935_vm0, %v15933_v41  ;;  %v14299_v50 = vld [vmem:[#allocation9 + $0x4] ss:$16 sps:$4 sm:$0xff]  }
 0xf70   : > { %13625 = vmatprep.subr.bf16.mxu1 %v15933_v41 }
 0xf76   : > { %13616 = vmatmul.mubr.msk.bf16.vlgmr.msra.gmra.mrb[36].mxu1 %vm2240_vm1, %v2793_v46  ;;  %v14300_v46 = vld [vmem:[#allocation9 + $0x8] ss:$16 sps:$4 sm:$0xff]  }
 0xf77   : > { %13629 = vmatprep.mubr.msk.bf16.mxu1 %vm15935_vm0, %v15933_v41  ;;  %13626 = vmatpush3.bf16.msra.mxu1 %v14295_v14  ;;  %v14332_v14 = vld [vmem:[#allocation9 + $0xac] ss:$16 sps:$4 sm:$0xff]  }
 0xf78   : > { %13627 = vmatprep.subr.bf16.mxu1 %v15933_v41 }
0x1041   : > { %v2722_v52 = vpop.f32.mrb[32].mxu1 }
0x1042   : > { %v13603_v53 = vpop.f32.mrb[33].mxu1 }
0x1043   : > { %v2725_v54 = vpop.f32.mrb[34].mxu1  ;;  %v14308_v53 = vld [vmem:[#allocation9 + $0x2c] ss:$16 sps:$4 sm:$0xff]  }
0x1044   : > { %v2729_v55 = vpack.c.bf16 %v2725_v54, %v2722_v52  ;;  %v13604_v56 = vpop.f32.mrb[35].mxu1  ;;  %v14305_v52 = vld [vmem:[#allocation9 + $0x24] ss:$16 sps:$4 sm:$0xff]   ;;  %v14306_v54 = vld [vmem:[#allocation9 + $0x28] ss:$16 sps:$4 sm:$0xff]  }
0x1046   : > { %13610 = vmatmul.mubr.msk.bf16.vlgmr.msra.gmra.mrb[8].mxu0 %vm2240_vm1, %v2729_v55 }
0x1047   : > { %13621 = vmatprep.mubr.msk.bf16.mxu0 %vm15935_vm0, %v15933_v41 }
0x1049   : > { %v2836_v57 = vpop.f32.mrb[36].mxu1 }
0x104a   : > { %v2843_v58 = vmul.f32 0.17677669, %v2836_v57  ;;  %v13617_v59 = vpop.f32.mrb[37].mxu1 }
0x104b   : > { %v2839_v60 = vpop.f32.mrb[38].mxu1 }
0x104c   : > { %v2844_v61 = vmul.f32 0.17677669, %v2839_v60  ;;  %v13618_v62 = vpop.f32.mrb[39].mxu1  ;;  %v2845_v63 = vsel %vm2290_vm2, %v2843_v58, -inf }
0x104d   : > { %2846 = vmax.xlane.f32.xlu1 %v2845_v63  ;;  %v14311_v62 = vld [vmem:[#allocation9 + $0x44] ss:$16 sps:$4 sm:$0xff]   ;;  %v14314_v63 = vld [vmem:[#allocation9 + $0x4c] ss:$16 sps:$4 sm:$0xff]  }
0x104e   : > { %v2848_v0 = vsel %vm2290_vm2, %v2844_v61, -inf }
0x104f   : > { %2849 = vmax.xlane.f32.xlu0 %v2848_v0  ;;  %v14309_v0 = vld [vmem:[#allocation9 + $0x40] ss:$16 sps:$4 sm:$0xff]  }
0x10da   : > { %v2847_v1 = vpop.xlane.xlu1 %2846 }
0x10db   : > { %v2851_v2 = vsub.f32 %v2843_v58, %v2847_v1  ;;  %v14312_v1 = vld [vmem:[#allocation9 + $0x48] ss:$16 sps:$4 sm:$0xff]  }
0x10dc   : > { %v2850_v3 = vpop.xlane.xlu0 %2849 }
0x10dd   : > { %v2853_v4 = vmul.f32 1.442695, %v2851_v2  ;;  %v2852_v5 = vsub.f32 %v2844_v61, %v2850_v3  ;;  %v14317_v2 = vld [vmem:[#allocation9 + $0x64] ss:$16 sps:$4 sm:$0xff]   ;;  %v14320_v3 = vld [vmem:[#allocation9 + $0x6c] ss:$16 sps:$4 sm:$0xff]  }
0x10df   : > { %14925 = vpow2.f32 %v2853_v4  ;;  %v2855_v7 = vmul.f32 1.442695, %v2852_v5  ;;  %v14315_v4 = vld [vmem:[#allocation9 + $0x60] ss:$16 sps:$4 sm:$0xff]   ;;  %v14318_v5 = vld [vmem:[#allocation9 + $0x68] ss:$16 sps:$4 sm:$0xff]  }
0x10e1   : > { %14927 = vpow2.f32 %v2855_v7  ;;  %v14323_v7 = vld [vmem:[#allocation9 + $0x84] ss:$16 sps:$4 sm:$0xff]  }
0x10e9   : > { %v14926_v9 = vpop.eup %14925 }
0x10ea   : > { %v2857_v10 = vsel %vm2290_vm2, %v14926_v9, 0.0 }
0x10eb   : > { %v14928_v12 = vpop.eup %14927  ;;  %2858 = vadd.xlane.f32.xlu0 %v2857_v10  ;;  %v14321_v10 = vld [vmem:[#allocation9 + $0x80] ss:$16 sps:$4 sm:$0xff]  }
0x10ec   : > { %v2860_v13 = vsel %vm2290_vm2, %v14928_v12, 0.0 }
0x10ed   : > { %2861 = vadd.xlane.f32.xlu1 %v2860_v13  ;;  %v14329_v13 = vld [vmem:[#allocation9 + $0xa4] ss:$16 sps:$4 sm:$0xff]  }
0x1101   : > { %2868 = vrot.lane.b32.xlu0 %v16624_v38, %s15938_s10 }
0x1119   : > { %v2783_v15 = vpop.f32.mrb[8].mxu0 }
0x111a   : > { %v2790_v16 = vadd.f32 %v2783_v15, %v16691_v8  ;;  %v13611_v17 = vpop.f32.mrb[9].mxu0  ;;  %v14296_v8 = vld [vmem:[#allocation8 + $0x38] sm:$0xff]   ;;  %v14327_v15 = vld [vmem:[#allocation9 + $0xa0] ss:$16 sps:$4 sm:$0xff]  }
0x111b   : > { %v2786_v18 = vpop.f32.mrb[10].mxu0  ;;  %13628 = vmatpush3.bf16.msra.mxu1 %v14296_v8  ;;  %v14335_v17 = vld [vmem:[#allocation9 + $0xc4] ss:$16 sps:$4 sm:$0xff]  }
0x111c   : > { %v2791_v19 = vadd.f32 %v2786_v18, %v16693_v11  ;;  %v13612_v20 = vpop.f32.mrb[11].mxu0  ;;  %3256 = vmatprep.subr.bf16.mxu1 %v14302_v51  ;;  %v14338_v18 = vld [vmem:[#allocation9 + $0xcc] ss:$16 sps:$4 sm:$0xff]   ;;  %v14347_v51 = vld [vmem:[%s17987_s7] sm:$0xff]  }
0x111d   : > { %v14336_v20 = vld [vmem:[#allocation9 + $0xc8] ss:$16 sps:$4 sm:$0xff]  }
0x1178   : > { %v2859_v21 = vpop.xlane.xlu0 %2858 }
0x1179   : > { %14929 = vrcp.f32 %v2859_v21  ;;  %v14341_v21 = vld [vmem:[#allocation9 + $0xe4] ss:$16 sps:$4 sm:$0xff]  }
0x117a   : > { %v2862_v22 = vpop.xlane.xlu1 %2861 }
0x117b   : > { %14931 = vrcp.f32 %v2862_v22  ;;  %v14344_v22 = vld [vmem:[#allocation9 + $0xec] ss:$16 sps:$4 sm:$0xff]  }
0x117c   : > { %v2869_v23 = vpop.permute.xlu0 %2868 }
0x117d   : > { %13620 = vmatpush3.bf16.msra.mxu0 %v2869_v23  ;;  %v14339_v23 = vld [vmem:[#allocation9 + $0xe0] ss:$16 sps:$4 sm:$0xff]  }
0x117e   : > { %3213 = vmatprep.subr.bf16.mxu0 %v14299_v50  ;;  %v14345_v50 = vld [vmem:[%s17987_s7 + $0x40] sm:$0xff]  }
0x1183   : > { %v14930_v24 = vpop.eup %14929 }
0x1184   : > { %v2865_v25 = vmul.f32 %v14930_v24, %v14926_v9  ;;  %v14326_v9 = vld [vmem:[#allocation9 + $0x8c] ss:$16 sps:$4 sm:$0xff]   ;;  %v14342_v24 = vld [vmem:[#allocation9 + $0xe8] ss:$16 sps:$4 sm:$0xff]  }
0x1185   : > { %v14932_v38 = vpop.eup %14931 }
0x1186   : > { %v2866_v26 = vmul.f32 %v14932_v38, %v14928_v12  ;;  %v14324_v12 = vld [vmem:[#allocation9 + $0x88] ss:$16 sps:$4 sm:$0xff]  }
0x1188   : > { %v2867_v27 = vpack.c.bf16 %v2866_v26, %v2865_v25 }
0x118a   : > { %13622 = vmatmul.mubr.msk.bf16.vlgmr.msra.gmra.mrb[12].mxu0 %vm2290_vm2, %v2867_v27 }
0x118b   : > { %3245 = vmatprep.mubr.bf16.mxu0 %v15934_v6  ;;  %3214 = vmatpush1.bf16.msra.mxu0 %v14297_v49 }
0x118c   : > { %3215 = vmatprep.subr.bf16.mxu0 %v14305_v52  ;;  %v14348_v52 = vld [vmem:[%s17987_s7 + $0x80] sm:$0xff]  }
0x125d   : > { %v2908_v28 = vpop.f32.mrb[12].mxu0 }
0x125e   : > { %v13623_v11 = vpop.f32.mrb[13].mxu0 }
0x125f   : > { %v2911_v29 = vpop.f32.mrb[14].mxu0 }
0x1260   : > { %v2915_v30 = vpack.c.bf16 %v2911_v29, %v2908_v28  ;;  %v13624_v31 = vpop.f32.mrb[15].mxu0 }
0x1262   : > { %13630 = vmatmul.mubr.msk.bf16.vlgmr.msra.gmra.mrb[40].mxu1 %vm2240_vm1, %v2915_v30  ;;  %v12331_v30 = vld [vmem:[%s17985_s16] ss:$0 sm:$0xff]  ;;  %s17995_s16 = sld [smem:[#allocation75_spill]] }
0x1263   : > { %3288 = vmatprep.mubr.bf16.mxu1 %v15934_v6  ;;  %3257 = vmatpush1.bf16.msra.mxu1 %v14300_v46  ;;  %v14346_v46 = vld [vmem:[%s17987_s7 + $0xc0] sm:$0xff]  }
0x1264   : > { %3258 = vmatprep.subr.bf16.mxu1 %v14308_v53  ;;  %v14349_v53 = vld [vmem:[%s17987_s7 + $0x48] sm:$0xff]  }
0x1267   : > { %3259 = vmatpush1.bf16.msra.mxu1 %v14306_v54  ;;  %v14351_v54 = vld [vmem:[%s17987_s7 + $0x8] sm:$0xff]  }
0x1268   : > { %3260 = vmatprep.subr.bf16.mxu1 %v14314_v63  ;;  %v14361_v63 = vld [vmem:[%s17987_s7 + $0x60] sm:$0xff]  }
0x126b   : > { %3261 = vmatpush1.bf16.msra.mxu1 %v14312_v1  ;;  %v14363_v1 = vld [vmem:[%s17987_s7 + $0x20] sm:$0xff]  }
0x126c   : > { %3262 = vmatprep.subr.bf16.mxu1 %v14320_v3  ;;  %v14365_v3 = vld [vmem:[%s17987_s7 + $0x68] sm:$0xff]  }
0x126f   : > { %3263 = vmatpush1.bf16.msra.mxu1 %v14318_v5  ;;  %v14367_v5 = vld [vmem:[%s17987_s7 + $0x28] sm:$0xff]  }
0x1270   : > { %3264 = vmatprep.subr.bf16.mxu1 %v14326_v9  ;;  %v14369_v9 = vld [vmem:[%s17987_s7 + $0x70] sm:$0xff]  }
0x1273   : > { %3265 = vmatpush1.bf16.msra.mxu1 %v14324_v12  ;;  %v14371_v12 = vld [vmem:[%s17987_s7 + $0x30] sm:$0xff]  }
0x1274   : > { %3266 = vmatprep.subr.bf16.mxu1 %v14332_v14  ;;  %v14373_v14 = vld [vmem:[%s17987_s7 + $0x78] sm:$0xff]  }
0x1335   : > { %v2969_v36 = vpop.f32.mrb[40].mxu1 }
0x1336   : > { %v2976_v32 = vadd.f32 %v2969_v36, %v2790_v16  ;;  %v13631_v33 = vpop.f32.mrb[41].mxu1  ;;  %v14330_v16 = vld [vmem:[#allocation9 + $0xa8] ss:$16 sps:$4 sm:$0xff]  }
0x1337   : > { %v2972_v34 = vpop.f32.mrb[42].mxu1  ;;  %3267 = vmatpush1.bf16.msra.mxu1 %v14330_v16  ;;  %v12332_v33 = vld [vmem:[%s17986_s2] ss:$0 sm:$0xff]  ;;  %v14375_v16 = vld [vmem:[%s17987_s7 + $0x38] sm:$0xff]   ;;  %s17996_s2 = sld [smem:[#allocation76_spill]] }
0x1338   : > { %v16733_v39 = vadd.f32 %v2976_v32, %v16585_v35  ;;  %v2977_v42 = vadd.f32 %v2972_v34, %v2791_v19  ;;  %v13632_v47 = vpop.f32.mrb[43].mxu1  ;;  %v14303_v35 = vld [vmem:[#allocation9 + $0x20] ss:$16 sps:$4 sm:$0xff]   ;;  %3268 = vmatprep.subr.bf16.mxu1 %v14338_v18 }
0x1339   : > { %3216 = vmatpush1.bf16.msra.mxu0 %v14303_v35  ;;  %v14333_v19 = vld [vmem:[#allocation9 + $0xc0] ss:$16 sps:$4 sm:$0xff]   ;;  %v14350_v35 = vld [vmem:[%s17987_s7 + $0xc8] sm:$0xff]  }
0x133a   : > { %2982 = vadd.xlane.f32.xlu1 %v16733_v39  ;;  %v16737_v48 = vadd.f32 %v2977_v42, %v16588_v37  ;;  %3217 = vmatprep.subr.bf16.mxu0 %v14311_v62  ;;  %v14360_v62 = vld [vmem:[%s17987_s7 + $0x98] sm:$0xff]  }
0x133b   : > { %3269 = vmatpush1.bf16.msra.mxu1 %v14336_v20 }
0x133c   : > { %3270 = vmatprep.subr.bf16.mxu1 %v14344_v22 }
0x133d   : > { %3218 = vmatpush1.bf16.msra.mxu0 %v14309_v0  ;;  %v14362_v0 = vld [vmem:[%s17987_s7 + $0xe0] sm:$0xff]  }
0x133e   : > { %2984 = vadd.xlane.f32.xlu1 %v16737_v48  ;;  %3219 = vmatprep.subr.bf16.mxu0 %v14317_v2  ;;  %v14364_v2 = vld [vmem:[%s17987_s7 + $0xa0] sm:$0xff]  }
0x133f   : > { %3271 = vmatpush1.bf16.msra.mxu1 %v14342_v24 }
0x1340   : > { %13092 = vmatprep.subr.bf16.mxu1 %v14346_v46 }
0x1341   : > { %3220 = vmatpush1.bf16.msra.mxu0 %v14315_v4  ;;  %v14366_v4 = vld [vmem:[%s17987_s7 + $0xe8] sm:$0xff]  }
0x1342   : > { %3221 = vmatprep.subr.bf16.mxu0 %v14323_v7  ;;  %v14368_v7 = vld [vmem:[%s17987_s7 + $0xa8] sm:$0xff]  }
0x1345   : > { %3222 = vmatpush1.bf16.msra.mxu0 %v14321_v10  ;;  %v14370_v10 = vld [vmem:[%s17987_s7 + $0xf0] sm:$0xff]  }
0x1346   : > { %3223 = vmatprep.subr.bf16.mxu0 %v14329_v13  ;;  %v14372_v13 = vld [vmem:[%s17987_s7 + $0xb0] sm:$0xff]  }
0x1349   : > { %3224 = vmatpush1.bf16.msra.mxu0 %v14327_v15  ;;  %v14374_v15 = vld [vmem:[%s17987_s7 + $0xf8] sm:$0xff]  }
0x134a   : > { %3225 = vmatprep.subr.bf16.mxu0 %v14335_v17  ;;  %v14376_v17 = vld [vmem:[%s17987_s7 + $0xb8] sm:$0xff]  }
0x134d   : > { %3226 = vmatpush1.bf16.msra.mxu0 %v14333_v19 }
0x134e   : > { %3227 = vmatprep.subr.bf16.mxu0 %v14341_v21 }
0x1351   : > { %3228 = vmatpush1.bf16.msra.mxu0 %v14339_v23 }
0x1352   : > { %13070 = vmatprep.subr.bf16.mxu0 %v14345_v50 }
0x13c7   : > { %v2983_v37 = vpop.xlane.xlu1 %2982 }
0x13c8   : > { %v2986_v55 = vmul.f32 0.0078125, %v2983_v37  ;;  %v14352_v37 = vld [vmem:[%s17987_s7 + $0x88] sm:$0xff]  }
0x13ca   : > { %v16741_v56 = vsub.f32 %v16733_v39, %v2986_v55  ;;  %v14353_v55 = vld [vmem:[%s17987_s7 + $0x50] sm:$0xff]  }
0x13cb   : > { %v2985_v57 = vpop.xlane.xlu1 %2984 }
0x13cc   : > { %v2987_v58 = vmul.f32 0.0078125, %v2985_v57  ;;  %v2990_v59 = vmul.f32 %v16741_v56, %v16741_v56  ;;  %v14355_v57 = vld [vmem:[%s17987_s7 + $0x10] sm:$0xff]  }
0x13ce   : > { %2992 = vadd.xlane.f32.xlu1 %v2990_v59  ;;  %v16746_v60 = vsub.f32 %v16737_v48, %v2987_v58  ;;  %v14356_v58 = vld [vmem:[%s17987_s7 + $0x90] sm:$0xff]   ;;  %v14357_v59 = vld [vmem:[%s17987_s7 + $0x58] sm:$0xff]  }
0x13d0   : > { %v2991_v61 = vmul.f32 %v16746_v60, %v16746_v60 }
0x13d2   : > { %2994 = vadd.xlane.f32.xlu1 %v2991_v61  ;;  %v14359_v61 = vld [vmem:[%s17987_s7 + $0x18] sm:$0xff]  }
0x145b   : > { %v2993_v38 = vpop.xlane.xlu1 %2992 }
0x145c   : > { %v2996_v25 = vmul.f32 0.0078125, %v2993_v38 }
0x145e   : > { %v2998_v26 = vadd.f32 1e-05, %v2996_v25 }
0x145f   : > { %v2995_v27 = vpop.xlane.xlu1 %2994 }
0x1460   : > { %14933 = vrsqrt.f32 %v2998_v26  ;;  %v2997_v8 = vmul.f32 0.0078125, %v2995_v27 }
0x1462   : > { %v2999_v28 = vadd.f32 1e-05, %v2997_v8 }
0x1464   : > { %14935 = vrsqrt.f32 %v2999_v28 }
0x146a   : > { %v14934_v11 = vpop.eup %14933 }
0x146b   : > { %v3002_v29 = vmul.f32 %v14934_v11, %v16741_v56  ;;  %v14354_v56 = vld [vmem:[%s17987_s7 + $0xd0] sm:$0xff]  }
0x146d   : > { %v3010_v32 = vmul.f32 %v12331_v30, %v3002_v29 }
0x146e   : > { %v14936_v31 = vpop.eup %14935 }
0x146f   : > { %v3003_v36 = vmul.f32 %v14936_v31, %v16746_v60  ;;  %v3018_v42 = vadd.f32 %v12332_v33, %v3010_v32  ;;  %v14358_v60 = vld [vmem:[%s17987_s7 + $0xd8] sm:$0xff]  }
0x1471   : > { %v3011_v34 = vmul.f32 %v12331_v30, %v3003_v36 }
0x1473   : > { %v3019_v47 = vadd.f32 %v12332_v33, %v3011_v34 }
0x1475   : > { %v3020_v49 = vpack.c.bf16 %v3019_v47, %v3018_v42 }
0x1477   : > { %3246 = vmatmul.mubr.bf16.vlgmr.msra.gmra.mrb[16].mxu0 %v3020_v49  ;;  %3289 = vmatmul.mubr.bf16.vlgmr.msra.gmra.mrb[44].mxu1 %v3020_v49 }
0x1478   : > { %13071 = vmatpush3.bf16.msra.mxu0 %v14347_v51  ;;  %13093 = vmatpush3.bf16.msra.mxu1 %v14348_v52 }
0x1479   : > { %13072 = vmatprep.subr.bf16.mxu0 %v14349_v53  ;;  %13094 = vmatprep.subr.bf16.mxu1 %v14350_v35 }
0x147c   : > { %13073 = vmatpush3.bf16.msra.mxu0 %v14351_v54  ;;  %13095 = vmatpush3.bf16.msra.mxu1 %v14352_v37 }
0x147d   : > { %13074 = vmatprep.subr.bf16.mxu0 %v14353_v55  ;;  %13096 = vmatprep.subr.bf16.mxu1 %v14354_v56 }
0x1480   : > { %13075 = vmatpush3.bf16.msra.mxu0 %v14355_v57  ;;  %13097 = vmatpush3.bf16.msra.mxu1 %v14356_v58 }
0x1481   : > { %13076 = vmatprep.subr.bf16.mxu0 %v14357_v59  ;;  %13098 = vmatprep.subr.bf16.mxu1 %v14358_v60 }
0x1484   : > { %13077 = vmatpush3.bf16.msra.mxu0 %v14359_v61  ;;  %13099 = vmatpush3.bf16.msra.mxu1 %v14360_v62 }
0x1485   : > { %13078 = vmatprep.subr.bf16.mxu0 %v14361_v63  ;;  %13100 = vmatprep.subr.bf16.mxu1 %v14362_v0 }
0x1488   : > { %13079 = vmatpush3.bf16.msra.mxu0 %v14363_v1  ;;  %13101 = vmatpush3.bf16.msra.mxu1 %v14364_v2 }
0x1489   : > { %13080 = vmatprep.subr.bf16.mxu0 %v14365_v3  ;;  %13102 = vmatprep.subr.bf16.mxu1 %v14366_v4 }
0x148c   : > { %13081 = vmatpush3.bf16.msra.mxu0 %v14367_v5  ;;  %13103 = vmatpush3.bf16.msra.mxu1 %v14368_v7 }
0x148d   : > { %13082 = vmatprep.subr.bf16.mxu0 %v14369_v9  ;;  %13104 = vmatprep.subr.bf16.mxu1 %v14370_v10 }
0x1490   : > { %13083 = vmatpush3.bf16.msra.mxu0 %v14371_v12  ;;  %13105 = vmatpush3.bf16.msra.mxu1 %v14372_v13 }
0x1491   : > { %13084 = vmatprep.subr.bf16.mxu0 %v14373_v14  ;;  %13106 = vmatprep.subr.bf16.mxu1 %v14374_v15 }
0x1494   : > { %13085 = vmatpush3.bf16.msra.mxu0 %v14375_v16  ;;  %13107 = vmatpush3.bf16.msra.mxu1 %v14376_v17 }
0x1495   : > { %13633 = vmatprep.subr.bf16.mxu1 %v15933_v41 }
0x154a   : > { %v16787_v18 = vpop.f32.mrb[16].mxu0  ;;  %v16789_v19 = vpop.f32.mrb[44].mxu1 }
0x154b   : > { %v3299_v20 = vmul.f32 %v16787_v18, %v16787_v18  ;;  %v3301_v21 = vmul.f32 %v16789_v19, %v16789_v19  ;;  %v16795_v22 = vpop.f32.mrb[17].mxu0  ;;  %v16797_v23 = vpop.f32.mrb[45].mxu1 }
0x154c   : > { %v3300_v24 = vmul.f32 %v16795_v22, %v16795_v22  ;;  %v3302_v38 = vmul.f32 %v16797_v23, %v16797_v23  ;;  %v16803_v25 = vpop.f32.mrb[18].mxu0  ;;  %v16805_v26 = vpop.f32.mrb[46].mxu1 }
0x154d   : > { %v3307_v27 = vmul.f32 %v3299_v20, %v16787_v18  ;;  %v3309_v8 = vmul.f32 %v3301_v21, %v16789_v19  ;;  %v3303_v28 = vmul.f32 %v16803_v25, %v16803_v25  ;;  %v3305_v11 = vmul.f32 %v16805_v26, %v16805_v26  ;;  %v16813_v29 = vpop.f32.mrb[19].mxu0  ;;  %v16815_v30 = vpop.f32.mrb[47].mxu1 }
0x154e   : > { %v3308_v31 = vmul.f32 %v3300_v24, %v16795_v22  ;;  %v3310_v36 = vmul.f32 %v3302_v38, %v16797_v23  ;;  %v3304_v32 = vmul.f32 %v16813_v29, %v16813_v29  ;;  %v3306_v33 = vmul.f32 %v16815_v30, %v16815_v30 }
0x154f   : > { %v3315_v34 = vmul.f32 0.044715, %v3307_v27  ;;  %v3317_v42 = vmul.f32 0.044715, %v3309_v8  ;;  %v3311_v47 = vmul.f32 %v3303_v28, %v16803_v25  ;;  %v3313_v49 = vmul.f32 %v3305_v11, %v16805_v26 }
0x1550   : > { %v3316_v50 = vmul.f32 0.044715, %v3308_v31  ;;  %v3318_v46 = vmul.f32 0.044715, %v3310_v36  ;;  %v3312_v51 = vmul.f32 %v3304_v32, %v16813_v29  ;;  %v3314_v52 = vmul.f32 %v3306_v33, %v16815_v30 }
0x1551   : > { %v3323_v53 = vadd.f32 %v3315_v34, %v16787_v18  ;;  %v3325_v35 = vadd.f32 %v3317_v42, %v16789_v19  ;;  %v3319_v54 = vmul.f32 0.044715, %v3311_v47  ;;  %v3321_v37 = vmul.f32 0.044715, %v3313_v49 }
0x1552   : > { %v3324_v55 = vadd.f32 %v3316_v50, %v16795_v22  ;;  %v3326_v56 = vadd.f32 %v3318_v46, %v16797_v23  ;;  %v3320_v57 = vmul.f32 0.044715, %v3312_v51  ;;  %v3322_v58 = vmul.f32 0.044715, %v3314_v52 }
0x1553   : > { %v3331_v59 = vmul.f32 0.7978846, %v3323_v53  ;;  %v3333_v60 = vmul.f32 0.7978846, %v3325_v35  ;;  %v3327_v61 = vadd.f32 %v3319_v54, %v16803_v25  ;;  %v3329_v62 = vadd.f32 %v3321_v37, %v16805_v26 }
0x1554   : > { %v3332_v63 = vmul.f32 0.7978846, %v3324_v55  ;;  %v3334_v0 = vmul.f32 0.7978846, %v3326_v56  ;;  %v3328_v1 = vadd.f32 %v3320_v57, %v16813_v29  ;;  %v3330_v2 = vadd.f32 %v3322_v58, %v16815_v30 }
0x1555   : > { %14937 = vtanh.f32 %v3331_v59  ;;  %v3335_v3 = vmul.f32 0.7978846, %v3327_v61  ;;  %v3337_v4 = vmul.f32 0.7978846, %v3329_v62 }
0x1556   : > { %14939 = vtanh.f32 %v3333_v60  ;;  %v3336_v5 = vmul.f32 0.7978846, %v3328_v1  ;;  %v3338_v7 = vmul.f32 0.7978846, %v3330_v2 }
0x1557   : > { %14941 = vtanh.f32 %v3332_v63 }
0x1558   : > { %14943 = vtanh.f32 %v3334_v0 }
0x1559   : > { %14945 = vtanh.f32 %v3335_v3  ;;  %v14377_v3 = vld [vmem:[#allocation11] ss:$12 sps:$4 sm:$0xff]  }
0x155a   : > { %14947 = vtanh.f32 %v3337_v4  ;;  %v14379_v4 = vld [vmem:[#allocation11 + $0x4] ss:$12 sps:$4 sm:$0xff]  }
0x155b   : > { %14949 = vtanh.f32 %v3336_v5  ;;  %v14380_v5 = vld [vmem:[#allocation11 + $0x8] ss:$12 sps:$4 sm:$0xff]   ;;  %3916 = vmatprep.subr.bf16.mxu0 %v14379_v4 }
0x155c   : > { %14951 = vtanh.f32 %v3338_v7  ;;  %v14383_v7 = vld [vmem:[#allocation11 + $0x1c] ss:$12 sps:$4 sm:$0xff]  }
0x155f   : > { %v14938_v9 = vpop.eup %14937 }
0x1560   : > { %v14940_v10 = vpop.eup %14939  ;;  %v3347_v12 = vadd.f32 1.0, %v14938_v9  ;;  %v14381_v9 = vld [vmem:[#allocation11 + $0x18] ss:$12 sps:$4 sm:$0xff]  }
0x1561   : > { %v14942_v13 = vpop.eup %14941  ;;  %v3349_v14 = vadd.f32 1.0, %v14940_v10 }
0x1562   : > { %v14944_v15 = vpop.eup %14943  ;;  %v3348_v16 = vadd.f32 1.0, %v14942_v13  ;;  %v3355_v24 = vmul.f32 0.5, %v3347_v12 }
0x1563   : > { %v14946_v17 = vpop.eup %14945  ;;  %v3350_v20 = vadd.f32 1.0, %v14944_v15  ;;  %v3357_v8 = vmul.f32 0.5, %v3349_v14 }
0x1564   : > { %v14948_v21 = vpop.eup %14947  ;;  %v3351_v38 = vadd.f32 1.0, %v14946_v17  ;;  %v3356_v31 = vmul.f32 0.5, %v3348_v16  ;;  %v3363_v47 = vmul.f32 %v3355_v24, %v16787_v18  ;;  %v14384_v17 = vld [vmem:[#allocation11 + $0x20] ss:$12 sps:$4 sm:$0xff]   ;;  %v14388_v24 = vld [vmem:[#allocation11 + $0x38] ss:$12 sps:$4 sm:$0xff]  }
0x1565   : > { %v14950_v27 = vpop.eup %14949  ;;  %v3353_v28 = vadd.f32 1.0, %v14948_v21  ;;  %v3358_v33 = vmul.f32 0.5, %v3350_v20  ;;  %v3365_v46 = vmul.f32 %v3357_v8, %v16789_v19  ;;  %v14387_v20 = vld [vmem:[#allocation11 + $0x34] ss:$12 sps:$4 sm:$0xff]   ;;  %v14385_v21 = vld [vmem:[#allocation11 + $0x30] ss:$12 sps:$4 sm:$0xff]  }
0x1566   : > { %v14952_v11 = vpop.eup %14951  ;;  %v3359_v36 = vmul.f32 0.5, %v3351_v38  ;;  %v3352_v32 = vadd.f32 1.0, %v14950_v27  ;;  %v3364_v53 = vmul.f32 %v3356_v31, %v16795_v22  ;;  %v14391_v38 = vld [vmem:[#allocation11 + $0x4c] ss:$12 sps:$4 sm:$0xff]   ;;  %v14389_v27 = vld [vmem:[#allocation11 + $0x48] ss:$12 sps:$4 sm:$0xff]  }
0x1567   : > { %v3361_v34 = vmul.f32 0.5, %v3353_v28  ;;  %v3354_v42 = vadd.f32 1.0, %v14952_v11  ;;  %v3366_v37 = vmul.f32 %v3358_v33, %v16797_v23  ;;  %v14392_v8 = vld [vmem:[#allocation11 + $0x50] ss:$12 sps:$4 sm:$0xff]   ;;  %v14393_v11 = vld [vmem:[#allocation11 + $0x60] ss:$12 sps:$4 sm:$0xff]  }
0x1568   : > { %v3367_v49 = vmul.f32 %v3359_v36, %v16803_v25  ;;  %v3360_v50 = vmul.f32 0.5, %v3352_v32  ;;  %v14395_v28 = vld [vmem:[#allocation11 + $0x64] ss:$12 sps:$4 sm:$0xff]   ;;  %v14396_v31 = vld [vmem:[#allocation11 + $0x68] ss:$12 sps:$4 sm:$0xff]  }
0x1569   : > { %v3369_v51 = vmul.f32 %v3361_v34, %v16805_v26  ;;  %v3362_v52 = vmul.f32 0.5, %v3354_v42  ;;  %v14399_v36 = vld [vmem:[#allocation11 + $0x7c] ss:$12 sps:$4 sm:$0xff]   ;;  %v14397_v32 = vld [vmem:[#allocation11 + $0x78] ss:$12 sps:$4 sm:$0xff]  }
0x156a   : > { %v3368_v35 = vmul.f32 %v3360_v50, %v16813_v29  ;;  %v3371_v54 = vpack.c.bf16 %v3367_v49, %v3363_v47  ;;  %v14400_v33 = vld [vmem:[#allocation11 + $0x80] ss:$12 sps:$4 sm:$0xff]   ;;  %v14401_v42 = vld [vmem:[#allocation11 + $0x90] ss:$12 sps:$4 sm:$0xff]   ;;  %v14404_v47 = vld [vmem:[#allocation11 + $0x98] ss:$12 sps:$4 sm:$0xff]  }
0x156b   : > { %v3370_v55 = vmul.f32 %v3362_v52, %v16815_v30  ;;  %v3373_v56 = vpack.c.bf16 %v3369_v51, %v3365_v46  ;;  %v14403_v34 = vld [vmem:[#allocation11 + $0x94] ss:$12 sps:$4 sm:$0xff]   ;;  %v14407_v49 = vld [vmem:[#allocation11 + $0xac] ss:$12 sps:$4 sm:$0xff]   ;;  %v14408_v46 = vld [vmem:[#allocation11 + $0xb0] ss:$12 sps:$4 sm:$0xff]  }
0x156c   : > { %v3372_v57 = vpack.c.bf16 %v3368_v35, %v3364_v53  ;;  %v14405_v50 = vld [vmem:[#allocation11 + $0xa8] ss:$12 sps:$4 sm:$0xff]  }
0x156d   : > { %v3374_v18 = vpack.c.bf16 %v3370_v55, %v3366_v37 }
0x156e   : > { %3663 = vmatprep.mubr.bf16.mxu0 %v3372_v57  ;;  %v12397_v57 = vld [vmem:[%s17988_s18] ss:$0 sm:$0xff] }
0x156f   : > { %3704 = vmatprep.mubr.bf16.mxu1 %v3374_v18  ;;  %3664 = vmatmul.mubr.bf16.vlgmr.msra.gmra.mrb[20].mxu0 %v3371_v54 }
0x1570   : > { %3705 = vmatmul.mubr.bf16.vlgmr.msra.gmra.mrb[48].mxu1 %v3373_v56  ;;  %3948 = vmatprep.mubr.bf16.mxu0 %v15934_v6 }
0x1571   : > { %13649 = vmatprep.mubr.msk.bf16.mxu1 %vm15935_vm0, %v15933_v41  ;;  %13634 = vmatpush3.bf16.msra.mxu1 %v14380_v5 }
0x1572   : > { %3917 = vmatpush1.bf16.msra.mxu0 %v14377_v3  ;;  %13635 = vmatprep.subr.bf16.mxu1 %v15933_v41 }
0x1573   : > { %3918 = vmatprep.subr.bf16.mxu0 %v14383_v7 }
0x1575   : > { %13636 = vmatpush3.bf16.msra.mxu1 %v14384_v17 }
0x1576   : > { %3919 = vmatpush1.bf16.msra.mxu0 %v14381_v9  ;;  %13637 = vmatprep.subr.bf16.mxu1 %v15933_v41 }
0x1577   : > { %3920 = vmatprep.subr.bf16.mxu0 %v14387_v20 }
0x1579   : > { %13638 = vmatpush3.bf16.msra.mxu1 %v14388_v24 }
0x157a   : > { %3921 = vmatpush1.bf16.msra.mxu0 %v14385_v21  ;;  %13639 = vmatprep.subr.bf16.mxu1 %v15933_v41 }
0x157b   : > { %3922 = vmatprep.subr.bf16.mxu0 %v14391_v38 }
0x157d   : > { %13640 = vmatpush3.bf16.msra.mxu1 %v14392_v8 }
0x157e   : > { %3923 = vmatpush1.bf16.msra.mxu0 %v14389_v27  ;;  %13641 = vmatprep.subr.bf16.mxu1 %v15933_v41 }
0x157f   : > { %3924 = vmatprep.subr.bf16.mxu0 %v14395_v28 }
0x1581   : > { %13642 = vmatpush3.bf16.msra.mxu1 %v14396_v31 }
0x1582   : > { %3925 = vmatpush1.bf16.msra.mxu0 %v14393_v11  ;;  %13643 = vmatprep.subr.bf16.mxu1 %v15933_v41 }
0x1583   : > { %3926 = vmatprep.subr.bf16.mxu0 %v14399_v36 }
0x1585   : > { %13644 = vmatpush3.bf16.msra.mxu1 %v14400_v33 }
0x1586   : > { %3927 = vmatpush1.bf16.msra.mxu0 %v14397_v32  ;;  %13645 = vmatprep.subr.bf16.mxu1 %v15933_v41 }
0x1587   : > { %3928 = vmatprep.subr.bf16.mxu0 %v14403_v34 }
0x1589   : > { %13646 = vmatpush3.bf16.msra.mxu1 %v14404_v47 }
0x158a   : > { %3929 = vmatpush1.bf16.msra.mxu0 %v14401_v42  ;;  %13647 = vmatprep.subr.bf16.mxu1 %v15933_v41 }
0x158b   : > { %3930 = vmatprep.subr.bf16.mxu0 %v14407_v49 }
0x158d   : > { %13648 = vmatpush3.bf16.msra.mxu1 %v14408_v46 }
0x158e   : > { %3931 = vmatpush1.bf16.msra.mxu0 %v14405_v50  ;;  %13659 = vmatprep.subr.bf16.mxu1 %v15933_v41 }
0x158f   : > { %13653 = vmatprep.subr.bf16.mxu0 %v15933_v41 }
0x1642   : > { %v13086_v19 = vpop.f32.mrb[20].mxu0 }
0x1643   : > { %v13108_v22 = vpop.f32.mrb[48].mxu1  ;;  %v13087_v25 = vpop.f32.mrb[21].mxu0 }
0x1644   : > { %v13088_v26 = vadd.f32 %v13087_v25, %v13086_v19  ;;  %v13109_v29 = vpop.f32.mrb[49].mxu1  ;;  %v13089_v23 = vpop.f32.mrb[22].mxu0  ;;  %v12398_v25 = vld [vmem:[%s17989_s15] ss:$0 sm:$0xff] }
0x1645   : > { %v13110_v58 = vadd.f32 %v13109_v29, %v13108_v22  ;;  %v13111_v30 = vpop.f32.mrb[50].mxu1  ;;  %v13090_v59 = vpop.f32.mrb[23].mxu0 }
0x1646   : > { %v13091_v60 = vadd.f32 %v13090_v59, %v13089_v23  ;;  %v13112_v61 = vpop.f32.mrb[51].mxu1 }
0x1647   : > { %v3707_v62 = vadd.f32 %v13110_v58, %v13088_v26  ;;  %v13113_v63 = vadd.f32 %v13112_v61, %v13111_v30 }
0x1649   : > { %v3710_v0 = vadd.f32 %v13113_v63, %v13091_v60  ;;  %v16847_v1 = vadd.f32 %v3707_v62, %v16733_v39 }
0x164b   : > { %3717 = vadd.xlane.f32.xlu1 %v16847_v1  ;;  %v16851_v2 = vadd.f32 %v3710_v0, %v16737_v48 }
0x164f   : > { %3719 = vadd.xlane.f32.xlu1 %v16851_v2 }
0x16d8   : > { %v3718_v39 = vpop.xlane.xlu1 %3717 }
0x16d9   : > { %v3721_v10 = vmul.f32 0.0078125, %v3718_v39 }
0x16db   : > { %v16856_v12 = vsub.f32 %v16847_v1, %v3721_v10 }
0x16dc   : > { %v3720_v48 = vpop.xlane.xlu1 %3719 }
0x16dd   : > { %v3722_v13 = vmul.f32 0.0078125, %v3720_v48  ;;  %v3725_v14 = vmul.f32 %v16856_v12, %v16856_v12 }
0x16df   : > { %v3724_v15 = vsub.f32 %v16851_v2, %v3722_v13  ;;  %3727 = vadd.xlane.f32.xlu0 %v3725_v14 }
0x16e1   : > { %v3726_v16 = vmul.f32 %v3724_v15, %v3724_v15 }
0x16e3   : > { %3729 = vadd.xlane.f32.xlu1 %v3726_v16 }
0x176c   : > { %v3728_v51 = vpop.xlane.xlu0 %3727 }
0x176d   : > { %v3731_v52 = vmul.f32 0.0078125, %v3728_v51 }
0x176f   : > { %v3733_v53 = vadd.f32 1e-05, %v3731_v52 }
0x1770   : > { %v3730_v35 = vpop.xlane.xlu1 %3729 }
0x1771   : > { %14953 = vrsqrt.f32 %v3733_v53  ;;  %v3732_v54 = vmul.f32 0.0078125, %v3730_v35 }
0x1773   : > { %v3734_v37 = vadd.f32 1e-05, %v3732_v54 }
0x1775   : > { %14955 = vrsqrt.f32 %v3734_v37 }
0x177b   : > { %v14954_v55 = vpop.eup %14953 }
0x177c   : > { %v3737_v56 = vmul.f32 %v14954_v55, %v16856_v12 }
0x177e   : > { %v3745_v22 = vmul.f32 %v12397_v57, %v3737_v56 }
0x177f   : > { %v14956_v18 = vpop.eup %14955 }
0x1780   : > { %v3738_v19 = vmul.f32 %v14956_v18, %v3724_v15  ;;  %v3753_v29 = vadd.f32 %v12398_v25, %v3745_v22 }
0x1782   : > { %v3746_v26 = vmul.f32 %v12397_v57, %v3738_v19 }
0x1784   : > { %v3754_v23 = vadd.f32 %v12398_v25, %v3746_v26 }
0x1786   : > { %v3755_v58 = vpack.c.bf16 %v3754_v23, %v3753_v29 }
0x1788   : > { %3949 = vmatmul.mubr.bf16.vlgmr.msra.gmra.mrb[24].mxu0 %v3755_v58  ;;  %13650 = vmatmul.mubr.bf16.vlgmr.msra.gmra.mrb[52].mxu1 %v3755_v58 }
0x1789   : > { %13655 = vmatprep.mubr.msk.bf16.mxu0 %vm15935_vm0, %v15933_v41  ;;  %13661 = vmatprep.mubr.msk.bf16.mxu1 %vm15935_vm0, %v15933_v41 }
0x185b   : > { %v3950_v30 = vpop.f32.mrb[24].mxu0  ;;  %v3993_v59 = vpop.f32.mrb[52].mxu1 }
0x185c   : > { %v3952_v60 = vpop.f32.mrb[25].mxu0  ;;  %v13651_v61 = vpop.f32.mrb[53].mxu1 }
0x185d   : > { %v3954_v62 = vpop.f32.mrb[26].mxu0  ;;  %v3996_v63 = vpop.f32.mrb[54].mxu1  ;;  %v14412_v61 = vld [vmem:[#allocation12 + $0x18] sm:$0xff]  }
0x185e   : > { %v16876_v0 = vpack.c.bf16 %v3954_v62, %v3950_v30  ;;  %v16878_v3 = vpack.c.bf16 %v3996_v63, %v3993_v59  ;;  %v3956_v4 = vpop.f32.mrb[27].mxu0  ;;  %v13652_v5 = vpop.f32.mrb[55].mxu1 }
0x185f   : > { %v16880_v7 = vpack.c.bf16 %v3956_v4, %v3952_v60  ;;  %v14411_v60 = vld [vmem:[#allocation12 + $0x10] sm:$0xff]  }
0x1860   : > { %13660 = vmatpush3.bf16.msra.mxu1 %v16878_v3 }
0x1861   : > { %4128 = vrot.lane.b32.xlu1 %v16880_v7, %s15936_s11  ;;  %v4007_v9 = vsel %vm2240_vm1, %v16880_v7, 0  ;;  %13671 = vmatprep.subr.bf16.mxu1 %v15933_v41 }
0x1862   : > { %13654 = vmatpush3.bf16.xpose.msra.mxu0 %v4007_v9 }
0x1863   : > { %13665 = vmatprep.subr.bf16.mxu0 %v15933_v41 }
0x1865   : > { %4125 = vrot.lane.b32.xlu1 %v16876_v0, %s15936_s11 }
0x1869   : > { %13656 = vmatmul.mubr.msk.bf16.vlgmr.msra.gmra.mrb[28].mxu0 %vm2240_vm1, %v16876_v0 }
0x186a   : > { %13667 = vmatprep.mubr.msk.bf16.mxu0 %vm15935_vm0, %v15933_v41 }
0x18d3   : > { %v4129_v39 = vpop.permute.xlu1 %4128 }
0x18d4   : > { %v4134_v10 = vsel %vm2240_vm1, %v4129_v39, 0 }
0x18d5   : > { %13666 = vmatpush3.bf16.xpose.msra.mxu0 %v4134_v10 }
0x18d6   : > { %13677 = vmatprep.subr.bf16.mxu0 %v15933_v41 }
0x18d7   : > { %v4126_v12 = vpop.permute.xlu1 %4125 }
0x18dc   : > { %13668 = vmatmul.mubr.msk.bf16.vlgmr.msra.gmra.mrb[32].mxu0 %vm2240_vm1, %v4126_v12  ;;  %v14409_v12 = vld [vmem:[#allocation12] sm:$0xff]  }
0x18dd   : > { %13681 = vmatprep.mubr.msk.bf16.mxu0 %vm15935_vm0, %v15933_v41  ;;  %13678 = vmatpush3.bf16.msra.mxu0 %v14411_v60 }
0x18de   : > { %13679 = vmatprep.subr.bf16.mxu0 %v15933_v41 }
0x18e1   : > { %13680 = vmatpush3.bf16.msra.mxu0 %v14412_v61 }
0x18e2   : > { %13693 = vmatprep.subr.bf16.mxu0 %v15933_v41 }
0x193c   : > { %v4043_v48 = vpop.f32.mrb[28].mxu0 }
0x193d   : > { %v4050_v13 = vmul.f32 0.17677669, %v4043_v48  ;;  %v13657_v14 = vpop.f32.mrb[29].mxu0 }
0x193e   : > { %v4046_v15 = vpop.f32.mrb[30].mxu0 }
0x193f   : > { %v4051_v16 = vmul.f32 0.17677669, %v4046_v15  ;;  %v13658_v17 = vpop.f32.mrb[31].mxu0  ;;  %v4052_v20 = vsel %vm2290_vm2, %v4050_v13, -inf }
0x1940   : > { %4053 = vmax.xlane.f32.xlu1 %v4052_v20 }
0x1941   : > { %v4055_v21 = vsel %vm2290_vm2, %v4051_v16, -inf }
0x1942   : > { %4056 = vmax.xlane.f32.xlu0 %v4055_v21 }
0x1951   : > { %4369 = vrot.lane.b32.xlu1 %v16880_v7, %s15937_s23 }
0x1955   : > { %4367 = vrot.lane.b32.xlu1 %v16876_v0, %s15937_s23 }
0x19af   : > { %v4170_v24 = vpop.f32.mrb[32].mxu0 }
0x19b0   : > { %v4177_v38 = vmul.f32 0.17677669, %v4170_v24  ;;  %v13669_v27 = vpop.f32.mrb[33].mxu0 }
0x19b1   : > { %v4173_v8 = vpop.f32.mrb[34].mxu0 }
0x19b2   : > { %v4178_v28 = vmul.f32 0.17677669, %v4173_v8  ;;  %v13670_v11 = vpop.f32.mrb[35].mxu0  ;;  %v4179_v31 = vsel %vm2290_vm2, %v4177_v38, -inf }
0x19b3   : > { %4180 = vmax.xlane.f32.xlu0 %v4179_v31 }
0x19b4   : > { %v4182_v36 = vsel %vm2290_vm2, %v4178_v28, -inf }
0x19b7   : > { %4183 = vmax.xlane.f32.xlu0 %v4182_v36 }
0x19cd   : > { %v4054_v32 = vpop.xlane.xlu1 %4053 }
0x19ce   : > { %v4058_v33 = vsub.f32 %v4050_v13, %v4054_v32  ;;  %v14410_v13 = vld [vmem:[#allocation12 + $0x8] sm:$0xff]  }
0x19cf   : > { %v4057_v34 = vpop.xlane.xlu0 %4056 }
0x19d0   : > { %v4060_v42 = vmul.f32 1.442695, %v4058_v33  ;;  %v4059_v47 = vsub.f32 %v4051_v16, %v4057_v34 }
0x19d2   : > { %14957 = vpow2.f32 %v4060_v42  ;;  %v4062_v49 = vmul.f32 1.442695, %v4059_v47 }
0x19d4   : > { %14959 = vpow2.f32 %v4062_v49 }
0x19dc   : > { %v14958_v50 = vpop.eup %14957 }
0x19dd   : > { %v4064_v46 = vsel %vm2290_vm2, %v14958_v50, 0.0 }
0x19de   : > { %v14960_v51 = vpop.eup %14959  ;;  %4065 = vadd.xlane.f32.xlu0 %v4064_v46 }
0x19df   : > { %v4067_v52 = vsel %vm2290_vm2, %v14960_v51, 0.0 }
0x19e2   : > { %4068 = vadd.xlane.f32.xlu0 %v4067_v52 }
0x1a40   : > { %v4181_v53 = vpop.xlane.xlu0 %4180 }
0x1a41   : > { %v4185_v35 = vsub.f32 %v4177_v38, %v4181_v53  ;;  %v4370_v38 = vpop.permute.xlu1 %4369 }
0x1a42   : > { %v4375_v11 = vsel %vm2240_vm1, %v4370_v38, 0 }
0x1a43   : > { %v4187_v54 = vmul.f32 1.442695, %v4185_v35 }
0x1a44   : > { %v4184_v37 = vpop.xlane.xlu0 %4183 }
0x1a45   : > { %14961 = vpow2.f32 %v4187_v54  ;;  %v4186_v55 = vsub.f32 %v4178_v28, %v4184_v37  ;;  %v4368_v31 = vpop.permute.xlu1 %4367 }
0x1a47   : > { %v4189_v56 = vmul.f32 1.442695, %v4186_v55 }
0x1a49   : > { %14963 = vpow2.f32 %v4189_v56 }
0x1a4f   : > { %v14962_v57 = vpop.eup %14961 }
0x1a50   : > { %v4191_v18 = vsel %vm2290_vm2, %v14962_v57, 0.0 }
0x1a51   : > { %4192 = vadd.xlane.f32.xlu0 %v4191_v18 }
0x1a53   : > { %v14964_v19 = vpop.eup %14963 }
0x1a54   : > { %v4194_v22 = vsel %vm2290_vm2, %v14964_v19, 0.0 }
0x1a55   : > { %4195 = vadd.xlane.f32.xlu0 %v4194_v22 }
0x1a6b   : > { %4203 = vrot.lane.b32.xlu0 %v16878_v3, %s15936_s11  ;;  %v4066_v25 = vpop.xlane.xlu0 %4065 }
0x1a6c   : > { %14965 = vrcp.f32 %v4066_v25 }
0x1a6f   : > { %v4069_v26 = vpop.xlane.xlu0 %4068 }
0x1a70   : > { %14967 = vrcp.f32 %v4069_v26 }
0x1a76   : > { %v14966_v29 = vpop.eup %14965 }
0x1a77   : > { %v4072_v58 = vmul.f32 %v14966_v29, %v14958_v50 }
0x1a7a   : > { %v14968_v23 = vpop.eup %14967 }
0x1a7b   : > { %v4073_v30 = vmul.f32 %v14968_v23, %v14960_v51 }
0x1a7d   : > { %v4074_v59 = vpack.c.bf16 %v4073_v30, %v4072_v58 }
0x1a7f   : > { %13662 = vmatmul.mubr.msk.bf16.vlgmr.msra.gmra.mrb[56].mxu1 %vm2290_vm2, %v4074_v59 }
0x1a80   : > { %13673 = vmatprep.mubr.msk.bf16.mxu1 %vm15935_vm0, %v15933_v41 }
0x1ade   : > { %v4193_v62 = vpop.xlane.xlu0 %4192 }
0x1adf   : > { %14969 = vrcp.f32 %v4193_v62 }
0x1ae2   : > { %v4196_v63 = vpop.xlane.xlu0 %4195 }
0x1ae3   : > { %14971 = vrcp.f32 %v4196_v63 }
0x1ae6   : > { %v4204_v4 = vpop.permute.xlu0 %4203 }
0x1ae7   : > { %13672 = vmatpush3.bf16.msra.mxu1 %v4204_v4 }
0x1ae8   : > { %13685 = vmatprep.subr.bf16.mxu1 %v15933_v41 }
0x1ae9   : > { %v14970_v5 = vpop.eup %14969 }
0x1aea   : > { %v4199_v39 = vmul.f32 %v14970_v5, %v14962_v57 }
0x1aed   : > { %v14972_v9 = vpop.eup %14971 }
0x1aee   : > { %v4200_v10 = vmul.f32 %v14972_v9, %v14964_v19 }
0x1af0   : > { %v4201_v48 = vpack.c.bf16 %v4200_v10, %v4199_v39 }
0x1af2   : > { %13674 = vmatmul.mubr.msk.bf16.vlgmr.msra.gmra.mrb[60].mxu1 %vm2290_vm2, %v4201_v48  ;;  %v14414_v48 = vld [vmem:[#allocation12 + $0x28] sm:$0xff]  }
0x1af3   : > { %13686 = vmatpush3.bf16.msra.mxu1 %v14409_v12  ;;  %13689 = vmatprep.mubr.msk.bf16.mxu1 %vm15935_vm0, %v15933_v41 }
0x1af4   : > { %13687 = vmatprep.subr.bf16.mxu1 %v15933_v41 }
0x1af7   : > { %13688 = vmatpush3.bf16.msra.mxu1 %v14410_v13 }
0x1af8   : > { %13699 = vmatprep.subr.bf16.mxu1 %v15933_v41 }
0x1b52   : > { %v4112_v14 = vpop.f32.mrb[56].mxu1 }
0x1b53   : > { %v13663_v15 = vpop.f32.mrb[57].mxu1 }
0x1b54   : > { %v4115_v16 = vpop.f32.mrb[58].mxu1 }
0x1b55   : > { %v4119_v17 = vpack.c.bf16 %v4115_v16, %v4112_v14  ;;  %v13664_v20 = vpop.f32.mrb[59].mxu1 }
0x1b57   : > { %13690 = vmatmul.mubr.msk.bf16.vlgmr.msra.gmra.mrb[64].mxu1 %vm2240_vm1, %v4119_v17 }
0x1b58   : > { %13701 = vmatprep.mubr.msk.bf16.mxu1 %vm15935_vm0, %v15933_v41 }
0x1bc5   : > { %v4243_v21 = vpop.f32.mrb[60].mxu1 }
0x1bc6   : > { %v13675_v24 = vpop.f32.mrb[61].mxu1 }
0x1bc7   : > { %v4246_v27 = vpop.f32.mrb[62].mxu1 }
0x1bc8   : > { %v4250_v8 = vpack.c.bf16 %v4246_v27, %v4243_v21  ;;  %v13676_v28 = vpop.f32.mrb[63].mxu1 }
0x1bca   : > { %13682 = vmatmul.mubr.msk.bf16.vlgmr.msra.gmra.mrb[36].mxu0 %vm2240_vm1, %v4250_v8 }
0x1bcb   : > { %13694 = vmatpush3.bf16.xpose.msra.mxu0 %v4375_v11  ;;  %13695 = vmatprep.mubr.msk.bf16.mxu0 %vm15935_vm0, %v15933_v41 }
0x1bcc   : > { %13705 = vmatprep.subr.bf16.mxu0 %v15933_v41 }
0x1bd2   : > { %13696 = vmatmul.mubr.msk.bf16.vlgmr.msra.gmra.mrb[40].mxu0 %vm2240_vm1, %v4368_v31 }
0x1bd3   : > { %13709 = vmatprep.mubr.msk.bf16.mxu0 %vm15935_vm0, %v15933_v41 }
0x1c2a   : > { %v4360_v36 = vpop.f32.mrb[64].mxu1 }
0x1c2b   : > { %v13691_v32 = vpop.f32.mrb[65].mxu1 }
0x1c2c   : > { %v4363_v33 = vpop.f32.mrb[66].mxu1 }
0x1c2d   : > { %v13692_v34 = vpop.f32.mrb[67].mxu1 }
0x1c9d   : > { %v4304_v42 = vpop.f32.mrb[36].mxu0 }
0x1c9e   : > { %v16936_v47 = vadd.f32 %v4360_v36, %v4304_v42  ;;  %v13683_v49 = vpop.f32.mrb[37].mxu0 }
0x1c9f   : > { %v4307_v50 = vpop.f32.mrb[38].mxu0 }
0x1ca0   : > { %v16938_v46 = vadd.f32 %v4363_v33, %v4307_v50  ;;  %v13684_v51 = vpop.f32.mrb[39].mxu0 }
0x1ca5   : > { %v4411_v52 = vpop.f32.mrb[40].mxu0 }
0x1ca6   : > { %v4418_v53 = vmul.f32 0.17677669, %v4411_v52  ;;  %v13697_v35 = vpop.f32.mrb[41].mxu0 }
0x1ca7   : > { %v4414_v54 = vpop.f32.mrb[42].mxu0  ;;  %v14415_v35 = vld [vmem:[#allocation12 + $0x30] sm:$0xff]  }
0x1ca8   : > { %v4419_v37 = vmul.f32 0.17677669, %v4414_v54  ;;  %v13698_v55 = vpop.f32.mrb[43].mxu0  ;;  %v4420_v56 = vsel %vm2290_vm2, %v4418_v53, -inf }
0x1ca9   : > { %4421 = vmax.xlane.f32.xlu0 %v4420_v56 }
0x1caa   : > { %v4423_v57 = vsel %vm2290_vm2, %v4419_v37, -inf }
0x1cab   : > { %4424 = vmax.xlane.f32.xlu1 %v4423_v57 }
0x1cbc   : > { %4555 = vrot.lane.b32.xlu1 %v16880_v7, %s15938_s10 }
0x1cc0   : > { %4553 = vrot.lane.b32.xlu1 %v16876_v0, %s15938_s10  ;;  %v14413_v0 = vld [vmem:[#allocation12 + $0x20] sm:$0xff]  }
0x1cc1   : > { %13706 = vmatpush3.bf16.msra.mxu0 %v14413_v0 }
0x1cc2   : > { %13707 = vmatprep.subr.bf16.mxu0 %v15933_v41 }
0x1cc5   : > { %13708 = vmatpush3.bf16.msra.mxu0 %v14414_v48  ;;  %v14422_v48 = vld [vmem:[#allocation14 + $0xc] ss:$16 sps:$4 sm:$0xff]  }
0x1cc6   : > { %13719 = vmatprep.subr.bf16.mxu0 %v15933_v41 }
0x1d36   : > { %v4422_v18 = vpop.xlane.xlu0 %4421 }
0x1d37   : > { %v4426_v19 = vsub.f32 %v4418_v53, %v4422_v18 }
0x1d38   : > { %v4425_v22 = vpop.xlane.xlu1 %4424 }
0x1d39   : > { %v4428_v25 = vmul.f32 1.442695, %v4426_v19  ;;  %v4427_v26 = vsub.f32 %v4419_v37, %v4425_v22 }
0x1d3b   : > { %14973 = vpow2.f32 %v4428_v25  ;;  %v4430_v29 = vmul.f32 1.442695, %v4427_v26 }
0x1d3c   : > { %v4556_v9 = vpop.permute.xlu1 %4555 }
0x1d3d   : > { %14975 = vpow2.f32 %v4430_v29  ;;  %v4561_v10 = vsel %vm2240_vm1, %v4556_v9, 0 }
0x1d40   : > { %v4554_v12 = vpop.permute.xlu1 %4553 }
0x1d45   : > { %v14974_v23 = vpop.eup %14973 }
0x1d46   : > { %v4432_v58 = vsel %vm2290_vm2, %v14974_v23, 0.0 }
0x1d47   : > { %v14976_v30 = vpop.eup %14975  ;;  %4433 = vadd.xlane.f32.xlu0 %v4432_v58  ;;  %v14416_v58 = vld [vmem:[#allocation12 + $0x38] sm:$0xff]  }
0x1d48   : > { %v4435_v59 = vsel %vm2290_vm2, %v14976_v30, 0.0 }
0x1d4b   : > { %4436 = vadd.xlane.f32.xlu0 %v4435_v59 }
0x1d61   : > { %4443 = vrot.lane.b32.xlu0 %v16878_v3, %s15937_s23 }
0x1dd4   : > { %v4434_v7 = vpop.xlane.xlu0 %4433 }
0x1dd5   : > { %14977 = vrcp.f32 %v4434_v7 }
0x1dd8   : > { %v4437_v60 = vpop.xlane.xlu0 %4436 }
0x1dd9   : > { %14979 = vrcp.f32 %v4437_v60 }
0x1ddc   : > { %v4444_v61 = vpop.permute.xlu0 %4443 }
0x1ddd   : > { %13700 = vmatpush3.bf16.msra.mxu1 %v4444_v61 }
0x1dde   : > { %13713 = vmatprep.subr.bf16.mxu1 %v15933_v41 }
0x1ddf   : > { %v14978_v62 = vpop.eup %14977 }
0x1de0   : > { %v4440_v4 = vmul.f32 %v14978_v62, %v14974_v23 }
0x1de3   : > { %v14980_v63 = vpop.eup %14979 }
0x1de4   : > { %v4441_v5 = vmul.f32 %v14980_v63, %v14976_v30 }
0x1de6   : > { %v4442_v39 = vpack.c.bf16 %v4441_v5, %v4440_v4 }
0x1de8   : > { %13702 = vmatmul.mubr.msk.bf16.vlgmr.msra.gmra.mrb[68].mxu1 %vm2290_vm2, %v4442_v39  ;;  %v14417_v39 = vld [vmem:[#allocation14] ss:$16 sps:$4 sm:$0xff]  }
0x1de9   : > { %13714 = vmatpush3.bf16.xpose.msra.mxu1 %v4561_v10  ;;  %13715 = vmatprep.mubr.msk.bf16.mxu1 %vm15935_vm0, %v15933_v41  ;;  %v14419_v10 = vld [vmem:[#allocation14 + $0x4] ss:$16 sps:$4 sm:$0xff]  }
0x1dea   : > { %13725 = vmatprep.subr.bf16.mxu1 %v15933_v41 }
0x1df0   : > { %13716 = vmatmul.mubr.msk.bf16.vlgmr.msra.gmra.mrb[72].mxu1 %vm2240_vm1, %v4554_v12  ;;  %v14420_v12 = vld [vmem:[#allocation14 + $0x8] ss:$16 sps:$4 sm:$0xff]  }
0x1df1   : > { %13729 = vmatprep.mubr.msk.bf16.mxu1 %vm15935_vm0, %v15933_v41  ;;  %13726 = vmatpush3.bf16.msra.mxu1 %v14415_v35  ;;  %v14447_v35 = vld [vmem:[#allocation14 + $0xa0] ss:$16 sps:$4 sm:$0xff]  }
0x1df2   : > { %13727 = vmatprep.subr.bf16.mxu1 %v15933_v41 }
0x1df5   : > { %13728 = vmatpush3.bf16.msra.mxu1 %v14416_v58 }
0x1df6   : > { %5017 = vmatprep.subr.bf16.mxu1 %v14422_v48  ;;  %v14467_v48 = vld [vmem:[#allocation15] sm:$0xff]  }
0x1ebb   : > { %v4483_v13 = vpop.f32.mrb[68].mxu1 }
0x1ebc   : > { %v13703_v14 = vpop.f32.mrb[69].mxu1 }
0x1ebd   : > { %v4486_v15 = vpop.f32.mrb[70].mxu1  ;;  %v14428_v14 = vld [vmem:[#allocation14 + $0x2c] ss:$16 sps:$4 sm:$0xff]  }
0x1ebe   : > { %v4490_v16 = vpack.c.bf16 %v4486_v15, %v4483_v13  ;;  %v13704_v17 = vpop.f32.mrb[71].mxu1  ;;  %v14425_v13 = vld [vmem:[#allocation14 + $0x24] ss:$16 sps:$4 sm:$0xff]   ;;  %v14426_v15 = vld [vmem:[#allocation14 + $0x28] ss:$16 sps:$4 sm:$0xff]  }
0x1ec0   : > { %13710 = vmatmul.mubr.msk.bf16.vlgmr.msra.gmra.mrb[44].mxu0 %vm2240_vm1, %v4490_v16 }
0x1ec1   : > { %13721 = vmatprep.mubr.msk.bf16.mxu0 %vm15935_vm0, %v15933_v41 }
0x1ec3   : > { %v4597_v20 = vpop.f32.mrb[72].mxu1 }
0x1ec4   : > { %v4604_v21 = vmul.f32 0.17677669, %v4597_v20  ;;  %v13717_v24 = vpop.f32.mrb[73].mxu1 }
0x1ec5   : > { %v4600_v38 = vpop.f32.mrb[74].mxu1 }
0x1ec6   : > { %v4605_v27 = vmul.f32 0.17677669, %v4600_v38  ;;  %v13718_v8 = vpop.f32.mrb[75].mxu1  ;;  %v4606_v28 = vsel %vm2290_vm2, %v4604_v21, -inf }
0x1ec7   : > { %4607 = vmax.xlane.f32.xlu1 %v4606_v28  ;;  %v14431_v8 = vld [vmem:[#allocation14 + $0x44] ss:$16 sps:$4 sm:$0xff]   ;;  %v14434_v28 = vld [vmem:[#allocation14 + $0x4c] ss:$16 sps:$4 sm:$0xff]  }
0x1ec8   : > { %v4609_v11 = vsel %vm2290_vm2, %v4605_v27, -inf }
0x1ec9   : > { %4610 = vmax.xlane.f32.xlu0 %v4609_v11  ;;  %v14429_v11 = vld [vmem:[#allocation14 + $0x40] ss:$16 sps:$4 sm:$0xff]  }
0x1ed8   : > { %4629 = vrot.lane.b32.xlu1 %v16878_v3, %s15938_s10 }
0x1f54   : > { %v4608_v31 = vpop.xlane.xlu1 %4607 }
0x1f55   : > { %v4612_v36 = vsub.f32 %v4604_v21, %v4608_v31  ;;  %v14432_v31 = vld [vmem:[#allocation14 + $0x48] ss:$16 sps:$4 sm:$0xff]  }
0x1f56   : > { %v4611_v32 = vpop.xlane.xlu0 %4610 }
0x1f57   : > { %v4614_v33 = vmul.f32 1.442695, %v4612_v36  ;;  %v4613_v34 = vsub.f32 %v4605_v27, %v4611_v32  ;;  %v14437_v36 = vld [vmem:[#allocation14 + $0x64] ss:$16 sps:$4 sm:$0xff]   ;;  %v14440_v32 = vld [vmem:[#allocation14 + $0x6c] ss:$16 sps:$4 sm:$0xff]  }
0x1f58   : > { %v4630_v42 = vpop.permute.xlu1 %4629 }
0x1f59   : > { %14981 = vpow2.f32 %v4614_v33  ;;  %v4616_v49 = vmul.f32 1.442695, %v4613_v34  ;;  %13720 = vmatpush3.bf16.msra.mxu0 %v4630_v42  ;;  %v14435_v33 = vld [vmem:[#allocation14 + $0x60] ss:$16 sps:$4 sm:$0xff]   ;;  %v14438_v34 = vld [vmem:[#allocation14 + $0x68] ss:$16 sps:$4 sm:$0xff]  }
0x1f5a   : > { %4974 = vmatprep.subr.bf16.mxu0 %v14419_v10  ;;  %v14443_v42 = vld [vmem:[#allocation14 + $0x84] ss:$16 sps:$4 sm:$0xff]  }
0x1f5b   : > { %14983 = vpow2.f32 %v4616_v49  ;;  %v14446_v49 = vld [vmem:[#allocation14 + $0x8c] ss:$16 sps:$4 sm:$0xff]   ;;  %v14465_v10 = vld [vmem:[#allocation15 + $0x40] sm:$0xff]  }
0x1f63   : > { %v14982_v50 = vpop.eup %14981 }
0x1f64   : > { %v4618_v51 = vsel %vm2290_vm2, %v14982_v50, 0.0 }
0x1f65   : > { %v14984_v52 = vpop.eup %14983  ;;  %4619 = vadd.xlane.f32.xlu0 %v4618_v51  ;;  %v14444_v51 = vld [vmem:[#allocation14 + $0x88] ss:$16 sps:$4 sm:$0xff]  }
0x1f66   : > { %v4621_v53 = vsel %vm2290_vm2, %v14984_v52, 0.0 }
0x1f69   : > { %4622 = vadd.xlane.f32.xlu0 %v4621_v53  ;;  %v14452_v53 = vld [vmem:[#allocation14 + $0xac] ss:$16 sps:$4 sm:$0xff]  }
0x1f93   : > { %v4544_v3 = vpop.f32.mrb[44].mxu0 }
0x1f94   : > { %v4551_v54 = vadd.f32 %v4544_v3, %v16936_v47  ;;  %v13711_v37 = vpop.f32.mrb[45].mxu0  ;;  %v14450_v3 = vld [vmem:[#allocation14 + $0xa8] ss:$16 sps:$4 sm:$0xff]  }
0x1f95   : > { %v4547_v55 = vpop.f32.mrb[46].mxu0  ;;  %v14458_v37 = vld [vmem:[#allocation14 + $0xcc] ss:$16 sps:$4 sm:$0xff]  }
0x1f96   : > { %v4552_v56 = vadd.f32 %v4547_v55, %v16938_v46  ;;  %v13712_v57 = vpop.f32.mrb[47].mxu0  ;;  %v14453_v55 = vld [vmem:[#allocation14 + $0xc0] ss:$16 sps:$4 sm:$0xff]  }
0x1f97   : > { %v14461_v57 = vld [vmem:[#allocation14 + $0xe4] ss:$16 sps:$4 sm:$0xff]  }
0x1ff2   : > { %v4620_v18 = vpop.xlane.xlu0 %4619 }
0x1ff3   : > { %14985 = vrcp.f32 %v4620_v18  ;;  %v14464_v18 = vld [vmem:[#allocation14 + $0xec] ss:$16 sps:$4 sm:$0xff]  }
0x1ff6   : > { %v4623_v19 = vpop.xlane.xlu0 %4622 }
0x1ff7   : > { %14987 = vrcp.f32 %v4623_v19  ;;  %v14459_v19 = vld [vmem:[#allocation14 + $0xe0] ss:$16 sps:$4 sm:$0xff]  }
0x1ffd   : > { %v14986_v22 = vpop.eup %14985 }
0x1ffe   : > { %v4626_v26 = vmul.f32 %v14986_v22, %v14982_v50  ;;  %v14441_v50 = vld [vmem:[#allocation14 + $0x80] ss:$16 sps:$4 sm:$0xff]   ;;  %v14462_v22 = vld [vmem:[#allocation14 + $0xe8] ss:$16 sps:$4 sm:$0xff]  }
0x2001   : > { %v14988_v25 = vpop.eup %14987 }
0x2002   : > { %v4627_v29 = vmul.f32 %v14988_v25, %v14984_v52  ;;  %v14449_v52 = vld [vmem:[#allocation14 + $0xa4] ss:$16 sps:$4 sm:$0xff]  }
0x2004   : > { %v4628_v23 = vpack.c.bf16 %v4627_v29, %v4626_v26 }
0x2006   : > { %13722 = vmatmul.mubr.msk.bf16.vlgmr.msra.gmra.mrb[48].mxu0 %vm2290_vm2, %v4628_v23 }
0x2007   : > { %5006 = vmatprep.mubr.bf16.mxu0 %v15934_v6  ;;  %4975 = vmatpush1.bf16.msra.mxu0 %v14417_v39 }
0x2008   : > { %4976 = vmatprep.subr.bf16.mxu0 %v14425_v13  ;;  %v14468_v13 = vld [vmem:[#allocation15 + $0x80] sm:$0xff]  }
0x20d9   : > { %v4669_v47 = vpop.f32.mrb[48].mxu0 }
0x20da   : > { %v13723_v30 = vpop.f32.mrb[49].mxu0 }
0x20db   : > { %v4672_v59 = vpop.f32.mrb[50].mxu0 }
0x20dc   : > { %v4676_v46 = vpack.c.bf16 %v4672_v59, %v4669_v47  ;;  %v13724_v0 = vpop.f32.mrb[51].mxu0 }
0x20de   : > { %13730 = vmatmul.mubr.msk.bf16.vlgmr.msra.gmra.mrb[76].mxu1 %vm2240_vm1, %v4676_v46  ;;  %v12443_v46 = vld [vmem:[%s17990_s13] ss:$0 sm:$0xff] }
0x20df   : > { %5049 = vmatprep.mubr.bf16.mxu1 %v15934_v6  ;;  %5018 = vmatpush1.bf16.msra.mxu1 %v14420_v12  ;;  %v14466_v12 = vld [vmem:[#allocation15 + $0xc0] sm:$0xff]  }
0x20e0   : > { %5019 = vmatprep.subr.bf16.mxu1 %v14428_v14  ;;  %v14469_v14 = vld [vmem:[#allocation15 + $0x48] sm:$0xff]  }
0x20e3   : > { %5020 = vmatpush1.bf16.msra.mxu1 %v14426_v15  ;;  %v14471_v15 = vld [vmem:[#allocation15 + $0x8] sm:$0xff]  }
0x20e4   : > { %5021 = vmatprep.subr.bf16.mxu1 %v14434_v28  ;;  %v14481_v28 = vld [vmem:[#allocation15 + $0x60] sm:$0xff]  }
0x20e7   : > { %5022 = vmatpush1.bf16.msra.mxu1 %v14432_v31  ;;  %v14483_v31 = vld [vmem:[#allocation15 + $0x20] sm:$0xff]  }
0x20e8   : > { %5023 = vmatprep.subr.bf16.mxu1 %v14440_v32  ;;  %v14485_v32 = vld [vmem:[#allocation15 + $0x68] sm:$0xff]  }
0x20eb   : > { %5024 = vmatpush1.bf16.msra.mxu1 %v14438_v34  ;;  %v14487_v34 = vld [vmem:[#allocation15 + $0x28] sm:$0xff]  }
0x20ec   : > { %5025 = vmatprep.subr.bf16.mxu1 %v14446_v49  ;;  %v14489_v49 = vld [vmem:[#allocation15 + $0x70] sm:$0xff]  }
0x20ef   : > { %5026 = vmatpush1.bf16.msra.mxu1 %v14444_v51  ;;  %v14491_v51 = vld [vmem:[#allocation15 + $0x30] sm:$0xff]  }
0x20f0   : > { %5027 = vmatprep.subr.bf16.mxu1 %v14452_v53  ;;  %v14493_v53 = vld [vmem:[#allocation15 + $0x78] sm:$0xff]  }
0x20f3   : > { %5028 = vmatpush1.bf16.msra.mxu1 %v14450_v3  ;;  %v14495_v3 = vld [vmem:[#allocation15 + $0x38] sm:$0xff]  }
0x20f4   : > { %5029 = vmatprep.subr.bf16.mxu1 %v14458_v37  ;;  %v14497_v37 = vld [vmem:[%s17992_s5 + $0x40] sm:$0xff]  }
0x21b1   : > { %v4730_v7 = vpop.f32.mrb[76].mxu1 }
0x21b2   : > { %v4737_v60 = vadd.f32 %v4730_v7, %v4551_v54  ;;  %v13731_v61 = vpop.f32.mrb[77].mxu1  ;;  %v14455_v54 = vld [vmem:[#allocation14 + $0xc4] ss:$16 sps:$4 sm:$0xff]  }
0x21b3   : > { %v4733_v62 = vpop.f32.mrb[78].mxu1  ;;  %v12444_v61 = vld [vmem:[%s17991_s4] ss:$0 sm:$0xff] }
0x21b4   : > { %v16978_v63 = vadd.f32 %v4737_v60, %v16847_v1  ;;  %v4738_v4 = vadd.f32 %v4733_v62, %v4552_v56  ;;  %v13732_v5 = vpop.f32.mrb[79].mxu1  ;;  %v14423_v1 = vld [vmem:[#allocation14 + $0x20] ss:$16 sps:$4 sm:$0xff]   ;;  %v14456_v56 = vld [vmem:[#allocation14 + $0xc8] ss:$16 sps:$4 sm:$0xff]  }
0x21b5   : > { %4977 = vmatpush1.bf16.msra.mxu0 %v14423_v1  ;;  %5030 = vmatpush1.bf16.msra.mxu1 %v14456_v56  ;;  %v14470_v1 = vld [vmem:[#allocation15 + $0xc8] sm:$0xff]  }
0x21b6   : > { %4743 = vadd.xlane.f32.xlu0 %v16978_v63  ;;  %v16982_v9 = vadd.f32 %v4738_v4, %v16851_v2  ;;  %4978 = vmatprep.subr.bf16.mxu0 %v14431_v8  ;;  %v14480_v8 = vld [vmem:[#allocation15 + $0x98] sm:$0xff]  }
0x21b7   : > { %5031 = vmatprep.subr.bf16.mxu1 %v14464_v18 }
0x21b9   : > { %4979 = vmatpush1.bf16.msra.mxu0 %v14429_v11  ;;  %5032 = vmatpush1.bf16.msra.mxu1 %v14462_v22  ;;  %v14482_v11 = vld [vmem:[#allocation15 + $0xe0] sm:$0xff]  }
0x21ba   : > { %4745 = vadd.xlane.f32.xlu0 %v16982_v9  ;;  %4980 = vmatprep.subr.bf16.mxu0 %v14437_v36  ;;  %v14484_v36 = vld [vmem:[#allocation15 + $0xa0] sm:$0xff]  }
0x21bb   : > { %13173 = vmatprep.subr.bf16.mxu1 %v14466_v12 }
0x21bd   : > { %4981 = vmatpush1.bf16.msra.mxu0 %v14435_v33  ;;  %v14486_v33 = vld [vmem:[#allocation15 + $0xe8] sm:$0xff]  }
0x21be   : > { %4982 = vmatprep.subr.bf16.mxu0 %v14443_v42  ;;  %v14488_v42 = vld [vmem:[#allocation15 + $0xa8] sm:$0xff]  }
0x21c1   : > { %4983 = vmatpush1.bf16.msra.mxu0 %v14441_v50  ;;  %v14490_v50 = vld [vmem:[#allocation15 + $0xf0] sm:$0xff]  }
0x21c2   : > { %4984 = vmatprep.subr.bf16.mxu0 %v14449_v52  ;;  %v14492_v52 = vld [vmem:[#allocation15 + $0xb0] sm:$0xff]  }
0x21c5   : > { %4985 = vmatpush1.bf16.msra.mxu0 %v14447_v35  ;;  %v14494_v35 = vld [vmem:[#allocation15 + $0xf8] sm:$0xff]  }
0x21c6   : > { %4986 = vmatprep.subr.bf16.mxu0 %v14455_v54  ;;  %v14496_v54 = vld [vmem:[#allocation15 + $0xb8] sm:$0xff]  }
0x21c9   : > { %4987 = vmatpush1.bf16.msra.mxu0 %v14453_v55  ;;  %v14498_v55 = vld [vmem:[%s17992_s5 + $0xc0] sm:$0xff]  }
0x21ca   : > { %4988 = vmatprep.subr.bf16.mxu0 %v14461_v57 }
0x21cd   : > { %4989 = vmatpush1.bf16.msra.mxu0 %v14459_v19 }
0x21ce   : > { %13151 = vmatprep.subr.bf16.mxu0 %v14465_v10 }
0x2243   : > { %v4744_v2 = vpop.xlane.xlu0 %4743 }
0x2244   : > { %v4747_v16 = vmul.f32 0.0078125, %v4744_v2  ;;  %v14472_v2 = vld [vmem:[#allocation15 + $0x88] sm:$0xff]  }
0x2246   : > { %v16986_v17 = vsub.f32 %v16978_v63, %v4747_v16  ;;  %v14473_v16 = vld [vmem:[#allocation15 + $0x50] sm:$0xff]  }
0x2247   : > { %v4746_v20 = vpop.xlane.xlu0 %4745 }
0x2248   : > { %v4748_v21 = vmul.f32 0.0078125, %v4746_v20  ;;  %v4751_v24 = vmul.f32 %v16986_v17, %v16986_v17  ;;  %v14475_v20 = vld [vmem:[#allocation15 + $0x10] sm:$0xff]  }
0x224a   : > { %v16991_v38 = vsub.f32 %v16982_v9, %v4748_v21  ;;  %4753 = vadd.xlane.f32.xlu0 %v4751_v24  ;;  %v14476_v21 = vld [vmem:[#allocation15 + $0x90] sm:$0xff]   ;;  %v14477_v24 = vld [vmem:[#allocation15 + $0x58] sm:$0xff]  }
0x224c   : > { %v4752_v27 = vmul.f32 %v16991_v38, %v16991_v38 }
0x224e   : > { %4755 = vadd.xlane.f32.xlu0 %v4752_v27  ;;  %v14479_v27 = vld [vmem:[#allocation15 + $0x18] sm:$0xff]  }
0x22d7   : > { %v4754_v25 = vpop.xlane.xlu0 %4753 }
0x22d8   : > { %v4757_v26 = vmul.f32 0.0078125, %v4754_v25 }
0x22da   : > { %v4759_v29 = vadd.f32 1e-05, %v4757_v26 }
0x22db   : > { %v4756_v23 = vpop.xlane.xlu0 %4755 }
0x22dc   : > { %14989 = vrsqrt.f32 %v4759_v29  ;;  %v4758_v58 = vmul.f32 0.0078125, %v4756_v23 }
0x22de   : > { %v4760_v47 = vadd.f32 1e-05, %v4758_v58 }
0x22e0   : > { %14991 = vrsqrt.f32 %v4760_v47 }
0x22e6   : > { %v14990_v30 = vpop.eup %14989 }
0x22e7   : > { %v4763_v59 = vmul.f32 %v14990_v30, %v16986_v17  ;;  %v14474_v17 = vld [vmem:[#allocation15 + $0xd0] sm:$0xff]  }
0x22e9   : > { %v4771_v60 = vmul.f32 %v12443_v46, %v4763_v59 }
0x22ea   : > { %v14992_v0 = vpop.eup %14991 }
0x22eb   : > { %v4764_v7 = vmul.f32 %v14992_v0, %v16991_v38  ;;  %v4779_v4 = vadd.f32 %v12444_v61, %v4771_v60  ;;  %v14478_v38 = vld [vmem:[#allocation15 + $0xd8] sm:$0xff]  }
0x22ed   : > { %v4772_v62 = vmul.f32 %v12443_v46, %v4764_v7 }
0x22ef   : > { %v4780_v5 = vadd.f32 %v12444_v61, %v4772_v62 }
0x22f1   : > { %v4781_v39 = vpack.c.bf16 %v4780_v5, %v4779_v4 }
0x22f3   : > { %5007 = vmatmul.mubr.bf16.vlgmr.msra.gmra.mrb[52].mxu0 %v4781_v39  ;;  %5050 = vmatmul.mubr.bf16.vlgmr.msra.gmra.mrb[80].mxu1 %v4781_v39 }
0x22f4   : > { %13152 = vmatpush3.bf16.msra.mxu0 %v14467_v48  ;;  %13174 = vmatpush3.bf16.msra.mxu1 %v14468_v13 }
0x22f5   : > { %13153 = vmatprep.subr.bf16.mxu0 %v14469_v14  ;;  %13175 = vmatprep.subr.bf16.mxu1 %v14470_v1 }
0x22f8   : > { %13154 = vmatpush3.bf16.msra.mxu0 %v14471_v15  ;;  %13176 = vmatpush3.bf16.msra.mxu1 %v14472_v2 }
0x22f9   : > { %13155 = vmatprep.subr.bf16.mxu0 %v14473_v16  ;;  %13177 = vmatprep.subr.bf16.mxu1 %v14474_v17 }
0x22fc   : > { %13156 = vmatpush3.bf16.msra.mxu0 %v14475_v20  ;;  %13178 = vmatpush3.bf16.msra.mxu1 %v14476_v21 }
0x22fd   : > { %13157 = vmatprep.subr.bf16.mxu0 %v14477_v24  ;;  %13179 = vmatprep.subr.bf16.mxu1 %v14478_v38 }
0x2300   : > { %13158 = vmatpush3.bf16.msra.mxu0 %v14479_v27  ;;  %13180 = vmatpush3.bf16.msra.mxu1 %v14480_v8 }
0x2301   : > { %13159 = vmatprep.subr.bf16.mxu0 %v14481_v28  ;;  %13181 = vmatprep.subr.bf16.mxu1 %v14482_v11 }
0x2304   : > { %13160 = vmatpush3.bf16.msra.mxu0 %v14483_v31  ;;  %13182 = vmatpush3.bf16.msra.mxu1 %v14484_v36 }
0x2305   : > { %13161 = vmatprep.subr.bf16.mxu0 %v14485_v32  ;;  %13183 = vmatprep.subr.bf16.mxu1 %v14486_v33 }
0x2308   : > { %13162 = vmatpush3.bf16.msra.mxu0 %v14487_v34  ;;  %13184 = vmatpush3.bf16.msra.mxu1 %v14488_v42 }
0x2309   : > { %13163 = vmatprep.subr.bf16.mxu0 %v14489_v49  ;;  %13185 = vmatprep.subr.bf16.mxu1 %v14490_v50 }
0x230c   : > { %13164 = vmatpush3.bf16.msra.mxu0 %v14491_v51  ;;  %13186 = vmatpush3.bf16.msra.mxu1 %v14492_v52 }
0x230d   : > { %13165 = vmatprep.subr.bf16.mxu0 %v14493_v53  ;;  %13187 = vmatprep.subr.bf16.mxu1 %v14494_v35 }
0x2310   : > { %13166 = vmatpush3.bf16.msra.mxu0 %v14495_v3  ;;  %13188 = vmatpush3.bf16.msra.mxu1 %v14496_v54 }
0x2311   : > { %13195 = vmatprep.subr.bf16.mxu0 %v14497_v37  ;;  %13217 = vmatprep.subr.bf16.mxu1 %v14498_v55 }
0x23c6   : > { %v17001_v56 = vpop.f32.mrb[52].mxu0  ;;  %v17003_v57 = vpop.f32.mrb[80].mxu1 }
0x23c7   : > { %v5060_v18 = vmul.f32 %v17001_v56, %v17001_v56  ;;  %v5062_v19 = vmul.f32 %v17003_v57, %v17003_v57  ;;  %v17009_v22 = vpop.f32.mrb[53].mxu0  ;;  %v17011_v25 = vpop.f32.mrb[81].mxu1 }
0x23c8   : > { %v5061_v26 = vmul.f32 %v17009_v22, %v17009_v22  ;;  %v5063_v29 = vmul.f32 %v17011_v25, %v17011_v25  ;;  %v17017_v23 = vpop.f32.mrb[54].mxu0  ;;  %v17019_v58 = vpop.f32.mrb[82].mxu1 }
0x23c9   : > { %v5068_v47 = vmul.f32 %v5060_v18, %v17001_v56  ;;  %v5070_v30 = vmul.f32 %v5062_v19, %v17003_v57  ;;  %v5064_v59 = vmul.f32 %v17017_v23, %v17017_v23  ;;  %v5066_v46 = vmul.f32 %v17019_v58, %v17019_v58  ;;  %v17027_v0 = vpop.f32.mrb[55].mxu0  ;;  %v17029_v7 = vpop.f32.mrb[83].mxu1 }
0x23ca   : > { %v5069_v60 = vmul.f32 %v5061_v26, %v17009_v22  ;;  %v5071_v61 = vmul.f32 %v5063_v29, %v17011_v25  ;;  %v5065_v62 = vmul.f32 %v17027_v0, %v17027_v0  ;;  %v5067_v4 = vmul.f32 %v17029_v7, %v17029_v7 }
0x23cb   : > { %v5076_v5 = vmul.f32 0.044715, %v5068_v47  ;;  %v5078_v39 = vmul.f32 0.044715, %v5070_v30  ;;  %v5072_v10 = vmul.f32 %v5064_v59, %v17017_v23  ;;  %v5074_v12 = vmul.f32 %v5066_v46, %v17019_v58 }
0x23cc   : > { %v5077_v48 = vmul.f32 0.044715, %v5069_v60  ;;  %v5079_v13 = vmul.f32 0.044715, %v5071_v61  ;;  %v5073_v14 = vmul.f32 %v5065_v62, %v17027_v0  ;;  %v5075_v1 = vmul.f32 %v5067_v4, %v17029_v7 }
0x23cd   : > { %v5084_v15 = vadd.f32 %v5076_v5, %v17001_v56  ;;  %v5086_v2 = vadd.f32 %v5078_v39, %v17003_v57  ;;  %v5080_v16 = vmul.f32 0.044715, %v5072_v10  ;;  %v5082_v17 = vmul.f32 0.044715, %v5074_v12 }
0x23ce   : > { %v5085_v20 = vadd.f32 %v5077_v48, %v17009_v22  ;;  %v5087_v21 = vadd.f32 %v5079_v13, %v17011_v25  ;;  %v5081_v24 = vmul.f32 0.044715, %v5073_v14  ;;  %v5083_v38 = vmul.f32 0.044715, %v5075_v1 }
0x23cf   : > { %v5092_v27 = vmul.f32 0.7978846, %v5084_v15  ;;  %v5094_v8 = vmul.f32 0.7978846, %v5086_v2  ;;  %v5088_v28 = vadd.f32 %v5080_v16, %v17017_v23  ;;  %v5090_v11 = vadd.f32 %v5082_v17, %v17019_v58 }
0x23d0   : > { %v5093_v31 = vmul.f32 0.7978846, %v5085_v20  ;;  %v5095_v36 = vmul.f32 0.7978846, %v5087_v21  ;;  %v5089_v32 = vadd.f32 %v5081_v24, %v17027_v0  ;;  %v5091_v33 = vadd.f32 %v5083_v38, %v17029_v7  ;;  %v14499_v21 = vld [vmem:[%s17992_s5] sm:$0xff]   ;;  %v14505_v24 = vld [vmem:[%s17992_s5 + $0x50] sm:$0xff]  }
0x23d1   : > { %14993 = vtanh.f32 %v5092_v27  ;;  %v5096_v34 = vmul.f32 0.7978846, %v5088_v28  ;;  %v5098_v42 = vmul.f32 0.7978846, %v5090_v11  ;;  %v14506_v38 = vld [vmem:[%s17992_s5 + $0xd0] sm:$0xff]   ;;  %v14509_v28 = vld [vmem:[%s17992_s5 + $0x58] sm:$0xff]  }
0x23d2   : > { %14995 = vtanh.f32 %v5094_v8  ;;  %v5097_v49 = vmul.f32 0.7978846, %v5089_v32  ;;  %v5099_v50 = vmul.f32 0.7978846, %v5091_v33  ;;  %v14507_v27 = vld [vmem:[%s17992_s5 + $0x10] sm:$0xff]   ;;  %v14510_v11 = vld [vmem:[%s17992_s5 + $0xd8] sm:$0xff]  }
0x23d3   : > { %14997 = vtanh.f32 %v5093_v31  ;;  %v14508_v8 = vld [vmem:[%s17992_s5 + $0x90] sm:$0xff]   ;;  %v14511_v31 = vld [vmem:[%s17992_s5 + $0x18] sm:$0xff]   ;;  %v14513_v32 = vld [vmem:[%s17992_s5 + $0x60] sm:$0xff]  }
0x23d4   : > { %14999 = vtanh.f32 %v5095_v36  ;;  %v14512_v36 = vld [vmem:[%s17992_s5 + $0x98] sm:$0xff]   ;;  %v14514_v33 = vld [vmem:[%s17992_s5 + $0xe0] sm:$0xff]  }
0x23d5   : > { %15001 = vtanh.f32 %v5096_v34  ;;  %v14515_v34 = vld [vmem:[%s17992_s5 + $0x20] sm:$0xff]  }
0x23d6   : > { %15003 = vtanh.f32 %v5098_v42  ;;  %v14516_v42 = vld [vmem:[%s17992_s5 + $0xa0] sm:$0xff]  }
0x23d7   : > { %15005 = vtanh.f32 %v5097_v49  ;;  %v14517_v49 = vld [vmem:[%s17992_s5 + $0x68] sm:$0xff]  }
0x23d8   : > { %15007 = vtanh.f32 %v5099_v50  ;;  %v14518_v50 = vld [vmem:[%s17992_s5 + $0xe8] sm:$0xff]  }
0x23db   : > { %v14994_v51 = vpop.eup %14993 }
0x23dc   : > { %v14996_v52 = vpop.eup %14995  ;;  %v5108_v53 = vadd.f32 1.0, %v14994_v51  ;;  %v14519_v51 = vld [vmem:[%s17992_s5 + $0x28] sm:$0xff]  }
0x23dd   : > { %v14998_v35 = vpop.eup %14997  ;;  %v5110_v3 = vadd.f32 1.0, %v14996_v52  ;;  %v14520_v52 = vld [vmem:[%s17992_s5 + $0xa8] sm:$0xff]  }
0x23de   : > { %v15000_v54 = vpop.eup %14999  ;;  %v5109_v37 = vadd.f32 1.0, %v14998_v35  ;;  %v5116_v26 = vmul.f32 0.5, %v5108_v53  ;;  %v14521_v53 = vld [vmem:[%s17992_s5 + $0x70] sm:$0xff]  }
0x23df   : > { %v15002_v55 = vpop.eup %15001  ;;  %v5111_v18 = vadd.f32 1.0, %v15000_v54  ;;  %v5118_v30 = vmul.f32 0.5, %v5110_v3  ;;  %v14522_v35 = vld [vmem:[%s17992_s5 + $0xf0] sm:$0xff]  }
0x23e0   : > { %v15004_v19 = vpop.eup %15003  ;;  %v5112_v29 = vadd.f32 1.0, %v15002_v55  ;;  %v5117_v60 = vmul.f32 0.5, %v5109_v37  ;;  %v5124_v10 = vmul.f32 %v5116_v26, %v17001_v56  ;;  %v14523_v3 = vld [vmem:[%s17992_s5 + $0x30] sm:$0xff]   ;;  %v14525_v37 = vld [vmem:[%s17992_s5 + $0x78] sm:$0xff]   ;;  %v14529_v26 = vld [vmem:[%s17992_s5 + $0x140] sm:$0xff]  }
0x23e1   : > { %v15006_v47 = vpop.eup %15005  ;;  %v5114_v59 = vadd.f32 1.0, %v15004_v19  ;;  %v5119_v4 = vmul.f32 0.5, %v5111_v18  ;;  %v5126_v13 = vmul.f32 %v5118_v30, %v17003_v57  ;;  %v14524_v54 = vld [vmem:[%s17992_s5 + $0xb0] sm:$0xff]   ;;  %v14526_v55 = vld [vmem:[%s17992_s5 + $0xf8] sm:$0xff]  }
0x23e2   : > { %v15008_v46 = vpop.eup %15007  ;;  %v5120_v61 = vmul.f32 0.5, %v5112_v29  ;;  %v5113_v62 = vadd.f32 1.0, %v15006_v47  ;;  %v5125_v15 = vmul.f32 %v5117_v60, %v17009_v22  ;;  %v14501_v22 = vld [vmem:[%s17992_s5 + $0x48] sm:$0xff]   ;;  %v14527_v18 = vld [vmem:[%s17992_s5 + $0x38] sm:$0xff]   ;;  %v14530_v29 = vld [vmem:[%s17992_s5 + $0x1c0] sm:$0xff]  }
0x23e3   : > { %v5122_v5 = vmul.f32 0.5, %v5114_v59  ;;  %v5115_v39 = vadd.f32 1.0, %v15008_v46  ;;  %v5127_v17 = vmul.f32 %v5119_v4, %v17011_v25  ;;  %v14502_v25 = vld [vmem:[%s17992_s5 + $0xc8] sm:$0xff]   ;;  %v14528_v19 = vld [vmem:[%s17992_s5 + $0xb8] sm:$0xff]   ;;  %v15939_v47 = vmov 1966171168  }
0x23e4   : > { %v5128_v12 = vmul.f32 %v5120_v61, %v17017_v23  ;;  %v5121_v48 = vmul.f32 0.5, %v5113_v62  ;;  %v5483_v30 = vunpack.c.l.s4 %v15939_v47 }
0x23e5   : > { %v5130_v14 = vmul.f32 %v5122_v5, %v17019_v58  ;;  %v5123_v1 = vmul.f32 0.5, %v5115_v39  ;;  %v14500_v58 = vld [vmem:[%s17992_s5 + $0x80] sm:$0xff]  }
0x23e6   : > { %v5129_v2 = vmul.f32 %v5121_v48, %v17027_v0  ;;  %v5132_v16 = vpack.c.bf16 %v5128_v12, %v5124_v10  ;;  %v14503_v0 = vld [vmem:[%s17992_s5 + $0x8] sm:$0xff]   ;;  %v5484_v61 = vunpack.c.0.s8 %v5483_v30 }
0x23e7   : > { %v5131_v20 = vmul.f32 %v5123_v1, %v17029_v7  ;;  %v5134_v56 = vpack.c.bf16 %v5130_v14, %v5126_v13  ;;  %v14504_v7 = vld [vmem:[%s17992_s5 + $0x88] sm:$0xff]  }
0x23e8   : > { %v5133_v23 = vpack.c.bf16 %v5129_v2, %v5125_v15  ;;  %v5487_v1 = vsub.s32 %v5484_v61, %v16567_v43  ;;  %v14533_v61 = vld [vmem:[%s17992_s5 + $0x148] sm:$0xff]   ;;  %v14540_v2 = vld [vmem:[%s17992_s5 + $0x190] sm:$0xff]  }
0x23e9   : > { %v5135_v57 = vpack.c.bf16 %v5131_v20, %v5127_v17 }
0x23ea   : > { %5424 = vmatprep.mubr.bf16.mxu0 %v5133_v23 }
0x23eb   : > { %5465 = vmatprep.mubr.bf16.mxu1 %v5135_v57  ;;  %5425 = vmatmul.mubr.bf16.vlgmr.msra.gmra.mrb[56].mxu0 %v5132_v16 }
0x23ec   : > { %5466 = vmatmul.mubr.bf16.vlgmr.msra.gmra.mrb[84].mxu1 %v5134_v56  ;;  %13196 = vmatpush3.bf16.msra.mxu0 %v14499_v21 }
0x23ed   : > { %13218 = vmatpush3.bf16.msra.mxu1 %v14500_v58  ;;  %13197 = vmatprep.subr.bf16.mxu0 %v14501_v22 }
0x23ee   : > { %13219 = vmatprep.subr.bf16.mxu1 %v14502_v25 }
0x23f0   : > { %13198 = vmatpush3.bf16.msra.mxu0 %v14503_v0 }
0x23f1   : > { %13220 = vmatpush3.bf16.msra.mxu1 %v14504_v7  ;;  %13199 = vmatprep.subr.bf16.mxu0 %v14505_v24 }
0x23f2   : > { %13221 = vmatprep.subr.bf16.mxu1 %v14506_v38 }
0x23f4   : > { %13200 = vmatpush3.bf16.msra.mxu0 %v14507_v27 }
0x23f5   : > { %13222 = vmatpush3.bf16.msra.mxu1 %v14508_v8  ;;  %13201 = vmatprep.subr.bf16.mxu0 %v14509_v28 }
0x23f6   : > { %13223 = vmatprep.subr.bf16.mxu1 %v14510_v11 }
0x23f8   : > { %13202 = vmatpush3.bf16.msra.mxu0 %v14511_v31 }
0x23f9   : > { %13224 = vmatpush3.bf16.msra.mxu1 %v14512_v36  ;;  %13203 = vmatprep.subr.bf16.mxu0 %v14513_v32 }
0x23fa   : > { %13225 = vmatprep.subr.bf16.mxu1 %v14514_v33 }
0x23fc   : > { %13204 = vmatpush3.bf16.msra.mxu0 %v14515_v34 }
0x23fd   : > { %13226 = vmatpush3.bf16.msra.mxu1 %v14516_v42  ;;  %13205 = vmatprep.subr.bf16.mxu0 %v14517_v49 }
0x23fe   : > { %13227 = vmatprep.subr.bf16.mxu1 %v14518_v50 }
0x2400   : > { %13206 = vmatpush3.bf16.msra.mxu0 %v14519_v51  ;;  %v5628_v51 = vsub.s32 3, %v16567_v43 }
0x2401   : > { %13228 = vmatpush3.bf16.msra.mxu1 %v14520_v52  ;;  %13207 = vmatprep.subr.bf16.mxu0 %v14521_v53  ;;  %v5624_v52 = vsub.s32 2, %v16567_v43  ;;  %v5636_v53 = vsub.s32 5, %v16567_v43 }
0x2402   : > { %13229 = vmatprep.subr.bf16.mxu1 %v14522_v35  ;;  %v5644_v35 = vsub.s32 7, %v16567_v43 }
0x2404   : > { %13208 = vmatpush3.bf16.msra.mxu0 %v14523_v3 }
0x2405   : > { %13230 = vmatpush3.bf16.msra.mxu1 %v14524_v54  ;;  %13209 = vmatprep.subr.bf16.mxu0 %v14525_v37 }
0x2406   : > { %13231 = vmatprep.subr.bf16.mxu1 %v14526_v55 }
0x2408   : > { %13210 = vmatpush3.bf16.msra.mxu0 %v14527_v18 }
0x2409   : > { %13232 = vmatpush3.bf16.msra.mxu1 %v14528_v19  ;;  %13239 = vmatprep.subr.bf16.mxu0 %v14529_v26 }
0x240a   : > { %13261 = vmatprep.subr.bf16.mxu1 %v14530_v29 }
0x24be   : > { %v13167_v59 = vpop.f32.mrb[56].mxu0 }
0x24bf   : > { %v13189_v46 = vpop.f32.mrb[84].mxu1  ;;  %v13168_v60 = vpop.f32.mrb[57].mxu0 }
0x24c0   : > { %v13169_v62 = vadd.f32 %v13168_v60, %v13167_v59  ;;  %v13190_v4 = vpop.f32.mrb[85].mxu1  ;;  %v13170_v5 = vpop.f32.mrb[58].mxu0  ;;  %v14532_v60 = vld [vmem:[%s17992_s5 + $0x180] sm:$0xff]  }
0x24c1   : > { %v13191_v39 = vadd.f32 %v13190_v4, %v13189_v46  ;;  %v13192_v10 = vpop.f32.mrb[86].mxu1  ;;  %v13171_v12 = vpop.f32.mrb[59].mxu0  ;;  %v14531_v46 = vld [vmem:[%s17992_s5 + $0x100] sm:$0xff]  }
0x24c2   : > { %v13172_v48 = vadd.f32 %v13171_v12, %v13170_v5  ;;  %v13193_v13 = vpop.f32.mrb[87].mxu1  ;;  %v14536_v12 = vld [vmem:[%s17992_s5 + $0x188] sm:$0xff]  }
0x24c3   : > { %v5468_v14 = vadd.f32 %v13191_v39, %v13169_v62  ;;  %v13194_v15 = vadd.f32 %v13193_v13, %v13192_v10  ;;  %v14534_v62 = vld [vmem:[%s17992_s5 + $0x1c8] sm:$0xff]   ;;  %v14537_v13 = vld [vmem:[%s17992_s5 + $0x150] sm:$0xff]  }
0x24c4   : > { %v14535_v10 = vld [vmem:[%s17992_s5 + $0x108] sm:$0xff]  }
0x24c5   : > { %v5474_v16 = vadd.f32 %v5468_v14, %v16978_v63  ;;  %v5471_v17 = vadd.f32 %v13194_v15, %v13172_v48  ;;  %v5640_v48 = vsub.s32 6, %v16567_v43  ;;  %v14538_v14 = vld [vmem:[%s17992_s5 + $0x1d0] sm:$0xff]  }
0x24c6   : > { %v14539_v15 = vld [vmem:[%s17992_s5 + $0x110] sm:$0xff]  }
0x24c7   : > { %5480 = vst.msk [vmem:[#allocation2] sm:$0x1] %vm17091_vm3, %v5474_v16  ;;  %v5488_v20 = vrot.slane %v5474_v16, %v5487_v1  ;;  %v5512_v56 = vcombine.high %v5474_v16, %v5474_v16  ;;  %v5475_v23 = vadd.f32 %v5471_v17, %v16982_v9  ;;  %v14541_v16 = vld [vmem:[%s17992_s5 + $0x158] sm:$0xff]  }
0x24c8   : > { %v14542_v17 = vld [vmem:[%s17992_s5 + $0x1d8] sm:$0xff]  }
0x24c9   : > { %v5489_v21 = vcombine.high %v5488_v20, %v5488_v20  ;;  %v5496_v57 = vrot.slane %v5488_v20, %v5487_v1  ;;  %v5519_v58 = vrot.slane %v5512_v56, %v5487_v1  ;;  %5545 = vst.msk [vmem:[#allocation2 + $0x8] sm:$0x1] %vm17091_vm3, %v5475_v23  ;;  %v5553_v40 = vrot.slane %v5475_v23, %v5487_v1  ;;  %v14543_v20 = vld [vmem:[%s17992_s5 + $0x118] sm:$0xff]  }
0x24ca   : > { %v5577_v22 = vcombine.high %v5475_v23, %v5475_v23  ;;  %v14544_v56 = vld [vmem:[%s17992_s5 + $0x198] sm:$0xff]   ;;  %v14545_v23 = vld [vmem:[%s17992_s5 + $0x160] sm:$0xff]  }
0x24cb   : > { %v5503_v25 = vrot.slane %v5489_v21, %v5487_v1  ;;  %v5506_v0 = vcombine.high %v5496_v57, %v5496_v57  ;;  %v5526_v7 = vrot.slane %v5519_v58, %v5487_v1  ;;  %v5529_v63 = vcombine.high %v5519_v58, %v5519_v58  ;;  %v14546_v21 = vld [vmem:[%s17992_s5 + $0x1e0] sm:$0xff]  }
0x24cc   : > { %v5554_v24 = vcombine.high %v5553_v40, %v5553_v40  ;;  %v5561_v38 = vrot.slane %v5553_v40, %v5487_v1  ;;  %v5584_v27 = vrot.slane %v5577_v22, %v5487_v1  ;;  %v14547_v57 = vld [vmem:[%s17992_s5 + $0x120] sm:$0xff]   ;;  %v14549_v40 = vld [vmem:[%s17992_s5 + $0x168] sm:$0xff]  }
0x24cd   : > { %5505 = vst.msk [vmem:[#allocation2 + $0x1] sm:$0x1] %vm17091_vm3, %v5503_v25  ;;  %5508 = vst.msk [vmem:[#allocation2 + $0x2] sm:$0x1] %vm17091_vm3, %v5506_v0  ;;  %v5509_v9 = vcombine.high %v5503_v25, %v5503_v25  ;;  %v5536_v8 = vrot.slane %v5529_v63, %v5487_v1  ;;  %v5539_v28 = vcombine.high %v5526_v7, %v5526_v7  ;;  %v14548_v58 = vld [vmem:[%s17992_s5 + $0x1a0] sm:$0xff]   ;;  %v14550_v22 = vld [vmem:[%s17992_s5 + $0x1e8] sm:$0xff]  }
0x24ce   : > { %5528 = vst.msk [vmem:[#allocation2 + $0x4] sm:$0x1] %vm17091_vm3, %v5526_v7  ;;  %v5568_v11 = vrot.slane %v5554_v24, %v5487_v1  ;;  %v5571_v31 = vcombine.high %v5561_v38, %v5561_v38  ;;  %v5591_v36 = vrot.slane %v5584_v27, %v5487_v1  ;;  %v5594_v32 = vcombine.high %v5584_v27, %v5584_v27  ;;  %v14551_v25 = vld [vmem:[%s17992_s5 + $0x128] sm:$0xff]   ;;  %v14553_v7 = vld [vmem:[%s17992_s5 + $0x170] sm:$0xff]   ;;  %v14557_v27 = vld [vmem:[%s17992_s5 + $0x178] sm:$0xff]  }
0x24cf   : > { %5511 = vst.msk [vmem:[#allocation2 + $0x3] sm:$0x1] %vm17091_vm3, %v5509_v9  ;;  %5538 = vst.msk [vmem:[#allocation2 + $0x5] sm:$0x1] %vm17091_vm3, %v5536_v8  ;;  %v5542_v33 = vcombine.high %v5536_v8, %v5536_v8  ;;  %v14552_v0 = vld [vmem:[%s17992_s5 + $0x1a8] sm:$0xff]   ;;  %v14554_v63 = vld [vmem:[%s17992_s5 + $0x1f0] sm:$0xff]  }
0x24d0   : > { %5541 = vst.msk [vmem:[#allocation2 + $0x6] sm:$0x1] %vm17091_vm3, %v5539_v28  ;;  %5570 = vst.msk [vmem:[#allocation2 + $0x9] sm:$0x1] %vm17091_vm3, %v5568_v11  ;;  %v5574_v34 = vcombine.high %v5568_v11, %v5568_v11  ;;  %v5601_v42 = vrot.slane %v5594_v32, %v5487_v1  ;;  %v5604_v49 = vcombine.high %v5591_v36, %v5591_v36  ;;  %v14555_v24 = vld [vmem:[%s17992_s5 + $0x130] sm:$0xff]   ;;  %v14558_v9 = vld [vmem:[%s17992_s5 + $0x1f8] sm:$0xff]  }
0x24d1   : > { %5573 = vst.msk [vmem:[#allocation2 + $0xa] sm:$0x1] %vm17091_vm3, %v5571_v31  ;;  %5593 = vst.msk [vmem:[#allocation2 + $0xc] sm:$0x1] %vm17091_vm3, %v5591_v36  ;;  %v14556_v38 = vld [vmem:[%s17992_s5 + $0x1b0] sm:$0xff]   ;;  %v5632_v8 = vsub.s32 4, %v16567_v43 }
0x24d2   : > { %5544 = vst.msk [vmem:[#allocation2 + $0x7] sm:$0x1] %vm17091_vm3, %v5542_v33  ;;  %5576 = vst.msk [vmem:[#allocation2 + $0xb] sm:$0x1] %vm17091_vm3, %v5574_v34  ;;  %v5607_v50 = vcombine.high %v5601_v42, %v5601_v42  ;;  %v14559_v28 = vld [vmem:[%s17992_s5 + $0x138] sm:$0xff]   ;;  %v14561_v32 = vld [vmem:[%s17992_s5 + $0x240] sm:$0xff]  }
0x24d3   : > { %5603 = vst.msk [vmem:[#allocation2 + $0xd] sm:$0x1] %vm17091_vm3, %v5601_v42  ;;  %5606 = vst.msk [vmem:[#allocation2 + $0xe] sm:$0x1] %vm17091_vm3, %v5604_v49  ;;  %v14560_v11 = vld [vmem:[%s17992_s5 + $0x1b8] sm:$0xff]   ;;  %v14562_v33 = vld [vmem:[%s17992_s5 + $0x2c0] sm:$0xff]  }
0x24d4   : > { %5609 = vst.msk [vmem:[#allocation2 + $0xf] sm:$0x1] %vm17091_vm3, %v5607_v50  ;;  %v14563_v49 = vld [vmem:[%s17992_s5 + $0x200] sm:$0xff]  }
0x24d5   : > { %v7055_v43 = vld [vmem:[%s17995_s16] sm:$0xff] }
0x24d9   : > { %v17133_v3 = vld [vmem:[#allocation2] sm:$0xff] }
0x24da   : > { %v5621_v54 = vrot.slane %v17133_v3, %v16573_v45  ;;  %v5629_v37 = vrot.slane %v17133_v3, %v5628_v51  ;;  %v5617_v55 = vrot.slane %v17133_v3, %v16570_v44  ;;  %v5625_v18 = vrot.slane %v17133_v3, %v5624_v52 }
0x24db   : > { %v5637_v19 = vrot.slane %v17133_v3, %v5636_v53  ;;  %v5645_v26 = vrot.slane %v17133_v3, %v5644_v35  ;;  %v17155_v39 = vld [vmem:[#allocation2 + $0x8] sm:$0xff]  ;;  %v5633_v31 = vrot.slane %v17133_v3, %v5632_v8  ;;  %v5641_v36 = vrot.slane %v17133_v3, %v5640_v48  ;;  %v14564_v3 = vld [vmem:[%s17992_s5 + $0x280] sm:$0xff]  }
0x24dc   : > { %v5695_v29 = vpack.c.bf16 %v5621_v54, %v5621_v54  ;;  %v5697_v47 = vpack.c.bf16 %v5629_v37, %v5629_v37  ;;  %v5694_v30 = vpack.c.bf16 %v5617_v55, %v5617_v55  ;;  %v5696_v59 = vpack.c.bf16 %v5625_v18, %v5625_v18  ;;  %v14565_v55 = vld [vmem:[%s17992_s5 + $0x248] sm:$0xff]  }
0x24dd   : > { %v5699_v4 = vpack.c.bf16 %v5637_v19, %v5637_v19  ;;  %v5701_v5 = vpack.c.bf16 %v5645_v26, %v5645_v26  ;;  %v17163_v1 = vrot.slane %v17155_v39, %v5640_v48  ;;  %v5653_v34 = vrot.slane %v17155_v39, %v16573_v45  ;;  %v14566_v45 = vld [vmem:[%s17992_s5 + $0x2c8] sm:$0xff]   ;;  %v14569_v26 = vld [vmem:[%s17992_s5 + $0x250] sm:$0xff]  }
0x24de   : > { %6766 = vmatprep.mubr.bf16.mxu0 %v5695_v29  ;;  %6806 = vmatprep.mubr.bf16.mxu1 %v5697_v47  ;;  %v5661_v42 = vrot.slane %v17155_v39, %v5628_v51  ;;  %v5698_v50 = vpack.c.bf16 %v5633_v31, %v5633_v31  ;;  %v5700_v54 = vpack.c.bf16 %v5641_v36, %v5641_v36  ;;  %v14567_v18 = vld [vmem:[%s17992_s5 + $0x208] sm:$0xff]   ;;  %v14570_v29 = vld [vmem:[%s17992_s5 + $0x2d0] sm:$0xff]  }
0x24df   : > { %6767 = vmatmul.mubr.bf16.vlgmr.msra.gmra.mrb[60].mxu0 %v5694_v30  ;;  %6807 = vmatmul.mubr.bf16.vlgmr.msra.gmra.mrb[88].mxu1 %v5696_v59  ;;  %v5703_v37 = vpack.c.bf16 %v5653_v34, %v5653_v34  ;;  %v14568_v19 = vld [vmem:[%s17992_s5 + $0x288] sm:$0xff]   ;;  %v14571_v47 = vld [vmem:[%s17992_s5 + $0x210] sm:$0xff]   ;;  %v14573_v59 = vld [vmem:[%s17992_s5 + $0x258] sm:$0xff]  }
0x24e0   : > { %13240 = vmatpush3.bf16.msra.mxu0 %v14531_v46  ;;  %13262 = vmatpush3.bf16.msra.mxu1 %v14532_v60  ;;  %v5705_v51 = vpack.c.bf16 %v5661_v42, %v5661_v42  ;;  %v14572_v30 = vld [vmem:[%s17992_s5 + $0x290] sm:$0xff]   ;;  %v14574_v46 = vld [vmem:[%s17992_s5 + $0x2d8] sm:$0xff]   ;;  %v14582_v48 = vld [vmem:[%s17992_s5 + $0x2e8] sm:$0xff]  }
0x24e1   : > { %6846 = vmatprep.mubr.bf16.mxu0 %v5699_v4  ;;  %6886 = vmatprep.mubr.bf16.mxu1 %v5701_v5  ;;  %v14575_v60 = vld [vmem:[%s17992_s5 + $0x218] sm:$0xff]   ;;  %v14578_v4 = vld [vmem:[%s17992_s5 + $0x2e0] sm:$0xff]   ;;  %v14603_v31 = vld [vmem:[%s17992_s5 + $0x310] sm:$0xff]  }
0x24e2   : > { %13241 = vmatprep.subr.bf16.mxu0 %v14533_v61  ;;  %13263 = vmatprep.subr.bf16.mxu1 %v14534_v62  ;;  %v14576_v61 = vld [vmem:[%s17992_s5 + $0x298] sm:$0xff]   ;;  %v14577_v62 = vld [vmem:[%s17992_s5 + $0x260] sm:$0xff]   ;;  %v14604_v36 = vld [vmem:[%s17992_s5 + $0x390] sm:$0xff]  }
0x24e3   : > { %v14579_v5 = vld [vmem:[%s17992_s5 + $0x220] sm:$0xff]   ;;  %v14607_v34 = vld [vmem:[%s17992_s5 + $0x318] sm:$0xff]  }
0x24e4   : > { %13242 = vmatpush3.bf16.msra.mxu0 %v14535_v10  ;;  %13264 = vmatpush3.bf16.msra.mxu1 %v14536_v12  ;;  %v14580_v10 = vld [vmem:[%s17992_s5 + $0x2a0] sm:$0xff]   ;;  %v14581_v12 = vld [vmem:[%s17992_s5 + $0x268] sm:$0xff]   ;;  %v14608_v42 = vld [vmem:[%s17992_s5 + $0x398] sm:$0xff]  }
0x24e5   : > { %13243 = vmatprep.subr.bf16.mxu0 %v14537_v13  ;;  %13265 = vmatprep.subr.bf16.mxu1 %v14538_v14  ;;  %v14583_v13 = vld [vmem:[%s17992_s5 + $0x228] sm:$0xff]  }
0x24e6   : > { %v14584_v14 = vld [vmem:[%s17992_s5 + $0x2a8] sm:$0xff]  }
0x24e8   : > { %13244 = vmatpush3.bf16.msra.mxu0 %v14539_v15  ;;  %13266 = vmatpush3.bf16.msra.mxu1 %v14540_v2  ;;  %v14585_v15 = vld [vmem:[%s17992_s5 + $0x270] sm:$0xff]  }
0x24e9   : > { %13245 = vmatprep.subr.bf16.mxu0 %v14541_v16  ;;  %13267 = vmatprep.subr.bf16.mxu1 %v14542_v17  ;;  %v14586_v2 = vld [vmem:[%s17992_s5 + $0x2f0] sm:$0xff]  }
0x24ea   : > { %v14587_v16 = vld [vmem:[%s17992_s5 + $0x230] sm:$0xff]  }
0x24eb   : > { %v14588_v17 = vld [vmem:[%s17992_s5 + $0x2b0] sm:$0xff]  }
0x24ec   : > { %13246 = vmatpush3.bf16.msra.mxu0 %v14543_v20  ;;  %13268 = vmatpush3.bf16.msra.mxu1 %v14544_v56  ;;  %v14589_v20 = vld [vmem:[%s17992_s5 + $0x278] sm:$0xff]  }
0x24ed   : > { %13247 = vmatprep.subr.bf16.mxu0 %v14545_v23  ;;  %13269 = vmatprep.subr.bf16.mxu1 %v14546_v21  ;;  %v14590_v56 = vld [vmem:[%s17992_s5 + $0x2f8] sm:$0xff]  }
0x24ee   : > { %v14591_v23 = vld [vmem:[%s17992_s5 + $0x238] sm:$0xff]  }
0x24ef   : > { %v14592_v21 = vld [vmem:[%s17992_s5 + $0x2b8] sm:$0xff]  }
0x24f0   : > { %13248 = vmatpush3.bf16.msra.mxu0 %v14547_v57  ;;  %13270 = vmatpush3.bf16.msra.mxu1 %v14548_v58  ;;  %v5649_v57 = vrot.slane %v17155_v39, %v16570_v44  ;;  %v14593_v58 = vld [vmem:[%s17992_s5 + $0x340] sm:$0xff]  }
0x24f1   : > { %13249 = vmatprep.subr.bf16.mxu0 %v14549_v40  ;;  %13271 = vmatprep.subr.bf16.mxu1 %v14550_v22  ;;  %v5657_v40 = vrot.slane %v17155_v39, %v5624_v52  ;;  %v14594_v22 = vld [vmem:[%s17992_s5 + $0x3c0] sm:$0xff]   ;;  %v14597_v52 = vld [vmem:[%s17992_s5 + $0x348] sm:$0xff]  }
0x24f2   : > { %v5702_v44 = vpack.c.bf16 %v5649_v57, %v5649_v57 }
0x24f4   : > { %13250 = vmatpush3.bf16.msra.mxu0 %v14551_v25  ;;  %13272 = vmatpush3.bf16.msra.mxu1 %v14552_v0  ;;  %v5669_v25 = vrot.slane %v17155_v39, %v5636_v53  ;;  %v14595_v0 = vld [vmem:[%s17992_s5 + $0x300] sm:$0xff]  }
0x24f5   : > { %13251 = vmatprep.subr.bf16.mxu0 %v14553_v7  ;;  %13273 = vmatprep.subr.bf16.mxu1 %v14554_v63  ;;  %v5677_v7 = vrot.slane %v17155_v39, %v5644_v35  ;;  %v14596_v63 = vld [vmem:[%s17992_s5 + $0x380] sm:$0xff]   ;;  %v14599_v35 = vld [vmem:[%s17992_s5 + $0x308] sm:$0xff]  }
0x24f6   : > { %v5707_v53 = vpack.c.bf16 %v5669_v25, %v5669_v25  ;;  %v7111_v25 = vld [vmem:[%s17995_s16 + $0x1c0] sm:$0xff] }
0x24f8   : > { %13252 = vmatpush3.bf16.msra.mxu0 %v14555_v24  ;;  %13274 = vmatpush3.bf16.msra.mxu1 %v14556_v38  ;;  %v5704_v24 = vpack.c.bf16 %v5657_v40, %v5657_v40  ;;  %v14598_v38 = vld [vmem:[%s17992_s5 + $0x3c8] sm:$0xff]  }
0x24f9   : > { %13253 = vmatprep.subr.bf16.mxu0 %v14557_v27  ;;  %13275 = vmatprep.subr.bf16.mxu1 %v14558_v9  ;;  %v5709_v27 = vpack.c.bf16 %v5677_v7, %v5677_v7  ;;  %v14600_v9 = vld [vmem:[%s17992_s5 + $0x388] sm:$0xff]  }
0x24fa   : > { %v7112_v7 = vld [vmem:[%s17995_s16 + $0x1c8] sm:$0xff] }
0x24fc   : > { %13254 = vmatpush3.bf16.msra.mxu0 %v14559_v28  ;;  %13276 = vmatpush3.bf16.msra.mxu1 %v14560_v11  ;;  %v14601_v28 = vld [vmem:[%s17992_s5 + $0x350] sm:$0xff]  }
0x24fd   : > { %13283 = vmatprep.subr.bf16.mxu0 %v14561_v32  ;;  %13305 = vmatprep.subr.bf16.mxu1 %v14562_v33  ;;  %v14602_v11 = vld [vmem:[%s17992_s5 + $0x3d0] sm:$0xff]   ;;  %v14605_v32 = vld [vmem:[%s17992_s5 + $0x358] sm:$0xff]  }
0x24fe   : > { %v14606_v33 = vld [vmem:[%s17992_s5 + $0x3d8] sm:$0xff]  }
0x24ff   : > { %6847 = vmatmul.mubr.bf16.vlgmr.msra.gmra.mrb[64].mxu0 %v5698_v50  ;;  %6887 = vmatmul.mubr.bf16.vlgmr.msra.gmra.mrb[92].mxu1 %v5700_v54  ;;  %v14610_v50 = vld [vmem:[%s17992_s5 + $0x3e0] sm:$0xff]  }
0x2500   : > { %13284 = vmatpush3.bf16.msra.mxu0 %v14563_v49  ;;  %6926 = vmatprep.mubr.bf16.mxu0 %v5703_v37  ;;  %v14609_v49 = vld [vmem:[%s17992_s5 + $0x360] sm:$0xff]   ;;  %v14613_v37 = vld [vmem:[%s17992_s5 + $0x368] sm:$0xff]  }
0x2501   : > { %13306 = vmatpush3.bf16.msra.mxu1 %v14564_v3  ;;  %6966 = vmatprep.mubr.bf16.mxu1 %v5705_v51  ;;  %v14611_v54 = vld [vmem:[%s17992_s5 + $0x320] sm:$0xff]   ;;  %v14616_v51 = vld [vmem:[%s17992_s5 + $0x3a8] sm:$0xff]  }
0x2502   : > { %13285 = vmatprep.subr.bf16.mxu0 %v14565_v55  ;;  %13307 = vmatprep.subr.bf16.mxu1 %v14566_v45  ;;  %v14612_v3 = vld [vmem:[%s17992_s5 + $0x3a0] sm:$0xff]   ;;  %v14614_v55 = vld [vmem:[%s17992_s5 + $0x3e8] sm:$0xff]  }
0x2503   : > { %v14615_v45 = vld [vmem:[%s17992_s5 + $0x328] sm:$0xff]  }
0x2504   : > { %13286 = vmatpush3.bf16.msra.mxu0 %v14567_v18  ;;  %v14617_v18 = vld [vmem:[%s17992_s5 + $0x370] sm:$0xff]  }
0x2505   : > { %13308 = vmatpush3.bf16.msra.mxu1 %v14568_v19  ;;  %13287 = vmatprep.subr.bf16.mxu0 %v14569_v26  ;;  %v14618_v19 = vld [vmem:[%s17992_s5 + $0x3f0] sm:$0xff]  }
0x2506   : > { %13309 = vmatprep.subr.bf16.mxu1 %v14570_v29  ;;  %v14619_v26 = vld [vmem:[%s17992_s5 + $0x330] sm:$0xff]  }
0x2507   : > { %v14620_v29 = vld [vmem:[%s17992_s5 + $0x3b0] sm:$0xff]  }
0x2508   : > { %13288 = vmatpush3.bf16.msra.mxu0 %v14571_v47  ;;  %v14621_v47 = vld [vmem:[%s17992_s5 + $0x378] sm:$0xff]  }
0x2509   : > { %13310 = vmatpush3.bf16.msra.mxu1 %v14572_v30  ;;  %13289 = vmatprep.subr.bf16.mxu0 %v14573_v59  ;;  %v14622_v30 = vld [vmem:[%s17992_s5 + $0x3f8] sm:$0xff]  }
0x250a   : > { %13311 = vmatprep.subr.bf16.mxu1 %v14574_v46  ;;  %v14623_v59 = vld [vmem:[%s17992_s5 + $0x338] sm:$0xff]  }
0x250b   : > { %v14624_v46 = vld [vmem:[%s17992_s5 + $0x3b8] sm:$0xff]  }
0x250c   : > { %13290 = vmatpush3.bf16.msra.mxu0 %v14575_v60  ;;  %v5665_v60 = vrot.slane %v17155_v39, %v5632_v8  ;;  %v7063_v39 = vld [vmem:[%s17995_s16 + $0x40] sm:$0xff]  ;;  %v7056_v8 = vld [vmem:[%s17995_s16 + $0x8] sm:$0xff] }
0x250d   : > { %13312 = vmatpush3.bf16.msra.mxu1 %v14576_v61  ;;  %13291 = vmatprep.subr.bf16.mxu0 %v14577_v62  ;;  %v5708_v62 = vpack.c.bf16 %v17163_v1, %v17163_v1  ;;  %v7079_v1 = vld [vmem:[%s17995_s16 + $0xc0] sm:$0xff] }
0x250e   : > { %13313 = vmatprep.subr.bf16.mxu1 %v14578_v4  ;;  %v5706_v61 = vpack.c.bf16 %v5665_v60, %v5665_v60  ;;  %v12637_v4 = vcombine.low %v7055_v43, %v7063_v39 }
0x2510   : > { %13292 = vmatpush3.bf16.msra.mxu0 %v14579_v5  ;;  %v12638_v5 = vcombine.high %v7055_v43, %v7063_v39  ;;  %v17312_v43 = vld [vmem:[%s17995_s16 + $0x10] sm:$0xff] }
0x2511   : > { %13314 = vmatpush3.bf16.msra.mxu1 %v14580_v10  ;;  %13293 = vmatprep.subr.bf16.mxu0 %v14581_v12  ;;  %v7064_v10 = vld [vmem:[%s17995_s16 + $0x48] sm:$0xff]  ;;  %v7071_v12 = vld [vmem:[%s17995_s16 + $0x80] sm:$0xff]  ;;  %v17315_v39 = vld [vmem:[%s17995_s16 + $0x50] sm:$0xff] }
0x2512   : > { %13315 = vmatprep.subr.bf16.mxu1 %v14582_v48  ;;  %v12639_v48 = vcombine.low %v7056_v8, %v7064_v10 }
0x2514   : > { %13294 = vmatpush3.bf16.msra.mxu0 %v14583_v13  ;;  %v12640_v13 = vcombine.high %v7056_v8, %v7064_v10  ;;  %v12642_v10 = vcombine.high %v17312_v43, %v17315_v39 }
0x2515   : > { %13316 = vmatpush3.bf16.msra.mxu1 %v14584_v14  ;;  %13295 = vmatprep.subr.bf16.mxu0 %v14585_v15  ;;  %v12654_v14 = vcombine.high %v7071_v12, %v7079_v1  ;;  %v7072_v15 = vld [vmem:[%s17995_s16 + $0x88] sm:$0xff] }
0x2516   : > { %13317 = vmatprep.subr.bf16.mxu1 %v14586_v2  ;;  %v7080_v2 = vld [vmem:[%s17995_s16 + $0xc8] sm:$0xff] }
0x2517   : > { %v12655_v57 = vcombine.low %v7072_v15, %v7080_v2 }
0x2518   : > { %13296 = vmatpush3.bf16.msra.mxu0 %v14587_v16  ;;  %v7087_v16 = vld [vmem:[%s17995_s16 + $0x100] sm:$0xff] }
0x2519   : > { %13318 = vmatpush3.bf16.msra.mxu1 %v14588_v17  ;;  %13297 = vmatprep.subr.bf16.mxu0 %v14589_v20  ;;  %v12656_v17 = vcombine.high %v7072_v15, %v7080_v2  ;;  %v7095_v20 = vld [vmem:[%s17995_s16 + $0x140] sm:$0xff] }
0x251a   : > { %13319 = vmatprep.subr.bf16.mxu1 %v14590_v56  ;;  %v7088_v56 = vld [vmem:[%s17995_s16 + $0x108] sm:$0xff] }
0x251c   : > { %13298 = vmatpush3.bf16.msra.mxu0 %v14591_v23  ;;  %v7096_v23 = vld [vmem:[%s17995_s16 + $0x148] sm:$0xff] }
0x251d   : > { %13320 = vmatpush3.bf16.msra.mxu1 %v14592_v21  ;;  %13327 = vmatprep.subr.bf16.mxu0 %v14593_v58  ;;  %v12653_v21 = vcombine.low %v7071_v12, %v7079_v1  ;;  %v12670_v58 = vcombine.high %v7087_v16, %v7095_v20  ;;  %v12672_v40 = vcombine.high %v7088_v56, %v7096_v23  ;;  %v17322_v12 = vld [vmem:[%s17995_s16 + $0x18] sm:$0xff] }
0x251e   : > { %13349 = vmatprep.subr.bf16.mxu1 %v14594_v22  ;;  %v7103_v22 = vld [vmem:[%s17995_s16 + $0x180] sm:$0xff]  ;;  %v17325_v1 = vld [vmem:[%s17995_s16 + $0x58] sm:$0xff] }
0x251f   : > { %6927 = vmatmul.mubr.bf16.vlgmr.msra.gmra.mrb[68].mxu0 %v5702_v44  ;;  %v12669_v44 = vcombine.low %v7087_v16, %v7095_v20 }
0x2520   : > { %6967 = vmatmul.mubr.bf16.vlgmr.msra.gmra.mrb[96].mxu1 %v5704_v24  ;;  %13328 = vmatpush3.bf16.msra.mxu0 %v14595_v0  ;;  %v7104_v0 = vld [vmem:[%s17995_s16 + $0x188] sm:$0xff]  ;;  %v12686_v24 = vcombine.high %v7103_v22, %v7111_v25 }
0x2521   : > { %7006 = vmatprep.mubr.bf16.mxu0 %v5707_v53  ;;  %13350 = vmatpush3.bf16.msra.mxu1 %v14596_v63  ;;  %v12671_v63 = vcombine.low %v7088_v56, %v7096_v23  ;;  %v7119_v53 = vld [vmem:[%s17995_s16 + $0x200] sm:$0xff] }
0x2522   : > { %7046 = vmatprep.mubr.bf16.mxu1 %v5709_v27  ;;  %13329 = vmatprep.subr.bf16.mxu0 %v14597_v52  ;;  %v12688_v52 = vcombine.high %v7104_v0, %v7112_v7  ;;  %v7120_v27 = vld [vmem:[%s17995_s16 + $0x208] sm:$0xff] }
0x2523   : > { %13351 = vmatprep.subr.bf16.mxu1 %v14598_v38  ;;  %v7127_v38 = vld [vmem:[%s17995_s16 + $0x240] sm:$0xff] }
0x2524   : > { %13330 = vmatpush3.bf16.msra.mxu0 %v14599_v35  ;;  %v7128_v35 = vld [vmem:[%s17995_s16 + $0x248] sm:$0xff] }
0x2525   : > { %13352 = vmatpush3.bf16.msra.mxu1 %v14600_v9  ;;  %13331 = vmatprep.subr.bf16.mxu0 %v14601_v28  ;;  %v12685_v9 = vcombine.low %v7103_v22, %v7111_v25  ;;  %v12687_v28 = vcombine.low %v7104_v0, %v7112_v7 }
0x2526   : > { %13353 = vmatprep.subr.bf16.mxu1 %v14602_v11  ;;  %v12702_v11 = vcombine.high %v7119_v53, %v7127_v38 }
0x2528   : > { %13332 = vmatpush3.bf16.msra.mxu0 %v14603_v31  ;;  %v12704_v31 = vcombine.high %v7120_v27, %v7128_v35 }
0x2529   : > { %13354 = vmatpush3.bf16.msra.mxu1 %v14604_v36  ;;  %13333 = vmatprep.subr.bf16.mxu0 %v14605_v32  ;;  %v7135_v36 = vld [vmem:[%s17995_s16 + $0x280] sm:$0xff] }
0x252a   : > { %13355 = vmatprep.subr.bf16.mxu1 %v14606_v33  ;;  %v7143_v32 = vld [vmem:[%s17995_s16 + $0x2c0] sm:$0xff]  ;;  %v7136_v33 = vld [vmem:[%s17995_s16 + $0x288] sm:$0xff] }
0x252c   : > { %13334 = vmatpush3.bf16.msra.mxu0 %v14607_v34  ;;  %v7144_v34 = vld [vmem:[%s17995_s16 + $0x2c8] sm:$0xff] }
0x252d   : > { %13356 = vmatpush3.bf16.msra.mxu1 %v14608_v42  ;;  %13335 = vmatprep.subr.bf16.mxu0 %v14609_v49  ;;  %v12701_v42 = vcombine.low %v7119_v53, %v7127_v38  ;;  %v12703_v49 = vcombine.low %v7120_v27, %v7128_v35 }
0x252e   : > { %13357 = vmatprep.subr.bf16.mxu1 %v14610_v50  ;;  %v12718_v50 = vcombine.high %v7135_v36, %v7143_v32 }
0x2530   : > { %13336 = vmatpush3.bf16.msra.mxu0 %v14611_v54  ;;  %v12720_v54 = vcombine.high %v7136_v33, %v7144_v34 }
0x2531   : > { %13358 = vmatpush3.bf16.msra.mxu1 %v14612_v3  ;;  %13337 = vmatprep.subr.bf16.mxu0 %v14613_v37  ;;  %v12717_v3 = vcombine.low %v7135_v36, %v7143_v32  ;;  %v12719_v37 = vcombine.low %v7136_v33, %v7144_v34 }
0x2532   : > { %13359 = vmatprep.subr.bf16.mxu1 %v14614_v55  ;;  %v7151_v55 = vld [vmem:[%s17995_s16 + $0x300] sm:$0xff] }
0x2534   : > { %13338 = vmatpush3.bf16.msra.mxu0 %v14615_v45  ;;  %v7159_v45 = vld [vmem:[%s17995_s16 + $0x340] sm:$0xff] }
0x2535   : > { %13360 = vmatpush3.bf16.msra.mxu1 %v14616_v51  ;;  %13339 = vmatprep.subr.bf16.mxu0 %v14617_v18  ;;  %v7152_v51 = vld [vmem:[%s17995_s16 + $0x308] sm:$0xff]  ;;  %v12734_v18 = vcombine.high %v7151_v55, %v7159_v45 }
0x2536   : > { %13361 = vmatprep.subr.bf16.mxu1 %v14618_v19  ;;  %v7160_v19 = vld [vmem:[%s17995_s16 + $0x348] sm:$0xff] }
0x2538   : > { %13340 = vmatpush3.bf16.msra.mxu0 %v14619_v26  ;;  %v12733_v26 = vcombine.low %v7151_v55, %v7159_v45 }
0x2539   : > { %13362 = vmatpush3.bf16.msra.mxu1 %v14620_v29  ;;  %13341 = vmatprep.subr.bf16.mxu0 %v14621_v47  ;;  %v12735_v29 = vcombine.low %v7152_v51, %v7160_v19  ;;  %v12736_v47 = vcombine.high %v7152_v51, %v7160_v19 }
0x253a   : > { %13363 = vmatprep.subr.bf16.mxu1 %v14622_v30  ;;  %v7167_v30 = vld [vmem:[%s17995_s16 + $0x380] sm:$0xff] }
0x253c   : > { %13342 = vmatpush3.bf16.msra.mxu0 %v14623_v59  ;;  %v7175_v59 = vld [vmem:[%s17995_s16 + $0x3c0] sm:$0xff] }
0x253d   : > { %13364 = vmatpush3.bf16.msra.mxu1 %v14624_v46  ;;  %7823 = vmatprep.subr.bf16.mxu0 %v12638_v5  ;;  %v7168_v46 = vld [vmem:[%s17995_s16 + $0x388] sm:$0xff]  ;;  %v12749_v60 = vcombine.low %v7167_v30, %v7175_v59  ;;  %v12641_v5 = vcombine.low %v17312_v43, %v17315_v39 }
0x253e   : > { %7864 = vmatprep.subr.bf16.mxu1 %v12640_v13  ;;  %v12644_v13 = vcombine.high %v17322_v12, %v17325_v1 }
0x253f   : > { %7007 = vmatmul.mubr.bf16.vlgmr.msra.gmra.mrb[72].mxu0 %v5706_v61  ;;  %v12750_v61 = vcombine.high %v7167_v30, %v7175_v59  ;;  %v7073_v30 = vld [vmem:[%s17995_s16 + $0x90] sm:$0xff] }
0x2540   : > { %7047 = vmatmul.mubr.bf16.vlgmr.msra.gmra.mrb[100].mxu1 %v5708_v62  ;;  %7855 = vmatprep.mubr.bf16.mxu0 %v15934_v6  ;;  %v7176_v62 = vld [vmem:[%s17995_s16 + $0x3c8] sm:$0xff]  ;;  %v7081_v59 = vld [vmem:[%s17995_s16 + $0xd0] sm:$0xff] }
0x2541   : > { %7896 = vmatprep.mubr.bf16.mxu1 %v15934_v6  ;;  %7824 = vmatpush1.bf16.msra.mxu0 %v12637_v4  ;;  %v12751_v8 = vcombine.low %v7168_v46, %v7176_v62  ;;  %v12752_v4 = vcombine.high %v7168_v46, %v7176_v62  ;;  %v7074_v46 = vld [vmem:[%s17995_s16 + $0x98] sm:$0xff] }
0x2542   : > { %7865 = vmatpush1.bf16.msra.mxu1 %v12639_v48  ;;  %7825 = vmatprep.subr.bf16.mxu0 %v12654_v14  ;;  %v12643_v48 = vcombine.low %v17322_v12, %v17325_v1  ;;  %v7121_v1 = vld [vmem:[%s17995_s16 + $0x210] sm:$0xff] }
0x2543   : > { %7866 = vmatprep.subr.bf16.mxu1 %v12656_v17 }
0x2545   : > { %7826 = vmatpush1.bf16.msra.mxu0 %v12653_v21 }
0x2546   : > { %7867 = vmatpush1.bf16.msra.mxu1 %v12655_v57  ;;  %7827 = vmatprep.subr.bf16.mxu0 %v12670_v58 }
0x2547   : > { %7868 = vmatprep.subr.bf16.mxu1 %v12672_v40 }
0x2549   : > { %7828 = vmatpush1.bf16.msra.mxu0 %v12669_v44 }
0x254a   : > { %7869 = vmatpush1.bf16.msra.mxu1 %v12671_v63  ;;  %7829 = vmatprep.subr.bf16.mxu0 %v12686_v24 }
0x254b   : > { %7870 = vmatprep.subr.bf16.mxu1 %v12688_v52 }
0x254d   : > { %7830 = vmatpush1.bf16.msra.mxu0 %v12685_v9 }
0x254e   : > { %7871 = vmatpush1.bf16.msra.mxu1 %v12687_v28  ;;  %7831 = vmatprep.subr.bf16.mxu0 %v12702_v11 }
0x254f   : > { %7872 = vmatprep.subr.bf16.mxu1 %v12704_v31 }
0x2551   : > { %7832 = vmatpush1.bf16.msra.mxu0 %v12701_v42 }
0x2552   : > { %7873 = vmatpush1.bf16.msra.mxu1 %v12703_v49  ;;  %7833 = vmatprep.subr.bf16.mxu0 %v12718_v50 }
0x2553   : > { %7874 = vmatprep.subr.bf16.mxu1 %v12720_v54 }
0x2555   : > { %7834 = vmatpush1.bf16.msra.mxu0 %v12717_v3 }
0x2556   : > { %7875 = vmatpush1.bf16.msra.mxu1 %v12719_v37  ;;  %7835 = vmatprep.subr.bf16.mxu0 %v12734_v18 }
0x2557   : > { %7876 = vmatprep.subr.bf16.mxu1 %v12736_v47 }
0x2559   : > { %7836 = vmatpush1.bf16.msra.mxu0 %v12733_v26 }
0x255a   : > { %7877 = vmatpush1.bf16.msra.mxu1 %v12735_v29  ;;  %7837 = vmatprep.subr.bf16.mxu0 %v12750_v61 }
0x255b   : > { %7878 = vmatprep.subr.bf16.mxu1 %v12752_v4 }
0x255d   : > { %7838 = vmatpush1.bf16.msra.mxu0 %v12749_v60  ;;  %v7082_v60 = vld [vmem:[%s17995_s16 + $0xd8] sm:$0xff] }
0x255e   : > { %7879 = vmatpush1.bf16.msra.mxu1 %v12751_v8  ;;  %7905 = vmatprep.subr.bf16.mxu0 %v12642_v10  ;;  %v12658_v8 = vcombine.high %v7073_v30, %v7081_v59  ;;  %v12660_v4 = vcombine.high %v7074_v46, %v7082_v60  ;;  %v7089_v10 = vld [vmem:[%s17995_s16 + $0x110] sm:$0xff] }
0x255f   : > { %7946 = vmatprep.subr.bf16.mxu1 %v12644_v13  ;;  %v7097_v13 = vld [vmem:[%s17995_s16 + $0x150] sm:$0xff] }
0x2560   : > { %v12673_v43 = vcombine.low %v7089_v10, %v7097_v13 }
0x25b2   : > { %v13211_v14 = vpop.f32.mrb[60].mxu0  ;;  %v13233_v15 = vpop.f32.mrb[88].mxu1 }
0x25b3   : > { %v13212_v2 = vpop.f32.mrb[61].mxu0  ;;  %v13234_v16 = vpop.f32.mrb[89].mxu1 }
0x25b4   : > { %v13213_v17 = vadd.f32 %v13212_v2, %v13211_v14  ;;  %v13235_v20 = vadd.f32 %v13234_v16, %v13233_v15  ;;  %v13214_v56 = vpop.f32.mrb[62].mxu0  ;;  %v13236_v23 = vpop.f32.mrb[90].mxu1  ;;  %v7090_v14 = vld [vmem:[%s17995_s16 + $0x118] sm:$0xff]  ;;  %v12657_v2 = vcombine.low %v7073_v30, %v7081_v59  ;;  %v12659_v16 = vcombine.low %v7074_v46, %v7082_v60  ;;  %v7075_v46 = vld [vmem:[%s17995_s16 + $0xa0] sm:$0xff] }
0x25b5   : > { %v13215_v21 = vpop.f32.mrb[63].mxu0  ;;  %v13237_v57 = vpop.f32.mrb[91].mxu1  ;;  %v7098_v15 = vld [vmem:[%s17995_s16 + $0x158] sm:$0xff]  ;;  %v7105_v56 = vld [vmem:[%s17995_s16 + $0x190] sm:$0xff]  ;;  %v7083_v60 = vld [vmem:[%s17995_s16 + $0xe0] sm:$0xff] }
0x25b6   : > { %v6809_v58 = vadd.f32 %v13235_v20, %v13213_v17  ;;  %v12674_v17 = vcombine.high %v7089_v10, %v7097_v13  ;;  %v12676_v20 = vcombine.high %v7090_v14, %v7098_v15  ;;  %v7113_v23 = vld [vmem:[%s17995_s16 + $0x1d0] sm:$0xff]  ;;  %v7106_v21 = vld [vmem:[%s17995_s16 + $0x198] sm:$0xff]  ;;  %v12675_v39 = vcombine.low %v7090_v14, %v7098_v15  ;;  %v7091_v15 = vld [vmem:[%s17995_s16 + $0x120] sm:$0xff] }
0x25b7   : > { %v7114_v57 = vld [vmem:[%s17995_s16 + $0x1d8] sm:$0xff]  ;;  %v12662_v13 = vcombine.high %v7075_v46, %v7083_v60 }
0x25b8   : > { %v12692_v12 = vcombine.high %v7106_v21, %v7114_v57 }
0x25d2   : > { %v13255_v40 = vpop.f32.mrb[64].mxu0  ;;  %v13277_v22 = vpop.f32.mrb[92].mxu1 }
0x25d3   : > { %v13256_v25 = vpop.f32.mrb[65].mxu0  ;;  %v13278_v0 = vpop.f32.mrb[93].mxu1 }
0x25d4   : > { %v13257_v7 = vadd.f32 %v13256_v25, %v13255_v40  ;;  %v13279_v44 = vadd.f32 %v13278_v0, %v13277_v22  ;;  %v13258_v63 = vpop.f32.mrb[66].mxu0  ;;  %v13280_v24 = vpop.f32.mrb[94].mxu1  ;;  %v7130_v40 = vld [vmem:[%s17995_s16 + $0x258] sm:$0xff]  ;;  %v12689_v22 = vcombine.low %v7105_v56, %v7113_v23  ;;  %v12691_v25 = vcombine.low %v7106_v21, %v7114_v57  ;;  %v7107_v57 = vld [vmem:[%s17995_s16 + $0x1a0] sm:$0xff] }
0x25d5   : > { %v13259_v52 = vpop.f32.mrb[67].mxu0  ;;  %v13281_v53 = vpop.f32.mrb[95].mxu1  ;;  %v7145_v63 = vld [vmem:[%s17995_s16 + $0x2d0] sm:$0xff]  ;;  %v7138_v24 = vld [vmem:[%s17995_s16 + $0x298] sm:$0xff] }
0x25d6   : > { %v6849_v38 = vadd.f32 %v13257_v7, %v6809_v58  ;;  %v7122_v58 = vld [vmem:[%s17995_s16 + $0x218] sm:$0xff] }
0x25d7   : > { %v12708_v7 = vcombine.high %v7122_v58, %v7130_v40  ;;  %v7146_v52 = vld [vmem:[%s17995_s16 + $0x2d8] sm:$0xff] }
0x25d8   : > { %v6889_v27 = vadd.f32 %v13279_v44, %v6849_v38  ;;  %v7137_v44 = vld [vmem:[%s17995_s16 + $0x290] sm:$0xff]  ;;  %v12707_v38 = vcombine.low %v7122_v58, %v7130_v40  ;;  %v7123_v40 = vld [vmem:[%s17995_s16 + $0x220] sm:$0xff] }
0x25f2   : > { %v13299_v35 = vpop.f32.mrb[68].mxu0 }
0x25f3   : > { %v13321_v9 = vpop.f32.mrb[96].mxu1  ;;  %v13300_v28 = vpop.f32.mrb[69].mxu0 }
0x25f4   : > { %v13301_v11 = vadd.f32 %v13300_v28, %v13299_v35  ;;  %v13322_v31 = vpop.f32.mrb[97].mxu1  ;;  %v13302_v36 = vpop.f32.mrb[70].mxu0  ;;  %v12724_v35 = vcombine.high %v7138_v24, %v7146_v52  ;;  %v7161_v28 = vld [vmem:[%s17995_s16 + $0x350] sm:$0xff] }
0x25f5   : > { %v13323_v32 = vadd.f32 %v13322_v31, %v13321_v9  ;;  %v13324_v33 = vpop.f32.mrb[98].mxu1  ;;  %v13303_v34 = vpop.f32.mrb[71].mxu0  ;;  %v7153_v9 = vld [vmem:[%s17995_s16 + $0x310] sm:$0xff]  ;;  %v7162_v31 = vld [vmem:[%s17995_s16 + $0x358] sm:$0xff]  ;;  %v12721_v36 = vcombine.low %v7137_v44, %v7145_v63 }
0x25f6   : > { %v6929_v42 = vadd.f32 %v13301_v11, %v6889_v27  ;;  %v13325_v49 = vpop.f32.mrb[99].mxu1  ;;  %v12722_v27 = vcombine.high %v7137_v44, %v7145_v63  ;;  %v7154_v11 = vld [vmem:[%s17995_s16 + $0x318] sm:$0xff]  ;;  %v12738_v33 = vcombine.high %v7153_v9, %v7161_v28 }
0x25f7   : > { %v12740_v34 = vcombine.high %v7154_v11, %v7162_v31  ;;  %v7177_v49 = vld [vmem:[%s17995_s16 + $0x3d0] sm:$0xff] }
0x25f8   : > { %v6969_v50 = vadd.f32 %v13323_v32, %v6929_v42  ;;  %v12723_v32 = vcombine.low %v7138_v24, %v7146_v52  ;;  %v7169_v42 = vld [vmem:[%s17995_s16 + $0x390] sm:$0xff]  ;;  %v7139_v52 = vld [vmem:[%s17995_s16 + $0x2a0] sm:$0xff] }
0x2612   : > { %v13343_v54 = vpop.f32.mrb[72].mxu0 }
0x2613   : > { %v13365_v3 = vpop.f32.mrb[100].mxu1  ;;  %v13344_v37 = vpop.f32.mrb[73].mxu0 }
0x2614   : > { %v13345_v55 = vadd.f32 %v13344_v37, %v13343_v54  ;;  %v13366_v45 = vpop.f32.mrb[101].mxu1  ;;  %v13346_v51 = vpop.f32.mrb[74].mxu0  ;;  %v7178_v54 = vld [vmem:[%s17995_s16 + $0x3d8] sm:$0xff]  ;;  %v12739_v37 = vcombine.low %v7154_v11, %v7162_v31  ;;  %v7155_v31 = vld [vmem:[%s17995_s16 + $0x320] sm:$0xff] }
0x2615   : > { %v13367_v18 = vadd.f32 %v13366_v45, %v13365_v3  ;;  %v13368_v19 = vpop.f32.mrb[102].mxu1  ;;  %v13347_v26 = vpop.f32.mrb[75].mxu0  ;;  %v12737_v3 = vcombine.low %v7153_v9, %v7161_v28  ;;  %v7059_v51 = vld [vmem:[%s17995_s16 + $0x20] sm:$0xff] }
0x2616   : > { %v7009_v29 = vadd.f32 %v13345_v55, %v6969_v50  ;;  %v13369_v47 = vpop.f32.mrb[103].mxu1  ;;  %v7170_v50 = vld [vmem:[%s17995_s16 + $0x398] sm:$0xff]  ;;  %v12754_v55 = vcombine.high %v7169_v42, %v7177_v49  ;;  %v7060_v19 = vld [vmem:[%s17995_s16 + $0x28] sm:$0xff] }
0x2617   : > { %v12756_v45 = vcombine.high %v7170_v50, %v7178_v54  ;;  %v7068_v26 = vld [vmem:[%s17995_s16 + $0x68] sm:$0xff]  ;;  %v12755_v47 = vcombine.low %v7170_v50, %v7178_v54  ;;  %v7171_v54 = vld [vmem:[%s17995_s16 + $0x3a0] sm:$0xff] }
0x2618   : > { %v7049_v61 = vadd.f32 %v13367_v18, %v7009_v29  ;;  %v7067_v18 = vld [vmem:[%s17995_s16 + $0x60] sm:$0xff]  ;;  %v12753_v29 = vcombine.low %v7169_v42, %v7177_v49  ;;  %v12648_v59 = vcombine.high %v7060_v19, %v7068_v26  ;;  %v12647_v10 = vcombine.low %v7060_v19, %v7068_v26  ;;  %v7061_v26 = vld [vmem:[%s17995_s16 + $0x30] sm:$0xff] }
0x2619   : > { %v12646_v30 = vcombine.high %v7059_v51, %v7067_v18 }
0x261a   : > { %v17335_v62 = vpack.c.bf16 %v7049_v61, %v7049_v61  ;;  %v7076_v61 = vld [vmem:[%s17995_s16 + $0xa8] sm:$0xff] }
0x261c   : > { %7856 = vmatmul.mubr.bf16.vlgmr.msra.gmra.mrb[76].mxu0 %v17335_v62  ;;  %7897 = vmatmul.mubr.bf16.vlgmr.msra.gmra.mrb[104].mxu1 %v17335_v62 }
0x261d   : > { %7906 = vmatpush1.bf16.msra.mxu0 %v12641_v5  ;;  %7947 = vmatpush1.bf16.msra.mxu1 %v12643_v48  ;;  %v12690_v5 = vcombine.high %v7105_v56, %v7113_v23  ;;  %v7129_v48 = vld [vmem:[%s17995_s16 + $0x250] sm:$0xff] }
0x261e   : > { %7907 = vmatprep.subr.bf16.mxu0 %v12658_v8  ;;  %7948 = vmatprep.subr.bf16.mxu1 %v12660_v4  ;;  %v12706_v0 = vcombine.high %v7121_v1, %v7129_v48  ;;  %v12705_v53 = vcombine.low %v7121_v1, %v7129_v48  ;;  %v7084_v8 = vld [vmem:[%s17995_s16 + $0xe8] sm:$0xff]  ;;  %v12645_v4 = vcombine.low %v7059_v51, %v7067_v18 }
0x261f   : > { %7937 = vmatprep.mubr.bf16.mxu0 %v15934_v6  ;;  %7978 = vmatprep.mubr.bf16.mxu1 %v15934_v6  ;;  %v12664_v14 = vcombine.high %v7076_v61, %v7084_v8  ;;  %v12663_v56 = vcombine.low %v7076_v61, %v7084_v8  ;;  %v7077_v8 = vld [vmem:[%s17995_s16 + $0xb0] sm:$0xff] }
0x2621   : > { %7908 = vmatpush1.bf16.msra.mxu0 %v12657_v2  ;;  %7949 = vmatpush1.bf16.msra.mxu1 %v12659_v16  ;;  %v7099_v2 = vld [vmem:[%s17995_s16 + $0x160] sm:$0xff]  ;;  %v7092_v16 = vld [vmem:[%s17995_s16 + $0x128] sm:$0xff] }
0x2622   : > { %7909 = vmatprep.subr.bf16.mxu0 %v12674_v17  ;;  %7950 = vmatprep.subr.bf16.mxu1 %v12676_v20  ;;  %v7100_v17 = vld [vmem:[%s17995_s16 + $0x168] sm:$0xff]  ;;  %v12661_v20 = vcombine.low %v7075_v46, %v7083_v60  ;;  %v12678_v23 = vcombine.high %v7091_v15, %v7099_v2 }
0x2623   : > { %v12680_v21 = vcombine.high %v7092_v16, %v7100_v17  ;;  %v12679_v1 = vcombine.low %v7092_v16, %v7100_v17  ;;  %v7093_v17 = vld [vmem:[%s17995_s16 + $0x130] sm:$0xff] }
0x2625   : > { %7910 = vmatpush1.bf16.msra.mxu0 %v12673_v43  ;;  %7951 = vmatpush1.bf16.msra.mxu1 %v12675_v39  ;;  %v7115_v43 = vld [vmem:[%s17995_s16 + $0x1e0] sm:$0xff]  ;;  %v7108_v39 = vld [vmem:[%s17995_s16 + $0x1a8] sm:$0xff] }
0x2626   : > { %7911 = vmatprep.subr.bf16.mxu0 %v12690_v5  ;;  %7952 = vmatprep.subr.bf16.mxu1 %v12692_v12  ;;  %v7116_v5 = vld [vmem:[%s17995_s16 + $0x1e8] sm:$0xff]  ;;  %v12677_v12 = vcombine.low %v7091_v15, %v7099_v2  ;;  %v12694_v48 = vcombine.high %v7107_v57, %v7115_v43 }
0x2627   : > { %v12696_v58 = vcombine.high %v7108_v39, %v7116_v5  ;;  %v12695_v44 = vcombine.low %v7108_v39, %v7116_v5  ;;  %v7109_v5 = vld [vmem:[%s17995_s16 + $0x1b0] sm:$0xff] }
0x2629   : > { %7912 = vmatpush1.bf16.msra.mxu0 %v12689_v22  ;;  %7953 = vmatpush1.bf16.msra.mxu1 %v12691_v25  ;;  %v7131_v22 = vld [vmem:[%s17995_s16 + $0x260] sm:$0xff]  ;;  %v7124_v25 = vld [vmem:[%s17995_s16 + $0x228] sm:$0xff] }
0x262a   : > { %7913 = vmatprep.subr.bf16.mxu0 %v12706_v0  ;;  %7954 = vmatprep.subr.bf16.mxu1 %v12708_v7  ;;  %v7132_v0 = vld [vmem:[%s17995_s16 + $0x268] sm:$0xff]  ;;  %v12693_v7 = vcombine.low %v7107_v57, %v7115_v43  ;;  %v12710_v63 = vcombine.high %v7123_v40, %v7131_v22 }
0x262b   : > { %v12712_v24 = vcombine.high %v7124_v25, %v7132_v0  ;;  %v12711_v9 = vcombine.low %v7124_v25, %v7132_v0  ;;  %v7125_v0 = vld [vmem:[%s17995_s16 + $0x230] sm:$0xff] }
0x262d   : > { %7914 = vmatpush1.bf16.msra.mxu0 %v12705_v53  ;;  %7955 = vmatpush1.bf16.msra.mxu1 %v12707_v38  ;;  %v7147_v53 = vld [vmem:[%s17995_s16 + $0x2e0] sm:$0xff]  ;;  %v7140_v38 = vld [vmem:[%s17995_s16 + $0x2a8] sm:$0xff] }
0x262e   : > { %7915 = vmatprep.subr.bf16.mxu0 %v12722_v27  ;;  %7956 = vmatprep.subr.bf16.mxu1 %v12724_v35  ;;  %v7148_v27 = vld [vmem:[%s17995_s16 + $0x2e8] sm:$0xff]  ;;  %v12709_v35 = vcombine.low %v7123_v40, %v7131_v22  ;;  %v12726_v28 = vcombine.high %v7139_v52, %v7147_v53 }
0x262f   : > { %v12728_v11 = vcombine.high %v7140_v38, %v7148_v27  ;;  %v12727_v42 = vcombine.low %v7140_v38, %v7148_v27  ;;  %v7141_v27 = vld [vmem:[%s17995_s16 + $0x2b0] sm:$0xff] }
0x2631   : > { %7916 = vmatpush1.bf16.msra.mxu0 %v12721_v36  ;;  %7957 = vmatpush1.bf16.msra.mxu1 %v12723_v32  ;;  %v7163_v36 = vld [vmem:[%s17995_s16 + $0x360] sm:$0xff]  ;;  %v7156_v32 = vld [vmem:[%s17995_s16 + $0x328] sm:$0xff] }
0x2632   : > { %7917 = vmatprep.subr.bf16.mxu0 %v12738_v33  ;;  %7958 = vmatprep.subr.bf16.mxu1 %v12740_v34  ;;  %v7164_v33 = vld [vmem:[%s17995_s16 + $0x368] sm:$0xff]  ;;  %v12725_v34 = vcombine.low %v7139_v52, %v7147_v53  ;;  %v12742_v49 = vcombine.high %v7155_v31, %v7163_v36 }
0x2633   : > { %v12744_v50 = vcombine.high %v7156_v32, %v7164_v33  ;;  %v12743_v51 = vcombine.low %v7156_v32, %v7164_v33  ;;  %v7157_v33 = vld [vmem:[%s17995_s16 + $0x330] sm:$0xff] }
0x2635   : > { %7918 = vmatpush1.bf16.msra.mxu0 %v12737_v3  ;;  %7959 = vmatpush1.bf16.msra.mxu1 %v12739_v37  ;;  %v7179_v3 = vld [vmem:[%s17995_s16 + $0x3e0] sm:$0xff]  ;;  %v7172_v37 = vld [vmem:[%s17995_s16 + $0x3a8] sm:$0xff] }
0x2636   : > { %7919 = vmatprep.subr.bf16.mxu0 %v12754_v55  ;;  %7960 = vmatprep.subr.bf16.mxu1 %v12756_v45  ;;  %v7180_v55 = vld [vmem:[%s17995_s16 + $0x3e8] sm:$0xff]  ;;  %v12741_v45 = vcombine.low %v7155_v31, %v7163_v36  ;;  %v12758_v18 = vcombine.high %v7171_v54, %v7179_v3 }
0x2637   : > { %v12760_v19 = vcombine.high %v7172_v37, %v7180_v55  ;;  %v12759_v46 = vcombine.low %v7172_v37, %v7180_v55  ;;  %v7173_v55 = vld [vmem:[%s17995_s16 + $0x3b0] sm:$0xff] }
0x2639   : > { %7920 = vmatpush1.bf16.msra.mxu0 %v12753_v29  ;;  %7961 = vmatpush1.bf16.msra.mxu1 %v12755_v47  ;;  %v7069_v29 = vld [vmem:[%s17995_s16 + $0x70] sm:$0xff]  ;;  %v7062_v47 = vld [vmem:[%s17995_s16 + $0x38] sm:$0xff] }
0x263a   : > { %7987 = vmatprep.subr.bf16.mxu0 %v12646_v30  ;;  %8028 = vmatprep.subr.bf16.mxu1 %v12648_v59  ;;  %v7070_v30 = vld [vmem:[%s17995_s16 + $0x78] sm:$0xff]  ;;  %v12757_v59 = vcombine.low %v7171_v54, %v7179_v3  ;;  %v12650_v60 = vcombine.high %v7061_v26, %v7069_v29 }
0x263b   : > { %v12652_v61 = vcombine.high %v7062_v47, %v7070_v30  ;;  %v12651_v15 = vcombine.low %v7062_v47, %v7070_v30 }
0x263c   : > { %7938 = vmatmul.mubr.bf16.vlgmr.msra.gmra.mrb[80].mxu0 %v17335_v62  ;;  %7979 = vmatmul.mubr.bf16.vlgmr.msra.gmra.mrb[108].mxu1 %v17335_v62 }
0x263d   : > { %7988 = vmatpush1.bf16.msra.mxu0 %v12645_v4  ;;  %8029 = vmatpush1.bf16.msra.mxu1 %v12647_v10  ;;  %v7085_v4 = vld [vmem:[%s17995_s16 + $0xf0] sm:$0xff]  ;;  %v7078_v10 = vld [vmem:[%s17995_s16 + $0xb8] sm:$0xff] }
0x263e   : > { %7989 = vmatprep.subr.bf16.mxu0 %v12662_v13  ;;  %8030 = vmatprep.subr.bf16.mxu1 %v12664_v14  ;;  %v7086_v13 = vld [vmem:[%s17995_s16 + $0xf8] sm:$0xff]  ;;  %v12649_v14 = vcombine.low %v7061_v26, %v7069_v29  ;;  %v12666_v2 = vcombine.high %v7077_v8, %v7085_v4 }
0x263f   : > { %8019 = vmatprep.mubr.bf16.mxu0 %v15934_v6  ;;  %8060 = vmatprep.mubr.bf16.mxu1 %v15934_v6  ;;  %v12668_v16 = vcombine.high %v7078_v10, %v7086_v13  ;;  %v12667_v57 = vcombine.low %v7078_v10, %v7086_v13 }
0x2641   : > { %7990 = vmatpush1.bf16.msra.mxu0 %v12661_v20  ;;  %8031 = vmatpush1.bf16.msra.mxu1 %v12663_v56  ;;  %v7101_v20 = vld [vmem:[%s17995_s16 + $0x170] sm:$0xff]  ;;  %v7094_v56 = vld [vmem:[%s17995_s16 + $0x138] sm:$0xff] }
0x2642   : > { %7991 = vmatprep.subr.bf16.mxu0 %v12678_v23  ;;  %8032 = vmatprep.subr.bf16.mxu1 %v12680_v21  ;;  %v7102_v23 = vld [vmem:[%s17995_s16 + $0x178] sm:$0xff]  ;;  %v12665_v21 = vcombine.low %v7077_v8, %v7085_v4  ;;  %v12682_v43 = vcombine.high %v7093_v17, %v7101_v20 }
0x2643   : > { %v12684_v39 = vcombine.high %v7094_v56, %v7102_v23  ;;  %v12683_v40 = vcombine.low %v7094_v56, %v7102_v23 }
0x2645   : > { %7992 = vmatpush1.bf16.msra.mxu0 %v12677_v12  ;;  %8033 = vmatpush1.bf16.msra.mxu1 %v12679_v1  ;;  %v7117_v12 = vld [vmem:[%s17995_s16 + $0x1f0] sm:$0xff]  ;;  %v7110_v1 = vld [vmem:[%s17995_s16 + $0x1b8] sm:$0xff] }
0x2646   : > { %7993 = vmatprep.subr.bf16.mxu0 %v12694_v48  ;;  %8034 = vmatprep.subr.bf16.mxu1 %v12696_v58  ;;  %v7118_v48 = vld [vmem:[%s17995_s16 + $0x1f8] sm:$0xff]  ;;  %v12681_v58 = vcombine.low %v7093_v17, %v7101_v20  ;;  %v12698_v22 = vcombine.high %v7109_v5, %v7117_v12 }
0x2647   : > { %v12700_v25 = vcombine.high %v7110_v1, %v7118_v48  ;;  %v12699_v52 = vcombine.low %v7110_v1, %v7118_v48 }
0x2649   : > { %7994 = vmatpush1.bf16.msra.mxu0 %v12693_v7  ;;  %8035 = vmatpush1.bf16.msra.mxu1 %v12695_v44  ;;  %v7133_v7 = vld [vmem:[%s17995_s16 + $0x270] sm:$0xff]  ;;  %v7126_v44 = vld [vmem:[%s17995_s16 + $0x238] sm:$0xff] }
0x264a   : > { %7995 = vmatprep.subr.bf16.mxu0 %v12710_v63  ;;  %8036 = vmatprep.subr.bf16.mxu1 %v12712_v24  ;;  %v7134_v63 = vld [vmem:[%s17995_s16 + $0x278] sm:$0xff]  ;;  %v12697_v24 = vcombine.low %v7109_v5, %v7117_v12  ;;  %v12714_v53 = vcombine.high %v7125_v0, %v7133_v7 }
0x264b   : > { %v12716_v38 = vcombine.high %v7126_v44, %v7134_v63  ;;  %v12715_v31 = vcombine.low %v7126_v44, %v7134_v63 }
0x264d   : > { %7996 = vmatpush1.bf16.msra.mxu0 %v12709_v35  ;;  %8037 = vmatpush1.bf16.msra.mxu1 %v12711_v9  ;;  %v7149_v35 = vld [vmem:[%s17995_s16 + $0x2f0] sm:$0xff]  ;;  %v7142_v9 = vld [vmem:[%s17995_s16 + $0x2b8] sm:$0xff] }
0x264e   : > { %7997 = vmatprep.subr.bf16.mxu0 %v12726_v28  ;;  %8038 = vmatprep.subr.bf16.mxu1 %v12728_v11  ;;  %v7150_v28 = vld [vmem:[%s17995_s16 + $0x2f8] sm:$0xff]  ;;  %v12713_v11 = vcombine.low %v7125_v0, %v7133_v7  ;;  %v12730_v36 = vcombine.high %v7141_v27, %v7149_v35 }
0x264f   : > { %v12732_v32 = vcombine.high %v7142_v9, %v7150_v28  ;;  %v12731_v54 = vcombine.low %v7142_v9, %v7150_v28  ;;  %v14625_v9 = vld [vmem:[#allocation18] ss:$12 sps:$4 sm:$0xff]   ;;  %v14627_v28 = vld [vmem:[#allocation18 + $0x4] ss:$12 sps:$4 sm:$0xff]  }
0x2651   : > { %7998 = vmatpush1.bf16.msra.mxu0 %v12725_v34  ;;  %8039 = vmatpush1.bf16.msra.mxu1 %v12727_v42  ;;  %v7165_v34 = vld [vmem:[%s17995_s16 + $0x370] sm:$0xff]  ;;  %v7158_v42 = vld [vmem:[%s17995_s16 + $0x338] sm:$0xff] }
0x2652   : > { %7999 = vmatprep.subr.bf16.mxu0 %v12742_v49  ;;  %8040 = vmatprep.subr.bf16.mxu1 %v12744_v50  ;;  %v7166_v49 = vld [vmem:[%s17995_s16 + $0x378] sm:$0xff]  ;;  %v12729_v50 = vcombine.low %v7141_v27, %v7149_v35  ;;  %v12746_v3 = vcombine.high %v7157_v33, %v7165_v34 }
0x2653   : > { %v12748_v37 = vcombine.high %v7158_v42, %v7166_v49  ;;  %v12747_v26 = vcombine.low %v7158_v42, %v7166_v49 }
0x2655   : > { %8000 = vmatpush1.bf16.msra.mxu0 %v12741_v45  ;;  %8041 = vmatpush1.bf16.msra.mxu1 %v12743_v51  ;;  %v7181_v45 = vld [vmem:[%s17995_s16 + $0x3f0] sm:$0xff]  ;;  %v7174_v51 = vld [vmem:[%s17995_s16 + $0x3b8] sm:$0xff] }
0x2656   : > { %8001 = vmatprep.subr.bf16.mxu0 %v12758_v18  ;;  %8042 = vmatprep.subr.bf16.mxu1 %v12760_v19  ;;  %v7182_v18 = vld [vmem:[%s17995_s16 + $0x3f8] sm:$0xff]  ;;  %v12745_v19 = vcombine.low %v7157_v33, %v7165_v34  ;;  %v12762_v29 = vcombine.high %v7173_v55, %v7181_v45  ;;  %v12761_v30 = vcombine.low %v7173_v55, %v7181_v45 }
0x2657   : > { %v12764_v47 = vcombine.high %v7174_v51, %v7182_v18  ;;  %v14635_v33 = vld [vmem:[#allocation18 + $0x34] ss:$12 sps:$4 sm:$0xff]   ;;  %v14633_v34 = vld [vmem:[#allocation18 + $0x30] ss:$12 sps:$4 sm:$0xff]  }
0x2658   : > { %v14637_v55 = vld [vmem:[#allocation18 + $0x48] ss:$12 sps:$4 sm:$0xff]   ;;  %v14640_v45 = vld [vmem:[#allocation18 + $0x50] ss:$12 sps:$4 sm:$0xff]  }
0x2659   : > { %8002 = vmatpush1.bf16.msra.mxu0 %v12757_v59  ;;  %8043 = vmatpush1.bf16.msra.mxu1 %v12759_v46  ;;  %v12763_v59 = vcombine.low %v7174_v51, %v7182_v18  ;;  %v14643_v51 = vld [vmem:[#allocation18 + $0x64] ss:$12 sps:$4 sm:$0xff]   ;;  %v14641_v18 = vld [vmem:[#allocation18 + $0x60] ss:$12 sps:$4 sm:$0xff]  }
0x265a   : > { %8069 = vmatprep.subr.bf16.mxu0 %v12650_v60  ;;  %8110 = vmatprep.subr.bf16.mxu1 %v12652_v61 }
0x265c   : > { %8020 = vmatmul.mubr.bf16.vlgmr.msra.gmra.mrb[84].mxu0 %v17335_v62  ;;  %8061 = vmatmul.mubr.bf16.vlgmr.msra.gmra.mrb[112].mxu1 %v17335_v62 }
0x265d   : > { %8070 = vmatpush1.bf16.msra.mxu0 %v12649_v14  ;;  %8111 = vmatpush1.bf16.msra.mxu1 %v12651_v15 }
0x265e   : > { %8071 = vmatprep.subr.bf16.mxu0 %v12666_v2  ;;  %8112 = vmatprep.subr.bf16.mxu1 %v12668_v16 }
0x265f   : > { %8101 = vmatprep.mubr.bf16.mxu0 %v15934_v6  ;;  %8142 = vmatprep.mubr.bf16.mxu1 %v15934_v6 }
0x2661   : > { %8072 = vmatpush1.bf16.msra.mxu0 %v12665_v21  ;;  %8113 = vmatpush1.bf16.msra.mxu1 %v12667_v57 }
0x2662   : > { %8073 = vmatprep.subr.bf16.mxu0 %v12682_v43  ;;  %8114 = vmatprep.subr.bf16.mxu1 %v12684_v39 }
0x2665   : > { %8074 = vmatpush1.bf16.msra.mxu0 %v12681_v58  ;;  %8115 = vmatpush1.bf16.msra.mxu1 %v12683_v40 }
0x2666   : > { %8075 = vmatprep.subr.bf16.mxu0 %v12698_v22  ;;  %8116 = vmatprep.subr.bf16.mxu1 %v12700_v25 }
0x2669   : > { %8076 = vmatpush1.bf16.msra.mxu0 %v12697_v24  ;;  %8117 = vmatpush1.bf16.msra.mxu1 %v12699_v52 }
0x266a   : > { %8077 = vmatprep.subr.bf16.mxu0 %v12714_v53  ;;  %8118 = vmatprep.subr.bf16.mxu1 %v12716_v38 }
0x266d   : > { %8078 = vmatpush1.bf16.msra.mxu0 %v12713_v11  ;;  %8119 = vmatpush1.bf16.msra.mxu1 %v12715_v31  ;;  %v14628_v11 = vld [vmem:[#allocation18 + $0x8] ss:$12 sps:$4 sm:$0xff]  }
0x266e   : > { %8079 = vmatprep.subr.bf16.mxu0 %v12730_v36  ;;  %8120 = vmatprep.subr.bf16.mxu1 %v12732_v32  ;;  %v14631_v31 = vld [vmem:[#allocation18 + $0x1c] ss:$12 sps:$4 sm:$0xff]   ;;  %v14632_v36 = vld [vmem:[#allocation18 + $0x20] ss:$12 sps:$4 sm:$0xff]   ;;  %v14629_v32 = vld [vmem:[#allocation18 + $0x18] ss:$12 sps:$4 sm:$0xff]  }
0x2671   : > { %8080 = vmatpush1.bf16.msra.mxu0 %v12729_v50  ;;  %8121 = vmatpush1.bf16.msra.mxu1 %v12731_v54 }
0x2672   : > { %8081 = vmatprep.subr.bf16.mxu0 %v12746_v3  ;;  %8122 = vmatprep.subr.bf16.mxu1 %v12748_v37  ;;  %v14636_v3 = vld [vmem:[#allocation18 + $0x38] ss:$12 sps:$4 sm:$0xff]  }
0x2673   : > { %v14639_v37 = vld [vmem:[#allocation18 + $0x4c] ss:$12 sps:$4 sm:$0xff]  }
0x2675   : > { %8082 = vmatpush1.bf16.msra.mxu0 %v12745_v19  ;;  %8123 = vmatpush1.bf16.msra.mxu1 %v12747_v26  ;;  %v14644_v19 = vld [vmem:[#allocation18 + $0x68] ss:$12 sps:$4 sm:$0xff]  }
0x2676   : > { %8083 = vmatprep.subr.bf16.mxu0 %v12762_v29  ;;  %8124 = vmatprep.subr.bf16.mxu1 %v12764_v47  ;;  %v14647_v26 = vld [vmem:[#allocation18 + $0x7c] ss:$12 sps:$4 sm:$0xff]   ;;  %v14645_v29 = vld [vmem:[#allocation18 + $0x78] ss:$12 sps:$4 sm:$0xff]   ;;  %v14648_v47 = vld [vmem:[#allocation18 + $0x80] ss:$12 sps:$4 sm:$0xff]  }
0x2679   : > { %8084 = vmatpush1.bf16.msra.mxu0 %v12761_v30  ;;  %8125 = vmatpush1.bf16.msra.mxu1 %v12763_v59  ;;  %v14651_v30 = vld [vmem:[#allocation18 + $0x94] ss:$12 sps:$4 sm:$0xff]   ;;  %v14649_v59 = vld [vmem:[#allocation18 + $0x90] ss:$12 sps:$4 sm:$0xff]  }
0x267a   : > { %13733 = vmatprep.subr.bf16.mxu1 %v15933_v41  ;;  %8370 = vmatprep.subr.bf16.mxu0 %v14627_v28 }
0x267c   : > { %8102 = vmatmul.mubr.bf16.vlgmr.msra.gmra.mrb[88].mxu0 %v17335_v62  ;;  %8143 = vmatmul.mubr.bf16.vlgmr.msra.gmra.mrb[116].mxu1 %v17335_v62 }
0x267d   : > { %8402 = vmatprep.mubr.bf16.mxu0 %v15934_v6  ;;  %13749 = vmatprep.mubr.msk.bf16.mxu1 %vm15935_vm0, %v15933_v41 }
0x267e   : > { %13734 = vmatpush3.bf16.msra.mxu1 %v14628_v11  ;;  %8371 = vmatpush1.bf16.msra.mxu0 %v14625_v9 }
0x267f   : > { %13735 = vmatprep.subr.bf16.mxu1 %v15933_v41  ;;  %8372 = vmatprep.subr.bf16.mxu0 %v14631_v31 }
0x2682   : > { %13736 = vmatpush3.bf16.msra.mxu1 %v14632_v36  ;;  %8373 = vmatpush1.bf16.msra.mxu0 %v14629_v32 }
0x2683   : > { %13737 = vmatprep.subr.bf16.mxu1 %v15933_v41  ;;  %8374 = vmatprep.subr.bf16.mxu0 %v14635_v33 }
0x2686   : > { %8375 = vmatpush1.bf16.msra.mxu0 %v14633_v34  ;;  %13738 = vmatpush3.bf16.msra.mxu1 %v14636_v3 }
0x2687   : > { %13739 = vmatprep.subr.bf16.mxu1 %v15933_v41  ;;  %8376 = vmatprep.subr.bf16.mxu0 %v14639_v37 }
0x268a   : > { %8377 = vmatpush1.bf16.msra.mxu0 %v14637_v55  ;;  %13740 = vmatpush3.bf16.msra.mxu1 %v14640_v45 }
0x268b   : > { %13741 = vmatprep.subr.bf16.mxu1 %v15933_v41  ;;  %8378 = vmatprep.subr.bf16.mxu0 %v14643_v51 }
0x268e   : > { %8379 = vmatpush1.bf16.msra.mxu0 %v14641_v18  ;;  %13742 = vmatpush3.bf16.msra.mxu1 %v14644_v19 }
0x268f   : > { %13743 = vmatprep.subr.bf16.mxu1 %v15933_v41  ;;  %8380 = vmatprep.subr.bf16.mxu0 %v14647_v26 }
0x2692   : > { %8381 = vmatpush1.bf16.msra.mxu0 %v14645_v29  ;;  %13744 = vmatpush3.bf16.msra.mxu1 %v14648_v47 }
0x2693   : > { %8382 = vmatprep.subr.bf16.mxu0 %v14651_v30  ;;  %13745 = vmatprep.subr.bf16.mxu1 %v15933_v41 }
0x2696   : > { %8383 = vmatpush1.bf16.msra.mxu0 %v14649_v59 }
0x26ef   : > { %v7857_v46 = vpop.f32.mrb[76].mxu0  ;;  %v7898_v60 = vpop.f32.mrb[104].mxu1 }
0x26f0   : > { %8151 = vst [vmem:[#allocation3] sm:$0x1] %v7857_v46  ;;  %8153 = vst [vmem:[#allocation3 + $0x2] sm:$0x1] %v7898_v60  ;;  %v7859_v61 = vpop.f32.mrb[77].mxu0  ;;  %v7900_v8 = vpop.f32.mrb[105].mxu1 }
0x26f1   : > { %8152 = vst [vmem:[#allocation3 + $0x1] sm:$0x1] %v7859_v61  ;;  %8154 = vst [vmem:[#allocation3 + $0x3] sm:$0x1] %v7900_v8  ;;  %v7861_v4 = vpop.f32.mrb[78].mxu0  ;;  %v7902_v10 = vpop.f32.mrb[106].mxu1 }
0x26f2   : > { %v7862_v13 = vpop.f32.mrb[79].mxu0  ;;  %v7903_v14 = vpop.f32.mrb[107].mxu1  ;;  %v14652_v46 = vld [vmem:[#allocation18 + $0x98] ss:$12 sps:$4 sm:$0xff]   ;;  %v14653_v61 = vld [vmem:[#allocation18 + $0xa8] ss:$12 sps:$4 sm:$0xff]  }
0x26f3   : > { %v14655_v60 = vld [vmem:[#allocation18 + $0xac] ss:$12 sps:$4 sm:$0xff]   ;;  %13746 = vmatpush3.bf16.msra.mxu1 %v14652_v46  ;;  %v14656_v8 = vld [vmem:[#allocation18 + $0xb0] ss:$12 sps:$4 sm:$0xff]  }
0x26f4   : > { %8384 = vmatprep.subr.bf16.mxu0 %v14655_v60  ;;  %13747 = vmatprep.subr.bf16.mxu1 %v15933_v41 }
0x26f5   : > { %8385 = vmatpush1.bf16.msra.mxu0 %v14653_v61 }
0x26f6   : > { %13753 = vmatprep.subr.bf16.mxu0 %v15933_v41 }
0x26f7   : > { %13748 = vmatpush3.bf16.msra.mxu1 %v14656_v8 }
0x26f8   : > { %13759 = vmatprep.subr.bf16.mxu1 %v15933_v41 }
0x270f   : > { %v7939_v15 = vpop.f32.mrb[80].mxu0  ;;  %v7980_v2 = vpop.f32.mrb[108].mxu1 }
0x2710   : > { %8155 = vst [vmem:[#allocation3 + $0x4] sm:$0x1] %v7939_v15  ;;  %8157 = vst [vmem:[#allocation3 + $0x6] sm:$0x1] %v7980_v2  ;;  %v7941_v62 = vpop.f32.mrb[81].mxu0  ;;  %v7982_v16 = vpop.f32.mrb[109].mxu1 }
0x2711   : > { %8156 = vst [vmem:[#allocation3 + $0x5] sm:$0x1] %v7941_v62  ;;  %8158 = vst [vmem:[#allocation3 + $0x7] sm:$0x1] %v7982_v16  ;;  %v7943_v17 = vpop.f32.mrb[82].mxu0  ;;  %v7984_v20 = vpop.f32.mrb[110].mxu1 }
0x2712   : > { %v7944_v56 = vpop.f32.mrb[83].mxu0  ;;  %v7985_v23 = vpop.f32.mrb[111].mxu1  ;;  %v12765_v17 = vld [vmem:[%s17996_s2] ss:$0 sm:$0xff] }
0x2718   : > { %v17449_v21 = vld [vmem:[#allocation3] sm:$0xff] }
0x2719   : > { %8171 = vadd.xlane.f32.xlu1 %v17449_v21 }
0x272f   : > { %v8021_v57 = vpop.f32.mrb[84].mxu0  ;;  %v8062_v43 = vpop.f32.mrb[112].mxu1 }
0x2730   : > { %8159 = vst [vmem:[#allocation3 + $0x8] sm:$0x1] %v8021_v57  ;;  %8161 = vst [vmem:[#allocation3 + $0xa] sm:$0x1] %v8062_v43  ;;  %v8023_v39 = vpop.f32.mrb[85].mxu0  ;;  %v8064_v5 = vpop.f32.mrb[113].mxu1 }
0x2731   : > { %8160 = vst [vmem:[#allocation3 + $0x9] sm:$0x1] %v8023_v39  ;;  %8162 = vst [vmem:[#allocation3 + $0xb] sm:$0x1] %v8064_v5  ;;  %v8025_v12 = vpop.f32.mrb[86].mxu0  ;;  %v8066_v1 = vpop.f32.mrb[114].mxu1 }
0x2732   : > { %v8026_v48 = vpop.f32.mrb[87].mxu0  ;;  %v8067_v58 = vpop.f32.mrb[115].mxu1  ;;  %v12766_v57 = vld [vmem:[#allocation17] ss:$0 sm:$0xff] }
0x274f   : > { %v8103_v40 = vpop.f32.mrb[88].mxu0  ;;  %v8144_v22 = vpop.f32.mrb[116].mxu1 }
0x2750   : > { %8163 = vst [vmem:[#allocation3 + $0xc] sm:$0x1] %v8103_v40  ;;  %8165 = vst [vmem:[#allocation3 + $0xe] sm:$0x1] %v8144_v22  ;;  %v8105_v25 = vpop.f32.mrb[89].mxu0  ;;  %v8146_v0 = vpop.f32.mrb[117].mxu1 }
0x2751   : > { %8164 = vst [vmem:[#allocation3 + $0xd] sm:$0x1] %v8105_v25  ;;  %8166 = vst [vmem:[#allocation3 + $0xf] sm:$0x1] %v8146_v0  ;;  %v8107_v7 = vpop.f32.mrb[90].mxu0  ;;  %v8148_v44 = vpop.f32.mrb[118].mxu1 }
0x2752   : > { %v8108_v63 = vpop.f32.mrb[91].mxu0  ;;  %v8149_v24 = vpop.f32.mrb[119].mxu1 }
0x2758   : > { %v17452_v52 = vld [vmem:[#allocation3 + $0x8] sm:$0xff] }
0x2759   : > { %8173 = vadd.xlane.f32.xlu0 %v17452_v52 }
0x27a6   : > { %v8172_v53 = vpop.xlane.xlu1 %8171 }
0x27a7   : > { %v8175_v38 = vmul.f32 0.0078125, %v8172_v53 }
0x27a9   : > { %v17456_v27 = vsub.f32 %v17449_v21, %v8175_v38 }
0x27ab   : > { %v8179_v35 = vmul.f32 %v17456_v27, %v17456_v27 }
0x27ad   : > { %8181 = vadd.xlane.f32.xlu0 %v8179_v35 }
0x27e6   : > { %v8174_v42 = vpop.xlane.xlu0 %8173 }
0x27e7   : > { %v8176_v49 = vmul.f32 0.0078125, %v8174_v42 }
0x27e9   : > { %v8178_v50 = vsub.f32 %v17452_v52, %v8176_v49 }
0x27eb   : > { %v8180_v54 = vmul.f32 %v8178_v50, %v8178_v50 }
0x27ed   : > { %8183 = vadd.xlane.f32.xlu0 %v8180_v54 }
0x283a   : > { %v8182_v4 = vpop.xlane.xlu0 %8181 }
0x283b   : > { %v8185_v10 = vmul.f32 0.0078125, %v8182_v4 }
0x283d   : > { %v8187_v13 = vadd.f32 1e-05, %v8185_v10 }
0x283f   : > { %15009 = vrsqrt.f32 %v8187_v13 }
0x2849   : > { %v15010_v62 = vpop.eup %15009 }
0x284a   : > { %v8191_v16 = vmul.f32 %v15010_v62, %v17456_v27 }
0x284c   : > { %v8199_v23 = vmul.f32 %v12765_v17, %v8191_v16 }
0x284e   : > { %v8207_v39 = vadd.f32 %v12766_v57, %v8199_v23 }
0x287a   : > { %v8184_v14 = vpop.xlane.xlu0 %8183 }
0x287b   : > { %v8186_v15 = vmul.f32 0.0078125, %v8184_v14 }
0x287d   : > { %v8188_v2 = vadd.f32 1e-05, %v8186_v15 }
0x287f   : > { %15011 = vrsqrt.f32 %v8188_v2 }
0x2889   : > { %v15012_v20 = vpop.eup %15011 }
0x288a   : > { %v8192_v56 = vmul.f32 %v15012_v20, %v8178_v50 }
0x288c   : > { %v8200_v43 = vmul.f32 %v12765_v17, %v8192_v56 }
0x288e   : > { %v8208_v5 = vadd.f32 %v12766_v57, %v8200_v43 }
0x2890   : > { %v8209_v12 = vpack.c.bf16 %v8208_v5, %v8207_v39 }
0x2892   : > { %8403 = vmatmul.mubr.bf16.vlgmr.msra.gmra.mrb[92].mxu0 %v8209_v12  ;;  %13750 = vmatmul.mubr.bf16.vlgmr.msra.gmra.mrb[120].mxu1 %v8209_v12  ;;  %v14659_v12 = vld [vmem:[#allocation20 + $0x10] sm:$0xff]  }
0x2893   : > { %13755 = vmatprep.mubr.msk.bf16.mxu0 %vm15935_vm0, %v15933_v41  ;;  %13761 = vmatprep.mubr.msk.bf16.mxu1 %vm15935_vm0, %v15933_v41 }
0x2965   : > { %v8404_v1 = vpop.f32.mrb[92].mxu0  ;;  %v8447_v48 = vpop.f32.mrb[120].mxu1 }
0x2966   : > { %v8406_v58 = vpop.f32.mrb[93].mxu0  ;;  %v13751_v40 = vpop.f32.mrb[121].mxu1 }
0x2967   : > { %v8408_v22 = vpop.f32.mrb[94].mxu0  ;;  %v8450_v25 = vpop.f32.mrb[122].mxu1 }
0x2968   : > { %v17476_v0 = vpack.c.bf16 %v8408_v22, %v8404_v1  ;;  %v17478_v7 = vpack.c.bf16 %v8450_v25, %v8447_v48  ;;  %v8410_v44 = vpop.f32.mrb[95].mxu0  ;;  %v13752_v63 = vpop.f32.mrb[123].mxu1  ;;  %v14660_v1 = vld [vmem:[#allocation20 + $0x18] sm:$0xff]  }
0x2969   : > { %v17480_v24 = vpack.c.bf16 %v8410_v44, %v8406_v58  ;;  %v14657_v63 = vld [vmem:[#allocation20] sm:$0xff]  }
0x296a   : > { %13760 = vmatpush3.bf16.msra.mxu1 %v17478_v7  ;;  %8579 = vrot.lane.b32.xlu1 %v17476_v0, %s15936_s11 }
0x296b   : > { %8582 = vrot.lane.b32.xlu0 %v17480_v24, %s15936_s11  ;;  %v8461_v53 = vsel %vm2240_vm1, %v17480_v24, 0  ;;  %13771 = vmatprep.subr.bf16.mxu1 %v15933_v41 }
0x296c   : > { %13754 = vmatpush3.bf16.xpose.msra.mxu0 %v8461_v53 }
0x296d   : > { %13765 = vmatprep.subr.bf16.mxu0 %v15933_v41 }
0x2973   : > { %13756 = vmatmul.mubr.msk.bf16.vlgmr.msra.gmra.mrb[96].mxu0 %vm2240_vm1, %v17476_v0 }
0x2974   : > { %13767 = vmatprep.mubr.msk.bf16.mxu0 %vm15935_vm0, %v15933_v41 }
0x29dc   : > { %v8580_v35 = vpop.permute.xlu1 %8579 }
0x29dd   : > { %v8583_v38 = vpop.permute.xlu0 %8582 }
0x29de   : > { %v8588_v27 = vsel %vm2240_vm1, %v8583_v38, 0  ;;  %v14658_v38 = vld [vmem:[#allocation20 + $0x8] sm:$0xff]  }
0x29df   : > { %13766 = vmatpush3.bf16.xpose.msra.mxu0 %v8588_v27 }
0x29e0   : > { %13777 = vmatprep.subr.bf16.mxu0 %v15933_v41 }
0x29e6   : > { %13768 = vmatmul.mubr.msk.bf16.vlgmr.msra.gmra.mrb[100].mxu0 %vm2240_vm1, %v8580_v35 }
0x29e7   : > { %13781 = vmatprep.mubr.msk.bf16.mxu0 %vm15935_vm0, %v15933_v41  ;;  %13778 = vmatpush3.bf16.msra.mxu0 %v14659_v12 }
0x29e8   : > { %13779 = vmatprep.subr.bf16.mxu0 %v15933_v41 }
0x29eb   : > { %13780 = vmatpush3.bf16.msra.mxu0 %v14660_v1 }
0x29ec   : > { %13793 = vmatprep.subr.bf16.mxu0 %v15933_v41 }
0x2a46   : > { %v8497_v9 = vpop.f32.mrb[96].mxu0 }
0x2a47   : > { %v8504_v28 = vmul.f32 0.17677669, %v8497_v9  ;;  %v13757_v11 = vpop.f32.mrb[97].mxu0 }
0x2a48   : > { %v8500_v31 = vpop.f32.mrb[98].mxu0 }
0x2a49   : > { %v8505_v36 = vmul.f32 0.17677669, %v8500_v31  ;;  %v13758_v32 = vpop.f32.mrb[99].mxu0  ;;  %v8506_v33 = vsel %vm2290_vm2, %v8504_v28, -inf }
0x2a4a   : > { %8507 = vmax.xlane.f32.xlu0 %v8506_v33 }
0x2a4b   : > { %v8509_v34 = vsel %vm2290_vm2, %v8505_v36, -inf }
0x2a4c   : > { %8510 = vmax.xlane.f32.xlu1 %v8509_v34 }
0x2a5d   : > { %8657 = vrot.lane.b32.xlu1 %v17478_v7, %s15936_s11 }
0x2a61   : > { %8821 = vrot.lane.b32.xlu1 %v17476_v0, %s15937_s23 }
0x2ab9   : > { %v8624_v42 = vpop.f32.mrb[100].mxu0 }
0x2aba   : > { %v8631_v49 = vmul.f32 0.17677669, %v8624_v42  ;;  %v13769_v50 = vpop.f32.mrb[101].mxu0 }
0x2abb   : > { %v8627_v54 = vpop.f32.mrb[102].mxu0 }
0x2abc   : > { %v8632_v3 = vmul.f32 0.17677669, %v8627_v54  ;;  %v13770_v37 = vpop.f32.mrb[103].mxu0  ;;  %v8633_v55 = vsel %vm2290_vm2, %v8631_v49, -inf }
0x2abd   : > { %8634 = vmax.xlane.f32.xlu0 %v8633_v55 }
0x2abe   : > { %v8636_v45 = vsel %vm2290_vm2, %v8632_v3, -inf }
0x2ac1   : > { %8637 = vmax.xlane.f32.xlu0 %v8636_v45 }
0x2ad7   : > { %v8508_v51 = vpop.xlane.xlu0 %8507 }
0x2ad8   : > { %v8512_v18 = vsub.f32 %v8504_v28, %v8508_v51 }
0x2ad9   : > { %v8511_v19 = vpop.xlane.xlu1 %8510 }
0x2ada   : > { %v8514_v26 = vmul.f32 1.442695, %v8512_v18  ;;  %v8513_v29 = vsub.f32 %v8505_v36, %v8511_v19 }
0x2adc   : > { %15013 = vpow2.f32 %v8514_v26  ;;  %v8516_v47 = vmul.f32 1.442695, %v8513_v29 }
0x2add   : > { %v8658_v5 = vpop.permute.xlu1 %8657 }
0x2ade   : > { %15015 = vpow2.f32 %v8516_v47 }
0x2ae1   : > { %v8822_v50 = vpop.permute.xlu1 %8821 }
0x2ae6   : > { %v15014_v30 = vpop.eup %15013 }
0x2ae7   : > { %v8518_v59 = vsel %vm2290_vm2, %v15014_v30, 0.0 }
0x2ae8   : > { %v15016_v46 = vpop.eup %15015  ;;  %8519 = vadd.xlane.f32.xlu0 %v8518_v59 }
0x2ae9   : > { %v8521_v60 = vsel %vm2290_vm2, %v15016_v46, 0.0 }
0x2aec   : > { %8522 = vadd.xlane.f32.xlu0 %v8521_v60 }
0x2b4a   : > { %v8635_v61 = vpop.xlane.xlu0 %8634 }
0x2b4b   : > { %v8639_v8 = vsub.f32 %v8631_v49, %v8635_v61 }
0x2b4d   : > { %v8641_v4 = vmul.f32 1.442695, %v8639_v8 }
0x2b4e   : > { %v8638_v10 = vpop.xlane.xlu0 %8637 }
0x2b4f   : > { %15017 = vpow2.f32 %v8641_v4  ;;  %v8640_v13 = vsub.f32 %v8632_v3, %v8638_v10 }
0x2b51   : > { %v8643_v14 = vmul.f32 1.442695, %v8640_v13 }
0x2b53   : > { %15019 = vpow2.f32 %v8643_v14 }
0x2b59   : > { %v15018_v15 = vpop.eup %15017 }
0x2b5a   : > { %v8645_v2 = vsel %vm2290_vm2, %v15018_v15, 0.0 }
0x2b5b   : > { %8646 = vadd.xlane.f32.xlu0 %v8645_v2 }
0x2b5d   : > { %v15020_v62 = vpop.eup %15019 }
0x2b5e   : > { %v8648_v16 = vsel %vm2290_vm2, %v15020_v62, 0.0 }
0x2b5f   : > { %8649 = vadd.xlane.f32.xlu0 %v8648_v16 }
0x2b75   : > { %8823 = vrot.lane.b32.xlu0 %v17480_v24, %s15937_s23  ;;  %v8520_v17 = vpop.xlane.xlu0 %8519 }
0x2b76   : > { %15021 = vrcp.f32 %v8520_v17 }
0x2b79   : > { %v8523_v20 = vpop.xlane.xlu0 %8522 }
0x2b7a   : > { %15023 = vrcp.f32 %v8523_v20 }
0x2b80   : > { %v15022_v56 = vpop.eup %15021 }
0x2b81   : > { %v8526_v57 = vmul.f32 %v15022_v56, %v15014_v30 }
0x2b84   : > { %v15024_v23 = vpop.eup %15023 }
0x2b85   : > { %v8527_v43 = vmul.f32 %v15024_v23, %v15016_v46  ;;  %v14661_v23 = vld [vmem:[#allocation20 + $0x20] sm:$0xff]  }
0x2b87   : > { %v8528_v39 = vpack.c.bf16 %v8527_v43, %v8526_v57 }
0x2b89   : > { %13762 = vmatmul.mubr.msk.bf16.vlgmr.msra.gmra.mrb[124].mxu1 %vm2290_vm2, %v8528_v39 }
0x2b8a   : > { %13772 = vmatpush3.bf16.msra.mxu1 %v8658_v5  ;;  %13773 = vmatprep.mubr.msk.bf16.mxu1 %vm15935_vm0, %v15933_v41 }
0x2b8b   : > { %13785 = vmatprep.subr.bf16.mxu1 %v15933_v41 }
0x2be8   : > { %v8647_v48 = vpop.xlane.xlu0 %8646 }
0x2be9   : > { %15025 = vrcp.f32 %v8647_v48 }
0x2bec   : > { %v8650_v58 = vpop.xlane.xlu0 %8649 }
0x2bed   : > { %15027 = vrcp.f32 %v8650_v58 }
0x2bf0   : > { %v8824_v32 = vpop.permute.xlu0 %8823 }
0x2bf1   : > { %v8829_v49 = vsel %vm2240_vm1, %v8824_v32, 0 }
0x2bf3   : > { %v15026_v40 = vpop.eup %15025 }
0x2bf4   : > { %v8653_v25 = vmul.f32 %v15026_v40, %v15018_v15 }
0x2bf7   : > { %v15028_v22 = vpop.eup %15027 }
0x2bf8   : > { %v8654_v44 = vmul.f32 %v15028_v22, %v15020_v62  ;;  %v14662_v22 = vld [vmem:[#allocation20 + $0x28] sm:$0xff]  }
0x2bfa   : > { %v8655_v53 = vpack.c.bf16 %v8654_v44, %v8653_v25 }
0x2bfc   : > { %13774 = vmatmul.mubr.msk.bf16.vlgmr.msra.gmra.mrb[128].mxu1 %vm2290_vm2, %v8655_v53 }
0x2bfd   : > { %13786 = vmatpush3.bf16.msra.mxu1 %v14657_v63  ;;  %13789 = vmatprep.mubr.msk.bf16.mxu1 %vm15935_vm0, %v15933_v41 }
0x2bfe   : > { %13787 = vmatprep.subr.bf16.mxu1 %v15933_v41 }
0x2c01   : > { %13788 = vmatpush3.bf16.msra.mxu1 %v14658_v38 }
0x2c02   : > { %13799 = vmatprep.subr.bf16.mxu1 %v15933_v41 }
0x2c5c   : > { %v8566_v27 = vpop.f32.mrb[124].mxu1 }
0x2c5d   : > { %v13763_v35 = vpop.f32.mrb[125].mxu1 }
0x2c5e   : > { %v8569_v9 = vpop.f32.mrb[126].mxu1 }
0x2c5f   : > { %v8573_v28 = vpack.c.bf16 %v8569_v9, %v8566_v27  ;;  %v13764_v11 = vpop.f32.mrb[127].mxu1 }
0x2c61   : > { %13790 = vmatmul.mubr.msk.bf16.vlgmr.msra.gmra.mrb[132].mxu1 %vm2240_vm1, %v8573_v28 }
0x2c62   : > { %13801 = vmatprep.mubr.msk.bf16.mxu1 %vm15935_vm0, %v15933_v41 }
0x2ccf   : > { %v8697_v31 = vpop.f32.mrb[128].mxu1 }
0x2cd0   : > { %v13775_v36 = vpop.f32.mrb[129].mxu1 }
0x2cd1   : > { %v8700_v33 = vpop.f32.mrb[130].mxu1 }
0x2cd2   : > { %v8704_v34 = vpack.c.bf16 %v8700_v33, %v8697_v31  ;;  %v13776_v42 = vpop.f32.mrb[131].mxu1 }
0x2cd4   : > { %13782 = vmatmul.mubr.msk.bf16.vlgmr.msra.gmra.mrb[104].mxu0 %vm2240_vm1, %v8704_v34 }
0x2cd5   : > { %13794 = vmatpush3.bf16.xpose.msra.mxu0 %v8829_v49  ;;  %13795 = vmatprep.mubr.msk.bf16.mxu0 %vm15935_vm0, %v15933_v41 }
0x2cd6   : > { %13805 = vmatprep.subr.bf16.mxu0 %v15933_v41 }
0x2cdc   : > { %13796 = vmatmul.mubr.msk.bf16.vlgmr.msra.gmra.mrb[108].mxu0 %vm2240_vm1, %v8822_v50 }
0x2cdd   : > { %13809 = vmatprep.mubr.msk.bf16.mxu0 %vm15935_vm0, %v15933_v41  ;;  %13806 = vmatpush3.bf16.msra.mxu0 %v14661_v23 }
0x2cde   : > { %13807 = vmatprep.subr.bf16.mxu0 %v15933_v41 }
0x2ce1   : > { %13808 = vmatpush3.bf16.msra.mxu0 %v14662_v22 }
0x2ce2   : > { %13819 = vmatprep.subr.bf16.mxu0 %v15933_v41 }
0x2d34   : > { %v8814_v54 = vpop.f32.mrb[132].mxu1 }
0x2d35   : > { %v13791_v3 = vpop.f32.mrb[133].mxu1 }
0x2d36   : > { %v8817_v37 = vpop.f32.mrb[134].mxu1 }
0x2d37   : > { %v13792_v55 = vpop.f32.mrb[135].mxu1 }
0x2da7   : > { %v8758_v45 = vpop.f32.mrb[104].mxu0 }
0x2da8   : > { %v17536_v51 = vadd.f32 %v8814_v54, %v8758_v45  ;;  %v13783_v18 = vpop.f32.mrb[105].mxu0 }
0x2da9   : > { %v8761_v19 = vpop.f32.mrb[106].mxu0 }
0x2daa   : > { %v17538_v26 = vadd.f32 %v8817_v37, %v8761_v19  ;;  %v13784_v29 = vpop.f32.mrb[107].mxu0  ;;  %v14663_v19 = vld [vmem:[#allocation20 + $0x30] sm:$0xff]  }
0x2daf   : > { %v8865_v47 = vpop.f32.mrb[108].mxu0 }
0x2db0   : > { %v8872_v30 = vmul.f32 0.17677669, %v8865_v47  ;;  %v13797_v59 = vpop.f32.mrb[109].mxu0 }
0x2db1   : > { %v8868_v46 = vpop.f32.mrb[110].mxu0 }
0x2db2   : > { %v8873_v60 = vmul.f32 0.17677669, %v8868_v46  ;;  %v13798_v61 = vpop.f32.mrb[111].mxu0  ;;  %v8874_v8 = vsel %vm2290_vm2, %v8872_v30, -inf }
0x2db3   : > { %8875 = vmax.xlane.f32.xlu1 %v8874_v8 }
0x2db4   : > { %v8877_v4 = vsel %vm2290_vm2, %v8873_v60, -inf }
0x2db5   : > { %8878 = vmax.xlane.f32.xlu0 %v8877_v4 }
0x2e40   : > { %v8876_v10 = vpop.xlane.xlu1 %8875 }
0x2e41   : > { %v8880_v13 = vsub.f32 %v8872_v30, %v8876_v10 }
0x2e42   : > { %v8879_v14 = vpop.xlane.xlu0 %8878 }
0x2e43   : > { %v8882_v15 = vmul.f32 1.442695, %v8880_v13  ;;  %v8881_v2 = vsub.f32 %v8873_v60, %v8879_v14 }
0x2e45   : > { %15029 = vpow2.f32 %v8882_v15  ;;  %v8884_v62 = vmul.f32 1.442695, %v8881_v2  ;;  %v14664_v15 = vld [vmem:[#allocation20 + $0x38] sm:$0xff]  }
0x2e47   : > { %15031 = vpow2.f32 %v8884_v62 }
0x2e4f   : > { %v15030_v16 = vpop.eup %15029 }
0x2e50   : > { %v8886_v17 = vsel %vm2290_vm2, %v15030_v16, 0.0 }
0x2e51   : > { %v15032_v20 = vpop.eup %15031  ;;  %8887 = vadd.xlane.f32.xlu0 %v8886_v17 }
0x2e52   : > { %v8889_v56 = vsel %vm2290_vm2, %v15032_v20, 0.0 }
0x2e53   : > { %8890 = vadd.xlane.f32.xlu1 %v8889_v56 }
0x2e64   : > { %9009 = vrot.lane.b32.xlu1 %v17480_v24, %s15938_s10 }
0x2e67   : > { %8897 = vrot.lane.b32.xlu0 %v17478_v7, %s15937_s23 }
0x2e68   : > { %9007 = vrot.lane.b32.xlu1 %v17476_v0, %s15938_s10 }
0x2ede   : > { %v8888_v57 = vpop.xlane.xlu0 %8887 }
0x2edf   : > { %15033 = vrcp.f32 %v8888_v57 }
0x2ee0   : > { %v8891_v43 = vpop.xlane.xlu1 %8890 }
0x2ee1   : > { %15035 = vrcp.f32 %v8891_v43 }
0x2ee2   : > { %v8898_v39 = vpop.permute.xlu0 %8897 }
0x2ee3   : > { %13800 = vmatpush3.bf16.msra.mxu1 %v8898_v39 }
0x2ee4   : > { %13813 = vmatprep.subr.bf16.mxu1 %v15933_v41  ;;  %v9010_v48 = vpop.permute.xlu1 %9009 }
0x2ee5   : > { %v9015_v0 = vsel %vm2240_vm1, %v9010_v48, 0  ;;  %v14670_v48 = vld [vmem:[#allocation24 + $0xc] ss:$16 sps:$4 sm:$0xff]  }
0x2ee8   : > { %v9008_v40 = vpop.permute.xlu1 %9007 }
0x2ee9   : > { %v15034_v5 = vpop.eup %15033 }
0x2eea   : > { %v8894_v12 = vmul.f32 %v15034_v5, %v15030_v16 }
0x2eeb   : > { %v15036_v24 = vpop.eup %15035 }
0x2eec   : > { %v8895_v1 = vmul.f32 %v15036_v24, %v15032_v20  ;;  %v14665_v24 = vld [vmem:[#allocation24] ss:$16 sps:$4 sm:$0xff]  }
0x2eee   : > { %v8896_v58 = vpack.c.bf16 %v8895_v1, %v8894_v12  ;;  %v14667_v12 = vld [vmem:[#allocation24 + $0x4] ss:$16 sps:$4 sm:$0xff]   ;;  %v14668_v1 = vld [vmem:[#allocation24 + $0x8] ss:$16 sps:$4 sm:$0xff]  }
0x2ef0   : > { %13802 = vmatmul.mubr.msk.bf16.vlgmr.msra.gmra.mrb[136].mxu1 %vm2290_vm2, %v8896_v58  ;;  %v14673_v58 = vld [vmem:[#allocation24 + $0x24] ss:$16 sps:$4 sm:$0xff]  }
0x2ef1   : > { %13814 = vmatpush3.bf16.xpose.msra.mxu1 %v9015_v0  ;;  %13815 = vmatprep.mubr.msk.bf16.mxu1 %vm15935_vm0, %v15933_v41  ;;  %v14676_v0 = vld [vmem:[#allocation24 + $0x2c] ss:$16 sps:$4 sm:$0xff]  }
0x2ef2   : > { %13825 = vmatprep.subr.bf16.mxu1 %v15933_v41 }
0x2ef8   : > { %13816 = vmatmul.mubr.msk.bf16.vlgmr.msra.gmra.mrb[140].mxu1 %vm2240_vm1, %v9008_v40  ;;  %v14674_v40 = vld [vmem:[#allocation24 + $0x28] ss:$16 sps:$4 sm:$0xff]  }
0x2ef9   : > { %13829 = vmatprep.mubr.msk.bf16.mxu1 %vm15935_vm0, %v15933_v41  ;;  %13826 = vmatpush3.bf16.msra.mxu1 %v14663_v19  ;;  %v14704_v19 = vld [vmem:[#allocation24 + $0xc8] ss:$16 sps:$4 sm:$0xff]  }
0x2efa   : > { %13827 = vmatprep.subr.bf16.mxu1 %v15933_v41 }
0x2efd   : > { %13828 = vmatpush3.bf16.msra.mxu1 %v14664_v15  ;;  %v12811_v15 = vld [vmem:[#allocation21] ss:$0 sm:$0xff] }
0x2efe   : > { %9471 = vmatprep.subr.bf16.mxu1 %v14670_v48  ;;  %v14719_v48 = vld [vmem:[#allocation26 + $0x8] sm:$0xff]  }
0x2fc3   : > { %v8937_v25 = vpop.f32.mrb[136].mxu1 }
0x2fc4   : > { %v13803_v44 = vpop.f32.mrb[137].mxu1 }
0x2fc5   : > { %v8940_v63 = vpop.f32.mrb[138].mxu1 }
0x2fc6   : > { %v8944_v53 = vpack.c.bf16 %v8940_v63, %v8937_v25  ;;  %v13804_v38 = vpop.f32.mrb[139].mxu1 }
0x2fc8   : > { %13810 = vmatmul.mubr.msk.bf16.vlgmr.msra.gmra.mrb[112].mxu0 %vm2240_vm1, %v8944_v53 }
0x2fc9   : > { %13821 = vmatprep.mubr.msk.bf16.mxu0 %vm15935_vm0, %v15933_v41 }
0x2fcb   : > { %v9051_v27 = vpop.f32.mrb[140].mxu1 }
0x2fcc   : > { %v9058_v35 = vmul.f32 0.17677669, %v9051_v27  ;;  %v13817_v9 = vpop.f32.mrb[141].mxu1 }
0x2fcd   : > { %v9054_v28 = vpop.f32.mrb[142].mxu1  ;;  %v14682_v9 = vld [vmem:[#allocation24 + $0x4c] ss:$16 sps:$4 sm:$0xff]  }
0x2fce   : > { %v9059_v11 = vmul.f32 0.17677669, %v9054_v28  ;;  %v13818_v31 = vpop.f32.mrb[143].mxu1  ;;  %v9060_v36 = vsel %vm2290_vm2, %v9058_v35, -inf  ;;  %v14677_v28 = vld [vmem:[#allocation24 + $0x40] ss:$16 sps:$4 sm:$0xff]  }
0x2fcf   : > { %9061 = vmax.xlane.f32.xlu0 %v9060_v36  ;;  %v14685_v31 = vld [vmem:[#allocation24 + $0x64] ss:$16 sps:$4 sm:$0xff]   ;;  %v14688_v36 = vld [vmem:[#allocation24 + $0x6c] ss:$16 sps:$4 sm:$0xff]  }
0x2fd0   : > { %v9063_v32 = vsel %vm2290_vm2, %v9059_v11, -inf }
0x2fd1   : > { %9064 = vmax.xlane.f32.xlu1 %v9063_v32  ;;  %v14683_v32 = vld [vmem:[#allocation24 + $0x60] ss:$16 sps:$4 sm:$0xff]  }
0x2fe2   : > { %9083 = vrot.lane.b32.xlu1 %v17478_v7, %s15938_s10 }
0x305c   : > { %v9062_v33 = vpop.xlane.xlu0 %9061 }
0x305d   : > { %v9066_v34 = vsub.f32 %v9058_v35, %v9062_v33  ;;  %v14679_v35 = vld [vmem:[#allocation24 + $0x44] ss:$16 sps:$4 sm:$0xff]   ;;  %v14686_v33 = vld [vmem:[#allocation24 + $0x68] ss:$16 sps:$4 sm:$0xff]  }
0x305e   : > { %v9065_v42 = vpop.xlane.xlu1 %9064 }
0x305f   : > { %v9068_v49 = vmul.f32 1.442695, %v9066_v34  ;;  %v9067_v50 = vsub.f32 %v9059_v11, %v9065_v42  ;;  %v14680_v11 = vld [vmem:[#allocation24 + $0x48] ss:$16 sps:$4 sm:$0xff]   ;;  %v14691_v34 = vld [vmem:[#allocation24 + $0x84] ss:$16 sps:$4 sm:$0xff]  }
0x3060   : > { %v14694_v42 = vld [vmem:[#allocation24 + $0x8c] ss:$16 sps:$4 sm:$0xff]  }
0x3061   : > { %15037 = vpow2.f32 %v9068_v49  ;;  %v9070_v54 = vmul.f32 1.442695, %v9067_v50  ;;  %v14689_v49 = vld [vmem:[#allocation24 + $0x80] ss:$16 sps:$4 sm:$0xff]   ;;  %v14692_v50 = vld [vmem:[#allocation24 + $0x88] ss:$16 sps:$4 sm:$0xff]  }
0x3062   : > { %v9084_v3 = vpop.permute.xlu1 %9083 }
0x3063   : > { %15039 = vpow2.f32 %v9070_v54  ;;  %13820 = vmatpush3.bf16.msra.mxu0 %v9084_v3  ;;  %v14697_v54 = vld [vmem:[#allocation24 + $0xa4] ss:$16 sps:$4 sm:$0xff]   ;;  %v14700_v3 = vld [vmem:[#allocation24 + $0xac] ss:$16 sps:$4 sm:$0xff]  }
0x3064   : > { %9428 = vmatprep.subr.bf16.mxu0 %v14667_v12  ;;  %v14717_v12 = vld [vmem:[#allocation26 + $0x48] sm:$0xff]  }
0x306b   : > { %v15038_v37 = vpop.eup %15037 }
0x306c   : > { %v9072_v55 = vsel %vm2290_vm2, %v15038_v37, 0.0 }
0x306d   : > { %v15040_v45 = vpop.eup %15039  ;;  %9073 = vadd.xlane.f32.xlu0 %v9072_v55  ;;  %v14698_v55 = vld [vmem:[#allocation24 + $0xa8] ss:$16 sps:$4 sm:$0xff]  }
0x306e   : > { %v9075_v18 = vsel %vm2290_vm2, %v15040_v45, 0.0 }
0x3071   : > { %9076 = vadd.xlane.f32.xlu0 %v9075_v18  ;;  %v14701_v18 = vld [vmem:[#allocation24 + $0xc0] ss:$16 sps:$4 sm:$0xff]  }
0x309b   : > { %v8998_v7 = vpop.f32.mrb[112].mxu0 }
0x309c   : > { %v9005_v29 = vadd.f32 %v8998_v7, %v17536_v51  ;;  %v13811_v47 = vpop.f32.mrb[113].mxu0  ;;  %v14706_v7 = vld [vmem:[#allocation24 + $0xcc] ss:$16 sps:$4 sm:$0xff]  }
0x309d   : > { %v9001_v30 = vpop.f32.mrb[114].mxu0  ;;  %v14712_v47 = vld [vmem:[#allocation24 + $0xec] ss:$16 sps:$4 sm:$0xff]  }
0x309e   : > { %v9006_v59 = vadd.f32 %v9001_v30, %v17538_v26  ;;  %v13812_v46 = vpop.f32.mrb[115].mxu0  ;;  %v14707_v30 = vld [vmem:[#allocation24 + $0xe0] ss:$16 sps:$4 sm:$0xff]  }
0x30fa   : > { %v9074_v60 = vpop.xlane.xlu0 %9073 }
0x30fb   : > { %15041 = vrcp.f32 %v9074_v60 }
0x30fe   : > { %v9077_v61 = vpop.xlane.xlu0 %9076 }
0x30ff   : > { %15043 = vrcp.f32 %v9077_v61 }
0x3105   : > { %v15042_v8 = vpop.eup %15041 }
0x3106   : > { %v9080_v10 = vmul.f32 %v15042_v8, %v15038_v37  ;;  %v14695_v37 = vld [vmem:[#allocation24 + $0xa0] ss:$16 sps:$4 sm:$0xff]  }
0x3109   : > { %v15044_v4 = vpop.eup %15043 }
0x310a   : > { %v9081_v13 = vmul.f32 %v15044_v4, %v15040_v45  ;;  %v14703_v45 = vld [vmem:[#allocation24 + $0xc4] ss:$16 sps:$4 sm:$0xff]  }
0x310c   : > { %v9082_v14 = vpack.c.bf16 %v9081_v13, %v9080_v10 }
0x310e   : > { %13822 = vmatmul.mubr.msk.bf16.vlgmr.msra.gmra.mrb[116].mxu0 %vm2290_vm2, %v9082_v14 }
0x310f   : > { %9460 = vmatprep.mubr.bf16.mxu0 %v15934_v6  ;;  %9429 = vmatpush1.bf16.msra.mxu0 %v14665_v24  ;;  %v14716_v24 = vld [vmem:[#allocation26 + $0x80] sm:$0xff]  }
0x3110   : > { %9430 = vmatprep.subr.bf16.mxu0 %v14673_v58  ;;  %v14720_v58 = vld [vmem:[#allocation26 + $0x88] sm:$0xff]  }
0x31e1   : > { %v9123_v51 = vpop.f32.mrb[116].mxu0 }
0x31e2   : > { %v13823_v2 = vpop.f32.mrb[117].mxu0 }
0x31e3   : > { %v9126_v62 = vpop.f32.mrb[118].mxu0 }
0x31e4   : > { %v9130_v26 = vpack.c.bf16 %v9126_v62, %v9123_v51  ;;  %v13824_v16 = vpop.f32.mrb[119].mxu0 }
0x31e6   : > { %13830 = vmatmul.mubr.msk.bf16.vlgmr.msra.gmra.mrb[144].mxu1 %vm2240_vm1, %v9130_v26  ;;  %v12812_v26 = vld [vmem:[#allocation23] ss:$0 sm:$0xff] }
0x31e7   : > { %9503 = vmatprep.mubr.bf16.mxu1 %v15934_v6  ;;  %9472 = vmatpush1.bf16.msra.mxu1 %v14668_v1  ;;  %v14718_v1 = vld [vmem:[#allocation26 + $0xc8] sm:$0xff]  }
0x31e8   : > { %9473 = vmatprep.subr.bf16.mxu1 %v14676_v0  ;;  %v14721_v0 = vld [vmem:[#allocation26 + $0x50] sm:$0xff]  }
0x31eb   : > { %9474 = vmatpush1.bf16.msra.mxu1 %v14674_v40  ;;  %v14723_v40 = vld [vmem:[#allocation26 + $0x10] sm:$0xff]  }
0x31ec   : > { %9475 = vmatprep.subr.bf16.mxu1 %v14682_v9  ;;  %v14733_v9 = vld [vmem:[#allocation26 + $0x68] sm:$0xff]  }
0x31ef   : > { %9476 = vmatpush1.bf16.msra.mxu1 %v14680_v11  ;;  %v14735_v11 = vld [vmem:[#allocation26 + $0x28] sm:$0xff]  }
0x31f0   : > { %9477 = vmatprep.subr.bf16.mxu1 %v14688_v36  ;;  %v14737_v36 = vld [vmem:[#allocation26 + $0x70] sm:$0xff]  }
0x31f3   : > { %9478 = vmatpush1.bf16.msra.mxu1 %v14686_v33  ;;  %v14739_v33 = vld [vmem:[#allocation26 + $0x30] sm:$0xff]  }
0x31f4   : > { %9479 = vmatprep.subr.bf16.mxu1 %v14694_v42  ;;  %v14741_v42 = vld [vmem:[#allocation26 + $0x78] sm:$0xff]  }
0x31f7   : > { %9480 = vmatpush1.bf16.msra.mxu1 %v14692_v50  ;;  %v14743_v50 = vld [vmem:[#allocation26 + $0x38] sm:$0xff]  }
0x31f8   : > { %9481 = vmatprep.subr.bf16.mxu1 %v14700_v3 }
0x31fb   : > { %9482 = vmatpush1.bf16.msra.mxu1 %v14698_v55 }
0x31fc   : > { %9483 = vmatprep.subr.bf16.mxu1 %v14706_v7 }
0x31ff   : > { %9484 = vmatpush1.bf16.msra.mxu1 %v14704_v19 }
0x3200   : > { %9485 = vmatprep.subr.bf16.mxu1 %v14712_v47 }
0x32b9   : > { %v9184_v17 = vpop.f32.mrb[144].mxu1 }
0x32ba   : > { %v9191_v20 = vadd.f32 %v9184_v17, %v9005_v29  ;;  %v13831_v56 = vpop.f32.mrb[145].mxu1  ;;  %v14709_v29 = vld [vmem:[#allocation24 + $0xe4] ss:$16 sps:$4 sm:$0xff]  }
0x32bb   : > { %v9187_v23 = vpop.f32.mrb[146].mxu1 }
0x32bc   : > { %v17578_v57 = vadd.f32 %v9191_v20, %v17449_v21  ;;  %v9192_v43 = vadd.f32 %v9187_v23, %v9006_v59  ;;  %v13832_v39 = vpop.f32.mrb[147].mxu1  ;;  %v14671_v21 = vld [vmem:[#allocation24 + $0x20] ss:$16 sps:$4 sm:$0xff]   ;;  %v14710_v59 = vld [vmem:[#allocation24 + $0xe8] ss:$16 sps:$4 sm:$0xff]  }
0x32bd   : > { %9431 = vmatpush1.bf16.msra.mxu0 %v14671_v21  ;;  %9486 = vmatpush1.bf16.msra.mxu1 %v14710_v59  ;;  %v14713_v23 = vld [vmem:[#allocation26 + $0x40] sm:$0xff]   ;;  %v14722_v21 = vld [vmem:[#allocation26 + $0xd0] sm:$0xff]  }
0x32be   : > { %9197 = vadd.xlane.f32.xlu0 %v17578_v57  ;;  %v17582_v5 = vadd.f32 %v9192_v43, %v17452_v52  ;;  %9432 = vmatprep.subr.bf16.mxu0 %v14679_v35  ;;  %v14714_v43 = vld [vmem:[#allocation26 + $0xc0] sm:$0xff]  }
0x32bf   : > { %v14715_v39 = vld [vmem:[#allocation26] sm:$0xff]   ;;  %13430 = vmatprep.subr.bf16.mxu1 %v14714_v43 }
0x32c0   : > { %v14732_v35 = vld [vmem:[#allocation26 + $0xa0] sm:$0xff]  }
0x32c1   : > { %9433 = vmatpush1.bf16.msra.mxu0 %v14677_v28  ;;  %v14734_v28 = vld [vmem:[#allocation26 + $0xe8] sm:$0xff]  }
0x32c2   : > { %9199 = vadd.xlane.f32.xlu0 %v17582_v5  ;;  %9434 = vmatprep.subr.bf16.mxu0 %v14685_v31  ;;  %v14736_v31 = vld [vmem:[#allocation26 + $0xa8] sm:$0xff]  }
0x32c5   : > { %9435 = vmatpush1.bf16.msra.mxu0 %v14683_v32  ;;  %v14738_v32 = vld [vmem:[#allocation26 + $0xf0] sm:$0xff]  }
0x32c6   : > { %9436 = vmatprep.subr.bf16.mxu0 %v14691_v34  ;;  %v14740_v34 = vld [vmem:[#allocation26 + $0xb0] sm:$0xff]  }
0x32c9   : > { %9437 = vmatpush1.bf16.msra.mxu0 %v14689_v49  ;;  %v14742_v49 = vld [vmem:[#allocation26 + $0xf8] sm:$0xff]  }
0x32ca   : > { %9438 = vmatprep.subr.bf16.mxu0 %v14697_v54  ;;  %v14744_v54 = vld [vmem:[#allocation26 + $0xb8] sm:$0xff]  }
0x32cd   : > { %9439 = vmatpush1.bf16.msra.mxu0 %v14695_v37 }
0x32ce   : > { %9440 = vmatprep.subr.bf16.mxu0 %v14703_v45 }
0x32d1   : > { %9441 = vmatpush1.bf16.msra.mxu0 %v14701_v18 }
0x32d2   : > { %9442 = vmatprep.subr.bf16.mxu0 %v14709_v29 }
0x32d5   : > { %9443 = vmatpush1.bf16.msra.mxu0 %v14707_v30 }
0x32d6   : > { %13408 = vmatprep.subr.bf16.mxu0 %v14713_v23 }
0x334b   : > { %v9198_v52 = vpop.xlane.xlu0 %9197 }
0x334c   : > { %v9201_v22 = vmul.f32 0.0078125, %v9198_v52  ;;  %v14724_v52 = vld [vmem:[#allocation26 + $0x90] sm:$0xff]  }
0x334e   : > { %v17586_v25 = vsub.f32 %v17578_v57, %v9201_v22  ;;  %v14725_v22 = vld [vmem:[#allocation26 + $0x58] sm:$0xff]  }
0x334f   : > { %v9200_v44 = vpop.xlane.xlu0 %9199 }
0x3350   : > { %v9202_v63 = vmul.f32 0.0078125, %v9200_v44  ;;  %v9205_v53 = vmul.f32 %v17586_v25, %v17586_v25  ;;  %v14727_v44 = vld [vmem:[#allocation26 + $0x18] sm:$0xff]  }
0x3352   : > { %v17591_v38 = vsub.f32 %v17582_v5, %v9202_v63  ;;  %9207 = vadd.xlane.f32.xlu0 %v9205_v53  ;;  %v14728_v63 = vld [vmem:[#allocation26 + $0x98] sm:$0xff]   ;;  %v14729_v53 = vld [vmem:[#allocation26 + $0x60] sm:$0xff]  }
0x3354   : > { %v9206_v27 = vmul.f32 %v17591_v38, %v17591_v38 }
0x3356   : > { %9209 = vadd.xlane.f32.xlu0 %v9206_v27  ;;  %v14731_v27 = vld [vmem:[#allocation26 + $0x20] sm:$0xff]  }
0x33df   : > { %v9208_v46 = vpop.xlane.xlu0 %9207 }
0x33e0   : > { %v9211_v60 = vmul.f32 0.0078125, %v9208_v46 }
0x33e2   : > { %v9213_v61 = vadd.f32 1e-05, %v9211_v60 }
0x33e3   : > { %v9210_v8 = vpop.xlane.xlu0 %9209 }
0x33e4   : > { %15045 = vrsqrt.f32 %v9213_v61  ;;  %v9212_v4 = vmul.f32 0.0078125, %v9210_v8 }
0x33e6   : > { %v9214_v10 = vadd.f32 1e-05, %v9212_v4 }
0x33e8   : > { %15047 = vrsqrt.f32 %v9214_v10 }
0x33ee   : > { %v15046_v13 = vpop.eup %15045 }
0x33ef   : > { %v9217_v14 = vmul.f32 %v15046_v13, %v17586_v25  ;;  %v14726_v25 = vld [vmem:[#allocation26 + $0xd8] sm:$0xff]  }
0x33f1   : > { %v9225_v62 = vmul.f32 %v12811_v15, %v9217_v14 }
0x33f2   : > { %v15048_v51 = vpop.eup %15047 }
0x33f3   : > { %v9218_v2 = vmul.f32 %v15048_v51, %v17591_v38  ;;  %v9233_v17 = vadd.f32 %v12812_v26, %v9225_v62  ;;  %v14730_v38 = vld [vmem:[#allocation26 + $0xe0] sm:$0xff]  }
0x33f5   : > { %v9226_v16 = vmul.f32 %v12811_v15, %v9218_v2 }
0x33f7   : > { %v9234_v20 = vadd.f32 %v12812_v26, %v9226_v16 }
0x33f9   : > { %v9235_v56 = vpack.c.bf16 %v9234_v20, %v9233_v17 }
0x33fb   : > { %9461 = vmatmul.mubr.bf16.vlgmr.msra.gmra.mrb[120].mxu0 %v9235_v56  ;;  %9504 = vmatmul.mubr.bf16.vlgmr.msra.gmra.mrb[148].mxu1 %v9235_v56 }
0x33fc   : > { %13409 = vmatpush3.bf16.msra.mxu0 %v14715_v39  ;;  %13431 = vmatpush3.bf16.msra.mxu1 %v14716_v24 }
0x33fd   : > { %13410 = vmatprep.subr.bf16.mxu0 %v14717_v12  ;;  %13432 = vmatprep.subr.bf16.mxu1 %v14718_v1 }
0x3400   : > { %13411 = vmatpush3.bf16.msra.mxu0 %v14719_v48  ;;  %13433 = vmatpush3.bf16.msra.mxu1 %v14720_v58 }
0x3401   : > { %13412 = vmatprep.subr.bf16.mxu0 %v14721_v0  ;;  %13434 = vmatprep.subr.bf16.mxu1 %v14722_v21 }
0x3404   : > { %13413 = vmatpush3.bf16.msra.mxu0 %v14723_v40  ;;  %13435 = vmatpush3.bf16.msra.mxu1 %v14724_v52 }
0x3405   : > { %13414 = vmatprep.subr.bf16.mxu0 %v14725_v22  ;;  %13436 = vmatprep.subr.bf16.mxu1 %v14726_v25 }
0x3408   : > { %13415 = vmatpush3.bf16.msra.mxu0 %v14727_v44  ;;  %13437 = vmatpush3.bf16.msra.mxu1 %v14728_v63 }
0x3409   : > { %13416 = vmatprep.subr.bf16.mxu0 %v14729_v53  ;;  %13438 = vmatprep.subr.bf16.mxu1 %v14730_v38 }
0x340c   : > { %13417 = vmatpush3.bf16.msra.mxu0 %v14731_v27  ;;  %13439 = vmatpush3.bf16.msra.mxu1 %v14732_v35 }
0x340d   : > { %13418 = vmatprep.subr.bf16.mxu0 %v14733_v9  ;;  %13440 = vmatprep.subr.bf16.mxu1 %v14734_v28 }
0x3410   : > { %13419 = vmatpush3.bf16.msra.mxu0 %v14735_v11  ;;  %13441 = vmatpush3.bf16.msra.mxu1 %v14736_v31 }
0x3411   : > { %13420 = vmatprep.subr.bf16.mxu0 %v14737_v36  ;;  %13442 = vmatprep.subr.bf16.mxu1 %v14738_v32 }
0x3414   : > { %13421 = vmatpush3.bf16.msra.mxu0 %v14739_v33  ;;  %13443 = vmatpush3.bf16.msra.mxu1 %v14740_v34 }
0x3415   : > { %13422 = vmatprep.subr.bf16.mxu0 %v14741_v42  ;;  %13444 = vmatprep.subr.bf16.mxu1 %v14742_v49 }
0x3418   : > { %13423 = vmatpush3.bf16.msra.mxu0 %v14743_v50  ;;  %13445 = vmatpush3.bf16.msra.mxu1 %v14744_v54 }
0x3419   : > { %13833 = vmatprep.subr.bf16.mxu1 %v15933_v41 }
0x34ce   : > { %v17598_v3 = vpop.f32.mrb[120].mxu0  ;;  %v17600_v37 = vpop.f32.mrb[148].mxu1 }
0x34cf   : > { %v9514_v55 = vmul.f32 %v17598_v3, %v17598_v3  ;;  %v9516_v45 = vmul.f32 %v17600_v37, %v17600_v37  ;;  %v17606_v18 = vpop.f32.mrb[121].mxu0  ;;  %v17608_v19 = vpop.f32.mrb[149].mxu1 }
0x34d0   : > { %v9515_v7 = vmul.f32 %v17606_v18, %v17606_v18  ;;  %v9517_v29 = vmul.f32 %v17608_v19, %v17608_v19  ;;  %v17614_v47 = vpop.f32.mrb[122].mxu0  ;;  %v17616_v30 = vpop.f32.mrb[150].mxu1 }
0x34d1   : > { %v9522_v59 = vmul.f32 %v9514_v55, %v17598_v3  ;;  %v9524_v46 = vmul.f32 %v9516_v45, %v17600_v37  ;;  %v9518_v60 = vmul.f32 %v17614_v47, %v17614_v47  ;;  %v9520_v61 = vmul.f32 %v17616_v30, %v17616_v30  ;;  %v17624_v8 = vpop.f32.mrb[123].mxu0  ;;  %v17626_v4 = vpop.f32.mrb[151].mxu1 }
0x34d2   : > { %v9523_v10 = vmul.f32 %v9515_v7, %v17606_v18  ;;  %v9525_v13 = vmul.f32 %v9517_v29, %v17608_v19  ;;  %v9519_v14 = vmul.f32 %v17624_v8, %v17624_v8  ;;  %v9521_v15 = vmul.f32 %v17626_v4, %v17626_v4 }
0x34d3   : > { %v9530_v51 = vmul.f32 0.044715, %v9522_v59  ;;  %v9532_v2 = vmul.f32 0.044715, %v9524_v46  ;;  %v9526_v62 = vmul.f32 %v9518_v60, %v17614_v47  ;;  %v9528_v26 = vmul.f32 %v9520_v61, %v17616_v30 }
0x34d4   : > { %v9531_v16 = vmul.f32 0.044715, %v9523_v10  ;;  %v9533_v17 = vmul.f32 0.044715, %v9525_v13  ;;  %v9527_v20 = vmul.f32 %v9519_v14, %v17624_v8  ;;  %v9529_v56 = vmul.f32 %v9521_v15, %v17626_v4 }
0x34d5   : > { %v9538_v23 = vadd.f32 %v9530_v51, %v17598_v3  ;;  %v9540_v43 = vadd.f32 %v9532_v2, %v17600_v37  ;;  %v9534_v39 = vmul.f32 0.044715, %v9526_v62  ;;  %v9536_v24 = vmul.f32 0.044715, %v9528_v26 }
0x34d6   : > { %v9539_v12 = vadd.f32 %v9531_v16, %v17606_v18  ;;  %v9541_v1 = vadd.f32 %v9533_v17, %v17608_v19  ;;  %v9535_v48 = vmul.f32 0.044715, %v9527_v20  ;;  %v9537_v58 = vmul.f32 0.044715, %v9529_v56 }
0x34d7   : > { %v9546_v0 = vmul.f32 0.7978846, %v9538_v23  ;;  %v9548_v21 = vmul.f32 0.7978846, %v9540_v43  ;;  %v9542_v40 = vadd.f32 %v9534_v39, %v17614_v47  ;;  %v9544_v52 = vadd.f32 %v9536_v24, %v17616_v30 }
0x34d8   : > { %v9547_v22 = vmul.f32 0.7978846, %v9539_v12  ;;  %v9549_v25 = vmul.f32 0.7978846, %v9541_v1  ;;  %v9543_v44 = vadd.f32 %v9535_v48, %v17624_v8  ;;  %v9545_v63 = vadd.f32 %v9537_v58, %v17626_v4 }
0x34d9   : > { %15049 = vtanh.f32 %v9546_v0  ;;  %v9550_v53 = vmul.f32 0.7978846, %v9542_v40  ;;  %v9552_v38 = vmul.f32 0.7978846, %v9544_v52 }
0x34da   : > { %15051 = vtanh.f32 %v9548_v21  ;;  %v9551_v27 = vmul.f32 0.7978846, %v9543_v44  ;;  %v9553_v35 = vmul.f32 0.7978846, %v9545_v63  ;;  %v14748_v44 = vld [vmem:[#allocation30 + $0x8] ss:$12 sps:$4 sm:$0xff]  }
0x34db   : > { %15053 = vtanh.f32 %v9547_v22  ;;  %v14745_v22 = vld [vmem:[#allocation30] ss:$12 sps:$4 sm:$0xff]   ;;  %v14751_v63 = vld [vmem:[#allocation30 + $0x1c] ss:$12 sps:$4 sm:$0xff]  }
0x34dc   : > { %15055 = vtanh.f32 %v9549_v25  ;;  %v14747_v25 = vld [vmem:[#allocation30 + $0x4] ss:$12 sps:$4 sm:$0xff]  }
0x34dd   : > { %15057 = vtanh.f32 %v9550_v53  ;;  %10131 = vmatprep.subr.bf16.mxu0 %v14747_v25  ;;  %v14749_v53 = vld [vmem:[#allocation30 + $0x18] ss:$12 sps:$4 sm:$0xff]  }
0x34de   : > { %15059 = vtanh.f32 %v9552_v38 }
0x34df   : > { %15061 = vtanh.f32 %v9551_v27 }
0x34e0   : > { %15063 = vtanh.f32 %v9553_v35 }
0x34e3   : > { %v15050_v9 = vpop.eup %15049 }
0x34e4   : > { %v15052_v28 = vpop.eup %15051  ;;  %v9562_v11 = vadd.f32 1.0, %v15050_v9 }
0x34e5   : > { %v15054_v31 = vpop.eup %15053  ;;  %v9564_v36 = vadd.f32 1.0, %v15052_v28 }
0x34e6   : > { %v15056_v32 = vpop.eup %15055  ;;  %v9563_v33 = vadd.f32 1.0, %v15054_v31  ;;  %v9570_v50 = vmul.f32 0.5, %v9562_v11  ;;  %v14752_v31 = vld [vmem:[#allocation30 + $0x20] ss:$12 sps:$4 sm:$0xff]  }
0x34e7   : > { %v15058_v34 = vpop.eup %15057  ;;  %v9565_v42 = vadd.f32 1.0, %v15056_v32  ;;  %v9572_v45 = vmul.f32 0.5, %v9564_v36  ;;  %v14755_v36 = vld [vmem:[#allocation30 + $0x34] ss:$12 sps:$4 sm:$0xff]   ;;  %v14753_v32 = vld [vmem:[#allocation30 + $0x30] ss:$12 sps:$4 sm:$0xff]  }
0x34e8   : > { %v15060_v49 = vpop.eup %15059  ;;  %v9566_v54 = vadd.f32 1.0, %v15058_v34  ;;  %v9571_v59 = vmul.f32 0.5, %v9563_v33  ;;  %v9578_v14 = vmul.f32 %v9570_v50, %v17598_v3  ;;  %v14756_v33 = vld [vmem:[#allocation30 + $0x38] ss:$12 sps:$4 sm:$0xff]  }
0x34e9   : > { %v15062_v55 = vpop.eup %15061  ;;  %v9568_v7 = vadd.f32 1.0, %v15060_v49  ;;  %v9573_v61 = vmul.f32 0.5, %v9565_v42  ;;  %v9580_v2 = vmul.f32 %v9572_v45, %v17600_v37  ;;  %v14759_v34 = vld [vmem:[#allocation30 + $0x4c] ss:$12 sps:$4 sm:$0xff]   ;;  %v14757_v42 = vld [vmem:[#allocation30 + $0x48] ss:$12 sps:$4 sm:$0xff]  }
0x34ea   : > { %v15064_v29 = vpop.eup %15063  ;;  %v9574_v46 = vmul.f32 0.5, %v9566_v54  ;;  %v9567_v60 = vadd.f32 1.0, %v15062_v55  ;;  %v9579_v16 = vmul.f32 %v9571_v59, %v17606_v18  ;;  %v14760_v49 = vld [vmem:[#allocation30 + $0x50] ss:$12 sps:$4 sm:$0xff]   ;;  %v14761_v54 = vld [vmem:[#allocation30 + $0x60] ss:$12 sps:$4 sm:$0xff]  }
0x34eb   : > { %v9576_v10 = vmul.f32 0.5, %v9568_v7  ;;  %v9569_v13 = vadd.f32 1.0, %v15064_v29  ;;  %v9581_v56 = vmul.f32 %v9573_v61, %v17608_v19  ;;  %v14763_v50 = vld [vmem:[#allocation30 + $0x64] ss:$12 sps:$4 sm:$0xff]   ;;  %v14764_v55 = vld [vmem:[#allocation30 + $0x68] ss:$12 sps:$4 sm:$0xff]  }
0x34ec   : > { %v9582_v15 = vmul.f32 %v9574_v46, %v17614_v47  ;;  %v9575_v51 = vmul.f32 0.5, %v9567_v60  ;;  %v14767_v45 = vld [vmem:[#allocation30 + $0x7c] ss:$12 sps:$4 sm:$0xff]   ;;  %v14765_v7 = vld [vmem:[#allocation30 + $0x78] ss:$12 sps:$4 sm:$0xff]  }
0x34ed   : > { %v9584_v62 = vmul.f32 %v9576_v10, %v17616_v30  ;;  %v9577_v26 = vmul.f32 0.5, %v9569_v13  ;;  %v14768_v29 = vld [vmem:[#allocation30 + $0x80] ss:$12 sps:$4 sm:$0xff]   ;;  %v14769_v46 = vld [vmem:[#allocation30 + $0x90] ss:$12 sps:$4 sm:$0xff]  }
0x34ee   : > { %v9583_v17 = vmul.f32 %v9575_v51, %v17624_v8  ;;  %v9586_v20 = vpack.c.bf16 %v9582_v15, %v9578_v14  ;;  %v14771_v59 = vld [vmem:[#allocation30 + $0x94] ss:$12 sps:$4 sm:$0xff]   ;;  %v14772_v60 = vld [vmem:[#allocation30 + $0x98] ss:$12 sps:$4 sm:$0xff]   ;;  %v14776_v13 = vld [vmem:[#allocation30 + $0xb0] ss:$12 sps:$4 sm:$0xff]  }
0x34ef   : > { %v9585_v23 = vmul.f32 %v9577_v26, %v17626_v4  ;;  %v9588_v43 = vpack.c.bf16 %v9584_v62, %v9580_v2  ;;  %v14775_v61 = vld [vmem:[#allocation30 + $0xac] ss:$12 sps:$4 sm:$0xff]   ;;  %v14773_v10 = vld [vmem:[#allocation30 + $0xa8] ss:$12 sps:$4 sm:$0xff]  }
0x34f0   : > { %v9587_v39 = vpack.c.bf16 %v9583_v17, %v9579_v16 }
0x34f1   : > { %v9589_v3 = vpack.c.bf16 %v9585_v23, %v9581_v56 }
0x34f2   : > { %9878 = vmatprep.mubr.bf16.mxu0 %v9587_v39  ;;  %v12878_v39 = vld [vmem:[#allocation29] ss:$0 sm:$0xff] }
0x34f3   : > { %9919 = vmatprep.mubr.bf16.mxu1 %v9589_v3  ;;  %9879 = vmatmul.mubr.bf16.vlgmr.msra.gmra.mrb[124].mxu0 %v9586_v20  ;;  %v12877_v20 = vld [vmem:[#allocation27] ss:$0 sm:$0xff] }
0x34f4   : > { %9920 = vmatmul.mubr.bf16.vlgmr.msra.gmra.mrb[152].mxu1 %v9588_v43  ;;  %10163 = vmatprep.mubr.bf16.mxu0 %v15934_v6 }
0x34f5   : > { %13849 = vmatprep.mubr.msk.bf16.mxu1 %vm15935_vm0, %v15933_v41  ;;  %13834 = vmatpush3.bf16.msra.mxu1 %v14748_v44 }
0x34f6   : > { %10132 = vmatpush1.bf16.msra.mxu0 %v14745_v22  ;;  %13835 = vmatprep.subr.bf16.mxu1 %v15933_v41 }
0x34f7   : > { %10133 = vmatprep.subr.bf16.mxu0 %v14751_v63 }
0x34f9   : > { %13836 = vmatpush3.bf16.msra.mxu1 %v14752_v31 }
0x34fa   : > { %10134 = vmatpush1.bf16.msra.mxu0 %v14749_v53  ;;  %13837 = vmatprep.subr.bf16.mxu1 %v15933_v41 }
0x34fb   : > { %10135 = vmatprep.subr.bf16.mxu0 %v14755_v36 }
0x34fd   : > { %13838 = vmatpush3.bf16.msra.mxu1 %v14756_v33 }
0x34fe   : > { %10136 = vmatpush1.bf16.msra.mxu0 %v14753_v32  ;;  %13839 = vmatprep.subr.bf16.mxu1 %v15933_v41 }
0x34ff   : > { %10137 = vmatprep.subr.bf16.mxu0 %v14759_v34 }
0x3501   : > { %13840 = vmatpush3.bf16.msra.mxu1 %v14760_v49 }
0x3502   : > { %10138 = vmatpush1.bf16.msra.mxu0 %v14757_v42  ;;  %13841 = vmatprep.subr.bf16.mxu1 %v15933_v41 }
0x3503   : > { %10139 = vmatprep.subr.bf16.mxu0 %v14763_v50 }
0x3505   : > { %13842 = vmatpush3.bf16.msra.mxu1 %v14764_v55 }
0x3506   : > { %10140 = vmatpush1.bf16.msra.mxu0 %v14761_v54  ;;  %13843 = vmatprep.subr.bf16.mxu1 %v15933_v41 }
0x3507   : > { %10141 = vmatprep.subr.bf16.mxu0 %v14767_v45 }
0x3509   : > { %13844 = vmatpush3.bf16.msra.mxu1 %v14768_v29 }
0x350a   : > { %10142 = vmatpush1.bf16.msra.mxu0 %v14765_v7  ;;  %13845 = vmatprep.subr.bf16.mxu1 %v15933_v41 }
0x350b   : > { %10143 = vmatprep.subr.bf16.mxu0 %v14771_v59 }
0x350d   : > { %13846 = vmatpush3.bf16.msra.mxu1 %v14772_v60 }
0x350e   : > { %10144 = vmatpush1.bf16.msra.mxu0 %v14769_v46  ;;  %13847 = vmatprep.subr.bf16.mxu1 %v15933_v41 }
0x350f   : > { %10145 = vmatprep.subr.bf16.mxu0 %v14775_v61 }
0x3511   : > { %13848 = vmatpush3.bf16.msra.mxu1 %v14776_v13 }
0x3512   : > { %10146 = vmatpush1.bf16.msra.mxu0 %v14773_v10  ;;  %13859 = vmatprep.subr.bf16.mxu1 %v15933_v41 }
0x3513   : > { %13853 = vmatprep.subr.bf16.mxu0 %v15933_v41 }
0x35c6   : > { %v13424_v37 = vpop.f32.mrb[124].mxu0 }
0x35c7   : > { %v13446_v18 = vpop.f32.mrb[152].mxu1  ;;  %v13425_v47 = vpop.f32.mrb[125].mxu0 }
0x35c8   : > { %v13426_v30 = vadd.f32 %v13425_v47, %v13424_v37  ;;  %v13447_v8 = vpop.f32.mrb[153].mxu1  ;;  %v13427_v19 = vpop.f32.mrb[126].mxu0 }
0x35c9   : > { %v13448_v24 = vadd.f32 %v13447_v8, %v13446_v18  ;;  %v13449_v4 = vpop.f32.mrb[154].mxu1  ;;  %v13428_v12 = vpop.f32.mrb[127].mxu0 }
0x35ca   : > { %v13429_v1 = vadd.f32 %v13428_v12, %v13427_v19  ;;  %v13450_v48 = vpop.f32.mrb[155].mxu1 }
0x35cb   : > { %v9922_v58 = vadd.f32 %v13448_v24, %v13426_v30  ;;  %v13451_v0 = vadd.f32 %v13450_v48, %v13449_v4 }
0x35cd   : > { %v9925_v21 = vadd.f32 %v13451_v0, %v13429_v1  ;;  %v17658_v40 = vadd.f32 %v9922_v58, %v17578_v57 }
0x35cf   : > { %9932 = vadd.xlane.f32.xlu1 %v17658_v40  ;;  %v17662_v52 = vadd.f32 %v9925_v21, %v17582_v5 }
0x35d1   : > { %9934 = vadd.xlane.f32.xlu0 %v17662_v52 }
0x365c   : > { %v9933_v57 = vpop.xlane.xlu1 %9932 }
0x365d   : > { %v9936_v38 = vmul.f32 0.0078125, %v9933_v57 }
0x365e   : > { %v9935_v27 = vpop.xlane.xlu0 %9934 }
0x365f   : > { %v9938_v5 = vsub.f32 %v17658_v40, %v9936_v38  ;;  %v9937_v35 = vmul.f32 0.0078125, %v9935_v27 }
0x3661   : > { %v17668_v9 = vsub.f32 %v17662_v52, %v9937_v35  ;;  %v9940_v28 = vmul.f32 %v9938_v5, %v9938_v5 }
0x3663   : > { %9942 = vadd.xlane.f32.xlu0 %v9940_v28  ;;  %v9941_v11 = vmul.f32 %v17668_v9, %v17668_v9 }
0x3667   : > { %9944 = vadd.xlane.f32.xlu0 %v9941_v11 }
0x36f0   : > { %v9943_v14 = vpop.xlane.xlu0 %9942 }
0x36f1   : > { %v9946_v15 = vmul.f32 0.0078125, %v9943_v14 }
0x36f3   : > { %v9948_v51 = vadd.f32 1e-05, %v9946_v15 }
0x36f4   : > { %v9945_v2 = vpop.xlane.xlu0 %9944 }
0x36f5   : > { %15065 = vrsqrt.f32 %v9948_v51  ;;  %v9947_v62 = vmul.f32 0.0078125, %v9945_v2 }
0x36f7   : > { %v9949_v26 = vadd.f32 1e-05, %v9947_v62 }
0x36f9   : > { %15067 = vrsqrt.f32 %v9949_v26 }
0x36ff   : > { %v15066_v16 = vpop.eup %15065 }
0x3700   : > { %v9952_v17 = vmul.f32 %v15066_v16, %v9938_v5 }
0x3702   : > { %v9960_v43 = vmul.f32 %v12877_v20, %v9952_v17 }
0x3703   : > { %v15068_v56 = vpop.eup %15067 }
0x3704   : > { %v9953_v23 = vmul.f32 %v15068_v56, %v17668_v9  ;;  %v9968_v37 = vadd.f32 %v12878_v39, %v9960_v43 }
0x3706   : > { %v9961_v3 = vmul.f32 %v12877_v20, %v9953_v23 }
0x3708   : > { %v9969_v18 = vadd.f32 %v12878_v39, %v9961_v3 }
0x370a   : > { %v9970_v47 = vpack.c.bf16 %v9969_v18, %v9968_v37  ;;  %v14779_v18 = vld [vmem:[#allocation32 + $0x10] sm:$0xff]  }
0x370c   : > { %10164 = vmatmul.mubr.bf16.vlgmr.msra.gmra.mrb[128].mxu0 %v9970_v47  ;;  %13850 = vmatmul.mubr.bf16.vlgmr.msra.gmra.mrb[156].mxu1 %v9970_v47  ;;  %v14780_v47 = vld [vmem:[#allocation32 + $0x18] sm:$0xff]  }
0x370d   : > { %13855 = vmatprep.mubr.msk.bf16.mxu0 %vm15935_vm0, %v15933_v41  ;;  %13861 = vmatprep.mubr.msk.bf16.mxu1 %vm15935_vm0, %v15933_v41 }
0x37df   : > { %v10165_v30 = vpop.f32.mrb[128].mxu0  ;;  %v10208_v8 = vpop.f32.mrb[156].mxu1 }
0x37e0   : > { %v10167_v19 = vpop.f32.mrb[129].mxu0  ;;  %v13851_v24 = vpop.f32.mrb[157].mxu1 }
0x37e1   : > { %v10169_v4 = vpop.f32.mrb[130].mxu0  ;;  %v10211_v12 = vpop.f32.mrb[158].mxu1 }
0x37e2   : > { %v17685_v1 = vpack.c.bf16 %v10169_v4, %v10165_v30  ;;  %v17687_v48 = vpack.c.bf16 %v10211_v12, %v10208_v8  ;;  %v10171_v58 = vpop.f32.mrb[131].mxu0  ;;  %v13852_v0 = vpop.f32.mrb[159].mxu1 }
0x37e3   : > { %v17689_v21 = vpack.c.bf16 %v10171_v58, %v10167_v19  ;;  %v14777_v0 = vld [vmem:[#allocation32] sm:$0xff]  }
0x37e4   : > { %13860 = vmatpush3.bf16.msra.mxu1 %v17687_v48 }
0x37e5   : > { %10343 = vrot.lane.b32.xlu0 %v17689_v21, %s15936_s11  ;;  %v10222_v22 = vsel %vm2240_vm1, %v17689_v21, 0  ;;  %13871 = vmatprep.subr.bf16.mxu1 %v15933_v41 }
0x37e6   : > { %13854 = vmatpush3.bf16.xpose.msra.mxu0 %v10222_v22 }
0x37e7   : > { %13865 = vmatprep.subr.bf16.mxu0 %v15933_v41 }
0x37e9   : > { %10340 = vrot.lane.b32.xlu0 %v17685_v1, %s15936_s11 }
0x37ed   : > { %13856 = vmatmul.mubr.msk.bf16.vlgmr.msra.gmra.mrb[132].mxu0 %vm2240_vm1, %v17685_v1 }
0x37ee   : > { %13867 = vmatprep.mubr.msk.bf16.mxu0 %vm15935_vm0, %v15933_v41 }
0x3857   : > { %v10344_v25 = vpop.permute.xlu0 %10343 }
0x3858   : > { %v10349_v44 = vsel %vm2240_vm1, %v10344_v25, 0  ;;  %v14778_v25 = vld [vmem:[#allocation32 + $0x8] sm:$0xff]  }
0x3859   : > { %13866 = vmatpush3.bf16.xpose.msra.mxu0 %v10349_v44 }
0x385a   : > { %13877 = vmatprep.subr.bf16.mxu0 %v15933_v41 }
0x385b   : > { %v10341_v63 = vpop.permute.xlu0 %10340 }
0x3860   : > { %13868 = vmatmul.mubr.msk.bf16.vlgmr.msra.gmra.mrb[136].mxu0 %vm2240_vm1, %v10341_v63 }
0x3861   : > { %13881 = vmatprep.mubr.msk.bf16.mxu0 %vm15935_vm0, %v15933_v41  ;;  %13878 = vmatpush3.bf16.msra.mxu0 %v14779_v18 }
0x3862   : > { %13879 = vmatprep.subr.bf16.mxu0 %v15933_v41 }
0x3865   : > { %13880 = vmatpush3.bf16.msra.mxu0 %v14780_v47 }
0x3866   : > { %13893 = vmatprep.subr.bf16.mxu0 %v15933_v41 }
0x38c0   : > { %v10258_v53 = vpop.f32.mrb[132].mxu0 }
0x38c1   : > { %v10265_v57 = vmul.f32 0.17677669, %v10258_v53  ;;  %v13857_v38 = vpop.f32.mrb[133].mxu0 }
0x38c2   : > { %v10261_v27 = vpop.f32.mrb[134].mxu0 }
0x38c3   : > { %v10266_v5 = vmul.f32 0.17677669, %v10261_v27  ;;  %v13858_v35 = vpop.f32.mrb[135].mxu0  ;;  %v10267_v9 = vsel %vm2290_vm2, %v10265_v57, -inf }
0x38c4   : > { %10268 = vmax.xlane.f32.xlu1 %v10267_v9 }
0x38c5   : > { %v10270_v28 = vsel %vm2290_vm2, %v10266_v5, -inf }
0x38c6   : > { %10271 = vmax.xlane.f32.xlu0 %v10270_v28 }
0x38dc   : > { %10584 = vrot.lane.b32.xlu0 %v17689_v21, %s15937_s23 }
0x3933   : > { %v10385_v11 = vpop.f32.mrb[136].mxu0 }
0x3934   : > { %v10392_v31 = vmul.f32 0.17677669, %v10385_v11  ;;  %v13869_v36 = vpop.f32.mrb[137].mxu0 }
0x3935   : > { %v10388_v32 = vpop.f32.mrb[138].mxu0 }
0x3936   : > { %v10393_v33 = vmul.f32 0.17677669, %v10388_v32  ;;  %v13870_v34 = vpop.f32.mrb[139].mxu0  ;;  %v10394_v42 = vsel %vm2290_vm2, %v10392_v31, -inf }
0x3937   : > { %10395 = vmax.xlane.f32.xlu1 %v10394_v42 }
0x3938   : > { %v10397_v49 = vsel %vm2290_vm2, %v10393_v33, -inf }
0x393b   : > { %10398 = vmax.xlane.f32.xlu1 %v10397_v49 }
0x3951   : > { %v10269_v50 = vpop.xlane.xlu1 %10268 }
0x3952   : > { %v10273_v54 = vsub.f32 %v10265_v57, %v10269_v50 }
0x3953   : > { %v10272_v55 = vpop.xlane.xlu0 %10271 }
0x3954   : > { %v10275_v45 = vmul.f32 1.442695, %v10273_v54  ;;  %v10274_v7 = vsub.f32 %v10266_v5, %v10272_v55 }
0x3956   : > { %15069 = vpow2.f32 %v10275_v45  ;;  %v10277_v29 = vmul.f32 1.442695, %v10274_v7 }
0x3957   : > { %v10585_v35 = vpop.permute.xlu0 %10584 }
0x3958   : > { %15071 = vpow2.f32 %v10277_v29 }
0x3960   : > { %v15070_v59 = vpop.eup %15069 }
0x3961   : > { %v10279_v46 = vsel %vm2290_vm2, %v15070_v59, 0.0 }
0x3962   : > { %v15072_v60 = vpop.eup %15071  ;;  %10280 = vadd.xlane.f32.xlu1 %v10279_v46 }
0x3963   : > { %v10282_v61 = vsel %vm2290_vm2, %v15072_v60, 0.0 }
0x3966   : > { %10283 = vadd.xlane.f32.xlu1 %v10282_v61 }
0x39c4   : > { %v10396_v10 = vpop.xlane.xlu1 %10395 }
0x39c5   : > { %v10400_v13 = vsub.f32 %v10392_v31, %v10396_v10  ;;  %v10590_v31 = vsel %vm2240_vm1, %v10585_v35, 0 }
0x39c7   : > { %v10402_v14 = vmul.f32 1.442695, %v10400_v13 }
0x39c8   : > { %v10399_v15 = vpop.xlane.xlu1 %10398 }
0x39c9   : > { %15073 = vpow2.f32 %v10402_v14  ;;  %v10401_v51 = vsub.f32 %v10393_v33, %v10399_v15 }
0x39cb   : > { %v10404_v2 = vmul.f32 1.442695, %v10401_v51 }
0x39cd   : > { %15075 = vpow2.f32 %v10404_v2 }
0x39d3   : > { %v15074_v62 = vpop.eup %15073 }
0x39d4   : > { %v10406_v26 = vsel %vm2290_vm2, %v15074_v62, 0.0 }
0x39d5   : > { %10407 = vadd.xlane.f32.xlu1 %v10406_v26 }
0x39d7   : > { %v15076_v16 = vpop.eup %15075 }
0x39d8   : > { %v10409_v17 = vsel %vm2290_vm2, %v15076_v16, 0.0 }
0x39d9   : > { %10410 = vadd.xlane.f32.xlu1 %v10409_v17 }
0x39ea   : > { %10418 = vrot.lane.b32.xlu1 %v17687_v48, %s15936_s11  ;;  %s1664_s11 = scalar_lea.vmem %s16168_s21, %s13009_s1 }
0x39ee   : > { %10582 = vrot.lane.b32.xlu1 %v17685_v1, %s15937_s23 }
0x39ef   : > { %v10281_v20 = vpop.xlane.xlu1 %10280 }
0x39f0   : > { %15077 = vrcp.f32 %v10281_v20 }
0x39f3   : > { %v10284_v56 = vpop.xlane.xlu1 %10283 }
0x39f4   : > { %15079 = vrcp.f32 %v10284_v56 }
0x39fa   : > { %v15078_v23 = vpop.eup %15077 }
0x39fb   : > { %v10287_v39 = vmul.f32 %v15078_v23, %v15070_v59 }
0x39fe   : > { %v15080_v43 = vpop.eup %15079 }
0x39ff   : > { %v10288_v3 = vmul.f32 %v15080_v43, %v15072_v60  ;;  %v14781_v43 = vld [vmem:[#allocation32 + $0x20] sm:$0xff]  }
0x3a01   : > { %v10289_v37 = vpack.c.bf16 %v10288_v3, %v10287_v39 }
0x3a03   : > { %13862 = vmatmul.mubr.msk.bf16.vlgmr.msra.gmra.mrb[160].mxu1 %vm2290_vm2, %v10289_v37 }
0x3a04   : > { %13873 = vmatprep.mubr.msk.bf16.mxu1 %vm15935_vm0, %v15933_v41 }
0x3a62   : > { %v10408_v30 = vpop.xlane.xlu1 %10407 }
0x3a63   : > { %15081 = vrcp.f32 %v10408_v30 }
0x3a66   : > { %v10411_v8 = vpop.xlane.xlu1 %10410 }
0x3a67   : > { %15083 = vrcp.f32 %v10411_v8 }
0x3a6a   : > { %v10419_v19 = vpop.permute.xlu1 %10418 }
0x3a6b   : > { %13872 = vmatpush3.bf16.msra.mxu1 %v10419_v19 }
0x3a6c   : > { %13885 = vmatprep.subr.bf16.mxu1 %v15933_v41 }
0x3a6d   : > { %v15082_v24 = vpop.eup %15081 }
0x3a6e   : > { %v10414_v12 = vmul.f32 %v15082_v24, %v15074_v62  ;;  %v10583_v36 = vpop.permute.xlu1 %10582 }
0x3a71   : > { %v15084_v4 = vpop.eup %15083 }
0x3a72   : > { %v10415_v58 = vmul.f32 %v15084_v4, %v15076_v16  ;;  %v14782_v4 = vld [vmem:[#allocation32 + $0x28] sm:$0xff]  }
0x3a74   : > { %v10416_v22 = vpack.c.bf16 %v10415_v58, %v10414_v12 }
0x3a76   : > { %13874 = vmatmul.mubr.msk.bf16.vlgmr.msra.gmra.mrb[164].mxu1 %vm2290_vm2, %v10416_v22 }
0x3a77   : > { %13886 = vmatpush3.bf16.msra.mxu1 %v14777_v0  ;;  %13889 = vmatprep.mubr.msk.bf16.mxu1 %vm15935_vm0, %v15933_v41 }
0x3a78   : > { %13887 = vmatprep.subr.bf16.mxu1 %v15933_v41 }
0x3a7b   : > { %13888 = vmatpush3.bf16.msra.mxu1 %v14778_v25 }
0x3a7c   : > { %13899 = vmatprep.subr.bf16.mxu1 %v15933_v41 }
0x3ad6   : > { %v10327_v44 = vpop.f32.mrb[160].mxu1 }
0x3ad7   : > { %v13863_v63 = vpop.f32.mrb[161].mxu1 }
0x3ad8   : > { %v10330_v53 = vpop.f32.mrb[162].mxu1 }
0x3ad9   : > { %v10334_v57 = vpack.c.bf16 %v10330_v53, %v10327_v44  ;;  %v13864_v38 = vpop.f32.mrb[163].mxu1 }
0x3adb   : > { %13890 = vmatmul.mubr.msk.bf16.vlgmr.msra.gmra.mrb[168].mxu1 %vm2240_vm1, %v10334_v57 }
0x3adc   : > { %13901 = vmatprep.mubr.msk.bf16.mxu1 %vm15935_vm0, %v15933_v41 }
0x3b49   : > { %v10458_v27 = vpop.f32.mrb[164].mxu1 }
0x3b4a   : > { %v13875_v5 = vpop.f32.mrb[165].mxu1 }
0x3b4b   : > { %v10461_v9 = vpop.f32.mrb[166].mxu1 }
0x3b4c   : > { %v10465_v28 = vpack.c.bf16 %v10461_v9, %v10458_v27  ;;  %v13876_v11 = vpop.f32.mrb[167].mxu1 }
0x3b4e   : > { %13882 = vmatmul.mubr.msk.bf16.vlgmr.msra.gmra.mrb[140].mxu0 %vm2240_vm1, %v10465_v28 }
0x3b4f   : > { %13894 = vmatpush3.bf16.xpose.msra.mxu0 %v10590_v31  ;;  %13895 = vmatprep.mubr.msk.bf16.mxu0 %vm15935_vm0, %v15933_v41 }
0x3b50   : > { %13905 = vmatprep.subr.bf16.mxu0 %v15933_v41 }
0x3b56   : > { %13896 = vmatmul.mubr.msk.bf16.vlgmr.msra.gmra.mrb[144].mxu0 %vm2240_vm1, %v10583_v36 }
0x3b57   : > { %13909 = vmatprep.mubr.msk.bf16.mxu0 %vm15935_vm0, %v15933_v41  ;;  %13906 = vmatpush3.bf16.msra.mxu0 %v14781_v43 }
0x3b58   : > { %13907 = vmatprep.subr.bf16.mxu0 %v15933_v41 }
0x3b5b   : > { %13908 = vmatpush3.bf16.msra.mxu0 %v14782_v4 }
0x3b5c   : > { %13919 = vmatprep.subr.bf16.mxu0 %v15933_v41 }
0x3bae   : > { %v10575_v32 = vpop.f32.mrb[168].mxu1 }
0x3baf   : > { %v13891_v33 = vpop.f32.mrb[169].mxu1 }
0x3bb0   : > { %v10578_v34 = vpop.f32.mrb[170].mxu1 }
0x3bb1   : > { %v13892_v42 = vpop.f32.mrb[171].mxu1 }
0x3c21   : > { %v10519_v49 = vpop.f32.mrb[140].mxu0 }
0x3c22   : > { %v17745_v50 = vadd.f32 %v10575_v32, %v10519_v49  ;;  %v13883_v54 = vpop.f32.mrb[141].mxu0 }
0x3c23   : > { %v10522_v55 = vpop.f32.mrb[142].mxu0  ;;  %v14783_v54 = vld [vmem:[#allocation32 + $0x30] sm:$0xff]  }
0x3c24   : > { %v17747_v45 = vadd.f32 %v10578_v34, %v10522_v55  ;;  %v13884_v7 = vpop.f32.mrb[143].mxu0 }
0x3c29   : > { %v10626_v29 = vpop.f32.mrb[144].mxu0 }
0x3c2a   : > { %v10633_v59 = vmul.f32 0.17677669, %v10626_v29  ;;  %v13897_v46 = vpop.f32.mrb[145].mxu0 }
0x3c2b   : > { %v10629_v60 = vpop.f32.mrb[146].mxu0 }
0x3c2c   : > { %v10634_v61 = vmul.f32 0.17677669, %v10629_v60  ;;  %v13898_v10 = vpop.f32.mrb[147].mxu0  ;;  %v10635_v13 = vsel %vm2290_vm2, %v10633_v59, -inf }
0x3c2d   : > { %10636 = vmax.xlane.f32.xlu1 %v10635_v13 }
0x3c2e   : > { %v10638_v14 = vsel %vm2290_vm2, %v10634_v61, -inf }
0x3c2f   : > { %10639 = vmax.xlane.f32.xlu0 %v10638_v14 }
0x3cba   : > { %v10637_v15 = vpop.xlane.xlu1 %10636 }
0x3cbb   : > { %v10641_v51 = vsub.f32 %v10633_v59, %v10637_v15 }
0x3cbc   : > { %v10640_v2 = vpop.xlane.xlu0 %10639 }
0x3cbd   : > { %v10643_v62 = vmul.f32 1.442695, %v10641_v51  ;;  %v10642_v26 = vsub.f32 %v10634_v61, %v10640_v2 }
0x3cbf   : > { %15085 = vpow2.f32 %v10643_v62  ;;  %v10645_v16 = vmul.f32 1.442695, %v10642_v26 }
0x3cc1   : > { %15087 = vpow2.f32 %v10645_v16 }
0x3cc9   : > { %v15086_v17 = vpop.eup %15085 }
0x3cca   : > { %v10647_v20 = vsel %vm2290_vm2, %v15086_v17, 0.0 }
0x3ccb   : > { %v15088_v56 = vpop.eup %15087  ;;  %10648 = vadd.xlane.f32.xlu1 %v10647_v20 }
0x3ccc   : > { %v10650_v23 = vsel %vm2290_vm2, %v15088_v56, 0.0 }
0x3ccd   : > { %10651 = vadd.xlane.f32.xlu0 %v10650_v23 }
0x3cdc   : > { %10658 = vrot.lane.b32.xlu1 %v17687_v48, %s15937_s23 }
0x3ce0   : > { %10768 = vrot.lane.b32.xlu1 %v17685_v1, %s15938_s10 }
0x3ce3   : > { %10770 = vrot.lane.b32.xlu0 %v17689_v21, %s15938_s10 }
0x3d58   : > { %v10649_v39 = vpop.xlane.xlu1 %10648 }
0x3d59   : > { %15089 = vrcp.f32 %v10649_v39 }
0x3d5a   : > { %v10652_v3 = vpop.xlane.xlu0 %10651 }
0x3d5b   : > { %15091 = vrcp.f32 %v10652_v3 }
0x3d5c   : > { %v10659_v37 = vpop.permute.xlu1 %10658 }
0x3d5d   : > { %13900 = vmatpush3.bf16.msra.mxu1 %v10659_v37 }
0x3d5e   : > { %13913 = vmatprep.subr.bf16.mxu1 %v15933_v41  ;;  %v10771_v1 = vpop.permute.xlu0 %10770 }
0x3d5f   : > { %v10776_v21 = vsel %vm2240_vm1, %v10771_v1, 0  ;;  %v14793_v1 = vld [vmem:[#allocation36 + $0x24] ss:$16 sps:$4 sm:$0xff]  }
0x3d60   : > { %v10769_v24 = vpop.permute.xlu1 %10768 }
0x3d63   : > { %v15090_v18 = vpop.eup %15089 }
0x3d64   : > { %v10655_v30 = vmul.f32 %v15090_v18, %v15086_v17  ;;  %v14785_v18 = vld [vmem:[#allocation36] ss:$16 sps:$4 sm:$0xff]  }
0x3d65   : > { %v15092_v47 = vpop.eup %15091 }
0x3d66   : > { %v10656_v8 = vmul.f32 %v15092_v47, %v15088_v56  ;;  %v14787_v47 = vld [vmem:[#allocation36 + $0x4] ss:$16 sps:$4 sm:$0xff]  }
0x3d68   : > { %v10657_v19 = vpack.c.bf16 %v10656_v8, %v10655_v30  ;;  %v14788_v30 = vld [vmem:[#allocation36 + $0x8] ss:$16 sps:$4 sm:$0xff]   ;;  %v14790_v8 = vld [vmem:[#allocation36 + $0xc] ss:$16 sps:$4 sm:$0xff]  }
0x3d6a   : > { %13902 = vmatmul.mubr.msk.bf16.vlgmr.msra.gmra.mrb[172].mxu1 %vm2290_vm2, %v10657_v19  ;;  %v14796_v19 = vld [vmem:[#allocation36 + $0x2c] ss:$16 sps:$4 sm:$0xff]  }
0x3d6b   : > { %13914 = vmatpush3.bf16.xpose.msra.mxu1 %v10776_v21  ;;  %13915 = vmatprep.mubr.msk.bf16.mxu1 %vm15935_vm0, %v15933_v41  ;;  %v14794_v21 = vld [vmem:[#allocation36 + $0x28] ss:$16 sps:$4 sm:$0xff]  }
0x3d6c   : > { %13925 = vmatprep.subr.bf16.mxu1 %v15933_v41 }
0x3d72   : > { %13916 = vmatmul.mubr.msk.bf16.vlgmr.msra.gmra.mrb[176].mxu1 %vm2240_vm1, %v10769_v24 }
0x3d73   : > { %13929 = vmatprep.mubr.msk.bf16.mxu1 %vm15935_vm0, %v15933_v41  ;;  %13926 = vmatpush3.bf16.msra.mxu1 %v14783_v54  ;;  %v14821_v54 = vld [vmem:[#allocation36 + $0xc0] ss:$16 sps:$4 sm:$0xff]  }
0x3d74   : > { %13927 = vmatprep.subr.bf16.mxu1 %v15933_v41 }
0x3e3d   : > { %v10698_v12 = vpop.f32.mrb[172].mxu1 }
0x3e3e   : > { %v13903_v58 = vpop.f32.mrb[173].mxu1 }
0x3e3f   : > { %v10701_v0 = vpop.f32.mrb[174].mxu1 }
0x3e40   : > { %v10705_v22 = vpack.c.bf16 %v10701_v0, %v10698_v12  ;;  %v13904_v25 = vpop.f32.mrb[175].mxu1 }
0x3e42   : > { %13910 = vmatmul.mubr.msk.bf16.vlgmr.msra.gmra.mrb[148].mxu0 %vm2240_vm1, %v10705_v22 }
0x3e43   : > { %13921 = vmatprep.mubr.msk.bf16.mxu0 %vm15935_vm0, %v15933_v41  ;;  %v14784_v41 = vld [vmem:[#allocation32 + $0x38] sm:$0xff]  }
0x3e44   : > { %13928 = vmatpush3.bf16.msra.mxu1 %v14784_v41 }
0x3e45   : > { %v10812_v44 = vpop.f32.mrb[176].mxu1  ;;  %11232 = vmatprep.subr.bf16.mxu1 %v14790_v8  ;;  %v14840_v8 = vld [vmem:[#allocation38 + $0x88] sm:$0xff]  }
0x3e46   : > { %v10819_v63 = vmul.f32 0.17677669, %v10812_v44  ;;  %v13917_v53 = vpop.f32.mrb[177].mxu1  ;;  %v14799_v44 = vld [vmem:[#allocation36 + $0x44] ss:$16 sps:$4 sm:$0xff]  }
0x3e47   : > { %v10815_v57 = vpop.f32.mrb[178].mxu1  ;;  %v14797_v53 = vld [vmem:[#allocation36 + $0x40] ss:$16 sps:$4 sm:$0xff]  }
0x3e48   : > { %v10820_v38 = vmul.f32 0.17677669, %v10815_v57  ;;  %v13918_v27 = vpop.f32.mrb[179].mxu1  ;;  %v10821_v5 = vsel %vm2290_vm2, %v10819_v63, -inf  ;;  %v14800_v57 = vld [vmem:[#allocation36 + $0x48] ss:$16 sps:$4 sm:$0xff]  }
0x3e49   : > { %10822 = vmax.xlane.f32.xlu1 %v10821_v5  ;;  %v14808_v27 = vld [vmem:[#allocation36 + $0x6c] ss:$16 sps:$4 sm:$0xff]   ;;  %v14803_v5 = vld [vmem:[#allocation36 + $0x60] ss:$16 sps:$4 sm:$0xff]  }
0x3e4a   : > { %v10824_v35 = vsel %vm2290_vm2, %v10820_v38, -inf }
0x3e4b   : > { %10825 = vmax.xlane.f32.xlu0 %v10824_v35  ;;  %v14806_v35 = vld [vmem:[#allocation36 + $0x68] ss:$16 sps:$4 sm:$0xff]  }
0x3ed6   : > { %v10823_v9 = vpop.xlane.xlu1 %10822 }
0x3ed7   : > { %v10827_v28 = vsub.f32 %v10819_v63, %v10823_v9  ;;  %v14802_v63 = vld [vmem:[#allocation36 + $0x4c] ss:$16 sps:$4 sm:$0xff]   ;;  %v14811_v9 = vld [vmem:[#allocation36 + $0x84] ss:$16 sps:$4 sm:$0xff]  }
0x3ed8   : > { %v10826_v11 = vpop.xlane.xlu0 %10825 }
0x3ed9   : > { %v10829_v31 = vmul.f32 1.442695, %v10827_v28  ;;  %v10828_v36 = vsub.f32 %v10820_v38, %v10826_v11  ;;  %v14805_v38 = vld [vmem:[#allocation36 + $0x64] ss:$16 sps:$4 sm:$0xff]   ;;  %v14814_v28 = vld [vmem:[#allocation36 + $0x8c] ss:$16 sps:$4 sm:$0xff]  }
0x3eda   : > { %v14809_v11 = vld [vmem:[#allocation36 + $0x80] ss:$16 sps:$4 sm:$0xff]  }
0x3edb   : > { %15093 = vpow2.f32 %v10829_v31  ;;  %v10831_v32 = vmul.f32 1.442695, %v10828_v36  ;;  %v14812_v31 = vld [vmem:[#allocation36 + $0x88] ss:$16 sps:$4 sm:$0xff]   ;;  %v14817_v36 = vld [vmem:[#allocation36 + $0xa4] ss:$16 sps:$4 sm:$0xff]  }
0x3edd   : > { %15095 = vpow2.f32 %v10831_v32  ;;  %v14820_v32 = vld [vmem:[#allocation36 + $0xac] ss:$16 sps:$4 sm:$0xff]  }
0x3ee5   : > { %v15094_v33 = vpop.eup %15093 }
0x3ee6   : > { %v10833_v34 = vsel %vm2290_vm2, %v15094_v33, 0.0 }
0x3ee7   : > { %v15096_v42 = vpop.eup %15095  ;;  %10834 = vadd.xlane.f32.xlu0 %v10833_v34  ;;  %v14818_v34 = vld [vmem:[#allocation36 + $0xa8] ss:$16 sps:$4 sm:$0xff]  }
0x3ee8   : > { %v10836_v49 = vsel %vm2290_vm2, %v15096_v42, 0.0 }
0x3ee9   : > { %10837 = vadd.xlane.f32.xlu1 %v10836_v49  ;;  %v14826_v49 = vld [vmem:[#allocation36 + $0xcc] ss:$16 sps:$4 sm:$0xff]  }
0x3efd   : > { %10844 = vrot.lane.b32.xlu0 %v17687_v48, %s15938_s10 }
0x3f15   : > { %v10759_v55 = vpop.f32.mrb[148].mxu0 }
0x3f16   : > { %v10766_v7 = vadd.f32 %v10759_v55, %v17745_v50  ;;  %v13911_v29 = vpop.f32.mrb[149].mxu0  ;;  %v14824_v55 = vld [vmem:[#allocation36 + $0xc8] ss:$16 sps:$4 sm:$0xff]  }
0x3f17   : > { %v10762_v59 = vpop.f32.mrb[150].mxu0  ;;  %v14832_v29 = vld [vmem:[#allocation36 + $0xec] ss:$16 sps:$4 sm:$0xff]  }
0x3f18   : > { %v10767_v46 = vadd.f32 %v10762_v59, %v17747_v45  ;;  %v13912_v60 = vpop.f32.mrb[151].mxu0  ;;  %v14827_v59 = vld [vmem:[#allocation36 + $0xe0] ss:$16 sps:$4 sm:$0xff]  }
0x3f74   : > { %v10835_v61 = vpop.xlane.xlu0 %10834 }
0x3f75   : > { %15097 = vrcp.f32 %v10835_v61 }
0x3f76   : > { %v10838_v10 = vpop.xlane.xlu1 %10837 }
0x3f77   : > { %15099 = vrcp.f32 %v10838_v10 }
0x3f78   : > { %v10845_v13 = vpop.permute.xlu0 %10844 }
0x3f79   : > { %13920 = vmatpush3.bf16.msra.mxu0 %v10845_v13 }
0x3f7a   : > { %11189 = vmatprep.subr.bf16.mxu0 %v14787_v47  ;;  %v14838_v47 = vld [vmem:[#allocation38 + $0xc8] sm:$0xff]  }
0x3f7f   : > { %v15098_v14 = vpop.eup %15097 }
0x3f80   : > { %v10841_v15 = vmul.f32 %v15098_v14, %v15094_v33  ;;  %v14815_v33 = vld [vmem:[#allocation36 + $0xa0] ss:$16 sps:$4 sm:$0xff]  }
0x3f81   : > { %v15100_v48 = vpop.eup %15099 }
0x3f82   : > { %v10842_v51 = vmul.f32 %v15100_v48, %v15096_v42  ;;  %v14823_v42 = vld [vmem:[#allocation36 + $0xc4] ss:$16 sps:$4 sm:$0xff]  }
0x3f84   : > { %v10843_v2 = vpack.c.bf16 %v10842_v51, %v10841_v15 }
0x3f86   : > { %13922 = vmatmul.mubr.msk.bf16.vlgmr.msra.gmra.mrb[152].mxu0 %vm2290_vm2, %v10843_v2  ;;  %v12923_v2 = vld [vmem:[#allocation33] ss:$0 sm:$0xff] }
0x3f87   : > { %11221 = vmatprep.mubr.bf16.mxu0 %v15934_v6  ;;  %11190 = vmatpush1.bf16.msra.mxu0 %v14785_v18  ;;  %v14837_v18 = vld [vmem:[#allocation38 + $0x48] sm:$0xff]  }
0x3f88   : > { %11191 = vmatprep.subr.bf16.mxu0 %v14793_v1  ;;  %v14841_v1 = vld [vmem:[#allocation38 + $0x50] sm:$0xff]  }
0x4059   : > { %v10884_v50 = vpop.f32.mrb[152].mxu0 }
0x405a   : > { %v13923_v45 = vpop.f32.mrb[153].mxu0 }
0x405b   : > { %v10887_v62 = vpop.f32.mrb[154].mxu0 }
0x405c   : > { %v10891_v26 = vpack.c.bf16 %v10887_v62, %v10884_v50  ;;  %v13924_v16 = vpop.f32.mrb[155].mxu0  ;;  %v12924_v62 = vld [vmem:[#allocation35] ss:$0 sm:$0xff] }
0x405e   : > { %13930 = vmatmul.mubr.msk.bf16.vlgmr.msra.gmra.mrb[180].mxu1 %vm2240_vm1, %v10891_v26 }
0x405f   : > { %11264 = vmatprep.mubr.bf16.mxu1 %v15934_v6  ;;  %11233 = vmatpush1.bf16.msra.mxu1 %v14788_v30  ;;  %v14839_v30 = vld [vmem:[#allocation38 + $0x8] sm:$0xff]  }
0x4060   : > { %11234 = vmatprep.subr.bf16.mxu1 %v14796_v19  ;;  %v14842_v19 = vld [vmem:[#allocation38 + $0xd0] sm:$0xff]  }
0x4063   : > { %11235 = vmatpush1.bf16.msra.mxu1 %v14794_v21  ;;  %v14844_v21 = vld [vmem:[#allocation38 + $0x90] sm:$0xff]  }
0x4064   : > { %11236 = vmatprep.subr.bf16.mxu1 %v14802_v63  ;;  %v14854_v63 = vld [vmem:[#allocation38 + $0xe8] sm:$0xff]  }
0x4067   : > { %11237 = vmatpush1.bf16.msra.mxu1 %v14800_v57  ;;  %v14856_v57 = vld [vmem:[#allocation38 + $0xa8] sm:$0xff]  }
0x4068   : > { %11238 = vmatprep.subr.bf16.mxu1 %v14808_v27  ;;  %v14858_v27 = vld [vmem:[#allocation38 + $0xf0] sm:$0xff]  }
0x406b   : > { %11239 = vmatpush1.bf16.msra.mxu1 %v14806_v35  ;;  %v14860_v35 = vld [vmem:[#allocation38 + $0xb0] sm:$0xff]  }
0x406c   : > { %11240 = vmatprep.subr.bf16.mxu1 %v14814_v28  ;;  %v14862_v28 = vld [vmem:[#allocation38 + $0xf8] sm:$0xff]  }
0x406f   : > { %11241 = vmatpush1.bf16.msra.mxu1 %v14812_v31  ;;  %v14864_v31 = vld [vmem:[#allocation38 + $0xb8] sm:$0xff]  }
0x4070   : > { %11242 = vmatprep.subr.bf16.mxu1 %v14820_v32 }
0x4073   : > { %11243 = vmatpush1.bf16.msra.mxu1 %v14818_v34 }
0x4074   : > { %11244 = vmatprep.subr.bf16.mxu1 %v14826_v49 }
0x4077   : > { %11245 = vmatpush1.bf16.msra.mxu1 %v14824_v55 }
0x4078   : > { %11246 = vmatprep.subr.bf16.mxu1 %v14832_v29 }
0x4131   : > { %v10945_v17 = vpop.f32.mrb[180].mxu1 }
0x4132   : > { %v10952_v20 = vadd.f32 %v10945_v17, %v10766_v7  ;;  %v13931_v56 = vpop.f32.mrb[181].mxu1  ;;  %v14829_v7 = vld [vmem:[#allocation36 + $0xe4] ss:$16 sps:$4 sm:$0xff]  }
0x4133   : > { %v10948_v23 = vpop.f32.mrb[182].mxu1  ;;  %v14833_v56 = vld [vmem:[#allocation38 + $0x40] sm:$0xff]  }
0x4134   : > { %v17787_v43 = vadd.f32 %v10952_v20, %v17658_v40  ;;  %v10953_v39 = vadd.f32 %v10948_v23, %v10767_v46  ;;  %v13932_v3 = vpop.f32.mrb[183].mxu1  ;;  %v14791_v40 = vld [vmem:[#allocation36 + $0x20] ss:$16 sps:$4 sm:$0xff]   ;;  %v14830_v46 = vld [vmem:[#allocation36 + $0xe8] ss:$16 sps:$4 sm:$0xff]  }
0x4135   : > { %11192 = vmatpush1.bf16.msra.mxu0 %v14791_v40  ;;  %11247 = vmatpush1.bf16.msra.mxu1 %v14830_v46  ;;  %v14834_v23 = vld [vmem:[#allocation38 + $0xc0] sm:$0xff]   ;;  %v14843_v40 = vld [vmem:[#allocation38 + $0x10] sm:$0xff]  }
0x4136   : > { %10958 = vadd.xlane.f32.xlu1 %v17787_v43  ;;  %v17791_v37 = vadd.f32 %v10953_v39, %v17662_v52  ;;  %11193 = vmatprep.subr.bf16.mxu0 %v14799_v44  ;;  %v14835_v39 = vld [vmem:[#allocation38] sm:$0xff]   ;;  %v14853_v44 = vld [vmem:[#allocation38 + $0x68] sm:$0xff]  }
0x4137   : > { %13511 = vmatprep.subr.bf16.mxu1 %v14834_v23  ;;  %v14836_v3 = vld [vmem:[#allocation38 + $0x80] sm:$0xff]  }
0x4139   : > { %11194 = vmatpush1.bf16.msra.mxu0 %v14797_v53  ;;  %v14855_v53 = vld [vmem:[#allocation38 + $0x28] sm:$0xff]  }
0x413a   : > { %10960 = vadd.xlane.f32.xlu1 %v17791_v37  ;;  %11195 = vmatprep.subr.bf16.mxu0 %v14805_v38  ;;  %v14857_v38 = vld [vmem:[#allocation38 + $0x70] sm:$0xff]  }
0x413d   : > { %11196 = vmatpush1.bf16.msra.mxu0 %v14803_v5  ;;  %v14859_v5 = vld [vmem:[#allocation38 + $0x30] sm:$0xff]  }
0x413e   : > { %11197 = vmatprep.subr.bf16.mxu0 %v14811_v9  ;;  %v14861_v9 = vld [vmem:[#allocation38 + $0x78] sm:$0xff]  }
0x4141   : > { %11198 = vmatpush1.bf16.msra.mxu0 %v14809_v11  ;;  %v14863_v11 = vld [vmem:[#allocation38 + $0x38] sm:$0xff]  }
0x4142   : > { %11199 = vmatprep.subr.bf16.mxu0 %v14817_v36 }
0x4145   : > { %11200 = vmatpush1.bf16.msra.mxu0 %v14815_v33 }
0x4146   : > { %11201 = vmatprep.subr.bf16.mxu0 %v14823_v42 }
0x4149   : > { %11202 = vmatpush1.bf16.msra.mxu0 %v14821_v54 }
0x414a   : > { %11203 = vmatprep.subr.bf16.mxu0 %v14829_v7 }
0x414d   : > { %11204 = vmatpush1.bf16.msra.mxu0 %v14827_v59 }
0x414e   : > { %13489 = vmatprep.subr.bf16.mxu0 %v14833_v56 }
0x41c3   : > { %v10959_v52 = vpop.xlane.xlu1 %10958 }
0x41c4   : > { %v10962_v24 = vmul.f32 0.0078125, %v10959_v52  ;;  %v14845_v52 = vld [vmem:[#allocation38 + $0x58] sm:$0xff]  }
0x41c6   : > { %v17795_v4 = vsub.f32 %v17787_v43, %v10962_v24  ;;  %v14846_v24 = vld [vmem:[#allocation38 + $0xd8] sm:$0xff]  }
0x41c7   : > { %v10961_v12 = vpop.xlane.xlu1 %10960 }
0x41c8   : > { %v10963_v58 = vmul.f32 0.0078125, %v10961_v12  ;;  %v10966_v0 = vmul.f32 %v17795_v4, %v17795_v4  ;;  %v14848_v12 = vld [vmem:[#allocation38 + $0x98] sm:$0xff]  }
0x41ca   : > { %v17800_v22 = vsub.f32 %v17791_v37, %v10963_v58  ;;  %10968 = vadd.xlane.f32.xlu1 %v10966_v0  ;;  %v14849_v58 = vld [vmem:[#allocation38 + $0x60] sm:$0xff]  }
0x41cb   : > { %v14850_v0 = vld [vmem:[#allocation38 + $0xe0] sm:$0xff]  }
0x41cc   : > { %v10967_v25 = vmul.f32 %v17800_v22, %v17800_v22 }
0x41ce   : > { %10970 = vadd.xlane.f32.xlu1 %v10967_v25  ;;  %v14852_v25 = vld [vmem:[#allocation38 + $0xa0] sm:$0xff]  }
0x4257   : > { %v10969_v60 = vpop.xlane.xlu1 %10968 }
0x4258   : > { %v10972_v61 = vmul.f32 0.0078125, %v10969_v60 }
0x425a   : > { %v10974_v10 = vadd.f32 1e-05, %v10972_v61 }
0x425b   : > { %v10971_v13 = vpop.xlane.xlu1 %10970 }
0x425c   : > { %15101 = vrsqrt.f32 %v10974_v10  ;;  %v10973_v14 = vmul.f32 0.0078125, %v10971_v13 }
0x425e   : > { %v10975_v48 = vadd.f32 1e-05, %v10973_v14 }
0x4260   : > { %15103 = vrsqrt.f32 %v10975_v48 }
0x4266   : > { %v15102_v15 = vpop.eup %15101 }
0x4267   : > { %v10978_v51 = vmul.f32 %v15102_v15, %v17795_v4  ;;  %v14847_v4 = vld [vmem:[#allocation38 + $0x18] sm:$0xff]  }
0x4269   : > { %v10986_v45 = vmul.f32 %v12923_v2, %v10978_v51 }
0x426a   : > { %v15104_v41 = vpop.eup %15103 }
0x426b   : > { %v10979_v50 = vmul.f32 %v15104_v41, %v17800_v22  ;;  %v10994_v16 = vadd.f32 %v12924_v62, %v10986_v45  ;;  %v14851_v22 = vld [vmem:[#allocation38 + $0x20] sm:$0xff]  }
0x426d   : > { %v10987_v26 = vmul.f32 %v12923_v2, %v10979_v50 }
0x426f   : > { %v10995_v17 = vadd.f32 %v12924_v62, %v10987_v26 }
0x4271   : > { %v10996_v20 = vpack.c.bf16 %v10995_v17, %v10994_v16 }
0x4273   : > { %11222 = vmatmul.mubr.bf16.vlgmr.msra.gmra.mrb[156].mxu0 %v10996_v20  ;;  %11265 = vmatmul.mubr.bf16.vlgmr.msra.gmra.mrb[184].mxu1 %v10996_v20 }
0x4274   : > { %13490 = vmatpush3.bf16.msra.mxu0 %v14835_v39  ;;  %13512 = vmatpush3.bf16.msra.mxu1 %v14836_v3 }
0x4275   : > { %13491 = vmatprep.subr.bf16.mxu0 %v14837_v18  ;;  %13513 = vmatprep.subr.bf16.mxu1 %v14838_v47 }
0x4278   : > { %13492 = vmatpush3.bf16.msra.mxu0 %v14839_v30  ;;  %13514 = vmatpush3.bf16.msra.mxu1 %v14840_v8 }
0x4279   : > { %13493 = vmatprep.subr.bf16.mxu0 %v14841_v1  ;;  %13515 = vmatprep.subr.bf16.mxu1 %v14842_v19 }
0x427c   : > { %13494 = vmatpush3.bf16.msra.mxu0 %v14843_v40  ;;  %13516 = vmatpush3.bf16.msra.mxu1 %v14844_v21 }
0x427d   : > { %13495 = vmatprep.subr.bf16.mxu0 %v14845_v52  ;;  %13517 = vmatprep.subr.bf16.mxu1 %v14846_v24 }
0x4280   : > { %13496 = vmatpush3.bf16.msra.mxu0 %v14847_v4  ;;  %13518 = vmatpush3.bf16.msra.mxu1 %v14848_v12 }
0x4281   : > { %13497 = vmatprep.subr.bf16.mxu0 %v14849_v58  ;;  %13519 = vmatprep.subr.bf16.mxu1 %v14850_v0 }
0x4284   : > { %13498 = vmatpush3.bf16.msra.mxu0 %v14851_v22  ;;  %13520 = vmatpush3.bf16.msra.mxu1 %v14852_v25 }
0x4285   : > { %13499 = vmatprep.subr.bf16.mxu0 %v14853_v44  ;;  %13521 = vmatprep.subr.bf16.mxu1 %v14854_v63 }
0x4288   : > { %13500 = vmatpush3.bf16.msra.mxu0 %v14855_v53  ;;  %13522 = vmatpush3.bf16.msra.mxu1 %v14856_v57 }
0x4289   : > { %13501 = vmatprep.subr.bf16.mxu0 %v14857_v38  ;;  %13523 = vmatprep.subr.bf16.mxu1 %v14858_v27 }
0x428c   : > { %13502 = vmatpush3.bf16.msra.mxu0 %v14859_v5  ;;  %13524 = vmatpush3.bf16.msra.mxu1 %v14860_v35 }
0x428d   : > { %13503 = vmatprep.subr.bf16.mxu0 %v14861_v9  ;;  %13525 = vmatprep.subr.bf16.mxu1 %v14862_v28 }
0x4290   : > { %13504 = vmatpush3.bf16.msra.mxu0 %v14863_v11  ;;  %13526 = vmatpush3.bf16.msra.mxu1 %v14864_v31 }
0x4346   : > { %v17806_v36 = vpop.f32.mrb[156].mxu0  ;;  %v17808_v32 = vpop.f32.mrb[184].mxu1 }
0x4347   : > { %v11275_v33 = vmul.f32 %v17806_v36, %v17806_v36  ;;  %v11277_v34 = vmul.f32 %v17808_v32, %v17808_v32  ;;  %v17814_v42 = vpop.f32.mrb[157].mxu0  ;;  %v17816_v49 = vpop.f32.mrb[185].mxu1 }
0x4348   : > { %v11276_v54 = vmul.f32 %v17814_v42, %v17814_v42  ;;  %v11278_v55 = vmul.f32 %v17816_v49, %v17816_v49  ;;  %v17822_v7 = vpop.f32.mrb[158].mxu0  ;;  %v17824_v29 = vpop.f32.mrb[186].mxu1 }
0x4349   : > { %v11283_v59 = vmul.f32 %v11275_v33, %v17806_v36  ;;  %v11285_v46 = vmul.f32 %v11277_v34, %v17808_v32  ;;  %v11279_v60 = vmul.f32 %v17822_v7, %v17822_v7  ;;  %v11281_v61 = vmul.f32 %v17824_v29, %v17824_v29  ;;  %v17832_v10 = vpop.f32.mrb[159].mxu0  ;;  %v17834_v13 = vpop.f32.mrb[187].mxu1 }
0x434a   : > { %v11284_v14 = vmul.f32 %v11276_v54, %v17814_v42  ;;  %v11286_v48 = vmul.f32 %v11278_v55, %v17816_v49  ;;  %v11280_v15 = vmul.f32 %v17832_v10, %v17832_v10  ;;  %v11282_v51 = vmul.f32 %v17834_v13, %v17834_v13 }
0x434b   : > { %v11291_v2 = vmul.f32 0.044715, %v11283_v59  ;;  %v11293_v41 = vmul.f32 0.044715, %v11285_v46  ;;  %v11287_v50 = vmul.f32 %v11279_v60, %v17822_v7  ;;  %v11289_v45 = vmul.f32 %v11281_v61, %v17824_v29 }
0x434c   : > { %v11292_v62 = vmul.f32 0.044715, %v11284_v14  ;;  %v11294_v26 = vmul.f32 0.044715, %v11286_v48  ;;  %v11288_v16 = vmul.f32 %v11280_v15, %v17832_v10  ;;  %v11290_v17 = vmul.f32 %v11282_v51, %v17834_v13 }
0x434d   : > { %v11299_v20 = vadd.f32 %v11291_v2, %v17806_v36  ;;  %v11301_v56 = vadd.f32 %v11293_v41, %v17808_v32  ;;  %v11295_v23 = vmul.f32 0.044715, %v11287_v50  ;;  %v11297_v39 = vmul.f32 0.044715, %v11289_v45 }
0x434e   : > { %v11300_v3 = vadd.f32 %v11292_v62, %v17814_v42  ;;  %v11302_v18 = vadd.f32 %v11294_v26, %v17816_v49  ;;  %v11296_v47 = vmul.f32 0.044715, %v11288_v16  ;;  %v11298_v30 = vmul.f32 0.044715, %v11290_v17 }
0x434f   : > { %v11307_v8 = vmul.f32 0.7978846, %v11299_v20  ;;  %v11309_v1 = vmul.f32 0.7978846, %v11301_v56  ;;  %v11303_v19 = vadd.f32 %v11295_v23, %v17822_v7  ;;  %v11305_v40 = vadd.f32 %v11297_v39, %v17824_v29 }
0x4350   : > { %v11308_v21 = vmul.f32 0.7978846, %v11300_v3  ;;  %v11310_v52 = vmul.f32 0.7978846, %v11302_v18  ;;  %v11304_v24 = vadd.f32 %v11296_v47, %v17832_v10  ;;  %v11306_v4 = vadd.f32 %v11298_v30, %v17834_v13 }
0x4351   : > { %15105 = vtanh.f32 %v11307_v8  ;;  %v11311_v12 = vmul.f32 0.7978846, %v11303_v19  ;;  %v11313_v58 = vmul.f32 0.7978846, %v11305_v40  ;;  %v14867_v40 = vld [vmem:[#allocation39 + $0x4] ss:$8 sps:$4 sm:$0xff]  }
0x4352   : > { %15107 = vtanh.f32 %v11309_v1  ;;  %v11312_v0 = vmul.f32 0.7978846, %v11304_v24  ;;  %v11314_v22 = vmul.f32 0.7978846, %v11306_v4  ;;  %11828 = vmatprep.subr.bf16.mxu0 %v14867_v40 }
0x4353   : > { %15109 = vtanh.f32 %v11308_v21  ;;  %v14870_v21 = vld [vmem:[#allocation39 + $0x14] ss:$8 sps:$4 sm:$0xff]  }
0x4354   : > { %15111 = vtanh.f32 %v11310_v52  ;;  %v14868_v52 = vld [vmem:[#allocation39 + $0x10] ss:$8 sps:$4 sm:$0xff]  }
0x4355   : > { %15113 = vtanh.f32 %v11311_v12 }
0x4356   : > { %15115 = vtanh.f32 %v11313_v58 }
0x4357   : > { %15117 = vtanh.f32 %v11312_v0 }
0x4358   : > { %15119 = vtanh.f32 %v11314_v22 }
0x435b   : > { %v15106_v25 = vpop.eup %15105 }
0x435c   : > { %v15108_v44 = vpop.eup %15107  ;;  %v11323_v63 = vadd.f32 1.0, %v15106_v25 }
0x435d   : > { %v15110_v53 = vpop.eup %15109  ;;  %v11325_v57 = vadd.f32 1.0, %v15108_v44  ;;  %v14871_v44 = vld [vmem:[#allocation39 + $0x20] ss:$8 sps:$4 sm:$0xff]  }
0x435e   : > { %v15112_v38 = vpop.eup %15111  ;;  %v11324_v27 = vadd.f32 1.0, %v15110_v53  ;;  %v11331_v28 = vmul.f32 0.5, %v11323_v63  ;;  %v14876_v63 = vld [vmem:[#allocation39 + $0x34] ss:$8 sps:$4 sm:$0xff]   ;;  %v14874_v53 = vld [vmem:[#allocation39 + $0x30] ss:$8 sps:$4 sm:$0xff]  }
0x435f   : > { %v15114_v5 = vpop.eup %15113  ;;  %v11326_v35 = vadd.f32 1.0, %v15112_v38  ;;  %v11333_v33 = vmul.f32 0.5, %v11325_v57  ;;  %v14879_v57 = vld [vmem:[#allocation39 + $0x44] ss:$8 sps:$4 sm:$0xff]   ;;  %v14877_v38 = vld [vmem:[#allocation39 + $0x40] ss:$8 sps:$4 sm:$0xff]  }
0x4360   : > { %v15116_v9 = vpop.eup %15115  ;;  %v11327_v11 = vadd.f32 1.0, %v15114_v5  ;;  %v11332_v55 = vmul.f32 0.5, %v11324_v27  ;;  %v11339_v48 = vmul.f32 %v11331_v28, %v17806_v36  ;;  %v14882_v27 = vld [vmem:[#allocation39 + $0x54] ss:$8 sps:$4 sm:$0xff]   ;;  %v14880_v5 = vld [vmem:[#allocation39 + $0x50] ss:$8 sps:$4 sm:$0xff]  }
0x4361   : > { %v15118_v31 = vpop.eup %15117  ;;  %v11329_v34 = vadd.f32 1.0, %v15116_v9  ;;  %v11334_v60 = vmul.f32 0.5, %v11326_v35  ;;  %v11341_v2 = vmul.f32 %v11333_v33, %v17808_v32  ;;  %v14885_v35 = vld [vmem:[#allocation39 + $0x64] ss:$8 sps:$4 sm:$0xff]   ;;  %v14883_v9 = vld [vmem:[#allocation39 + $0x60] ss:$8 sps:$4 sm:$0xff]  }
0x4362   : > { %v15120_v54 = vpop.eup %15119  ;;  %v11335_v59 = vmul.f32 0.5, %v11327_v11  ;;  %v11328_v46 = vadd.f32 1.0, %v15118_v31  ;;  %v11340_v45 = vmul.f32 %v11332_v55, %v17814_v42  ;;  %v14888_v28 = vld [vmem:[#allocation39 + $0x74] ss:$8 sps:$4 sm:$0xff]   ;;  %v14886_v11 = vld [vmem:[#allocation39 + $0x70] ss:$8 sps:$4 sm:$0xff]  }
0x4363   : > { %v11337_v61 = vmul.f32 0.5, %v11329_v34  ;;  %v11330_v14 = vadd.f32 1.0, %v15120_v54  ;;  %v11342_v16 = vmul.f32 %v11334_v60, %v17816_v49 }
0x4364   : > { %v11343_v15 = vmul.f32 %v11335_v59, %v17822_v7  ;;  %v11336_v51 = vmul.f32 0.5, %v11328_v46 }
0x4365   : > { %v11345_v41 = vmul.f32 %v11337_v61, %v17824_v29  ;;  %v11338_v50 = vmul.f32 0.5, %v11330_v14  ;;  %v12989_v61 = vld [vmem:[%s16153_s3] ss:$0 sm:$0xff] }
0x4366   : > { %v11344_v62 = vmul.f32 %v11336_v51, %v17832_v10  ;;  %v11347_v26 = vpack.c.bf16 %v11343_v15, %v11339_v48  ;;  %v12990_v51 = vld [vmem:[%s16158_s9] ss:$0 sm:$0xff] }
0x4367   : > { %v11346_v17 = vmul.f32 %v11338_v50, %v17834_v13  ;;  %v11349_v20 = vpack.c.bf16 %v11345_v41, %v11341_v2 }
0x4368   : > { %v11348_v56 = vpack.c.bf16 %v11344_v62, %v11340_v45 }
0x4369   : > { %v11350_v36 = vpack.c.bf16 %v11346_v17, %v11342_v16 }
0x436a   : > { %11639 = vmatprep.mubr.bf16.mxu0 %v11348_v56 }
0x436b   : > { %11680 = vmatprep.mubr.bf16.mxu1 %v11350_v36  ;;  %11640 = vmatmul.mubr.bf16.vlgmr.msra.gmra.mrb[160].mxu0 %v11347_v26 }
0x436c   : > { %11681 = vmatmul.mubr.bf16.vlgmr.msra.gmra.mrb[188].mxu1 %v11349_v20  ;;  %11860 = vmatprep.mubr.bf16.mxu0 %v15934_v6  ;;  %v14865_v6 = vld [vmem:[#allocation39] ss:$8 sps:$4 sm:$0xff]  }
0x436d   : > { %11829 = vmatpush1.bf16.msra.mxu0 %v14865_v6 }
0x436e   : > { %11830 = vmatprep.subr.bf16.mxu0 %v14870_v21 }
0x4371   : > { %11831 = vmatpush1.bf16.msra.mxu0 %v14868_v52 }
0x443e   : > { %v13505_v32 = vpop.f32.mrb[160].mxu0 }
0x443f   : > { %v13527_v7 = vpop.f32.mrb[188].mxu1  ;;  %v13506_v29 = vpop.f32.mrb[161].mxu0 }
0x4440   : > { %v13507_v42 = vadd.f32 %v13506_v29, %v13505_v32  ;;  %v13528_v23 = vpop.f32.mrb[189].mxu1  ;;  %v13508_v10 = vpop.f32.mrb[162].mxu0 }
0x4441   : > { %v13529_v39 = vadd.f32 %v13528_v23, %v13527_v7  ;;  %v13530_v3 = vpop.f32.mrb[190].mxu1  ;;  %v13509_v49 = vpop.f32.mrb[163].mxu0 }
0x4442   : > { %v13510_v18 = vadd.f32 %v13509_v49, %v13508_v10  ;;  %v13531_v13 = vpop.f32.mrb[191].mxu1 }
0x4443   : > { %v11683_v47 = vadd.f32 %v13529_v39, %v13507_v42  ;;  %v13532_v30 = vadd.f32 %v13531_v13, %v13530_v3 }
0x4445   : > { %v11686_v8 = vadd.f32 %v13532_v30, %v13510_v18  ;;  %v11689_v1 = vadd.f32 %v11683_v47, %v17787_v43 }
0x4447   : > { %11693 = vadd.xlane.f32.xlu1 %v11689_v1  ;;  %v11690_v19 = vadd.f32 %v11686_v8, %v17791_v37  ;;  %v14873_v37 = vld [vmem:[#allocation39 + $0x24] ss:$8 sps:$4 sm:$0xff]  }
0x4448   : > { %11832 = vmatprep.subr.bf16.mxu0 %v14873_v37 }
0x4449   : > { %11833 = vmatpush1.bf16.msra.mxu0 %v14871_v44 }
0x444a   : > { %11834 = vmatprep.subr.bf16.mxu0 %v14876_v63 }
0x444b   : > { %11695 = vadd.xlane.f32.xlu1 %v11690_v19 }
0x444d   : > { %11835 = vmatpush1.bf16.msra.mxu0 %v14874_v53 }
0x444e   : > { %11836 = vmatprep.subr.bf16.mxu0 %v14879_v57 }
0x4451   : > { %11837 = vmatpush1.bf16.msra.mxu0 %v14877_v38 }
0x4452   : > { %11838 = vmatprep.subr.bf16.mxu0 %v14882_v27 }
0x4455   : > { %11839 = vmatpush1.bf16.msra.mxu0 %v14880_v5 }
0x4456   : > { %11840 = vmatprep.subr.bf16.mxu0 %v14885_v35 }
0x4459   : > { %11841 = vmatpush1.bf16.msra.mxu0 %v14883_v9 }
0x445a   : > { %11842 = vmatprep.subr.bf16.mxu0 %v14888_v28 }
0x445d   : > { %11843 = vmatpush1.bf16.msra.mxu0 %v14886_v11 }
0x44d4   : > { %v11694_v24 = vpop.xlane.xlu1 %11693 }
0x44d5   : > { %v11697_v4 = vmul.f32 0.0078125, %v11694_v24 }
0x44d7   : > { %v11699_v12 = vsub.f32 %v11689_v1, %v11697_v4 }
0x44d8   : > { %v11696_v58 = vpop.xlane.xlu1 %11695 }
0x44d9   : > { %v11698_v0 = vmul.f32 0.0078125, %v11696_v58  ;;  %v11701_v22 = vmul.f32 %v11699_v12, %v11699_v12 }
0x44db   : > { %v11700_v25 = vsub.f32 %v11690_v19, %v11698_v0  ;;  %11703 = vadd.xlane.f32.xlu0 %v11701_v22 }
0x44dd   : > { %v11702_v43 = vmul.f32 %v11700_v25, %v11700_v25 }
0x44df   : > { %11705 = vadd.xlane.f32.xlu1 %v11702_v43 }
0x4568   : > { %v11704_v31 = vpop.xlane.xlu0 %11703 }
0x4569   : > { %v11707_v33 = vmul.f32 0.0078125, %v11704_v31 }
0x456b   : > { %v11709_v34 = vadd.f32 1e-05, %v11707_v33 }
0x456c   : > { %v11706_v54 = vpop.xlane.xlu1 %11705 }
0x456d   : > { %15121 = vrsqrt.f32 %v11709_v34  ;;  %v11708_v55 = vmul.f32 0.0078125, %v11706_v54 }
0x456f   : > { %v11710_v59 = vadd.f32 1e-05, %v11708_v55 }
0x4571   : > { %15123 = vrsqrt.f32 %v11710_v59 }
0x4577   : > { %v15122_v46 = vpop.eup %15121 }
0x4578   : > { %v11713_v60 = vmul.f32 %v15122_v46, %v11699_v12 }
0x457a   : > { %v11721_v15 = vmul.f32 %v12989_v61, %v11713_v60 }
0x457b   : > { %v15124_v14 = vpop.eup %15123 }
0x457c   : > { %v11714_v48 = vmul.f32 %v15124_v14, %v11700_v25  ;;  %v11729_v41 = vadd.f32 %v12990_v51, %v11721_v15 }
0x457e   : > { %v11722_v2 = vmul.f32 %v12989_v61, %v11714_v48 }
0x4580   : > { %v11730_v50 = vadd.f32 %v12990_v51, %v11722_v2 }
0x4582   : > { %v11731_v45 = vpack.c.bf16 %v11730_v50, %v11729_v41 }
0x4584   : > { %11861 = vmatmul.mubr.bf16.vlgmr.msra.gmra.mrb[164].mxu0 %v11731_v45 }
0x4657   : > { %v11862_v62 = vpop.f32.mrb[164].mxu0 }
0x4658   : > { %11871 = vst [vmem:[%s1664_s11] sm:$0xff] %v11862_v62  ;;  %v11864_v26 = vpop.f32.mrb[165].mxu0 }
0x4659   : > { %11872 = vst [vmem:[%s1664_s11 + $0x8] sm:$0xff] %v11864_v26  ;;  %v11866_v16 = vpop.f32.mrb[166].mxu0 }
0x465a   : > { %11873 = vst [vmem:[%s1664_s11 + $0x10] sm:$0xff] %v11866_v16  ;;  %v11868_v17 = vpop.f32.mrb[167].mxu0 }
0x465b   : > { %11874 = vst [vmem:[%s1664_s11 + $0x18] sm:$0xff] %v11868_v17 }
0x465c PF: > { %s112_s28 = sadd.s32 1, %s15855_s28  }
0x465d   : > { %p109_p7 = scmp.ge.s32.totalorder %s112_s28, 4  }
0x465f   :  { %111 = sbr.rel (!%p109_p7) target bundleno = 94 (0x5e), region = 367 }
0x4666   :  { %11899 = vsyncpa [#allocation5], 1 }
0x4667   :  { %11901 = vsyncpa [#allocation5 + $0x1], 1 }
0x4668   :  { %11902 = vsyncpa [#allocation7], 1 }
0x4669   :  { %11903 = vsyncpa [#allocation10], 1 }
0x466a   :  { %11904 = vsyncpa [#allocation13], 1 }
0x466b   :  { %11905 = vsyncpa [#allocation16], 1 }
0x466c   :  { %11906 = vsyncpa [#allocation19], 1 }
0x466d   :  { %11907 = vsyncpa [#allocation22], 1 }
0x466e   :  { %11908 = vsyncpa [#allocation25], 1 }
0x466f   :  { %11909 = vsyncpa [#allocation28], 1 }
0x4670   :  { %11910 = vsyncpa [#allocation31], 1 }
0x4671   :  { %11911 = vsyncpa [#allocation34], 1 }
0x4672   :  { %11912 = vsyncpa [#allocation37], 1 }
0x4673   :  { %11913 = vsyncpa [#allocation40], 1 }

</bundles_post_ra>
